<compile_context>
chip_gen: v6e
topology: v6e:2x2x1
jax: 0.10.0
libtpu: 0.0.40
codegen_flags: <defaults>
</compile_context>

<pallas_src>
import jax
import jax.numpy as jnp
from jax.experimental import pallas as pl
from jax.experimental.pallas import tpu as pltpu

BN_EPS = 1e-5


def _round_up(x, m):
    return (x + m - 1) // m * m


def _pad_channels(c):
    # Lane-dense (multiple of 128) only when there are enough channels to fill
    # a lane tile; small-channel layers keep their (rounded) true width so the
    # intermediate tensors are not inflated (perf-review item 9).
    return _round_up(c, 128) if c >= 128 else _round_up(c, 8)


# ---------------- Pallas kernels ----------------

def _make_conv_kernel(Wp, W, L, base, apply_act, chunk_rows):
    """3x3 'same' conv over a flattened padded image + per-image BN partials.

    Flat layouts (per image, channels on lanes):
      * source buffer S: effective padded image `padded[i, j]` (i in [0,H+2),
        j in [0,Wp)) lives at flat row  base + i*Wp + j  and is ZERO on the ring.
      * output (compact): conv result for pixel-row r = y*Wp + x, x in [0, Wp);
        the two x >= W columns are junk and are zeroed (they double as the next
        layer's left/right zero padding).
    Tap (ky,kx) of output row r therefore reads S[base + r + ky*Wp + kx]; the
    nine windows are lane-concatenated into a (rows, 9*Cin) lhs and fed to ONE
    MXU matmul (K = 9*Cin), chunked along rows to bound live f32 results.
    """
    chunks = [(c0, min(chunk_rows, L - c0)) for c0 in range(0, L, chunk_rows)]

    def _conv_from(src_ref, w_ref, y_ref, psum_ref, psq_ref):
        psum = jnp.zeros(psum_ref.shape, jnp.float32)
        psq = jnp.zeros(psq_ref.shape, jnp.float32)
        for c0, cs in chunks:
            # (cs, 9*Cin) bf16 im2col block built from 9 shifted row windows.
            lhs = jnp.concatenate(
                [src_ref[pl.ds(base + c0 + ky * Wp + kx, cs), :]
                 for ky in range(3) for kx in range(3)],
                axis=1)
            acc = jnp.dot(lhs, w_ref[...], preferred_element_type=jnp.float32)
            # In-kernel iota mask for the 2 padded-width columns per image row
            # (keeps them out of the BN statistics and stores exact zeros).
            col = (c0 + jax.lax.broadcasted_iota(jnp.int32, (cs, 1), 0)) % Wp
            accm = jnp.where(col < W, acc, 0.0)
            y_ref[pl.ds(c0, cs), :] = accm.astype(y_ref.dtype)
            psum = psum + jnp.sum(accm, axis=0, keepdims=True)
            psq = psq + jnp.sum(accm * accm, axis=0, keepdims=True)
        psum_ref[...] = psum
        psq_ref[...] = psq

    if not apply_act:
        # Layer-1 flavour: the operand is already a zero-padded image in the
        # "extended" flat layout -> slice it directly, no staging copy.
        def kernel(x_ref, w_ref, y_ref, psum_ref, psq_ref):
            _conv_from(x_ref, w_ref, y_ref, psum_ref, psq_ref)
        return kernel

    offw = base + Wp + 1          # aligned row where the image starts in scratch

    def kernel(x_ref, w_ref, scale_ref, shift_ref, y_ref, psum_ref, psq_ref,
               a_ref):
        # Fused BatchNorm+ReLU of the PREVIOUS layer, applied while the tile is
        # already in VMEM (saves a full standalone BN+ReLU HBM pass), then
        # re-centred into a zero-guarded scratch so the nine im2col windows see
        # correct zero padding at the image border.
        a_ref[...] = jnp.zeros(a_ref.shape, a_ref.dtype)
        x = x_ref[...].astype(jnp.float32)
        act = jnp.maximum(x * scale_ref[...] + shift_ref[...], 0.0)
        col = jax.lax.broadcasted_iota(jnp.int32, (L, 1), 0) % Wp
        act = jnp.where(col < W, act, 0.0)          # padding columns stay zero
        a_ref[pl.ds(offw, L), :] = act.astype(a_ref.dtype)
        _conv_from(a_ref, w_ref, y_ref, psum_ref, psq_ref)

    return kernel


def _bn_relu_kernel(y_ref, scale_ref, shift_ref, o_ref):
    """Standalone fused BatchNorm (folded scale/shift) + ReLU (final layer)."""
    y = y_ref[...].astype(jnp.float32)
    o_ref[...] = jnp.maximum(y * scale_ref[...] + shift_ref[...], 0.0
                             ).astype(o_ref.dtype)


# ---------------- pallas_call wrappers ----------------

def _conv3x3_bn_stats(a, wmat, H, W, in_scale=None, in_shift=None):
    """Conv3x3 ('same', no bias) over all images -> pre-BN compact output +
    per-image BN partial statistics.

    a:    (N, P, Cin) bf16.  If `in_scale` is None: zero-padded "extended"
          layout ((H+3)*(W+2) rows, pixel (y,x) at (y+1)*(W+2)+(x+1)).
          Otherwise: the previous layer's compact pre-BN output (H*(W+2) rows);
          BN+ReLU (in_scale/in_shift) is fused into the load.
    wmat: (9*Cin, Cout_pad) bf16 packed weights.
    """
    N, Pin, Cin = a.shape
    K9, Cout_p = wmat.shape
    assert K9 == 9 * Cin
    Wp = W + 2
    L = H * Wp
    apply_act = in_scale is not None

    # Output-channel tile: full width (single resident weight block) when it
    # fits comfortably; 256 wide otherwise (fills the v6e/v7x MXU N dimension).
    if Cout_p <= 512:
        TN = Cout_p
    elif Cout_p % 256 == 0:
        TN = 256
    else:
        TN = 128
    nJ = Cout_p // TN
    chunk_rows = 512 if TN < 128 else 256   # bounds the live f32 matmul result

    if apply_act:
        assert Pin == L
        offw = _round_up(Wp + 1, 16)                  # aligned scratch offset
        base = offw - (Wp + 1)
        p2 = _round_up(offw + (H + 1) * Wp + 2, 8)    # covers max tap read
        scratch_shapes = [pltpu.VMEM((p2, Cin), jnp.bfloat16)]
    else:
        assert Pin >= (H + 2) * Wp + 2
        base = 0
        scratch_shapes = []

    kernel = _make_conv_kernel(Wp, W, L, base, apply_act, chunk_rows)

    in_specs = [pl.BlockSpec((None, Pin, Cin), lambda j, n: (n, 0, 0)),
                # Weight block index depends only on j (OUTER grid axis) =>
                # each weight tile is DMA'd once, not once per image.
                pl.BlockSpec((K9, TN), lambda j, n: (0, j))]
    operands = [a, wmat]
    if apply_act:
        in_specs += [pl.BlockSpec((1, Cin), lambda j, n: (0, 0)),
                     pl.BlockSpec((1, Cin), lambda j, n: (0, 0))]
        operands += [in_scale, in_shift]

    flops = 2 * N * L * K9 * Cout_p
    bytes_accessed = (a.size * 2 * nJ + wmat.size * 2
                      + N * L * Cout_p * 2 + 2 * N * Cout_p * 4)

    y, psum, psq = pl.pallas_call(
        kernel,
        out_shape=(jax.ShapeDtypeStruct((N, L, Cout_p), jnp.bfloat16),
                   jax.ShapeDtypeStruct((N, 1, Cout_p), jnp.float32),
                   jax.ShapeDtypeStruct((N, 1, Cout_p), jnp.float32)),
        grid=(nJ, N),
        in_specs=in_specs,
        out_specs=(pl.BlockSpec((None, L, TN), lambda j, n: (n, 0, j)),
                   pl.BlockSpec((None, 1, TN), lambda j, n: (n, 0, j)),
                   pl.BlockSpec((None, 1, TN), lambda j, n: (n, 0, j))),
        scratch_shapes=scratch_shapes,
        compiler_params=pltpu.CompilerParams(
            dimension_semantics=("parallel", "parallel")),
        cost_estimate=pl.CostEstimate(flops=flops, transcendentals=0,
                                      bytes_accessed=bytes_accessed),
    )(*operands)
    return y, psum, psq


def _bn_relu(y, scale, shift):
    """Final standalone BN+ReLU: full-width, whole-image blocks (HBM-bound)."""
    N, L, C = y.shape
    return pl.pallas_call(
        _bn_relu_kernel,
        out_shape=jax.ShapeDtypeStruct((N, L, C), jnp.float32),
        grid=(N,),
        in_specs=[pl.BlockSpec((None, L, C), lambda n: (n, 0, 0)),
                  pl.BlockSpec((1, C), lambda n: (0, 0)),
                  pl.BlockSpec((1, C), lambda n: (0, 0))],
        out_specs=pl.BlockSpec((None, L, C), lambda n: (n, 0, 0)),
        compiler_params=pltpu.CompilerParams(
            dimension_semantics=("parallel",)),
    )(y, scale, shift)


# ---------------- JAX glue ----------------

def _fold_bn(psum, psq, gamma, beta, count, cpad):
    """Fold training-mode batch statistics into per-channel scale/shift."""
    s = jnp.sum(psum[:, 0, :], axis=0)
    q = jnp.sum(psq[:, 0, :], axis=0)
    mean = s / count
    # Biased batch variance (what BatchNorm normalises with); clamp the
    # E[x^2]-E[x]^2 cancellation.
    var = jnp.maximum(q / count - mean * mean, 0.0)
    g = jnp.pad(gamma.astype(jnp.float32), (0, cpad - gamma.shape[0]))
    b = jnp.pad(beta.astype(jnp.float32), (0, cpad - beta.shape[0]))
    scale = g * jax.lax.rsqrt(var + BN_EPS)
    shift = b - mean * scale
    return scale.reshape(1, cpad), shift.reshape(1, cpad)


def _pack_weights(w_oihw, cin_stored, cout_stored):
    """OIHW -> (9*cin_stored, cout_stored) bf16; K index = (ky*3+kx)*Cin + ci."""
    cout, cin, kh, kw = w_oihw.shape
    w = jnp.transpose(w_oihw, (2, 3, 1, 0))            # (3, 3, Cin, Cout)
    w = jnp.pad(w, ((0, 0), (0, 0), (0, cin_stored - cin),
                    (0, cout_stored - cout)))
    return w.reshape(kh * kw * cin_stored, cout_stored).astype(jnp.bfloat16)


def _to_ext_layout(x_nhwc):
    """NHWC -> (N, (H+3)*(W+2), C): zero ring + guard rows; pixel (y,x) at flat
    row (y+1)*(W+2)+(x+1).  One cheap pad; no overlapping-tile HBM restaging."""
    n, h, w, c = x_nhwc.shape
    xp = jnp.pad(x_nhwc, ((0, 0), (1, 2), (1, 1), (0, 0)))
    return xp.reshape(n, (h + 3) * (w + 2), c)


def _from_compact_layout(y, H, W, cout):
    """(N, H*(W+2), C) compact layout -> NHWC, dropping pad columns/channels."""
    n = y.shape[0]
    return y.reshape(n, H, W + 2, -1)[:, :, :W, :cout]


def double_conv(x_nchw, params):
    """Matches DoubleConv.forward: NCHW in/out (BatchNorm uses batch stats)."""
    x = jnp.transpose(x_nchw, (0, 2, 3, 1))            # NCHW -> NHWC
    n, h, w, cin = x.shape
    cmid = params["w1"].shape[0]
    cout = params["w2"].shape[0]
    cmid_p = _pad_channels(cmid)
    cout_p = _pad_channels(cout)
    count = n * h * w

    a1 = _to_ext_layout(x.astype(jnp.bfloat16))
    w1 = _pack_weights(params["w1"], cin, cmid_p)
    w2 = _pack_weights(params["w2"], cmid_p, cout_p)

    # conv1 (pre-BN) + batch statistics
    y1, s1, q1 = _conv3x3_bn_stats(a1, w1, h, w)
    scale1, shift1 = _fold_bn(s1, q1, params["gamma1"], params["beta1"],
                              count, cmid_p)
    # conv2 with layer-1's BN+ReLU fused into its input load
    y2, s2, q2 = _conv3x3_bn_stats(y1, w2, h, w, scale1, shift1)
    scale2, shift2 = _fold_bn(s2, q2, params["gamma2"], params["beta2"],
                              count, cout_p)
    # final standalone BN + ReLU
    out = _bn_relu(y2, scale2, shift2)
    out = _from_compact_layout(out, h, w, cout)
    return jnp.transpose(out, (0, 3, 1, 2))            # NHWC -> NCHW


# ---------------- pure-JAX reference (for a loose sanity check) ----------------

def _reference_double_conv(x_nchw, params):
    def block(x, wgt, g, b):
        y = jax.lax.conv_general_dilated(
            x, wgt, window_strides=(1, 1), padding="SAME",
            dimension_numbers=("NCHW", "OIHW", "NCHW"),
            precision=jax.lax.Precision.HIGHEST)
        mean = jnp.mean(y, axis=(0, 2, 3), keepdims=True)
        var = jnp.mean((y - mean) ** 2, axis=(0, 2, 3), keepdims=True)
        yn = (y - mean) * jax.lax.rsqrt(var + BN_EPS)
        yn = yn * g.reshape(1, -1, 1, 1) + b.reshape(1, -1, 1, 1)
        return jnp.maximum(yn, 0.0)

    hmid = block(x_nchw, params["w1"], params["gamma1"], params["beta1"])
    return block(hmid, params["w2"], params["gamma2"], params["beta2"])


# ---------------- demo ----------------

if __name__ == "__main__":
    N, C_IN, H, W = 2, 4, 16, 16
    C_MID = C_OUT = 8          # mid_channels defaults to out_channels

    key = jax.random.PRNGKey(0)
    kx, k1, k2 = jax.random.split(key, 3)

    x = jax.random.normal(kx, (N, C_IN, H, W), dtype=jnp.float32)

    params = {
        # Conv2d weights in PyTorch OIHW layout, no bias.
        "w1": jax.random.normal(k1, (C_MID, C_IN, 3, 3), dtype=jnp.float32) * 0.1,
        "w2": jax.random.normal(k2, (C_OUT, C_MID, 3, 3), dtype=jnp.float32) * 0.1,
        # BatchNorm2d default init: weight=1, bias=0.
        "gamma1": jnp.ones((C_MID,), jnp.float32),
        "beta1": jnp.zeros((C_MID,), jnp.float32),
        "gamma2": jnp.ones((C_OUT,), jnp.float32),
        "beta2": jnp.zeros((C_OUT,), jnp.float32),
    }

    out = jax.jit(double_conv)(x, params)
    out = jax.block_until_ready(out)

    assert out.shape == (N, C_OUT, H, W)
    assert bool(jnp.all(jnp.isfinite(out)))
    assert bool(jnp.all(out >= 0.0))            # ReLU output

    ref = _reference_double_conv(x, params)
    assert bool(jnp.allclose(out, ref, rtol=0.05, atol=0.05)), (
        "mismatch vs f32 reference: max |diff| = "
        f"{float(jnp.max(jnp.abs(out - ref)))}")

    print("KERNEL_OK")
</pallas_src>

<mosaic_0001>
module attributes {stable_mosaic.version = 11 : i64} {
  func.func @kernel(%arg0: i32, %arg1: i32, %arg2: memref<1x288x8xbf16, #tpu.memory_space<vmem>>, %arg3: memref<72x8xbf16, #tpu.memory_space<vmem>>, %arg4: memref<1x8xf32, #tpu.memory_space<vmem>>, %arg5: memref<1x8xf32, #tpu.memory_space<vmem>>, %arg6: memref<1x288x8xbf16, #tpu.memory_space<vmem>>, %arg7: memref<1x1x8xf32, #tpu.memory_space<vmem>>, %arg8: memref<1x1x8xf32, #tpu.memory_space<vmem>>, %arg9: memref<344x8xbf16, #tpu.memory_space<vmem>>) attributes {dimension_semantics = [#tpu.dimension_semantics<parallel>, #tpu.dimension_semantics<parallel>], iteration_bounds = array<i64: 1, 2>, scalar_prefetch = 0 : i64, scratch_operands = 1 : i64, tpu.core_type = #tpu.core_type<tc>, window_params = [{transform_indices = @transform_0, window_bounds = array<i64: 1, 288, 8>}, {transform_indices = @transform_1, window_bounds = array<i64: 72, 8>}, {pipeline_mode = #tpu.pipeline_mode<synchronous>, transform_indices = @transform_2, window_bounds = array<i64: 1, 8>}, {pipeline_mode = #tpu.pipeline_mode<synchronous>, transform_indices = @transform_3, window_bounds = array<i64: 1, 8>}, {transform_indices = @transform_4, window_bounds = array<i64: 1, 288, 8>}, {transform_indices = @transform_5, window_bounds = array<i64: 1, 1, 8>}, {transform_indices = @transform_6, window_bounds = array<i64: 1, 1, 8>}]} {
    %cst = arith.constant 0.000000e+00 : bf16
    %0 = vector.broadcast %cst : bf16 to vector<344x8xbf16>
    %c0 = arith.constant 0 : index
    %c0_0 = arith.constant 0 : index
    %1 = vector.load %arg9[%c0, %c0_0] : memref<344x8xbf16, #tpu.memory_space<vmem>>, vector<344x8xbf16>
    tpu.vector_store %arg9[%c0, %c0_0], %0 {strides = array<i32>} : memref<344x8xbf16, #tpu.memory_space<vmem>>, vector<344x8xbf16>,
    %c0_1 = arith.constant 0 : index
    %c0_2 = arith.constant 0 : index
    %c0_3 = arith.constant 0 : index
    %2 = vector.load %arg2[%c0_1, %c0_2, %c0_3] : memref<1x288x8xbf16, #tpu.memory_space<vmem>>, vector<1x288x8xbf16>
    %3 = vector.shape_cast %2 : vector<1x288x8xbf16> to vector<288x8xbf16>
    %4 = arith.extf %3 : vector<288x8xbf16> to vector<288x8xf32>
    %c0_4 = arith.constant 0 : index
    %c0_5 = arith.constant 0 : index
    %5 = vector.load %arg4[%c0_4, %c0_5] : memref<1x8xf32, #tpu.memory_space<vmem>>, vector<1x8xf32>
    %6 = vector.broadcast %5 : vector<1x8xf32> to vector<288x8xf32>
    %7 = arith.mulf %4, %6 : vector<288x8xf32>
    %c0_6 = arith.constant 0 : index
    %c0_7 = arith.constant 0 : index
    %8 = vector.load %arg5[%c0_6, %c0_7] : memref<1x8xf32, #tpu.memory_space<vmem>>, vector<1x8xf32>
    %9 = vector.broadcast %8 : vector<1x8xf32> to vector<288x8xf32>
    %10 = arith.addf %7, %9 : vector<288x8xf32>
    %cst_8 = arith.constant 0.000000e+00 : f32
    %11 = vector.broadcast %cst_8 : f32 to vector<288x8xf32>
    %12 = arith.maximumf %10, %11 : vector<288x8xf32>
    %13 = tpu.iota {dimensions = array<i32: 0>} : vector<288x1xi32>
    %c18_i32 = arith.constant 18 : i32
    %c0_i32 = arith.constant 0 : i32
    %14 = arith.cmpi eq, %c18_i32, %c0_i32 : i32
    %c1_i32 = arith.constant 1 : i32
    %15 = arith.select %14, %c1_i32, %c18_i32 : i32
    %16 = vector.broadcast %15 : i32 to vector<288x1xi32>
    %17 = arith.remsi %13, %16 : vector<288x1xi32>
    %c0_i32_9 = arith.constant 0 : i32
    %18 = vector.broadcast %c0_i32_9 : i32 to vector<288x1xi32>
    %19 = arith.cmpi ne, %17, %18 : vector<288x1xi32>
    %c0_i32_10 = arith.constant 0 : i32
    %20 = vector.broadcast %c0_i32_10 : i32 to vector<288x1xi32>
    %21 = arith.cmpi slt, %17, %20 : vector<288x1xi32>
    %c0_i32_11 = arith.constant 0 : i32
    %22 = arith.cmpi slt, %15, %c0_i32_11 : i32
    %23 = vector.broadcast %22 : i1 to vector<288x1xi1>
    %24 = vector.broadcast %23 : vector<288x1xi1> to vector<288x1xi1>
    %25 = arith.xori %21, %24 : vector<288x1xi1>
    %26 = arith.andi %25, %19 : vector<288x1xi1>
    %27 = vector.broadcast %15 : i32 to vector<288x1xi32>
    %28 = arith.addi %17, %27 : vector<288x1xi32>
    %29 = arith.select %26, %28, %17 : vector<288x1xi1>, vector<288x1xi32>
    %c16_i32 = arith.constant 16 : i32
    %30 = vector.broadcast %c16_i32 : i32 to vector<288x1xi32>
    %31 = arith.cmpi slt, %29, %30 : vector<288x1xi32>
    %cst_12 = arith.constant 0.000000e+00 : f32
    %32 = vector.shape_cast %31 : vector<288x1xi1> to vector<288x1xi1>
    %33 = vector.broadcast %32 : vector<288x1xi1> to vector<288x8xi1>
    %34 = vector.broadcast %cst_12 : f32 to vector<288x8xf32>
    %35 = arith.select %33, %12, %34 : vector<288x8xi1>, vector<288x8xf32>
    %36 = arith.truncf %35 : vector<288x8xf32> to vector<288x8xbf16>
    %c32 = arith.constant 32 : index
    %c0_13 = arith.constant 0 : index
    %37 = vector.load %arg9[%c32, %c0_13] : memref<344x8xbf16, #tpu.memory_space<vmem>>, vector<288x8xbf16>
    tpu.vector_store %arg9[%c32, %c0_13], %36 {strides = array<i32>} : memref<344x8xbf16, #tpu.memory_space<vmem>>, vector<288x8xbf16>,
    %cst_14 = arith.constant 0.000000e+00 : f32
    %38 = vector.broadcast %cst_14 : f32 to vector<1x8xf32>
    %cst_15 = arith.constant 0.000000e+00 : f32
    %39 = vector.broadcast %cst_15 : f32 to vector<1x8xf32>
    %c13 = arith.constant 13 : index
    %c0_16 = arith.constant 0 : index
    %40 = vector.load %arg9[%c13, %c0_16] : memref<344x8xbf16, #tpu.memory_space<vmem>>, vector<288x8xbf16>
    %c14 = arith.constant 14 : index
    %c0_17 = arith.constant 0 : index
    %41 = vector.load %arg9[%c14, %c0_17] : memref<344x8xbf16, #tpu.memory_space<vmem>>, vector<288x8xbf16>
    %c15 = arith.constant 15 : index
    %c0_18 = arith.constant 0 : index
    %42 = vector.load %arg9[%c15, %c0_18] : memref<344x8xbf16, #tpu.memory_space<vmem>>, vector<288x8xbf16>
    %c31 = arith.constant 31 : index
    %c0_19 = arith.constant 0 : index
    %43 = vector.load %arg9[%c31, %c0_19] : memref<344x8xbf16, #tpu.memory_space<vmem>>, vector<288x8xbf16>
    %c32_20 = arith.constant 32 : index
    %c0_21 = arith.constant 0 : index
    %44 = vector.load %arg9[%c32_20, %c0_21] : memref<344x8xbf16, #tpu.memory_space<vmem>>, vector<288x8xbf16>
    %c33 = arith.constant 33 : index
    %c0_22 = arith.constant 0 : index
    %45 = vector.load %arg9[%c33, %c0_22] : memref<344x8xbf16, #tpu.memory_space<vmem>>, vector<288x8xbf16>
    %c49 = arith.constant 49 : index
    %c0_23 = arith.constant 0 : index
    %46 = vector.load %arg9[%c49, %c0_23] : memref<344x8xbf16, #tpu.memory_space<vmem>>, vector<288x8xbf16>
    %c50 = arith.constant 50 : index
    %c0_24 = arith.constant 0 : index
    %47 = vector.load %arg9[%c50, %c0_24] : memref<344x8xbf16, #tpu.memory_space<vmem>>, vector<288x8xbf16>
    %c51 = arith.constant 51 : index
    %c0_25 = arith.constant 0 : index
    %48 = vector.load %arg9[%c51, %c0_25] : memref<344x8xbf16, #tpu.memory_space<vmem>>, vector<288x8xbf16>
    %49 = tpu.concatenate %40, %41, %42, %43, %44, %45, %46, %47, %48 in 1 : vector<288x8xbf16>, vector<288x8xbf16>, vector<288x8xbf16>, vector<288x8xbf16>, vector<288x8xbf16>, vector<288x8xbf16>, vector<288x8xbf16>, vector<288x8xbf16>, vector<288x8xbf16> -> vector<288x72xbf16>
    %c0_26 = arith.constant 0 : index
    %c0_27 = arith.constant 0 : index
    %50 = vector.load %arg3[%c0_26, %c0_27] : memref<72x8xbf16, #tpu.memory_space<vmem>>, vector<72x8xbf16>
    %cst_28 = arith.constant dense<0.000000e+00> : vector<288x8xf32>
    %51 = tpu.matmul %49, %50, %cst_28 {dimension_numbers = #tpu.dot_dimension_numbers<[1], [0], [0], [1], [0, 0, 1, 1], [], []>} : vector<288x72xbf16>, vector<72x8xbf16>, vector<288x8xf32> -> vector<288x8xf32>
    %52 = tpu.iota {dimensions = array<i32: 0>} : vector<288x1xi32>
    %c0_i32_29 = arith.constant 0 : i32
    %53 = vector.broadcast %c0_i32_29 : i32 to vector<288x1xi32>
    %54 = arith.addi %53, %52 : vector<288x1xi32>
    %c18_i32_30 = arith.constant 18 : i32
    %c0_i32_31 = arith.constant 0 : i32
    %55 = arith.cmpi eq, %c18_i32_30, %c0_i32_31 : i32
    %c1_i32_32 = arith.constant 1 : i32
    %56 = arith.select %55, %c1_i32_32, %c18_i32_30 : i32
    %57 = vector.broadcast %56 : i32 to vector<288x1xi32>
    %58 = arith.remsi %54, %57 : vector<288x1xi32>
    %c0_i32_33 = arith.constant 0 : i32
    %59 = vector.broadcast %c0_i32_33 : i32 to vector<288x1xi32>
    %60 = arith.cmpi ne, %58, %59 : vector<288x1xi32>
    %c0_i32_34 = arith.constant 0 : i32
    %61 = vector.broadcast %c0_i32_34 : i32 to vector<288x1xi32>
    %62 = arith.cmpi slt, %58, %61 : vector<288x1xi32>
    %c0_i32_35 = arith.constant 0 : i32
    %63 = arith.cmpi slt, %56, %c0_i32_35 : i32
    %64 = vector.broadcast %63 : i1 to vector<288x1xi1>
    %65 = vector.broadcast %64 : vector<288x1xi1> to vector<288x1xi1>
    %66 = arith.xori %62, %65 : vector<288x1xi1>
    %67 = arith.andi %66, %60 : vector<288x1xi1>
    %68 = vector.broadcast %56 : i32 to vector<288x1xi32>
    %69 = arith.addi %58, %68 : vector<288x1xi32>
    %70 = arith.select %67, %69, %58 : vector<288x1xi1>, vector<288x1xi32>
    %c16_i32_36 = arith.constant 16 : i32
    %71 = vector.broadcast %c16_i32_36 : i32 to vector<288x1xi32>
    %72 = arith.cmpi slt, %70, %71 : vector<288x1xi32>
    %cst_37 = arith.constant 0.000000e+00 : f32
    %73 = vector.shape_cast %72 : vector<288x1xi1> to vector<288x1xi1>
    %74 = vector.broadcast %73 : vector<288x1xi1> to vector<288x8xi1>
    %75 = vector.broadcast %cst_37 : f32 to vector<288x8xf32>
    %76 = arith.select %74, %51, %75 : vector<288x8xi1>, vector<288x8xf32>
    %77 = arith.truncf %76 : vector<288x8xf32> to vector<288x8xbf16>
    %c0_38 = arith.constant 0 : index
    %c0_39 = arith.constant 0 : index
    %c0_40 = arith.constant 0 : index
    %78 = vector.load %arg6[%c0_38, %c0_39, %c0_40] : memref<1x288x8xbf16, #tpu.memory_space<vmem>>, vector<1x288x8xbf16>
    %79 = vector.shape_cast %78 : vector<1x288x8xbf16> to vector<288x8xbf16>
    %80 = vector.shape_cast %77 : vector<288x8xbf16> to vector<1x288x8xbf16>
    tpu.vector_store %arg6[%c0_38, %c0_39, %c0_40], %80 {strides = array<i32>} : memref<1x288x8xbf16, #tpu.memory_space<vmem>>, vector<1x288x8xbf16>,
    %cst_41 = arith.constant dense<0.000000e+00> : vector<8xf32>
    %81 = vector.multi_reduction <add>, %76, %cst_41 [0] : vector<288x8xf32> to vector<8xf32>
    %82 = vector.shape_cast %81 : vector<8xf32> to vector<1x8xf32>
    %83 = arith.addf %38, %82 : vector<1x8xf32>
    %84 = arith.mulf %76, %76 : vector<288x8xf32>
    %cst_42 = arith.constant dense<0.000000e+00> : vector<8xf32>
    %85 = vector.multi_reduction <add>, %84, %cst_42 [0] : vector<288x8xf32> to vector<8xf32>
    %86 = vector.shape_cast %85 : vector<8xf32> to vector<1x8xf32>
    %87 = arith.addf %39, %86 : vector<1x8xf32>
    %c0_43 = arith.constant 0 : index
    %c0_44 = arith.constant 0 : index
    %c0_45 = arith.constant 0 : index
    %88 = vector.load %arg7[%c0_43, %c0_44, %c0_45] : memref<1x1x8xf32, #tpu.memory_space<vmem>>, vector<1x1x8xf32>
    %89 = vector.shape_cast %88 : vector<1x1x8xf32> to vector<1x8xf32>
    %90 = vector.shape_cast %83 : vector<1x8xf32> to vector<1x1x8xf32>
    tpu.vector_store %arg7[%c0_43, %c0_44, %c0_45], %90 {strides = array<i32>} : memref<1x1x8xf32, #tpu.memory_space<vmem>>, vector<1x1x8xf32>,
    %c0_46 = arith.constant 0 : index
    %c0_47 = arith.constant 0 : index
    %c0_48 = arith.constant 0 : index
    %91 = vector.load %arg8[%c0_46, %c0_47, %c0_48] : memref<1x1x8xf32, #tpu.memory_space<vmem>>, vector<1x1x8xf32>
    %92 = vector.shape_cast %91 : vector<1x1x8xf32> to vector<1x8xf32>
    %93 = vector.shape_cast %87 : vector<1x8xf32> to vector<1x1x8xf32>
    tpu.vector_store %arg8[%c0_46, %c0_47, %c0_48], %93 {strides = array<i32>} : memref<1x1x8xf32, #tpu.memory_space<vmem>>, vector<1x1x8xf32>,
    return
  }
  func.func @transform_0(%arg0: i32, %arg1: i32) -> (i32, i32, i32) {
    %c0_i32 = arith.constant 0 : i32
    %c0_i32_0 = arith.constant 0 : i32
    %c0_i32_1 = arith.constant 0 : i32
    return %arg1, %c0_i32, %c0_i32_0 : i32, i32, i32
  }
  func.func @transform_1(%arg0: i32, %arg1: i32) -> (i32, i32) {
    %c0_i32 = arith.constant 0 : i32
    %c0_i32_0 = arith.constant 0 : i32
    return %c0_i32, %arg0 : i32, i32
  }
  func.func @transform_2(%arg0: i32, %arg1: i32) -> (i32, i32) {
    %c0_i32 = arith.constant 0 : i32
    %c0_i32_0 = arith.constant 0 : i32
    %c0_i32_1 = arith.constant 0 : i32
    return %c0_i32, %c0_i32_0 : i32, i32
  }
  func.func @transform_3(%arg0: i32, %arg1: i32) -> (i32, i32) {
    %c0_i32 = arith.constant 0 : i32
    %c0_i32_0 = arith.constant 0 : i32
    %c0_i32_1 = arith.constant 0 : i32
    return %c0_i32, %c0_i32_0 : i32, i32
  }
  func.func @transform_4(%arg0: i32, %arg1: i32) -> (i32, i32, i32) {
    %c0_i32 = arith.constant 0 : i32
    %c0_i32_0 = arith.constant 0 : i32
    return %arg1, %c0_i32, %arg0 : i32, i32, i32
  }
  func.func @transform_5(%arg0: i32, %arg1: i32) -> (i32, i32, i32) {
    %c0_i32 = arith.constant 0 : i32
    %c0_i32_0 = arith.constant 0 : i32
    return %arg1, %c0_i32, %arg0 : i32, i32, i32
  }
  func.func @transform_6(%arg0: i32, %arg1: i32) -> (i32, i32, i32) {
    %c0_i32 = arith.constant 0 : i32
    %c0_i32_0 = arith.constant 0 : i32
    return %arg1, %c0_i32, %arg0 : i32, i32, i32
  }
}

module attributes {stable_mosaic.version = 11 : i64} {
  func.func @kernel(%arg0: i32, %arg1: i32, %arg2: memref<1x342x4xbf16, #tpu.memory_space<vmem>>, %arg3: memref<36x8xbf16, #tpu.memory_space<vmem>>, %arg4: memref<1x288x8xbf16, #tpu.memory_space<vmem>>, %arg5: memref<1x1x8xf32, #tpu.memory_space<vmem>>, %arg6: memref<1x1x8xf32, #tpu.memory_space<vmem>>) attributes {dimension_semantics = [#tpu.dimension_semantics<parallel>, #tpu.dimension_semantics<parallel>], iteration_bounds = array<i64: 1, 2>, scalar_prefetch = 0 : i64, scratch_operands = 0 : i64, tpu.core_type = #tpu.core_type<tc>, window_params = [{transform_indices = @transform_0, window_bounds = array<i64: 1, 342, 4>}, {transform_indices = @transform_1, window_bounds = array<i64: 36, 8>}, {transform_indices = @transform_2, window_bounds = array<i64: 1, 288, 8>}, {transform_indices = @transform_3, window_bounds = array<i64: 1, 1, 8>}, {transform_indices = @transform_4, window_bounds = array<i64: 1, 1, 8>}]} {
    %cst = arith.constant 0.000000e+00 : f32
    %0 = vector.broadcast %cst : f32 to vector<1x8xf32>
    %cst_0 = arith.constant 0.000000e+00 : f32
    %1 = vector.broadcast %cst_0 : f32 to vector<1x8xf32>
    %c0 = arith.constant 0 : index
    %c0_1 = arith.constant 0 : index
    %c0_2 = arith.constant 0 : index
    %2 = vector.load %arg2[%c0, %c0_1, %c0_2] : memref<1x342x4xbf16, #tpu.memory_space<vmem>>, vector<1x288x4xbf16>
    %3 = vector.shape_cast %2 : vector<1x288x4xbf16> to vector<288x4xbf16>
    %c0_3 = arith.constant 0 : index
    %c1 = arith.constant 1 : index
    %c0_4 = arith.constant 0 : index
    %4 = vector.load %arg2[%c0_3, %c1, %c0_4] : memref<1x342x4xbf16, #tpu.memory_space<vmem>>, vector<1x288x4xbf16>
    %5 = vector.shape_cast %4 : vector<1x288x4xbf16> to vector<288x4xbf16>
    %c0_5 = arith.constant 0 : index
    %c2 = arith.constant 2 : index
    %c0_6 = arith.constant 0 : index
    %6 = vector.load %arg2[%c0_5, %c2, %c0_6] : memref<1x342x4xbf16, #tpu.memory_space<vmem>>, vector<1x288x4xbf16>
    %7 = vector.shape_cast %6 : vector<1x288x4xbf16> to vector<288x4xbf16>
    %c0_7 = arith.constant 0 : index
    %c18 = arith.constant 18 : index
    %c0_8 = arith.constant 0 : index
    %8 = vector.load %arg2[%c0_7, %c18, %c0_8] : memref<1x342x4xbf16, #tpu.memory_space<vmem>>, vector<1x288x4xbf16>
    %9 = vector.shape_cast %8 : vector<1x288x4xbf16> to vector<288x4xbf16>
    %c0_9 = arith.constant 0 : index
    %c19 = arith.constant 19 : index
    %c0_10 = arith.constant 0 : index
    %10 = vector.load %arg2[%c0_9, %c19, %c0_10] : memref<1x342x4xbf16, #tpu.memory_space<vmem>>, vector<1x288x4xbf16>
    %11 = vector.shape_cast %10 : vector<1x288x4xbf16> to vector<288x4xbf16>
    %c0_11 = arith.constant 0 : index
    %c20 = arith.constant 20 : index
    %c0_12 = arith.constant 0 : index
    %12 = vector.load %arg2[%c0_11, %c20, %c0_12] : memref<1x342x4xbf16, #tpu.memory_space<vmem>>, vector<1x288x4xbf16>
    %13 = vector.shape_cast %12 : vector<1x288x4xbf16> to vector<288x4xbf16>
    %c0_13 = arith.constant 0 : index
    %c36 = arith.constant 36 : index
    %c0_14 = arith.constant 0 : index
    %14 = vector.load %arg2[%c0_13, %c36, %c0_14] : memref<1x342x4xbf16, #tpu.memory_space<vmem>>, vector<1x288x4xbf16>
    %15 = vector.shape_cast %14 : vector<1x288x4xbf16> to vector<288x4xbf16>
    %c0_15 = arith.constant 0 : index
    %c37 = arith.constant 37 : index
    %c0_16 = arith.constant 0 : index
    %16 = vector.load %arg2[%c0_15, %c37, %c0_16] : memref<1x342x4xbf16, #tpu.memory_space<vmem>>, vector<1x288x4xbf16>
    %17 = vector.shape_cast %16 : vector<1x288x4xbf16> to vector<288x4xbf16>
    %c0_17 = arith.constant 0 : index
    %c38 = arith.constant 38 : index
    %c0_18 = arith.constant 0 : index
    %18 = vector.load %arg2[%c0_17, %c38, %c0_18] : memref<1x342x4xbf16, #tpu.memory_space<vmem>>, vector<1x288x4xbf16>
    %19 = vector.shape_cast %18 : vector<1x288x4xbf16> to vector<288x4xbf16>
    %20 = tpu.concatenate %3, %5, %7, %9, %11, %13, %15, %17, %19 in 1 : vector<288x4xbf16>, vector<288x4xbf16>, vector<288x4xbf16>, vector<288x4xbf16>, vector<288x4xbf16>, vector<288x4xbf16>, vector<288x4xbf16>, vector<288x4xbf16>, vector<288x4xbf16> -> vector<288x36xbf16>
    %c0_19 = arith.constant 0 : index
    %c0_20 = arith.constant 0 : index
    %21 = vector.load %arg3[%c0_19, %c0_20] : memref<36x8xbf16, #tpu.memory_space<vmem>>, vector<36x8xbf16>
    %cst_21 = arith.constant dense<0.000000e+00> : vector<288x8xf32>
    %22 = tpu.matmul %20, %21, %cst_21 {dimension_numbers = #tpu.dot_dimension_numbers<[1], [0], [0], [1], [0, 0, 1, 1], [], []>} : vector<288x36xbf16>, vector<36x8xbf16>, vector<288x8xf32> -> vector<288x8xf32>
    %23 = tpu.iota {dimensions = array<i32: 0>} : vector<288x1xi32>
    %c0_i32 = arith.constant 0 : i32
    %24 = vector.broadcast %c0_i32 : i32 to vector<288x1xi32>
    %25 = arith.addi %24, %23 : vector<288x1xi32>
    %c18_i32 = arith.constant 18 : i32
    %c0_i32_22 = arith.constant 0 : i32
    %26 = arith.cmpi eq, %c18_i32, %c0_i32_22 : i32
    %c1_i32 = arith.constant 1 : i32
    %27 = arith.select %26, %c1_i32, %c18_i32 : i32
    %28 = vector.broadcast %27 : i32 to vector<288x1xi32>
    %29 = arith.remsi %25, %28 : vector<288x1xi32>
    %c0_i32_23 = arith.constant 0 : i32
    %30 = vector.broadcast %c0_i32_23 : i32 to vector<288x1xi32>
    %31 = arith.cmpi ne, %29, %30 : vector<288x1xi32>
    %c0_i32_24 = arith.constant 0 : i32
    %32 = vector.broadcast %c0_i32_24 : i32 to vector<288x1xi32>
    %33 = arith.cmpi slt, %29, %32 : vector<288x1xi32>
    %c0_i32_25 = arith.constant 0 : i32
    %34 = arith.cmpi slt, %27, %c0_i32_25 : i32
    %35 = vector.broadcast %34 : i1 to vector<288x1xi1>
    %36 = vector.broadcast %35 : vector<288x1xi1> to vector<288x1xi1>
    %37 = arith.xori %33, %36 : vector<288x1xi1>
    %38 = arith.andi %37, %31 : vector<288x1xi1>
    %39 = vector.broadcast %27 : i32 to vector<288x1xi32>
    %40 = arith.addi %29, %39 : vector<288x1xi32>
    %41 = arith.select %38, %40, %29 : vector<288x1xi1>, vector<288x1xi32>
    %c16_i32 = arith.constant 16 : i32
    %42 = vector.broadcast %c16_i32 : i32 to vector<288x1xi32>
    %43 = arith.cmpi slt, %41, %42 : vector<288x1xi32>
    %cst_26 = arith.constant 0.000000e+00 : f32
    %44 = vector.shape_cast %43 : vector<288x1xi1> to vector<288x1xi1>
    %45 = vector.broadcast %44 : vector<288x1xi1> to vector<288x8xi1>
    %46 = vector.broadcast %cst_26 : f32 to vector<288x8xf32>
    %47 = arith.select %45, %22, %46 : vector<288x8xi1>, vector<288x8xf32>
    %48 = arith.truncf %47 : vector<288x8xf32> to vector<288x8xbf16>
    %c0_27 = arith.constant 0 : index
    %c0_28 = arith.constant 0 : index
    %c0_29 = arith.constant 0 : index
    %49 = vector.load %arg4[%c0_27, %c0_28, %c0_29] : memref<1x288x8xbf16, #tpu.memory_space<vmem>>, vector<1x288x8xbf16>
    %50 = vector.shape_cast %49 : vector<1x288x8xbf16> to vector<288x8xbf16>
    %51 = vector.shape_cast %48 : vector<288x8xbf16> to vector<1x288x8xbf16>
    tpu.vector_store %arg4[%c0_27, %c0_28, %c0_29], %51 {strides = array<i32>} : memref<1x288x8xbf16, #tpu.memory_space<vmem>>, vector<1x288x8xbf16>,
    %cst_30 = arith.constant dense<0.000000e+00> : vector<8xf32>
    %52 = vector.multi_reduction <add>, %47, %cst_30 [0] : vector<288x8xf32> to vector<8xf32>
    %53 = vector.shape_cast %52 : vector<8xf32> to vector<1x8xf32>
    %54 = arith.addf %0, %53 : vector<1x8xf32>
    %55 = arith.mulf %47, %47 : vector<288x8xf32>
    %cst_31 = arith.constant dense<0.000000e+00> : vector<8xf32>
    %56 = vector.multi_reduction <add>, %55, %cst_31 [0] : vector<288x8xf32> to vector<8xf32>
    %57 = vector.shape_cast %56 : vector<8xf32> to vector<1x8xf32>
    %58 = arith.addf %1, %57 : vector<1x8xf32>
    %c0_32 = arith.constant 0 : index
    %c0_33 = arith.constant 0 : index
    %c0_34 = arith.constant 0 : index
    %59 = vector.load %arg5[%c0_32, %c0_33, %c0_34] : memref<1x1x8xf32, #tpu.memory_space<vmem>>, vector<1x1x8xf32>
    %60 = vector.shape_cast %59 : vector<1x1x8xf32> to vector<1x8xf32>
    %61 = vector.shape_cast %54 : vector<1x8xf32> to vector<1x1x8xf32>
    tpu.vector_store %arg5[%c0_32, %c0_33, %c0_34], %61 {strides = array<i32>} : memref<1x1x8xf32, #tpu.memory_space<vmem>>, vector<1x1x8xf32>,
    %c0_35 = arith.constant 0 : index
    %c0_36 = arith.constant 0 : index
    %c0_37 = arith.constant 0 : index
    %62 = vector.load %arg6[%c0_35, %c0_36, %c0_37] : memref<1x1x8xf32, #tpu.memory_space<vmem>>, vector<1x1x8xf32>
    %63 = vector.shape_cast %62 : vector<1x1x8xf32> to vector<1x8xf32>
    %64 = vector.shape_cast %58 : vector<1x8xf32> to vector<1x1x8xf32>
    tpu.vector_store %arg6[%c0_35, %c0_36, %c0_37], %64 {strides = array<i32>} : memref<1x1x8xf32, #tpu.memory_space<vmem>>, vector<1x1x8xf32>,
    return
  }
  func.func @transform_0(%arg0: i32, %arg1: i32) -> (i32, i32, i32) {
    %c0_i32 = arith.constant 0 : i32
    %c0_i32_0 = arith.constant 0 : i32
    %c0_i32_1 = arith.constant 0 : i32
    return %arg1, %c0_i32, %c0_i32_0 : i32, i32, i32
  }
  func.func @transform_1(%arg0: i32, %arg1: i32) -> (i32, i32) {
    %c0_i32 = arith.constant 0 : i32
    %c0_i32_0 = arith.constant 0 : i32
    return %c0_i32, %arg0 : i32, i32
  }
  func.func @transform_2(%arg0: i32, %arg1: i32) -> (i32, i32, i32) {
    %c0_i32 = arith.constant 0 : i32
    %c0_i32_0 = arith.constant 0 : i32
    return %arg1, %c0_i32, %arg0 : i32, i32, i32
  }
  func.func @transform_3(%arg0: i32, %arg1: i32) -> (i32, i32, i32) {
    %c0_i32 = arith.constant 0 : i32
    %c0_i32_0 = arith.constant 0 : i32
    return %arg1, %c0_i32, %arg0 : i32, i32, i32
  }
  func.func @transform_4(%arg0: i32, %arg1: i32) -> (i32, i32, i32) {
    %c0_i32 = arith.constant 0 : i32
    %c0_i32_0 = arith.constant 0 : i32
    return %arg1, %c0_i32, %arg0 : i32, i32, i32
  }
}

module attributes {stable_mosaic.version = 11 : i64} {
  func.func @_bn_relu_kernel(%arg0: i32, %arg1: memref<1x288x8xbf16, #tpu.memory_space<vmem>>, %arg2: memref<1x8xf32, #tpu.memory_space<vmem>>, %arg3: memref<1x8xf32, #tpu.memory_space<vmem>>, %arg4: memref<1x288x8xf32, #tpu.memory_space<vmem>>) attributes {dimension_semantics = [#tpu.dimension_semantics<parallel>], iteration_bounds = array<i64: 2>, scalar_prefetch = 0 : i64, scratch_operands = 0 : i64, tpu.core_type = #tpu.core_type<tc>, window_params = [{transform_indices = @transform_0, window_bounds = array<i64: 1, 288, 8>}, {pipeline_mode = #tpu.pipeline_mode<synchronous>, transform_indices = @transform_1, window_bounds = array<i64: 1, 8>}, {pipeline_mode = #tpu.pipeline_mode<synchronous>, transform_indices = @transform_2, window_bounds = array<i64: 1, 8>}, {transform_indices = @transform_3, window_bounds = array<i64: 1, 288, 8>}]} {
    %c0 = arith.constant 0 : index
    %c0_0 = arith.constant 0 : index
    %c0_1 = arith.constant 0 : index
    %0 = vector.load %arg1[%c0, %c0_0, %c0_1] : memref<1x288x8xbf16, #tpu.memory_space<vmem>>, vector<1x288x8xbf16>
    %1 = vector.shape_cast %0 : vector<1x288x8xbf16> to vector<288x8xbf16>
    %2 = arith.extf %1 : vector<288x8xbf16> to vector<288x8xf32>
    %c0_2 = arith.constant 0 : index
    %c0_3 = arith.constant 0 : index
    %3 = vector.load %arg2[%c0_2, %c0_3] : memref<1x8xf32, #tpu.memory_space<vmem>>, vector<1x8xf32>
    %4 = vector.broadcast %3 : vector<1x8xf32> to vector<288x8xf32>
    %5 = arith.mulf %2, %4 : vector<288x8xf32>
    %c0_4 = arith.constant 0 : index
    %c0_5 = arith.constant 0 : index
    %6 = vector.load %arg3[%c0_4, %c0_5] : memref<1x8xf32, #tpu.memory_space<vmem>>, vector<1x8xf32>
    %7 = vector.broadcast %6 : vector<1x8xf32> to vector<288x8xf32>
    %8 = arith.addf %5, %7 : vector<288x8xf32>
    %cst = arith.constant 0.000000e+00 : f32
    %9 = vector.broadcast %cst : f32 to vector<288x8xf32>
    %10 = arith.maximumf %8, %9 : vector<288x8xf32>
    %c0_6 = arith.constant 0 : index
    %c0_7 = arith.constant 0 : index
    %c0_8 = arith.constant 0 : index
    %11 = vector.load %arg4[%c0_6, %c0_7, %c0_8] : memref<1x288x8xf32, #tpu.memory_space<vmem>>, vector<1x288x8xf32>
    %12 = vector.shape_cast %11 : vector<1x288x8xf32> to vector<288x8xf32>
    %13 = vector.shape_cast %10 : vector<288x8xf32> to vector<1x288x8xf32>
    tpu.vector_store %arg4[%c0_6, %c0_7, %c0_8], %13 {strides = array<i32>} : memref<1x288x8xf32, #tpu.memory_space<vmem>>, vector<1x288x8xf32>,
    return
  }
  func.func @transform_0(%arg0: i32) -> (i32, i32, i32) {
    %c0_i32 = arith.constant 0 : i32
    %c0_i32_0 = arith.constant 0 : i32
    %c0_i32_1 = arith.constant 0 : i32
    return %arg0, %c0_i32, %c0_i32_0 : i32, i32, i32
  }
  func.func @transform_1(%arg0: i32) -> (i32, i32) {
    %c0_i32 = arith.constant 0 : i32
    %c0_i32_0 = arith.constant 0 : i32
    %c0_i32_1 = arith.constant 0 : i32
    return %c0_i32, %c0_i32_0 : i32, i32
  }
  func.func @transform_2(%arg0: i32) -> (i32, i32) {
    %c0_i32 = arith.constant 0 : i32
    %c0_i32_0 = arith.constant 0 : i32
    %c0_i32_1 = arith.constant 0 : i32
    return %c0_i32, %c0_i32_0 : i32, i32
  }
  func.func @transform_3(%arg0: i32) -> (i32, i32, i32) {
    %c0_i32 = arith.constant 0 : i32
    %c0_i32_0 = arith.constant 0 : i32
    %c0_i32_1 = arith.constant 0 : i32
    return %arg0, %c0_i32, %c0_i32_0 : i32, i32, i32
  }
}

</mosaic_0001>

<bundles_post_ra>
// kernel: double_conv.5
= control target key start
LH: loop header
LB: loop body
LE: loop exit
PB: predicated region body
PF: predicated region fallthrough
CT: control target
= control target key end

     0   :  { %s595_s12 = smov 0   ;;  %s792_s0 = inlined_call_operand.vmem [shape: bf16[2,288,8], index: 0, kind: input, shape index: {}]   ;;  %s793_s1 = inlined_call_operand.vmem [shape: f32[1,8], index: 1, kind: input, shape index: {}]   ;;  %s794_s2 = inlined_call_operand.vmem [shape: f32[1,8], index: 2, kind: input, shape index: {}]   ;;  %s795_s3 = inlined_call_operand.vmem [shape: f32[2,288,8], index: 3, kind: output, shape index: {}]  }
   0x1 LB: > { %s457_s13 = sadd.s32 4294967295, %s573_s12   ;;  %p461_p0 = scmp.ge.s32.totalorder %s573_s12, 1  ;;  %s573_s12 = sphi %s595_s12, %s13_s12  }
   0x2   : > { %p137_p1 = scmp.lt.s32.totalorder %s573_s12, 3 }
   0x4   : > { %p138_p2 = pnand %p461_p0, %p137_p1 }
   0x5   : > { %p161_p3 = scmp.lt.s32.totalorder (!%p138_p2), %s457_s13, 1 }
   0x6   : > { %141 = sbr.rel (%p138_p2) target bundleno = 57 (0x39), region = 32 }
   0xb   : > { %s797_s13 = smov (!%p161_p3, %s457_s13), 1  ;;  %v614_v0 = vld [vmem:[%s793_s1] ss:$0 sm:$0xff]  ;;  %vm365_vm0 = vcmask 64512  }
   0xc   : > { %s557_s14 = smul.u32 144, %s797_s13  ;;  %v624_v9 = vld [vmem:[%s794_s2] ss:$0 sm:$0xff] }
   0xd   : > { %s558_s20 = smul.u32 288, %s797_s13 }
   0xe   : > { %s609_s17 = scalar_lea.vmem %s792_s0, %s557_s14 }
   0xf   : > { %v469_v1 = vld [vmem:[%s609_s17] sm:$0xff]   ;;  %v540_v2 = vld [vmem:[%s609_s17 + $0x8] sm:$0xff]   ;;  %v541_v3 = vld [vmem:[%s609_s17 + $0x10] sm:$0xff]   ;;  %s641_s25 = scalar_lea.vmem %s795_s3, %s558_s20 }
  0x10   : > { %v470_v4 = vunpack.c.l.bf16 %v469_v1  ;;  %v471_v5 = vunpack.c.h.bf16 %v469_v1  ;;  %v474_v6 = vunpack.c.l.bf16 %v540_v2  ;;  %v475_v7 = vunpack.c.h.bf16 %v540_v2  ;;  %v542_v8 = vld [vmem:[%s609_s17 + $0x18] sm:$0xff]   ;;  %v543_v30 = vld [vmem:[%s609_s17 + $0x20] sm:$0xff]   ;;  %v544_v31 = vld [vmem:[%s609_s17 + $0x28] sm:$0xff]  }
  0x11   : > { %v478_v10 = vunpack.c.l.bf16 %v541_v3  ;;  %v479_v11 = vunpack.c.h.bf16 %v541_v3  ;;  %v482_v12 = vunpack.c.l.bf16 %v542_v8  ;;  %v483_v13 = vunpack.c.h.bf16 %v542_v8  ;;  %v545_v36 = vld [vmem:[%s609_s17 + $0x30] sm:$0xff]   ;;  %v546_v37 = vld [vmem:[%s609_s17 + $0x38] sm:$0xff]   ;;  %v547_v3 = vld [vmem:[%s609_s17 + $0x40] sm:$0xff]  }
  0x12   : > { %v250_v14 = vmul.f32 %v470_v4, %v614_v0  ;;  %v251_v15 = vmul.f32 %v471_v5, %v614_v0  ;;  %v252_v16 = vmul.f32 %v474_v6, %v614_v0  ;;  %v253_v17 = vmul.f32 %v475_v7, %v614_v0  ;;  %v548_v4 = vld [vmem:[%s609_s17 + $0x48] sm:$0xff]  }
  0x13   : > { %v254_v18 = vmul.f32 %v478_v10, %v614_v0  ;;  %v255_v19 = vmul.f32 %v479_v11, %v614_v0  ;;  %v256_v20 = vmul.f32 %v482_v12, %v614_v0  ;;  %v257_v21 = vmul.f32 %v483_v13, %v614_v0  ;;  %v549_v10 = vld [vmem:[%s609_s17 + $0x50] sm:$0xff]   ;;  %v550_v11 = vld [vmem:[%s609_s17 + $0x58] sm:$0xff]  }
  0x14   : > { %v293_v22 = vadd.f32 %v624_v9, %v250_v14  ;;  %v294_v23 = vadd.f32 %v624_v9, %v251_v15  ;;  %v295_v24 = vadd.f32 %v624_v9, %v252_v16  ;;  %v296_v25 = vadd.f32 %v624_v9, %v253_v17 }
  0x15   : > { %v297_v26 = vadd.f32 %v624_v9, %v254_v18  ;;  %v298_v27 = vadd.f32 %v624_v9, %v255_v19  ;;  %v299_v28 = vadd.f32 %v624_v9, %v256_v20  ;;  %v300_v29 = vadd.f32 %v624_v9, %v257_v21 }
  0x16   : > { %v329_v32 = vmax.f32 %v293_v22, 0.0  ;;  %v330_v33 = vmax.f32 %v294_v23, 0.0  ;;  %v331_v34 = vmax.f32 %v295_v24, 0.0  ;;  %v332_v35 = vmax.f32 %v296_v25, 0.0 }
  0x17   : > { %v333_v38 = vmax.f32 %v297_v26, 0.0  ;;  %v334_v39 = vmax.f32 %v298_v27, 0.0  ;;  %v335_v40 = vmax.f32 %v299_v28, 0.0  ;;  %v336_v41 = vmax.f32 %v300_v29, 0.0 }
  0x18   : > { %366 = vst.msk [vmem:[%s641_s25] sm:$0xff] %vm365_vm0, %v329_v32  ;;  %367 = vst.msk [vmem:[%s641_s25 + $0x8] sm:$0xff] %vm365_vm0, %v330_v33  ;;  %v486_v42 = vunpack.c.l.bf16 %v543_v30  ;;  %v487_v43 = vunpack.c.h.bf16 %v543_v30  ;;  %v490_v44 = vunpack.c.l.bf16 %v544_v31  ;;  %v491_v45 = vunpack.c.h.bf16 %v544_v31 }
  0x19   : > { %368 = vst.msk [vmem:[%s641_s25 + $0x10] sm:$0xff] %vm365_vm0, %v331_v34  ;;  %369 = vst.msk [vmem:[%s641_s25 + $0x18] sm:$0xff] %vm365_vm0, %v332_v35  ;;  %v494_v46 = vunpack.c.l.bf16 %v545_v36  ;;  %v495_v47 = vunpack.c.h.bf16 %v545_v36  ;;  %v498_v48 = vunpack.c.l.bf16 %v546_v37  ;;  %v499_v49 = vunpack.c.h.bf16 %v546_v37 }
  0x1a   : > { %370 = vst.msk [vmem:[%s641_s25 + $0x20] sm:$0xff] %vm365_vm0, %v333_v38  ;;  %371 = vst.msk [vmem:[%s641_s25 + $0x28] sm:$0xff] %vm365_vm0, %v334_v39  ;;  %v258_v50 = vmul.f32 %v486_v42, %v614_v0  ;;  %v259_v51 = vmul.f32 %v487_v43, %v614_v0  ;;  %v260_v52 = vmul.f32 %v490_v44, %v614_v0  ;;  %v502_v16 = vunpack.c.l.bf16 %v547_v3 }
  0x1b   : > { %372 = vst.msk [vmem:[%s641_s25 + $0x30] sm:$0xff] %vm365_vm0, %v335_v40  ;;  %373 = vst.msk [vmem:[%s641_s25 + $0x38] sm:$0xff] %vm365_vm0, %v336_v41  ;;  %v261_v53 = vmul.f32 %v491_v45, %v614_v0  ;;  %v262_v54 = vmul.f32 %v494_v46, %v614_v0  ;;  %v263_v55 = vmul.f32 %v495_v47, %v614_v0  ;;  %v503_v17 = vunpack.c.h.bf16 %v547_v3  ;;  %v551_v40 = vld [vmem:[%s609_s17 + $0x60] sm:$0xff]   ;;  %v552_v41 = vld [vmem:[%s609_s17 + $0x68] sm:$0xff]  }
  0x1c   : > { %v264_v56 = vmul.f32 %v498_v48, %v614_v0  ;;  %v265_v57 = vmul.f32 %v499_v49, %v614_v0  ;;  %v301_v58 = vadd.f32 %v624_v9, %v258_v50  ;;  %v302_v59 = vadd.f32 %v624_v9, %v259_v51  ;;  %v553_v46 = vld [vmem:[%s609_s17 + $0x70] sm:$0xff]   ;;  %v554_v47 = vld [vmem:[%s609_s17 + $0x78] sm:$0xff]  }
  0x1d   : > { %v303_v60 = vadd.f32 %v624_v9, %v260_v52  ;;  %v304_v61 = vadd.f32 %v624_v9, %v261_v53  ;;  %v305_v62 = vadd.f32 %v624_v9, %v262_v54  ;;  %v306_v63 = vadd.f32 %v624_v9, %v263_v55 }
  0x1e   : > { %v307_v1 = vadd.f32 %v624_v9, %v264_v56  ;;  %v308_v2 = vadd.f32 %v624_v9, %v265_v57  ;;  %v337_v5 = vmax.f32 %v301_v58, 0.0  ;;  %v338_v6 = vmax.f32 %v302_v59, 0.0 }
  0x1f   : > { %v339_v7 = vmax.f32 %v303_v60, 0.0  ;;  %v340_v8 = vmax.f32 %v304_v61, 0.0  ;;  %v341_v12 = vmax.f32 %v305_v62, 0.0  ;;  %v342_v13 = vmax.f32 %v306_v63, 0.0 }
  0x20   : > { %v343_v14 = vmax.f32 %v307_v1, 0.0  ;;  %v344_v15 = vmax.f32 %v308_v2, 0.0  ;;  %374 = vst.msk [vmem:[%s641_s25 + $0x40] sm:$0xff] %vm365_vm0, %v337_v5  ;;  %375 = vst.msk [vmem:[%s641_s25 + $0x48] sm:$0xff] %vm365_vm0, %v338_v6  ;;  %v506_v18 = vunpack.c.l.bf16 %v548_v4  ;;  %v507_v19 = vunpack.c.h.bf16 %v548_v4 }
  0x21   : > { %376 = vst.msk [vmem:[%s641_s25 + $0x50] sm:$0xff] %vm365_vm0, %v339_v7  ;;  %377 = vst.msk [vmem:[%s641_s25 + $0x58] sm:$0xff] %vm365_vm0, %v340_v8  ;;  %v510_v20 = vunpack.c.l.bf16 %v549_v10  ;;  %v511_v21 = vunpack.c.h.bf16 %v549_v10  ;;  %v514_v22 = vunpack.c.l.bf16 %v550_v11  ;;  %v515_v23 = vunpack.c.h.bf16 %v550_v11 }
  0x22   : > { %378 = vst.msk [vmem:[%s641_s25 + $0x60] sm:$0xff] %vm365_vm0, %v341_v12  ;;  %379 = vst.msk [vmem:[%s641_s25 + $0x68] sm:$0xff] %vm365_vm0, %v342_v13  ;;  %v266_v24 = vmul.f32 %v502_v16, %v614_v0  ;;  %v267_v25 = vmul.f32 %v503_v17, %v614_v0  ;;  %v268_v26 = vmul.f32 %v506_v18, %v614_v0  ;;  %v518_v52 = vunpack.c.l.bf16 %v551_v40 }
  0x23   : > { %380 = vst.msk [vmem:[%s641_s25 + $0x70] sm:$0xff] %vm365_vm0, %v343_v14  ;;  %381 = vst.msk [vmem:[%s641_s25 + $0x78] sm:$0xff] %vm365_vm0, %v344_v15  ;;  %v269_v27 = vmul.f32 %v507_v19, %v614_v0  ;;  %v270_v28 = vmul.f32 %v510_v20, %v614_v0  ;;  %v271_v29 = vmul.f32 %v511_v21, %v614_v0  ;;  %v519_v53 = vunpack.c.h.bf16 %v551_v40  ;;  %v555_v14 = vld [vmem:[%s609_s17 + $0x80] sm:$0xff]   ;;  %v556_v15 = vld [vmem:[%s609_s17 + $0x88] sm:$0xff]  }
  0x24   : > { %v272_v30 = vmul.f32 %v514_v22, %v614_v0  ;;  %v273_v31 = vmul.f32 %v515_v23, %v614_v0  ;;  %v309_v32 = vadd.f32 %v624_v9, %v266_v24  ;;  %v310_v33 = vadd.f32 %v624_v9, %v267_v25 }
  0x25   : > { %v311_v34 = vadd.f32 %v624_v9, %v268_v26  ;;  %v312_v35 = vadd.f32 %v624_v9, %v269_v27  ;;  %v313_v36 = vadd.f32 %v624_v9, %v270_v28  ;;  %v314_v37 = vadd.f32 %v624_v9, %v271_v29 }
  0x26   : > { %v315_v38 = vadd.f32 %v624_v9, %v272_v30  ;;  %v316_v39 = vadd.f32 %v624_v9, %v273_v31  ;;  %v345_v42 = vmax.f32 %v309_v32, 0.0  ;;  %v346_v43 = vmax.f32 %v310_v33, 0.0 }
  0x27   : > { %v347_v44 = vmax.f32 %v311_v34, 0.0  ;;  %v348_v45 = vmax.f32 %v312_v35, 0.0  ;;  %v349_v48 = vmax.f32 %v313_v36, 0.0  ;;  %v350_v49 = vmax.f32 %v314_v37, 0.0 }
  0x28   : > { %v351_v50 = vmax.f32 %v315_v38, 0.0  ;;  %v352_v51 = vmax.f32 %v316_v39, 0.0  ;;  %382 = vst.msk [vmem:[%s641_s25 + $0x80] sm:$0xff] %vm365_vm0, %v345_v42  ;;  %383 = vst.msk [vmem:[%s641_s25 + $0x88] sm:$0xff] %vm365_vm0, %v346_v43  ;;  %v522_v54 = vunpack.c.l.bf16 %v552_v41  ;;  %v523_v55 = vunpack.c.h.bf16 %v552_v41 }
  0x29   : > { %384 = vst.msk [vmem:[%s641_s25 + $0x90] sm:$0xff] %vm365_vm0, %v347_v44  ;;  %385 = vst.msk [vmem:[%s641_s25 + $0x98] sm:$0xff] %vm365_vm0, %v348_v45  ;;  %v526_v56 = vunpack.c.l.bf16 %v553_v46  ;;  %v527_v57 = vunpack.c.h.bf16 %v553_v46  ;;  %v530_v58 = vunpack.c.l.bf16 %v554_v47  ;;  %v531_v59 = vunpack.c.h.bf16 %v554_v47 }
  0x2a   : > { %386 = vst.msk [vmem:[%s641_s25 + $0xa0] sm:$0xff] %vm365_vm0, %v349_v48  ;;  %387 = vst.msk [vmem:[%s641_s25 + $0xa8] sm:$0xff] %vm365_vm0, %v350_v49  ;;  %v274_v60 = vmul.f32 %v518_v52, %v614_v0  ;;  %v275_v61 = vmul.f32 %v519_v53, %v614_v0  ;;  %v276_v62 = vmul.f32 %v522_v54, %v614_v0  ;;  %v534_v24 = vunpack.c.l.bf16 %v555_v14 }
  0x2b   : > { %388 = vst.msk [vmem:[%s641_s25 + $0xb0] sm:$0xff] %vm365_vm0, %v351_v50  ;;  %389 = vst.msk [vmem:[%s641_s25 + $0xb8] sm:$0xff] %vm365_vm0, %v352_v51  ;;  %v277_v63 = vmul.f32 %v523_v55, %v614_v0  ;;  %v278_v1 = vmul.f32 %v526_v56, %v614_v0  ;;  %v279_v2 = vmul.f32 %v527_v57, %v614_v0  ;;  %v535_v25 = vunpack.c.h.bf16 %v555_v14 }
  0x2c   : > { %v280_v3 = vmul.f32 %v530_v58, %v614_v0  ;;  %v281_v4 = vmul.f32 %v531_v59, %v614_v0  ;;  %v317_v5 = vadd.f32 %v624_v9, %v274_v60  ;;  %v318_v6 = vadd.f32 %v624_v9, %v275_v61 }
  0x2d   : > { %v319_v7 = vadd.f32 %v624_v9, %v276_v62  ;;  %v320_v8 = vadd.f32 %v624_v9, %v277_v63  ;;  %v321_v10 = vadd.f32 %v624_v9, %v278_v1  ;;  %v322_v11 = vadd.f32 %v624_v9, %v279_v2 }
  0x2e   : > { %v323_v12 = vadd.f32 %v624_v9, %v280_v3  ;;  %v324_v13 = vadd.f32 %v624_v9, %v281_v4  ;;  %v353_v16 = vmax.f32 %v317_v5, 0.0  ;;  %v354_v17 = vmax.f32 %v318_v6, 0.0 }
  0x2f   : > { %v355_v18 = vmax.f32 %v319_v7, 0.0  ;;  %v356_v19 = vmax.f32 %v320_v8, 0.0  ;;  %v357_v20 = vmax.f32 %v321_v10, 0.0  ;;  %v358_v21 = vmax.f32 %v322_v11, 0.0 }
  0x30   : > { %v359_v22 = vmax.f32 %v323_v12, 0.0  ;;  %v360_v23 = vmax.f32 %v324_v13, 0.0  ;;  %390 = vst.msk [vmem:[%s641_s25 + $0xc0] sm:$0xff] %vm365_vm0, %v353_v16  ;;  %391 = vst.msk [vmem:[%s641_s25 + $0xc8] sm:$0xff] %vm365_vm0, %v354_v17  ;;  %v538_v26 = vunpack.c.l.bf16 %v556_v15  ;;  %v539_v27 = vunpack.c.h.bf16 %v556_v15 }
  0x31   : > { %392 = vst.msk [vmem:[%s641_s25 + $0xd0] sm:$0xff] %vm365_vm0, %v355_v18  ;;  %393 = vst.msk [vmem:[%s641_s25 + $0xd8] sm:$0xff] %vm365_vm0, %v356_v19  ;;  %v282_v28 = vmul.f32 %v534_v24, %v614_v0  ;;  %v283_v29 = vmul.f32 %v535_v25, %v614_v0 }
  0x32   : > { %394 = vst.msk [vmem:[%s641_s25 + $0xe0] sm:$0xff] %vm365_vm0, %v357_v20  ;;  %395 = vst.msk [vmem:[%s641_s25 + $0xe8] sm:$0xff] %vm365_vm0, %v358_v21  ;;  %v284_v30 = vmul.f32 %v538_v26, %v614_v0  ;;  %v285_v31 = vmul.f32 %v539_v27, %v614_v0 }
  0x33   : > { %396 = vst.msk [vmem:[%s641_s25 + $0xf0] sm:$0xff] %vm365_vm0, %v359_v22  ;;  %397 = vst.msk [vmem:[%s641_s25 + $0xf8] sm:$0xff] %vm365_vm0, %v360_v23  ;;  %v325_v32 = vadd.f32 %v624_v9, %v282_v28  ;;  %v326_v33 = vadd.f32 %v624_v9, %v283_v29 }
  0x34   : > { %v327_v34 = vadd.f32 %v624_v9, %v284_v30  ;;  %v328_v35 = vadd.f32 %v624_v9, %v285_v31 }
  0x35   : > { %v361_v36 = vmax.f32 %v325_v32, 0.0  ;;  %v362_v37 = vmax.f32 %v326_v33, 0.0 }
  0x36   : > { %v363_v38 = vmax.f32 %v327_v34, 0.0  ;;  %v364_v39 = vmax.f32 %v328_v35, 0.0 }
  0x37   : > { %398 = vst.msk [vmem:[%s641_s25 + $0x100] sm:$0xff] %vm365_vm0, %v361_v36  ;;  %399 = vst.msk [vmem:[%s641_s25 + $0x108] sm:$0xff] %vm365_vm0, %v362_v37 }
  0x38   : > { %400 = vst.msk [vmem:[%s641_s25 + $0x110] sm:$0xff] %vm365_vm0, %v363_v38  ;;  %401 = vst.msk [vmem:[%s641_s25 + $0x118] sm:$0xff] %vm365_vm0, %v364_v39 }
  0x39 PF: > { %s13_s12 = sadd.s32 1, %s573_s12  }
  0x3a   : > { %p10_p4 = scmp.ge.s32.totalorder %s13_s12, 4  }
  0x3c   :  { %12 = sbr.rel (!%p10_p4) target bundleno = 1 (0x1), region = 62 }

// kernel: double_conv.3
= control target key start
LH: loop header
LB: loop body
LE: loop exit
PB: predicated region body
PF: predicated region fallthrough
CT: control target
= control target key end

     0   :  { %s3427_s15 = smov 0   ;;  %s3429_s16 = smov 0   ;;  %s5106_s0 = inlined_call_operand.vmem [shape: bf16[2,342,4], index: 0, kind: input, shape index: {}]   ;;  %s5107_s1 = inlined_call_operand.vmem [shape: bf16[36,8], index: 1, kind: input, shape index: {}]   ;;  %s5108_s2 = inlined_call_operand.vmem [shape: bf16[2,288,8], index: 2, kind: output, shape index: {0}]   ;;  %s5109_s3 = inlined_call_operand.vmem [shape: f32[2,1,8], index: 3, kind: output, shape index: {1}]   ;;  %s5110_s4 = inlined_call_operand.vmem [shape: f32[2,1,8], index: 4, kind: output, shape index: {2}]  }
   0x1   :  { %s3431_s17 = smov 0  }
   0x2 LB: > { %s24_s18 = sadd.s32 1, %s3388_s16  ;;  %p3029_p0 = scmp.ge.s32.totalorder %s3392_s17, 1  ;;  %s3392_s17 = sphi %s3431_s17, %s15_s17   ;;  %s3388_s16 = sphi %s3429_s16, %s5219_s16   ;;  %s3384_s15 = sphi %s3427_s15, %s5218_s15  }
   0x3   : > { %p25_p1 = scmp.ge.s32.totalorder %s24_s18, 2  ;;  %p194_p2 = scmp.lt.s32.totalorder %s3392_s17, 3 }
   0x5   : > { %s5221_s18 = smov (%p25_p1, %s24_s18), 0  ;;  %p195_p3 = pnand %p3029_p0, %p194_p2 }
   0x6   : > { %p239_p4 = scmp.lt.s32.totalorder (!%p195_p3), %s3384_s15, 1  ;;  %s3394_s23 = smov (!%p195_p3), 12  }
   0x7   : > { %198 = sbr.rel (%p195_p3) target bundleno = 646 (0x286), region = 28  ;;  %s3395_s24 = smov (!%p195_p3), 8  }
   0x8   : > { %s3396_s25 = smov (!%p195_p3), 20   ;;  %s3397_s26 = smov (!%p195_p3), 4  }
   0x9   : > { %s3398_s27 = smov (!%p195_p3), 16   ;;  %s3399_s28 = smov (!%p195_p3), 24  }
   0xa   : > { %s3400_s29 = smov (!%p195_p3), 28   ;;  %s3401_s30 = smov (!%p195_p3), 32  }
   0xc   : > { %s5223_s15 = smov (!%p239_p4, %s3384_s15), 1  ;;  %vm600_vm0 = vcmask 1046528   ;;  %vm860_vm1 = vcmask 1045504   ;;  %vm412_vm2 = vsmask.f32 7424  ;;  %vm1120_vm5 = vcmask 1044480  }
   0xd   : > { %s3228_s19 = smul.u32 172, %s5223_s15  ;;  %vm730_vm3 = vsmask.f32 6400  ;;  %vm990_vm4 = vsmask.f32 5376  ;;  %vm1547_vm6 = vcmask 1041408   ;;  %s261_s21 = scalar_lea.vmem %s5109_s3, %s5223_s15 }
   0xe   : > { %vm5112_vm7 = vcmask 31744   ;;  %vm1231_vm8 = vcmask 64512   ;;  %vm1268_vm9 = vcmask 97280   ;;  %vm1305_vm10 = vcmask 130048   ;;  %s3229_s11 = smul.u32 144, %s5223_s15 }
   0xf   : > { %s3451_s22 = scalar_lea.vmem %s5106_s0, %s3228_s19  ;;  %vm1342_vm11 = vcmask 162816   ;;  %vm1379_vm12 = vcmask 195584   ;;  %vm1416_vm13 = vcmask 228352   ;;  %vm1453_vm14 = vcmask 261120  }
  0x10   : > { %v272_v0 = vld [vmem:[%s3451_s22 + $0xc] sm:$0xf]  ;;  %v273_v1 = vld [vmem:[%s3451_s22 + $0x10] sm:$0xf]  ;;  %v3456_v2 = vld [vmem:[%s3451_s22 + $0x14] sm:$0xf]  ;;  %s4474_s14 = scalar_lea.vmem %s5108_s2, %s3229_s11 }
  0x11   : > { %v307_v3 = vld [vmem:[%s3451_s22 + $0x8] sm:$0xe]  ;;  %v3460_v4 = vcombine.low %v273_v1, %v3456_v2  ;;  %v270_v5 = vld [vmem:[%s3451_s22 + $0x4] sm:$0xf]  ;;  %v306_v8 = vld [vmem:[%s3451_s22] sm:$0xe] }
  0x12   : > { %v271_v6 = vld [vmem:[%s3451_s22 + $0x8] sm:$0xf]  ;;  %v3052_v7 = vcombine.low %v307_v3, %v272_v0  ;;  %v269_v10 = vld [vmem:[%s3451_s22] sm:$0xf]  ;;  %v3051_v13 = vcombine.low %v306_v8, %v270_v5  ;;  %v3473_v16 = vld [vmem:[%s3451_s22 + $0x18] sm:$0xff]   ;;  %vm5111_vm15 = vcmask 293888  }
  0x13   : > { %v3465_v9 = vcombine.low %v271_v6, %v272_v0  ;;  %v312_v11 = vld [vmem:[%s3451_s22 + $0x8] sm:$0xc]  ;;  %v604_v12 = vrot.slane %v3460_v4, 1  ;;  %v3470_v14 = vcombine.low %v269_v10, %v270_v5  ;;  %v862_v19 = vrot.slane %v3460_v4, 2  ;;  %v313_v34 = vld [vmem:[%s3451_s22 + $0x10] sm:$0xc] }
  0x14   : > { %v3056_v15 = vcombine.low %v312_v11, %v272_v0  ;;  %v685_v17 = vrot.slane %v3052_v7, 1  ;;  %v601_v21 = vrot.slane %v3051_v13, 1  ;;  %v606_v28 = vrot.slane %v3473_v16, 1  ;;  %v3502_v45 = vld [vmem:[%s3451_s22 + $0x20] sm:$0xff]   ;;  %v318_v3 = vld [vmem:[%s3451_s22 + $0x10] sm:$0x8] }
  0x15   : > { %v602_v18 = vrot.slane %v3465_v9, 1  ;;  %v421_v20 = vshll.u32 %v3465_v9, 16  ;;  %v414_v24 = vshrl.u32 %v3470_v14, 16  ;;  %v416_v25 = vshll.u32 %v3470_v14, 16 }
  0x16   : > { %v861_v22 = vrot.slane %v3056_v15, 2  ;;  %v686_v23 = vsel %vm600_vm0, %v685_v17, %v604_v12  ;;  %v425_v31 = vshrl.u32 %v3465_v9, 16  ;;  %v429_v32 = vshll.u32 %v3460_v4, 16 }
  0x17   : > { %691 = vrot.lane.b32.xlu0 %v686_v23, %s3394_s23  ;;  %v603_v26 = vsel %vm600_vm0, %v601_v21, %v602_v18  ;;  %v423_v29 = vrot.slane %v421_v20, 1  ;;  %v418_v30 = vrot.slane %v416_v25, 1  ;;  %v433_v33 = vshrl.u32 %v3460_v4, 16 }
  0x18   : > { %v863_v27 = vsel %vm860_vm1, %v861_v22, %v862_v19  ;;  %638 = vrot.lane.b32.xlu1 %v603_v26, %s3395_s24  ;;  %v605_v35 = vsel %vm600_vm0, %v602_v18, %v604_v12  ;;  %v3492_v36 = vshll.u32 %v3473_v16, 16  ;;  %v3495_v37 = vshrl.u32 %v3473_v16, 16 }
  0x19   : > { %v732_v38 = vshrl.u32 %v3052_v7, 16  ;;  %v419_v39 = vor.u32 %v418_v30, %v414_v24  ;;  %v864_v40 = vrot.slane %v3473_v16, 2  ;;  %v427_v41 = vor.u32 %v425_v31, %v423_v29 }
  0x1a   : > { %v431_v42 = vrot.slane %v429_v32, 1  ;;  %v739_v43 = vrot.slane %v433_v33, 1  ;;  %v740_v44 = vrot.slane %v429_v32, 2  ;;  %v735_v48 = vshll.u32 %v3052_v7, 16  ;;  %v3567_v32 = vld [vmem:[%s3451_s22 + $0x28] sm:$0xff]  }
  0x1b   : > { %898 = vrot.lane.b32.xlu0 %v863_v27, %s3396_s25  ;;  %v424_v46 = vsel %vm412_vm2, %v419_v39, %v423_v29  ;;  %v734_v47 = vrot.slane %v732_v38, 1  ;;  %v3509_v49 = vsel %vm600_vm0, %v604_v12, %v606_v28  ;;  %v743_v50 = vrot.slane %v3495_v37, 1 }
  0x1c   : > { %640 = vrot.lane.b32.xlu1 %v605_v35, %s3395_s24  ;;  %v744_v51 = vrot.slane %v3492_v36, 2  ;;  %v3057_v52 = vcombine.low %v313_v34, %v3456_v2  ;;  %v737_v53 = vrot.slane %v735_v48, 2  ;;  %v432_v54 = vsel %vm412_vm2, %v427_v41, %v431_v42 }
  0x1d   : > { %v741_v55 = vor.u32 %v740_v44, %v739_v43  ;;  %v865_v59 = vsel %vm860_vm1, %v862_v19, %v864_v40  ;;  %v3522_v61 = vshll.u32 %v3502_v45, 16  ;;  %v3525_v62 = vshrl.u32 %v3502_v45, 16 }
  0x1e   : > { %v738_v56 = vor.u32 %v737_v53, %v734_v47  ;;  %v992_v57 = vshrl.u32 %v3057_v52, 16  ;;  %v995_v58 = vshll.u32 %v3057_v52, 16  ;;  %v3519_v60 = vor.u32 %v744_v51, %v743_v50  ;;  %v3350_v53 = vld [vmem:[%s5107_s1 + $0x10] ss:$0 sps:$4 sm:$0x33]  }
  0x1f   : > { %561 = vrot.lane.b32.xlu0 %v424_v46, %s3397_s26  ;;  %v999_v63 = vrot.slane %v3495_v37, 2  ;;  %v945_v0 = vrot.slane %v3057_v52, 2  ;;  %v1000_v1 = vrot.slane %v3492_v36, 3  ;;  %v866_v10 = vrot.slane %v3502_v45, 2  ;;  %3226 = vmatprep.subr.msk.bf16.mxu0 %vm1547_vm6, %v3350_v53 }
  0x20   : > { %693 = vrot.lane.b32.xlu1 %v3509_v49, %s3394_s23  ;;  %v742_v5 = vsel %vm730_vm3, %v738_v56, %v741_v55  ;;  %v994_v6 = vrot.slane %v992_v57, 2  ;;  %v997_v7 = vrot.slane %v995_v58, 3  ;;  %v746_v8 = vsel %vm730_vm3, %v741_v55, %v3519_v60  ;;  %3227 = vmatprep.subr.msk.bf16.mxu1 %vm1547_vm6, %v3350_v53 }
  0x21   : > { %v1003_v11 = vrot.slane %v3525_v62, 2  ;;  %v1004_v12 = vrot.slane %v3522_v61, 3  ;;  %v946_v13 = vsel %vm860_vm1, %v945_v0, %v864_v40  ;;  %v1001_v15 = vor.u32 %v1000_v1, %v999_v63  ;;  %v3353_v0 = vld [vmem:[%s5107_s1] sm:$0xff]  }
  0x22   : > { %v998_v17 = vor.u32 %v997_v7, %v994_v6  ;;  %v3061_v18 = vcombine.low %v318_v3, %v3456_v2  ;;  %v3545_v19 = vsel %vm860_vm1, %v864_v40, %v866_v10  ;;  %v1122_v2 = vrot.slane %v3473_v16, 3 }
  0x23   : > { %563 = vrot.lane.b32.xlu0 %v432_v54, %s3397_s26  ;;  %v3547_v20 = vor.u32 %v1004_v12, %v1003_v11  ;;  %v435_v24 = vor.u32 %v433_v33, %v431_v42  ;;  %v439_v25 = vrot.slane %v3492_v36, 1  ;;  %v1124_v27 = vrot.slane %v3502_v45, 3  ;;  %v3352_v54 = vld [vmem:[%s5107_s1 + $0x8] sm:$0xff]  }
  0x24   : > { %900 = vrot.lane.b32.xlu1 %v865_v59, %s3396_s25  ;;  %v1002_v21 = vsel %vm990_vm4, %v998_v17, %v1001_v15  ;;  %v1121_v22 = vrot.slane %v3061_v18, 3  ;;  %v447_v31 = vrot.slane %v3522_v61, 1  ;;  %v608_v35 = vrot.slane %v3502_v45, 1  ;;  %v3669_v17 = vld [vmem:[%s3451_s22 + $0x38] sm:$0xff]  }
  0x25   : > { %v1006_v23 = vsel %vm990_vm4, %v1001_v15, %v3547_v20  ;;  %v440_v29 = vsel %vm412_vm2, %v435_v24, %v439_v25  ;;  %v443_v30 = vor.u32 %v3495_v37, %v439_v25  ;;  %v1125_v33 = vsel %vm1120_vm5, %v1122_v2, %v1124_v27 }
  0x26   : > { %v1123_v26 = vsel %vm1120_vm5, %v1121_v22, %v1122_v2  ;;  %v3579_v36 = vshll.u32 %v3567_v32, 16  ;;  %v3582_v37 = vshrl.u32 %v3567_v32, 16  ;;  %v747_v38 = vrot.slane %v3525_v62, 1 }
  0x27   : > { %821 = vrot.lane.b32.xlu0 %v742_v5, %s3398_s27  ;;  %v448_v34 = vsel %vm412_vm2, %v443_v30, %v447_v31  ;;  %v748_v39 = vrot.slane %v3522_v61, 2  ;;  %v609_v40 = vsel %vm600_vm0, %v606_v28, %v608_v35  ;;  %v610_v41 = vrot.slane %v3567_v32, 1  ;;  %v3605_v28 = vld [vmem:[%s3451_s22 + $0x30] sm:$0xff]  }
  0x28   : > { %823 = vrot.lane.b32.xlu1 %v746_v8, %s3398_s27  ;;  %v751_v42 = vrot.slane %v3582_v37, 1  ;;  %v752_v43 = vrot.slane %v3579_v36, 2  ;;  %v868_v50 = vrot.slane %v3567_v32, 2  ;;  %v3616_v51 = vshll.u32 %v3605_v28, 16 }
  0x29   : > { %v749_v44 = vor.u32 %v748_v39, %v747_v38  ;;  %v3600_v46 = vsel %vm600_vm0, %v608_v35, %v610_v41  ;;  %v3619_v52 = vshrl.u32 %v3605_v28, 16  ;;  %v870_v55 = vrot.slane %v3605_v28, 2 }
  0x2a   : > { %v3602_v47 = vor.u32 %v752_v43, %v751_v42  ;;  %v1007_v56 = vrot.slane %v3582_v37, 2  ;;  %v1008_v57 = vrot.slane %v3579_v36, 3  ;;  %v869_v58 = vsel %vm860_vm1, %v866_v10, %v868_v50 }
  0x2b   : > { %951 = vrot.lane.b32.xlu0 %v946_v13, %s3399_s28  ;;  %v750_v48 = vsel %vm730_vm3, %v3519_v60, %v749_v44  ;;  %v1011_v59 = vrot.slane %v3619_v52, 2  ;;  %v1012_v60 = vrot.slane %v3616_v51, 3  ;;  %v1549_v63 = vsel %vm1547_vm6, %v3350_v53, 0 }
  0x2c   : > { %953 = vrot.lane.b32.xlu1 %v3545_v19, %s3399_s28  ;;  %3179 = vmatpush3.bf16.msra.mxu0 %v1549_v63  ;;  %v1009_v1 = vor.u32 %v1008_v57, %v1007_v56  ;;  %v871_v3 = vsel %vm860_vm1, %v868_v50, %v870_v55  ;;  %v1126_v7 = vrot.slane %v3567_v32, 3  ;;  %v451_v10 = vor.u32 %v3525_v62, %v447_v31 }
  0x2d   : > { %3223 = vmatpush3.bf16.msra.mxu1 %v1549_v63  ;;  %3180 = vmatprep.subr.bf16.mxu0 %v3352_v54  ;;  %v3646_v5 = vor.u32 %v1012_v60, %v1011_v59  ;;  %v455_v11 = vrot.slane %v3579_v36, 1  ;;  %v1128_v13 = vrot.slane %v3605_v28, 3  ;;  %v463_v62 = vrot.slane %v3616_v51, 1  ;;  %v3730_v60 = vld [vmem:[%s3451_s22 + $0x48] sm:$0xff]  }
  0x2e   : > { %3221 = vmatprep.subr.bf16.mxu1 %v3352_v54  ;;  %v1010_v6 = vsel %vm990_vm4, %v3547_v20, %v1009_v1  ;;  %v1127_v12 = vsel %vm1120_vm5, %v1124_v27, %v1126_v7  ;;  %v612_v20 = vrot.slane %v3605_v28, 1  ;;  %v473_v22 = vshrl.u32 %v3669_v17, 16 }
  0x2f   : > { %1081 = vrot.lane.b32.xlu0 %v1002_v21, %s3400_s29  ;;  %v1014_v8 = vsel %vm990_vm4, %v1009_v1, %v3646_v5  ;;  %v456_v15 = vsel %vm412_vm2, %v451_v10, %v455_v11  ;;  %v459_v61 = vor.u32 %v3582_v37, %v455_v11  ;;  %v1129_v18 = vsel %vm1120_vm5, %v1126_v7, %v1128_v13 }
  0x30   : > { %1083 = vrot.lane.b32.xlu1 %v1006_v23, %s3400_s29  ;;  %3181 = vmatpush3.bf16.msra.mxu0 %v3352_v54  ;;  %v469_v21 = vshll.u32 %v3669_v17, 16  ;;  %v755_v2 = vrot.slane %v3619_v52, 1  ;;  %v756_v23 = vrot.slane %v3616_v51, 2  ;;  %v613_v24 = vsel %vm600_vm0, %v610_v41, %v612_v20 }
  0x31   : > { %3224 = vmatpush3.bf16.msra.mxu1 %v3352_v54  ;;  %3182 = vmatprep.subr.bf16.mxu0 %v3353_v0  ;;  %v614_v25 = vrot.slane %v3669_v17, 1  ;;  %v872_v36 = vrot.slane %v3669_v17, 2  ;;  %v1015_v39 = vrot.slane %v473_v22, 2  ;;  %v1130_v50 = vrot.slane %v3669_v17, 3 }
  0x32   : > { %3222 = vmatprep.subr.bf16.mxu1 %v3353_v0  ;;  %v760_v27 = vrot.slane %v469_v21, 2  ;;  %v467_v53 = vor.u32 %v3619_v52, %v463_v62  ;;  %v471_v54 = vrot.slane %v469_v21, 1  ;;  %v485_v1 = vshll.u32 %v3730_v60, 16 }
  0x33   : > { %1158 = vrot.lane.b32.xlu0 %v1123_v26, %s3401_s30  ;;  %v759_v26 = vrot.slane %v473_v22, 1  ;;  %v615_v30 = vsel %vm600_vm0, %v612_v20, %v614_v25  ;;  %v873_v41 = vsel %vm860_vm1, %v870_v55, %v872_v36  ;;  %v1131_v55 = vsel %vm1120_vm5, %v1128_v13, %v1130_v50 }
  0x34   : > { %565 = vrot.lane.b32.xlu1 %v440_v29, %s3397_s26  ;;  %3183 = vmatpush3.bf16.msra.mxu0 %v3353_v0  ;;  %v757_v29 = vor.u32 %v756_v23, %v755_v2  ;;  %v472_v57 = vsel %vm412_vm2, %v467_v53, %v471_v54  ;;  %v768_v11 = vrot.slane %v485_v1, 2  ;;  %v1024_v2 = vrot.slane %v485_v1, 3 }
  0x35   : > { %3225 = vmatpush3.bf16.msra.mxu1 %v3353_v0  ;;  %v761_v31 = vor.u32 %v760_v27, %v759_v26 }
  0x37   : > { %1160 = vrot.lane.b32.xlu0 %v1125_v33, %s3401_s30  ;;  %v3691_v33 = vld [vmem:[%s3451_s22 + $0x40] sm:$0xff]   ;;  %v762_v35 = vsel %vm730_vm3, %v757_v29, %v761_v31 }
  0x38   : > { %567 = vrot.lane.b32.xlu1 %v448_v34, %s3397_s26  ;;  %v758_v34 = vsel %vm730_vm3, %v3602_v47, %v757_v29  ;;  %v3700_v37 = vshll.u32 %v3691_v33, 16  ;;  %v3703_v38 = vshrl.u32 %v3691_v33, 16  ;;  %v874_v42 = vrot.slane %v3691_v33, 2 }
  0x39   : > { %v1132_v56 = vrot.slane %v3691_v33, 3  ;;  %v616_v0 = vrot.slane %v3691_v33, 1 }
  0x3a   : > { %v1019_v43 = vrot.slane %v3703_v38, 2  ;;  %v479_v59 = vrot.slane %v3700_v37, 1 }
  0x3b   : > { %642 = vrot.lane.b32.xlu0 %v3509_v49, %s3395_s24  ;;  %v754_v49 = vsel %vm730_vm3, %v749_v44, %v3602_v47  ;;  %v1020_v44 = vrot.slane %v3700_v37, 3  ;;  %v875_v47 = vsel %vm860_vm1, %v872_v36, %v874_v42  ;;  %v1133_v52 = vsel %vm1120_vm5, %v1130_v50, %v1132_v56  ;;  %v3802_v50 = vld [vmem:[%s3451_s22 + $0x58] sm:$0xff]  }
  0x3c   : > { %644 = vrot.lane.b32.xlu1 %v609_v40, %s3395_s24  ;;  %v617_v7 = vsel %vm600_vm0, %v614_v25, %v616_v0  ;;  %v1134_v36 = vrot.slane %v3730_v60, 3 }
  0x3f   : > { %695 = vrot.lane.b32.xlu0 %v609_v40, %s3394_s23  ;;  %v1016_v40 = vrot.slane %v469_v21, 3 }
  0x40   : > { %697 = vrot.lane.b32.xlu1 %v3600_v46, %s3394_s23 }
  0x43   : > { %825 = vrot.lane.b32.xlu0 %v750_v48, %s3398_s27  ;;  %v1021_v48 = vor.u32 %v1020_v44, %v1019_v43  ;;  %v1135_v43 = vsel %vm1120_vm5, %v1132_v56, %v1134_v36  ;;  %v3814_v56 = vshll.u32 %v3802_v50, 16 }
  0x44   : > { %827 = vrot.lane.b32.xlu1 %v754_v49, %s3398_s27 }
  0x47   : > { %902 = vrot.lane.b32.xlu0 %v3545_v19, %s3396_s25  ;;  %v464_v19 = vsel %vm412_vm2, %v459_v61, %v463_v62  ;;  %v3755_v61 = vld [vmem:[%s3451_s22 + $0x50] sm:$0xff]  }
  0x48   : > { %904 = vrot.lane.b32.xlu1 %v869_v58, %s3396_s25  ;;  %v3765_v20 = vshll.u32 %v3755_v61, 16  ;;  %v3768_v21 = vshrl.u32 %v3755_v61, 16  ;;  %v1136_v44 = vrot.slane %v3755_v61, 3 }
  0x4a   : > { %v1027_v25 = vrot.slane %v3768_v21, 2  ;;  %v1028_v26 = vrot.slane %v3765_v20, 3 }
  0x4b   : > { %955 = vrot.lane.b32.xlu0 %v869_v58, %s3399_s28  ;;  %v475_v58 = vor.u32 %v473_v22, %v471_v54 }
  0x4c   : > { %957 = vrot.lane.b32.xlu1 %v871_v3, %s3399_s28 }
  0x4d   : > { %v480_v63 = vsel %vm412_vm2, %v475_v58, %v479_v59 }
  0x4f   : > { %1085 = vrot.lane.b32.xlu0 %v1010_v6, %s3400_s29  ;;  %v764_v6 = vrot.slane %v3700_v37, 2 }
  0x50   : > { %1087 = vrot.lane.b32.xlu1 %v1014_v8, %s3400_s29  ;;  %v618_v8 = vrot.slane %v3730_v60, 1 }
  0x52   : > { %v3750_v13 = vsel %vm600_vm0, %v616_v0, %v618_v8 }
  0x53   : > { %1162 = vrot.lane.b32.xlu0 %v1127_v12, %s3401_s30 }
  0x54   : > { %569 = vrot.lane.b32.xlu1 %v456_v15, %s3397_s26 }
  0x57   : > { %1164 = vrot.lane.b32.xlu0 %v1129_v18, %s3401_s30 }
  0x58   : > { %571 = vrot.lane.b32.xlu1 %v464_v19, %s3397_s26  ;;  %v876_v19 = vrot.slane %v3730_v60, 2 }
  0x5a   : > { %v877_v23 = vsel %vm860_vm1, %v874_v42, %v876_v19 }
  0x5b   : > { %646 = vrot.lane.b32.xlu0 %v3600_v46, %s3395_s24  ;;  %v1017_v46 = vor.u32 %v1016_v40, %v1015_v39  ;;  %v483_v40 = vor.u32 %v3703_v38, %v479_v59  ;;  %v622_v59 = vrot.slane %v3802_v50, 1 }
  0x5c   : > { %648 = vrot.lane.b32.xlu1 %v613_v24, %s3395_s24 }
  0x5d   : > { %v1018_v49 = vsel %vm990_vm4, %v3646_v5, %v1017_v46  ;;  %v1022_v51 = vsel %vm990_vm4, %v1017_v46, %v1021_v48  ;;  %v763_v5 = vrot.slane %v3703_v38, 1  ;;  %v1137_v38 = vsel %vm1120_vm5, %v1134_v36, %v1136_v44 }
  0x5f   : > { %699 = vrot.lane.b32.xlu0 %v613_v24, %s3394_s23  ;;  %v765_v12 = vor.u32 %v764_v6, %v763_v5  ;;  %v878_v24 = vrot.slane %v3755_v61, 2  ;;  %v776_v6 = vrot.slane %v3814_v56, 2 }
  0x60   : > { %701 = vrot.lane.b32.xlu1 %v615_v30, %s3394_s23 }
  0x61   : > { %v766_v62 = vsel %vm730_vm3, %v761_v31, %v765_v12  ;;  %v3783_v31 = vor.u32 %v1028_v26, %v1027_v25 }
  0x63   : > { %829 = vrot.lane.b32.xlu0 %v758_v34, %s3398_s27 }
  0x64   : > { %831 = vrot.lane.b32.xlu1 %v762_v35, %s3398_s27 }
  0x67   : > { %906 = vrot.lane.b32.xlu0 %v871_v3, %s3396_s25  ;;  %v489_v3 = vshrl.u32 %v3730_v60, 16 }
  0x68   : > { %908 = vrot.lane.b32.xlu1 %v873_v41, %s3396_s25 }
  0x69   : > { %v767_v10 = vrot.slane %v489_v3, 1  ;;  %v1023_v22 = vrot.slane %v489_v3, 2 }
  0x6b   : > { %959 = vrot.lane.b32.xlu0 %v873_v41, %s3399_s28  ;;  %v3752_v15 = vor.u32 %v768_v11, %v767_v10  ;;  %v1025_v27 = vor.u32 %v1024_v2, %v1023_v22  ;;  %v487_v41 = vrot.slane %v485_v1, 1 }
  0x6c   : > { %961 = vrot.lane.b32.xlu1 %v875_v47, %s3399_s28 }
  0x6d   : > { %v770_v18 = vsel %vm730_vm3, %v765_v12, %v3752_v15  ;;  %v1026_v35 = vsel %vm990_vm4, %v1021_v48, %v1025_v27  ;;  %v1030_v39 = vsel %vm990_vm4, %v1025_v27, %v3783_v31  ;;  %v491_v48 = vor.u32 %v489_v3, %v487_v41 }
  0x6f   : > { %1089 = vrot.lane.b32.xlu0 %v1018_v49, %s3400_s29  ;;  %v495_v49 = vrot.slane %v3765_v20, 1 }
  0x70   : > { %1091 = vrot.lane.b32.xlu1 %v1022_v51, %s3400_s29 }
  0x71   : > { %v496_v54 = vsel %vm412_vm2, %v491_v48, %v495_v49 }
  0x73   : > { %1166 = vrot.lane.b32.xlu0 %v1131_v55, %s3401_s30  ;;  %v620_v55 = vrot.slane %v3755_v61, 1 }
  0x74   : > { %573 = vrot.lane.b32.xlu1 %v472_v57, %s3397_s26  ;;  %v3817_v57 = vshrl.u32 %v3802_v50, 16 }
  0x75   : > { %v621_v3 = vsel %vm600_vm0, %v618_v8, %v620_v55  ;;  %v3840_v8 = vsel %vm600_vm0, %v620_v55, %v622_v59 }
  0x76   : > { %v775_v5 = vrot.slane %v3817_v57, 1 }
  0x77   : > { %1168 = vrot.lane.b32.xlu0 %v1133_v52, %s3401_s30  ;;  %v771_v52 = vrot.slane %v3768_v21, 1 }
  0x78   : > { %575 = vrot.lane.b32.xlu1 %v480_v63, %s3397_s26  ;;  %v772_v63 = vrot.slane %v3765_v20, 2 }
  0x7b   : > { %650 = vrot.lane.b32.xlu0 %v615_v30, %s3395_s24  ;;  %v3781_v30 = vsel %vm860_vm1, %v876_v19, %v878_v24 }
  0x7c   : > { %652 = vrot.lane.b32.xlu1 %v617_v7, %s3395_s24 }
  0x7f   : > { %703 = vrot.lane.b32.xlu0 %v617_v7, %s3394_s23 }
  0x80   : > { %705 = vrot.lane.b32.xlu1 %v3750_v13, %s3394_s23 }
  0x83   : > { %833 = vrot.lane.b32.xlu0 %v766_v62, %s3398_s27  ;;  %v3842_v62 = vor.u32 %v776_v6, %v775_v5 }
  0x84   : > { %835 = vrot.lane.b32.xlu1 %v770_v18, %s3398_s27  ;;  %v3845_v18 = vld [vmem:[%s3451_s22 + $0x60] sm:$0xff]  }
  0x87   : > { %910 = vrot.lane.b32.xlu0 %v875_v47, %s3396_s25  ;;  %v488_v47 = vsel %vm412_vm2, %v483_v40, %v487_v41  ;;  %v1031_v41 = vrot.slane %v3817_v57, 2 }
  0x88   : > { %912 = vrot.lane.b32.xlu1 %v877_v23, %s3396_s25 }
  0x89   : > { %v692_v29 = vpop.permute.xlu0 %691 }
  0x8a   : > { %v639_v34 = vpop.permute.xlu1 %638 }
  0x8b   : > { %963 = vrot.lane.b32.xlu0 %v877_v23, %s3399_s28  ;;  %v880_v23 = vrot.slane %v3802_v50, 2 }
  0x8c   : > { %965 = vrot.lane.b32.xlu1 %v3781_v30, %s3399_s28 }
  0x8d   : > { %v3790_v37 = vpop.permute.xlu0 %898 }
  0x8e   : > { %v641_v42 = vpop.permute.xlu1 %640 }
  0x8f   : > { %1093 = vrot.lane.b32.xlu0 %v1026_v35, %s3400_s29 }
  0x90   : > { %1095 = vrot.lane.b32.xlu1 %v1030_v39, %s3400_s29 }
  0x91   : > { %v562_v46 = vpop.permute.xlu0 %561 }
  0x92   : > { %v694_v51 = vpop.permute.xlu1 %693  ;;  %v1196_v0 = vsel %vm5112_vm7, %v3470_v14, %v562_v46  ;;  %v773_v14 = vor.u32 %v772_v63, %v771_v52 }
  0x93   : > { %1170 = vrot.lane.b32.xlu0 %v1135_v43, %s3401_s30  ;;  %v1233_v11 = vsel %vm1231_vm8, %v1196_v0, %v639_v34  ;;  %v3863_v34 = vshrl.u32 %v3845_v18, 16 }
  0x94   : > { %577 = vrot.lane.b32.xlu1 %v488_v47, %s3397_s26  ;;  %v1270_v19 = vsel %vm1268_vm9, %v1233_v11, %v692_v29  ;;  %v774_v2 = vsel %vm730_vm3, %v3752_v15, %v773_v14  ;;  %v778_v27 = vsel %vm730_vm3, %v773_v14, %v3842_v62  ;;  %v3860_v29 = vshll.u32 %v3845_v18, 16 }
  0x95   : > { %v564_v53 = vpop.permute.xlu0 %563  ;;  %v882_v15 = vrot.slane %v3845_v18, 2  ;;  %v1035_v47 = vrot.slane %v3863_v34, 2  ;;  %v1140_v14 = vrot.slane %v3845_v18, 3 }
  0x96   : > { %v901_v58 = vpop.permute.xlu1 %900  ;;  %v1198_v10 = vsel %vm5112_vm7, %v3465_v9, %v564_v53  ;;  %v1036_v48 = vrot.slane %v3860_v29, 3 }
  0x97   : > { %1172 = vrot.lane.b32.xlu0 %v1137_v38, %s3401_s30  ;;  %v1235_v9 = vsel %vm1231_vm8, %v1198_v10, %v641_v42  ;;  %v1032_v42 = vrot.slane %v3814_v56, 3  ;;  %v3891_v63 = vsel %vm860_vm1, %v880_v23, %v882_v15  ;;  %v503_v10 = vrot.slane %v3814_v56, 1 }
  0x98   : > { %579 = vrot.lane.b32.xlu1 %v496_v54, %s3397_s26  ;;  %v1272_v25 = vsel %vm1268_vm9, %v1235_v9, %v694_v51  ;;  %v3893_v0 = vor.u32 %v1036_v48, %v1035_v47 }
  0x99   : > { %v822_v1 = vpop.permute.xlu0 %821  ;;  %v1033_v55 = vor.u32 %v1032_v42, %v1031_v41  ;;  %v507_v20 = vor.u32 %v3817_v57, %v503_v10  ;;  %v624_v57 = vrot.slane %v3845_v18, 1 }
  0x9a   : > { %v824_v7 = vpop.permute.xlu1 %823  ;;  %v1307_v22 = vsel %vm1305_vm10, %v1270_v19, %v822_v1 }
  0x9b   : > { %654 = vrot.lane.b32.xlu0 %v3750_v13, %s3395_s24  ;;  %v1344_v36 = vsel %vm1342_vm11, %v1307_v22, %v3790_v37  ;;  %v1309_v39 = vsel %vm1305_vm10, %v1272_v25, %v824_v7  ;;  %v881_v37 = vsel %vm860_vm1, %v878_v24, %v880_v23  ;;  %v1034_v1 = vsel %vm990_vm4, %v3783_v31, %v1033_v55 }
  0x9c   : > { %656 = vrot.lane.b32.xlu1 %v621_v3, %s3395_s24  ;;  %v1346_v53 = vsel %vm1342_vm11, %v1309_v39, %v901_v58  ;;  %v1038_v6 = vsel %vm990_vm4, %v1033_v55, %v3893_v0  ;;  %v499_v7 = vor.u32 %v3768_v21, %v495_v49  ;;  %v511_v21 = vrot.slane %v3860_v29, 1  ;;  %v3921_v49 = vld [vmem:[%s3451_s22 + $0x68] sm:$0xff]  }
  0x9d   : > { %v952_v12 = vpop.permute.xlu0 %951  ;;  %v3933_v19 = vshll.u32 %v3921_v49, 16  ;;  %v3936_v22 = vshrl.u32 %v3921_v49, 16  ;;  %v779_v23 = vrot.slane %v3863_v34, 1  ;;  %v780_v25 = vrot.slane %v3860_v29, 2 }
  0x9e   : > { %v954_v13 = vpop.permute.xlu1 %953  ;;  %v1381_v40 = vsel %vm1379_vm12, %v1344_v36, %v952_v12  ;;  %v504_v9 = vsel %vm412_vm2, %v499_v7, %v503_v10 }
  0x9f   : > { %707 = vrot.lane.b32.xlu0 %v621_v3, %s3394_s23  ;;  %v1383_v54 = vsel %vm1379_vm12, %v1346_v53, %v954_v13  ;;  %v1138_v3 = vrot.slane %v3802_v50, 3  ;;  %v512_v13 = vsel %vm412_vm2, %v507_v20, %v511_v21  ;;  %v783_v36 = vrot.slane %v3936_v22, 1 }
  0xa0   : > { %709 = vrot.lane.b32.xlu1 %v3840_v8, %s3394_s23  ;;  %v784_v39 = vrot.slane %v3933_v19, 2  ;;  %v781_v41 = vor.u32 %v780_v25, %v779_v23 }
  0xa1   : > { %v1082_v26 = vpop.permute.xlu0 %1081  ;;  %v1139_v31 = vsel %vm1120_vm5, %v1136_v44, %v1138_v3  ;;  %v1141_v61 = vsel %vm1120_vm5, %v1138_v3, %v1140_v14  ;;  %v1039_v3 = vrot.slane %v3936_v22, 2 }
  0xa2   : > { %v1084_v35 = vpop.permute.xlu1 %1083  ;;  %v1418_v43 = vsel %vm1416_vm13, %v1381_v40, %v1082_v26  ;;  %v782_v48 = vsel %vm730_vm3, %v3842_v62, %v781_v41 }
  0xa3   : > { %837 = vrot.lane.b32.xlu0 %v774_v2, %s3398_s27  ;;  %v1420_v24 = vsel %vm1416_vm13, %v1383_v54, %v1084_v35  ;;  %v626_v35 = vrot.slane %v3921_v49, 1 }
  0xa4   : > { %839 = vrot.lane.b32.xlu1 %v778_v27, %s3398_s27  ;;  %v625_v27 = vsel %vm600_vm0, %v622_v59, %v624_v57  ;;  %v3956_v59 = vor.u32 %v784_v39, %v783_v36 }
  0xa5   : > { %v1159_v46 = vpop.permute.xlu0 %1158 }
  0xa6   : > { %v566_v51 = vpop.permute.xlu1 %565  ;;  %v1455_v38 = vsel %vm1453_vm14, %v1418_v43, %v1159_v46  ;;  %v3954_v43 = vsel %vm600_vm0, %v624_v57, %v626_v35  ;;  %v3959_v46 = vld [vmem:[%s3451_s22 + $0x70] sm:$0xff]   ;;  %v786_v55 = vsel %vm730_vm3, %v781_v41, %v3956_v59  ;;  %v519_v41 = vrot.slane %v3933_v19, 1 }
  0xa7   : > { %914 = vrot.lane.b32.xlu0 %v3781_v30, %s3396_s25  ;;  %3184 = vmatprep.mubr.msk.bf16.mxu0 %vm5111_vm15, %v1455_v38  ;;  %v1200_v47 = vsel %vm5112_vm7, %v3460_v4, %v566_v51  ;;  %v884_v38 = vrot.slane %v3921_v49, 2  ;;  %v3974_v4 = vshll.u32 %v3959_v46, 16  ;;  %v3977_v51 = vshrl.u32 %v3959_v46, 16 }
  0xa8   : > { %916 = vrot.lane.b32.xlu1 %v881_v37, %s3396_s25  ;;  %v523_v29 = vor.u32 %v3936_v22, %v519_v41  ;;  %v628_v22 = vrot.slane %v3959_v46, 1 }
  0xa9   : > { %v1161_v52 = vpop.permute.xlu0 %1160  ;;  %v885_v7 = vsel %vm860_vm1, %v882_v15, %v884_v38 }
  0xaa   : > { %v3895_v58 = vpop.permute.xlu1 %567  ;;  %v1457_v30 = vsel %vm1453_vm14, %v1420_v24, %v1161_v52 }
  0xab   : > { %967 = vrot.lane.b32.xlu0 %v881_v37, %s3399_s28  ;;  %3185 = vmatmul.mubr.msk.bf16.vlgmr.msra.gmra.mxu0 %vm5111_vm15, %v1457_v30  ;;  %v1202_v62 = vsel %vm5112_vm7, %v3473_v16, %v3895_v58  ;;  %v1040_v16 = vrot.slane %v3933_v19, 3 }
  0xac   : > { %969 = vrot.lane.b32.xlu1 %v3891_v63, %s3399_s28 }
  0xad   : > { %v643_v5 = vpop.permute.xlu0 %642 }
  0xae   : > { %v645_v11 = vpop.permute.xlu1 %644 }
  0xaf   : > { %1097 = vrot.lane.b32.xlu0 %v1034_v1, %s3400_s29  ;;  %v886_v1 = vrot.slane %v3959_v46, 2 }
  0xb0   : > { %1099 = vrot.lane.b32.xlu1 %v1038_v6, %s3400_s29 }
  0xb1   : > { %v696_v12 = vpop.permute.xlu0 %695 }
  0xb2   : > { %v698_v56 = vpop.permute.xlu1 %697 }
  0xb3   : > { %1174 = vrot.lane.b32.xlu0 %v1139_v31, %s3401_s30 }
  0xb4   : > { %581 = vrot.lane.b32.xlu1 %v504_v9, %s3397_s26  ;;  %v1044_v9 = vrot.slane %v3974_v4, 3 }
  0xb5   : > { %v826_v44 = vpop.permute.xlu0 %825 }
  0xb6   : > { %v828_v2 = vpop.permute.xlu1 %827 }
  0xb7   : > { %1176 = vrot.lane.b32.xlu0 %v1141_v61, %s3401_s30 }
  0xb8   : > { %583 = vrot.lane.b32.xlu1 %v512_v13, %s3397_s26 }
  0xb9   : > { %v903_v26 = vpop.permute.xlu0 %902 }
  0xba   : > { %v905_v40 = vpop.permute.xlu1 %904 }
  0xbb   : > { %658 = vrot.lane.b32.xlu0 %v3840_v8, %s3395_s24  ;;  %v1237_v8 = vsel %vm1231_vm8, %v1200_v47, %v643_v5  ;;  %v1239_v5 = vsel %vm1231_vm8, %v1202_v62, %v645_v11 }
  0xbc   : > { %660 = vrot.lane.b32.xlu1 %v625_v27, %s3395_s24  ;;  %v1274_v53 = vsel %vm1268_vm9, %v1237_v8, %v696_v12  ;;  %v1276_v58 = vsel %vm1268_vm9, %v1239_v5, %v698_v56  ;;  %v1043_v12 = vrot.slane %v3977_v51, 2  ;;  %v1041_v56 = vor.u32 %v1040_v16, %v1039_v3 }
  0xbd   : > { %v956_v42 = vpop.permute.xlu0 %955  ;;  %v1311_v24 = vsel %vm1305_vm10, %v1274_v53, %v826_v44  ;;  %v1313_v11 = vsel %vm1305_vm10, %v1276_v58, %v828_v2  ;;  %v4010_v2 = vsel %vm860_vm1, %v884_v38, %v886_v1 }
  0xbe   : > { %v958_v37 = vpop.permute.xlu1 %957  ;;  %v1348_v30 = vsel %vm1342_vm11, %v1311_v24, %v903_v26  ;;  %v1350_v44 = vsel %vm1342_vm11, %v1313_v11, %v905_v40  ;;  %v4012_v23 = vor.u32 %v1044_v9, %v1043_v12  ;;  %v1042_v26 = vsel %vm990_vm4, %v3893_v0, %v1041_v56 }
  0xbf   : > { %711 = vrot.lane.b32.xlu0 %v625_v27, %s3394_s23  ;;  %v1385_v6 = vsel %vm1379_vm12, %v1348_v30, %v956_v42  ;;  %v1387_v15 = vsel %vm1379_vm12, %v1350_v44, %v958_v37  ;;  %v1142_v27 = vrot.slane %v3921_v49, 3  ;;  %v515_v40 = vor.u32 %v3863_v34, %v511_v21  ;;  %v4040_v21 = vld [vmem:[%s3451_s22 + $0x78] sm:$0xff]  }
  0xc0   : > { %713 = vrot.lane.b32.xlu1 %v3954_v43, %s3394_s23  ;;  %v1046_v39 = vsel %vm990_vm4, %v1041_v56, %v4012_v23  ;;  %v1144_v37 = vrot.slane %v3959_v46, 3  ;;  %v527_v34 = vrot.slane %v3974_v4, 1  ;;  %v4052_v53 = vshll.u32 %v4040_v21, 16 }
  0xc1   : > { %v1086_v54 = vpop.permute.xlu0 %1085  ;;  %v1143_v0 = vsel %vm1120_vm5, %v1140_v14, %v1142_v27  ;;  %v520_v8 = vsel %vm412_vm2, %v515_v40, %v519_v41  ;;  %v787_v24 = vrot.slane %v3977_v51, 1  ;;  %v629_v30 = vsel %vm600_vm0, %v626_v35, %v628_v22 }
  0xc2   : > { %v1088_v52 = vpop.permute.xlu1 %1087  ;;  %v1422_v10 = vsel %vm1416_vm13, %v1385_v6, %v1086_v54  ;;  %v1145_v14 = vsel %vm1120_vm5, %v1142_v27, %v1144_v37  ;;  %v528_v38 = vsel %vm412_vm2, %v523_v29, %v527_v34  ;;  %v4055_v54 = vshrl.u32 %v4040_v21, 16 }
  0xc3   : > { %841 = vrot.lane.b32.xlu0 %v782_v48, %s3398_s27  ;;  %v1424_v13 = vsel %vm1416_vm13, %v1387_v15, %v1088_v52  ;;  %v788_v52 = vrot.slane %v3974_v4, 2  ;;  %v630_v3 = vrot.slane %v4040_v21, 1  ;;  %v792_v6 = vrot.slane %v4052_v53, 2 }
  0xc4   : > { %843 = vrot.lane.b32.xlu1 %v786_v55, %s3398_s27  ;;  %v791_v5 = vrot.slane %v4055_v54, 1  ;;  %v1047_v40 = vrot.slane %v4055_v54, 2 }
  0xc5   : > { %v1163_v31 = vpop.permute.xlu0 %1162  ;;  %v789_v16 = vor.u32 %v788_v52, %v787_v24 }
  0xc6   : > { %v570_v20 = vpop.permute.xlu1 %569  ;;  %v1459_v61 = vsel %vm1453_vm14, %v1422_v10, %v1163_v31  ;;  %v4073_v10 = vsel %vm600_vm0, %v628_v22, %v630_v3  ;;  %v4075_v35 = vor.u32 %v792_v6, %v791_v5  ;;  %v4078_v31 = vld [vmem:[%s3451_s22 + $0x80] sm:$0xff]  }
  0xc7   : > { %918 = vrot.lane.b32.xlu0 %v3891_v63, %s3396_s25  ;;  %3188 = vmatprep.mubr.msk.bf16.mxu0 %vm5111_vm15, %v1459_v61  ;;  %v1204_v9 = vsel %vm5112_vm7, %v3502_v45, %v570_v20  ;;  %v790_v61 = vsel %vm730_vm3, %v3956_v59, %v789_v16  ;;  %v4093_v45 = vshll.u32 %v4078_v31, 16  ;;  %v4096_v20 = vshrl.u32 %v4078_v31, 16 }
  0xc8   : > { %920 = vrot.lane.b32.xlu1 %v885_v7, %s3396_s25  ;;  %v794_v56 = vsel %vm730_vm3, %v789_v16, %v4075_v35  ;;  %v890_v27 = vrot.slane %v4078_v31, 2  ;;  %v535_v16 = vrot.slane %v4052_v53, 1 }
  0xc9   : > { %v1165_v57 = vpop.permute.xlu0 %1164 }
  0xca   : > { %v4014_v25 = vpop.permute.xlu1 %571  ;;  %v1461_v63 = vsel %vm1453_vm14, %v1424_v13, %v1165_v57  ;;  %v539_v4 = vor.u32 %v4055_v54, %v535_v16  ;;  %v632_v54 = vrot.slane %v4078_v31, 1 }
  0xcb   : > { %971 = vrot.lane.b32.xlu0 %v885_v7, %s3399_s28  ;;  %3189 = vmatmul.mubr.msk.bf16.gmra.mxu0 %vm5111_vm15, %v1461_v63  ;;  %v1206_v63 = vsel %vm5112_vm7, %v3567_v32, %v4014_v25  ;;  %v1048_v32 = vrot.slane %v4052_v53, 3 }
  0xcc   : > { %973 = vrot.lane.b32.xlu1 %v4010_v2, %s3399_s28 }
  0xcd   : > { %v647_v36 = vpop.permute.xlu0 %646 }
  0xce   : > { %v649_v42 = vpop.permute.xlu1 %648  ;;  %v1241_v11 = vsel %vm1231_vm8, %v1204_v9, %v647_v36 }
  0xcf   : > { %1101 = vrot.lane.b32.xlu0 %v1042_v26, %s3400_s29  ;;  %v1243_v36 = vsel %vm1231_vm8, %v1206_v63, %v649_v42  ;;  %v633_v63 = vsel %vm600_vm0, %v630_v3, %v632_v54 }
  0xd0   : > { %1103 = vrot.lane.b32.xlu1 %v1046_v39, %s3400_s29 }
  0xd1   : > { %v700_v47 = vpop.permute.xlu0 %699 }
  0xd2   : > { %v702_v19 = vpop.permute.xlu1 %701  ;;  %v1278_v44 = vsel %vm1268_vm9, %v1241_v11, %v700_v47  ;;  %v1051_v47 = vrot.slane %v4096_v20, 2 }
  0xd3   : > { %1178 = vrot.lane.b32.xlu0 %v1143_v0, %s3401_s30  ;;  %v1280_v25 = vsel %vm1268_vm9, %v1243_v36, %v702_v19 }
  0xd4   : > { %585 = vrot.lane.b32.xlu1 %v520_v8, %s3397_s26 }
  0xd5   : > { %v830_v48 = vpop.permute.xlu0 %829 }
  0xd6   : > { %v832_v55 = vpop.permute.xlu1 %831  ;;  %v1315_v13 = vsel %vm1305_vm10, %v1278_v44, %v830_v48  ;;  %v1049_v48 = vor.u32 %v1048_v32, %v1047_v40 }
  0xd7   : > { %1180 = vrot.lane.b32.xlu0 %v1145_v14, %s3401_s30  ;;  %v1317_v8 = vsel %vm1305_vm10, %v1280_v25, %v832_v55 }
  0xd8   : > { %587 = vrot.lane.b32.xlu1 %v528_v38, %s3397_s26 }
  0xd9   : > { %v907_v62 = vpop.permute.xlu0 %906 }
  0xda   : > { %v909_v7 = vpop.permute.xlu1 %908  ;;  %v1352_v59 = vsel %vm1342_vm11, %v1315_v13, %v907_v62  ;;  %v1050_v62 = vsel %vm990_vm4, %v4012_v23, %v1049_v48  ;;  %v796_v13 = vrot.slane %v4093_v45, 2 }
  0xdb   : > { %662 = vrot.lane.b32.xlu0 %v3954_v43, %s3395_s24  ;;  %v888_v43 = vrot.slane %v4040_v21, 2  ;;  %v1354_v14 = vsel %vm1342_vm11, %v1317_v8, %v909_v7  ;;  %v531_v7 = vor.u32 %v3977_v51, %v527_v34  ;;  %v543_v51 = vrot.slane %v4093_v45, 1  ;;  %v4159_v34 = vld [vmem:[%s3451_s22 + $0x88] sm:$0xff]  }
  0xdc   : > { %664 = vrot.lane.b32.xlu1 %v629_v30, %s3395_s24  ;;  %v4174_v44 = vshrl.u32 %v4159_v34, 16 }
  0xdd   : > { %v960_v58 = vpop.permute.xlu0 %959  ;;  %v889_v26 = vsel %vm860_vm1, %v886_v1, %v888_v43  ;;  %v1052_v1 = vrot.slane %v4093_v45, 3  ;;  %v4129_v55 = vsel %vm860_vm1, %v888_v43, %v890_v27  ;;  %v536_v43 = vsel %vm412_vm2, %v531_v7, %v535_v16 }
  0xde   : > { %v962_v12 = vpop.permute.xlu1 %961  ;;  %v1389_v39 = vsel %vm1379_vm12, %v1352_v59, %v960_v58  ;;  %v544_v11 = vsel %vm412_vm2, %v539_v4, %v543_v51  ;;  %v4184_v59 = vrot.slane %v4159_v34, 1 }
  0xdf   : > { %715 = vrot.lane.b32.xlu0 %v629_v30, %s3394_s23  ;;  %v1391_v19 = vsel %vm1379_vm12, %v1354_v14, %v962_v12  ;;  %v4131_v24 = vor.u32 %v1052_v1, %v1051_v47  ;;  %v1146_v30 = vrot.slane %v4040_v21, 3  ;;  %v1148_v12 = vrot.slane %v4078_v31, 3 }
  0xe0   : > { %717 = vrot.lane.b32.xlu1 %v4073_v10, %s3394_s23  ;;  %v4193_v25 = vsel %vm600_vm0, %v632_v54, %v4184_v59 }
  0xe1   : > { %v1090_v15 = vpop.permute.xlu0 %1089  ;;  %v1054_v6 = vsel %vm990_vm4, %v1049_v48, %v4131_v24  ;;  %v1147_v23 = vsel %vm1120_vm5, %v1144_v37, %v1146_v30  ;;  %v1149_v46 = vsel %vm1120_vm5, %v1146_v30, %v1148_v12 }
  0xe2   : > { %v1092_v57 = vpop.permute.xlu1 %1091  ;;  %v1426_v41 = vsel %vm1416_vm13, %v1389_v39, %v1090_v15 }
  0xe3   : > { %845 = vrot.lane.b32.xlu0 %v790_v61, %s3398_s27  ;;  %v1428_v38 = vsel %vm1416_vm13, %v1391_v19, %v1092_v57  ;;  %v4171_v61 = vshll.u32 %v4159_v34, 16 }
  0xe4   : > { %847 = vrot.lane.b32.xlu1 %v794_v56, %s3398_s27  ;;  %v795_v56 = vrot.slane %v4096_v20, 1 }
  0xe5   : > { %v1167_v0 = vpop.permute.xlu0 %1166  ;;  %v800_v36 = vrot.slane %v4171_v61, 2 }
  0xe6   : > { %v574_v42 = vpop.permute.xlu1 %573  ;;  %v1463_v29 = vsel %vm1453_vm14, %v1426_v41, %v1167_v0  ;;  %v797_v40 = vor.u32 %v796_v13, %v795_v56  ;;  %v4198_v41 = vld [vmem:[%s3451_s22 + $0x90] sm:$0xff]  }
  0xe7   : > { %922 = vrot.lane.b32.xlu0 %v4010_v2, %s3396_s25  ;;  %3192 = vmatprep.mubr.msk.bf16.mxu0 %vm5111_vm15, %v1463_v29  ;;  %v1208_v47 = vsel %vm5112_vm7, %v3605_v28, %v574_v42  ;;  %v804_v28 = vshrl.u32 %v4198_v41, 16  ;;  %v807_v42 = vshll.u32 %v4198_v41, 16  ;;  %v3361_v56 = vld [vmem:[%s3451_s22 + $0x90] ss:$0 sps:$4 sm:$0x11]  }
  0xe8   : > { %924 = vrot.lane.b32.xlu1 %v889_v26, %s3396_s25  ;;  %v798_v8 = vsel %vm730_vm3, %v4075_v35, %v797_v40 }
  0xe9   : > { %v1169_v22 = vpop.permute.xlu0 %1168 }
  0xea   : > { %v4133_v52 = vpop.permute.xlu1 %575  ;;  %v1465_v2 = vsel %vm1453_vm14, %v1428_v38, %v1169_v22 }
  0xeb   : > { %975 = vrot.lane.b32.xlu0 %v889_v26, %s3399_s28  ;;  %3193 = vmatmul.mubr.msk.bf16.gmra.mxu0 %vm5111_vm15, %v1465_v2  ;;  %v799_v26 = vrot.slane %v4174_v44, 1  ;;  %v1210_v22 = vsel %vm5112_vm7, %v3669_v17, %v4133_v52  ;;  %v1056_v17 = vrot.slane %v4171_v61, 3 }
  0xec   : > { %977 = vrot.lane.b32.xlu1 %v4129_v55, %s3399_s28 }
  0xed   : > { %v651_v5 = vpop.permute.xlu0 %650  ;;  %v4195_v3 = vor.u32 %v800_v36, %v799_v26 }
  0xee   : > { %v653_v58 = vpop.permute.xlu1 %652  ;;  %v1245_v1 = vsel %vm1231_vm8, %v1208_v47, %v651_v5  ;;  %v1152_v47 = vrot.slane %v4198_v41, 3 }
  0xef   : > { %1105 = vrot.lane.b32.xlu0 %v1050_v62, %s3400_s29  ;;  %v802_v19 = vsel %vm730_vm3, %v797_v40, %v4195_v3  ;;  %v4224_v62 = vrot.slane %v4198_v41, 2  ;;  %v1247_v30 = vsel %vm1231_vm8, %v1210_v22, %v653_v58  ;;  %v1060_v58 = vrot.slane %v807_v42, 3 }
  0xf0   : > { %1107 = vrot.lane.b32.xlu1 %v1054_v6, %s3400_s29  ;;  %v1055_v6 = vrot.slane %v4174_v44, 2  ;;  %v551_v40 = vrot.slane %v4171_v61, 1  ;;  %v3363_v61 = vld [vmem:[%s3451_s22 + $0x98] ss:$0 sps:$4 sm:$0x33]   ;;  %v806_v22 = vrot.slane %v804_v28, 1 }
  0xf1   : > { %v704_v9 = vpop.permute.xlu0 %703 }
  0xf2   : > { %v706_v53 = vpop.permute.xlu1 %705  ;;  %v1282_v29 = vsel %vm1268_vm9, %v1245_v1, %v704_v9 }
  0xf3   : > { %1182 = vrot.lane.b32.xlu0 %v1147_v23, %s3401_s30  ;;  %v1284_v52 = vsel %vm1268_vm9, %v1247_v30, %v706_v53 }
  0xf4   : > { %589 = vrot.lane.b32.xlu1 %v536_v43, %s3397_s26 }
  0xf5   : > { %v834_v37 = vpop.permute.xlu0 %833 }
  0xf6   : > { %v836_v15 = vpop.permute.xlu1 %835  ;;  %v1319_v48 = vsel %vm1305_vm10, %v1282_v29, %v834_v37  ;;  %v636_v29 = vrot.slane %v3361_v56, 1 }
  0xf7   : > { %1184 = vrot.lane.b32.xlu0 %v1149_v46, %s3401_s30  ;;  %v1321_v23 = vsel %vm1305_vm10, %v1284_v52, %v836_v15  ;;  %v1057_v46 = vor.u32 %v1056_v17, %v1055_v6 }
  0xf8   : > { %591 = vrot.lane.b32.xlu1 %v544_v11, %s3397_s26  ;;  %v637_v30 = vsel %vm600_vm0, %v4184_v59, %v636_v29 }
  0xf9   : > { %v911_v57 = vpop.permute.xlu0 %910 }
  0xfa   : > { %v913_v39 = vpop.permute.xlu1 %912  ;;  %v1356_v2 = vsel %vm1342_vm11, %v1319_v48, %v911_v57  ;;  %v1058_v57 = vsel %vm990_vm4, %v4131_v24, %v1057_v46  ;;  %v816_v48 = vshll.u32 %v3363_v61, 16 }
  0xfb   : > { %666 = vrot.lane.b32.xlu0 %v4073_v10, %s3395_s24  ;;  %v892_v10 = vrot.slane %v4159_v34, 2  ;;  %v1358_v4 = vsel %vm1342_vm11, %v1321_v23, %v913_v39  ;;  %v547_v39 = vor.u32 %v4096_v20, %v543_v51  ;;  %v555_v20 = vor.u32 %v4174_v44, %v551_v40  ;;  %v4308_v23 = vld [vmem:[%s3451_s22 + $0xa0] ss:$0 sps:$4 sm:$0x77]  }
  0xfc   : > { %668 = vrot.lane.b32.xlu1 %v633_v63, %s3395_s24  ;;  %v687_v44 = vrot.slane %v4198_v41, 1  ;;  %v818_v17 = vrot.slane %v816_v48, 2 }
  0xfd   : > { %v964_v32 = vpop.permute.xlu0 %963  ;;  %v893_v35 = vsel %vm860_vm1, %v890_v27, %v892_v10  ;;  %v1059_v27 = vrot.slane %v804_v28, 2  ;;  %v4250_v54 = vsel %vm860_vm1, %v892_v10, %v4224_v62  ;;  %v552_v45 = vsel %vm412_vm2, %v547_v39, %v551_v40 }
  0xfe   : > { %v966_v0 = vpop.permute.xlu1 %965  ;;  %v1393_v5 = vsel %vm1379_vm12, %v1356_v2, %v964_v32  ;;  %v557_v32 = vshll.u32 %v3361_v56, 16  ;;  %v809_v2 = vrot.slane %v807_v42, 2  ;;  %v688_v28 = vsel %vm600_vm0, %v4184_v59, %v687_v44 }
  0xff   : > { %719 = vrot.lane.b32.xlu0 %v633_v63, %s3394_s23  ;;  %v1395_v53 = vsel %vm1379_vm12, %v1358_v4, %v966_v0  ;;  %v4252_v15 = vor.u32 %v1060_v58, %v1059_v27  ;;  %v1150_v63 = vrot.slane %v4159_v34, 3  ;;  %v896_v4 = vrot.slane %v3363_v61, 2 }
 0x100   : > { %721 = vrot.lane.b32.xlu1 %v4193_v25, %s3394_s23  ;;  %v559_v51 = vrot.slane %v557_v32, 1 }
 0x101   : > { %v1094_v14 = vpop.permute.xlu0 %1093  ;;  %v1062_v36 = vsel %vm990_vm4, %v1057_v46, %v4252_v15  ;;  %v1151_v24 = vsel %vm1120_vm5, %v1148_v12, %v1150_v63  ;;  %v1153_v31 = vsel %vm1120_vm5, %v1150_v63, %v1152_v47 }
 0x102   : > { %v1096_v38 = vpop.permute.xlu1 %1095  ;;  %v1430_v7 = vsel %vm1416_vm13, %v1393_v5, %v1094_v14  ;;  %v560_v12 = vsel %vm412_vm2, %v555_v20, %v559_v51  ;;  %v3362_v14 = vld [vmem:[%s3451_s22 + $0x98] ss:$0 sps:$4 sm:$0x11]  }
 0x103   : > { %849 = vrot.lane.b32.xlu0 %v798_v8, %s3398_s27  ;;  %v1432_v37 = vsel %vm1416_vm13, %v1395_v53, %v1096_v38  ;;  %v689_v5 = vrot.slane %v3362_v14, 1  ;;  %v3365_v53 = vld [vmem:[%s3451_s22 + $0xa0] ss:$0 sps:$4 sm:$0x33]  }
 0x104   : > { %851 = vrot.lane.b32.xlu1 %v802_v19, %s3398_s27  ;;  %v813_v19 = vshrl.u32 %v3363_v61, 16  ;;  %v949_v32 = vrot.slane %v3365_v53, 2 }
 0x105   : > { %v1171_v16 = vpop.permute.xlu0 %1170  ;;  %v690_v27 = vsel %vm600_vm0, %v687_v44, %v689_v5 }
 0x106   : > { %v4238_v9 = vpop.permute.xlu1 %577  ;;  %v1467_v43 = vsel %vm1453_vm14, %v1430_v7, %v1171_v16  ;;  %v815_v6 = vrot.slane %v813_v19, 1  ;;  %v810_v7 = vor.u32 %v809_v2, %v806_v22  ;;  %v4304_v16 = vld [vmem:[%s3451_s22 + $0x98] sm:$0xff]  }
 0x107   : > { %926 = vrot.lane.b32.xlu0 %v4129_v55, %s3396_s25  ;;  %3196 = vmatprep.mubr.msk.bf16.mxu0 %vm5111_vm15, %v1467_v43  ;;  %v947_v40 = vrot.slane %v4304_v16, 2 }
 0x108   : > { %928 = vrot.lane.b32.xlu1 %v893_v35, %s3396_s25  ;;  %v819_v58 = vor.u32 %v818_v17, %v815_v6  ;;  %v811_v46 = vsel %vm730_vm3, %v4195_v3, %v810_v7  ;;  %v1156_v6 = vrot.slane %v4308_v23, 3 }
 0x109   : > { %v1173_v11 = vpop.permute.xlu0 %1172  ;;  %v950_v44 = vsel %vm860_vm1, %v947_v40, %v949_v32 }
 0x10a   : > { %v4255_v13 = vpop.permute.xlu1 %579  ;;  %v1469_v55 = vsel %vm1453_vm14, %v1432_v37, %v1173_v11  ;;  %v1064_v37 = vshrl.u32 %v4304_v16, 16  ;;  %v1067_v11 = vshll.u32 %v4304_v16, 16 }
 0x10b   : > { %979 = vrot.lane.b32.xlu0 %v893_v35, %s3399_s28  ;;  %3197 = vmatmul.mubr.msk.bf16.gmra.mxu0 %vm5111_vm15, %v1469_v55  ;;  %v1214_v3 = vsel %vm5112_vm7, %v3730_v60, %v4255_v13 }
 0x10c   : > { %981 = vrot.lane.b32.xlu1 %v4250_v54, %s3399_s28  ;;  %v1069_v20 = vrot.slane %v1067_v11, 3 }
 0x10d   : > { %v655_v26 = vpop.permute.xlu0 %654 }
 0x10e   : > { %v4271_v0 = vpop.permute.xlu1 %656 }
 0x10f   : > { %1109 = vrot.lane.b32.xlu0 %v1058_v57, %s3400_s29  ;;  %v820_v57 = vsel %vm730_vm3, %v810_v7, %v819_v58 }
 0x110   : > { %1111 = vrot.lane.b32.xlu1 %v1062_v36, %s3400_s29  ;;  %v897_v36 = vsel %vm860_vm1, %v4224_v62, %v896_v4  ;;  %v3367_v4 = vld [vmem:[%s3451_s22 + $0x50] sm:$0xff]  }
 0x111   : > { %v708_v10 = vpop.permute.xlu0 %707 }
 0x112   : > { %v710_v1 = vpop.permute.xlu1 %709 }
 0x113   : > { %1186 = vrot.lane.b32.xlu0 %v1151_v24, %s3401_s30  ;;  %v1251_v24 = vsel %vm1231_vm8, %v1214_v3, %v4271_v0 }
 0x114   : > { %593 = vrot.lane.b32.xlu1 %v552_v45, %s3397_s26  ;;  %v1066_v45 = vrot.slane %v1064_v37, 2  ;;  %v1288_v51 = vsel %vm1268_vm9, %v1251_v24, %v710_v1  ;;  %v948_v1 = vsel %vm860_vm1, %v4224_v62, %v947_v40  ;;  %v1154_v62 = vrot.slane %v4304_v16, 3 }
 0x115   : > { %v838_v8 = vpop.permute.xlu0 %837 }
 0x116   : > { %v840_v38 = vpop.permute.xlu1 %839  ;;  %v1070_v19 = vor.u32 %v1069_v20, %v1066_v45 }
 0x117   : > { %1188 = vrot.lane.b32.xlu0 %v1153_v31, %s3401_s30 }
 0x118   : > { %595 = vrot.lane.b32.xlu1 %v560_v12, %s3397_s26 }
 0x119   : > { %v915_v35 = vpop.permute.xlu0 %914 }
 0x11a   : > { %v917_v52 = vpop.permute.xlu1 %916 }
 0x11b   : > { %670 = vrot.lane.b32.xlu0 %v4193_v25, %s3395_s24  ;;  %v1212_v25 = vsel %vm5112_vm7, %v3691_v33, %v4238_v9  ;;  %v1073_v33 = vshrl.u32 %v4308_v23, 16  ;;  %v1076_v9 = vshll.u32 %v4308_v23, 16 }
 0x11c   : > { %672 = vrot.lane.b32.xlu1 %v637_v30, %s3395_s24  ;;  %v1249_v59 = vsel %vm1231_vm8, %v1212_v25, %v655_v26  ;;  %s267_s24 = scalar_lea.vmem %s5110_s4, %s5223_s15 }
 0x11d   : > { %v968_v42 = vpop.permute.xlu0 %967  ;;  %v1286_v56 = vsel %vm1268_vm9, %v1249_v59, %v708_v10  ;;  %v1075_v61 = vrot.slane %v1073_v33, 2  ;;  %v1078_v31 = vrot.slane %v1076_v9, 3 }
 0x11e   : > { %v970_v43 = vpop.permute.xlu1 %969  ;;  %v1323_v63 = vsel %vm1305_vm10, %v1286_v56, %v838_v8  ;;  %v1325_v8 = vsel %vm1305_vm10, %v1288_v51, %v840_v38 }
 0x11f   : > { %723 = vrot.lane.b32.xlu0 %v688_v28, %s3394_s23  ;;  %v1360_v39 = vsel %vm1342_vm11, %v1323_v63, %v915_v35  ;;  %v1362_v0 = vsel %vm1342_vm11, %v1325_v8, %v917_v52  ;;  %v1079_v22 = vor.u32 %v1078_v31, %v1075_v61  ;;  %v1155_v52 = vsel %vm1120_vm5, %v1152_v47, %v1154_v62 }
 0x120   : > { %725 = vrot.lane.b32.xlu1 %v690_v27, %s3394_s23  ;;  %v1397_v10 = vsel %vm1379_vm12, %v1360_v39, %v968_v42  ;;  %v1399_v14 = vsel %vm1379_vm12, %v1362_v0, %v970_v43  ;;  %v1728_v47 = vlaneseq }
 0x121   : > { %v1098_v55 = vpop.permute.xlu0 %1097  ;;  %v1080_v5 = vsel %vm990_vm4, %v1070_v19, %v1079_v22 }
 0x122   : > { %v1100_v26 = vpop.permute.xlu1 %1099  ;;  %v1434_v60 = vsel %vm1416_vm13, %v1397_v10, %v1098_v55  ;;  %v4379_v33 = vshrl.u32 %v1728_v47, 7 }
 0x123   : > { %853 = vrot.lane.b32.xlu0 %v811_v46, %s3398_s27  ;;  %v1436_v48 = vsel %vm1416_vm13, %v1399_v14, %v1100_v26 }
 0x124   : > { %855 = vrot.lane.b32.xlu1 %v820_v57, %s3398_s27  ;;  %v1731_v32 = vadd.s32 16, %v4379_v33  ;;  %v1732_v51 = vadd.s32 24, %v4379_v33  ;;  %v4397_v31 = vmul.u32.u64.low 3817748708, %v4379_v33  ;;  %v4398_v8 = vmul.u32.u64.high 3817748708, %v4379_v33, %v4397_v31 }
 0x125   : > { %v1175_v13 = vpop.permute.xlu0 %1174 }
 0x126   : > { %v582_v12 = vpop.permute.xlu1 %581  ;;  %v1471_v29 = vsel %vm1453_vm14, %v1434_v60, %v1175_v13  ;;  %v4393_v60 = vmul.u32.u64.low 3817748708, %v1731_v32  ;;  %v4394_v13 = vmul.u32.u64.high 3817748708, %v1731_v32, %v4393_v60 }
 0x127   : > { %930 = vrot.lane.b32.xlu0 %v4250_v54, %s3396_s25  ;;  %3200 = vmatprep.mubr.msk.bf16.mxu0 %vm5111_vm15, %v1471_v29  ;;  %v1071_v54 = vsel %vm990_vm4, %v4252_v15, %v1070_v19  ;;  %v1157_v15 = vsel %vm1120_vm5, %v1154_v62, %v1156_v6  ;;  %v1216_v25 = vsel %vm5112_vm7, %v3367_v4, %v582_v12  ;;  %v1730_v12 = vadd.s32 8, %v4379_v33 }
 0x128   : > { %932 = vrot.lane.b32.xlu1 %v897_v36, %s3396_s25  ;;  %v4401_v0 = vmul.u32.u64.low 3817748708, %v1732_v51  ;;  %v4402_v14 = vmul.u32.u64.high 3817748708, %v1732_v51, %v4401_v0 }
 0x129   : > { %v1177_v38 = vpop.permute.xlu0 %1176 }
 0x12a   : > { %v584_v2 = vpop.permute.xlu1 %583  ;;  %v1473_v35 = vsel %vm1453_vm14, %v1436_v48, %v1177_v38  ;;  %v4404_v19 = vmul.u32.u64.low 3817748708, %v1730_v12  ;;  %v4405_v48 = vmul.u32.u64.high 3817748708, %v1730_v12, %v4404_v19 }
 0x12b   : > { %983 = vrot.lane.b32.xlu0 %v948_v1, %s3399_s28  ;;  %3201 = vmatmul.mubr.msk.bf16.gmra.mxu0 %vm5111_vm15, %v1473_v35  ;;  %v1218_v11 = vsel %vm5112_vm7, %v3802_v50, %v584_v2  ;;  %v1771_v2 = vshrl.u32 %v4398_v8, 4 }
 0x12c   : > { %985 = vrot.lane.b32.xlu1 %v950_v44, %s3399_s28  ;;  %v1793_v44 = vshrl.u32 %v4394_v13, 4  ;;  %v1782_v6 = vshrl.u32 %v4405_v48, 4  ;;  %v4481_v48 = vadd.s32 56, %v4379_v33 }
 0x12d   : > { %v659_v30 = vpop.permute.xlu0 %658 }
 0x12e   : > { %v661_v17 = vpop.permute.xlu1 %660  ;;  %v1253_v41 = vsel %vm1231_vm8, %v1216_v25, %v659_v30  ;;  %v1794_v62 = vmul.u32 18, %v1793_v44 }
 0x12f   : > { %1113 = vrot.lane.b32.xlu0 %v1071_v54, %s3400_s29  ;;  %v1255_v55 = vsel %vm1231_vm8, %v1218_v11, %v661_v17  ;;  %v1804_v54 = vshrl.u32 %v4402_v14, 4 }
 0x130   : > { %1115 = vrot.lane.b32.xlu1 %v1080_v5, %s3400_s29  ;;  %v1772_v5 = vmul.u32 18, %v1771_v2 }
 0x131   : > { %v712_v28 = vpop.permute.xlu0 %711 }
 0x132   : > { %v714_v7 = vpop.permute.xlu1 %713  ;;  %v1290_v53 = vsel %vm1268_vm9, %v1253_v41, %v712_v28  ;;  %v1795_v28 = vsub.s32 %v1731_v32, %v1794_v62 }
 0x133   : > { %1190 = vrot.lane.b32.xlu0 %v1155_v52, %s3401_s30  ;;  %v1292_v9 = vsel %vm1268_vm9, %v1255_v55, %v714_v7  ;;  %v1805_v52 = vmul.u32 18, %v1804_v54  ;;  %v1773_v7 = vsub.s32 %v4379_v33, %v1772_v5  ;;  %v4488_v54 = vadd.s32 40, %v4379_v33 }
 0x134   : > { %1192 = vrot.lane.b32.xlu1 %v1157_v15, %s3401_s30  ;;  %vm2163_vm0 = vcmp.ne.s32.totalorder %v1795_v28, 0  ;;  %vm2199_vm1 = vcmp.lt.s32.totalorder %v1795_v28, 0 }
 0x135   : > { %v842_v16 = vpop.permute.xlu0 %841  ;;  %vm2161_vm2 = vcmp.ne.s32.totalorder %v1773_v7, 0  ;;  %vm2197_vm3 = vcmp.lt.s32.totalorder %v1773_v7, 0  ;;  %vm4420_vm6 = vmand %vm2199_vm1, %vm2163_vm0  ;;  %v2269_v55 = vadd.s32 18, %v1773_v7 }
 0x136   : > { %v844_v42 = vpop.permute.xlu1 %843  ;;  %v1327_v46 = vsel %vm1305_vm10, %v1290_v53, %v842_v16  ;;  %v1783_v16 = vmul.u32 18, %v1782_v6  ;;  %v2271_v53 = vadd.s32 18, %v1795_v28 }
 0x137   : > { %v1329_v36 = vsel %vm1305_vm10, %v1292_v9, %v844_v42 }
 0x138   : > { %v1784_v25 = vsub.s32 %v1730_v12, %v1783_v16 }
 0x139   : > { %v919_v27 = vpop.permute.xlu0 %918 }
 0x13a   : > { %v921_v58 = vpop.permute.xlu1 %920  ;;  %v1364_v56 = vsel %vm1342_vm11, %v1327_v46, %v919_v27  ;;  %v1806_v27 = vsub.s32 %v1732_v51, %v1805_v52  ;;  %vm2162_vm1 = vcmp.ne.s32.totalorder %v1784_v25, 0  ;;  %v2270_v32 = vadd.s32 18, %v1784_v25 }
 0x13b   : > { %v1366_v50 = vsel %vm1342_vm11, %v1329_v36, %v921_v58  ;;  %v4455_v51 = vadd.s32 48, %v4379_v33 }
 0x13c   : > { %vm2164_vm4 = vcmp.ne.s32.totalorder %v1806_v27, 0  ;;  %vm2200_vm5 = vcmp.lt.s32.totalorder %v1806_v27, 0 }
 0x13d   : > { %v972_v23 = vpop.permute.xlu0 %971  ;;  %vm4432_vm0 = vmand %vm2200_vm5, %vm2164_vm4 }
 0x13e   : > { %v974_v43 = vpop.permute.xlu1 %973  ;;  %v1401_v57 = vsel %vm1379_vm12, %v1364_v56, %v972_v23 }
 0x13f   : > { %v1403_v40 = vsel %vm1379_vm12, %v1366_v50, %v974_v43  ;;  %v2307_v50 = vsel %vm4420_vm6, %v2271_v53, %v1795_v28  ;;  %v4497_v52 = vmul.u32.u64.low 3817748708, %v4481_v48  ;;  %v4498_v28 = vmul.u32.u64.high 3817748708, %v4481_v48, %v4497_v52 }
 0x140   : > { %vm2343_vm4 = vcmp.lt.s32.totalorder %v2307_v50, 16 }
 0x141   : > { %v1102_v59 = vpop.permute.xlu0 %1101 }
 0x142   : > { %v1104_v37 = vpop.permute.xlu1 %1103  ;;  %v1438_v63 = vsel %vm1416_vm13, %v1401_v57, %v1102_v59  ;;  %v2272_v57 = vadd.s32 18, %v1806_v27 }
 0x143   : > { %v1440_v24 = vsel %vm1416_vm13, %v1403_v40, %v1104_v37 }
 0x145   : > { %v1179_v26 = vpop.permute.xlu0 %1178 }
 0x146   : > { %v586_v3 = vpop.permute.xlu1 %585  ;;  %v1475_v39 = vsel %vm1453_vm14, %v1438_v63, %v1179_v26 }
 0x147   : > { %3204 = vmatprep.mubr.msk.bf16.mxu1 %vm5111_vm15, %v1475_v39  ;;  %v1220_v58 = vsel %vm5112_vm7, %v3845_v18, %v586_v3 }
 0x149   : > { %v1181_v10 = vpop.permute.xlu0 %1180 }
 0x14a   : > { %v588_v45 = vpop.permute.xlu1 %587  ;;  %v1477_v20 = vsel %vm1453_vm14, %v1440_v24, %v1181_v10 }
 0x14b   : > { %3205 = vmatmul.mubr.msk.bf16.vlgmr.msra.gmra.mxu1 %vm5111_vm15, %v1477_v20  ;;  %v1222_v59 = vsel %vm5112_vm7, %v3921_v49, %v588_v45  ;;  %vm4426_vm15 = vmand %vm2197_vm3, %vm2161_vm2  ;;  %vm2198_vm7 = vcmp.lt.s32.totalorder %v1784_v25, 0  ;;  %vm5120_vm2 = vcmask 293888   ;;  %v2308_v45 = vsel %vm4432_vm0, %v2272_v57, %v1806_v27 }
 0x14c   : > { %v2305_v10 = vsel %vm4426_vm15, %v2269_v55, %v1773_v7  ;;  %vm4450_vm3 = vmand %vm2198_vm7, %vm2162_vm1  ;;  %vm5113_vm15 = vcmask 60416   ;;  %vm4465_vm6 = vcmp.lt.s32.totalorder %v2308_v45, 16  ;;  %vm5126_vm1 = vcmask 31744  }
 0x14d   : > { %v663_v61 = vpop.permute.xlu0 %662  ;;  %vm5123_vm7 = vmmov %vm5120_vm2  ;;  %vm2341_vm5 = vcmp.lt.s32.totalorder %v2305_v10, 16  ;;  %v2306_v0 = vsel %vm4450_vm3, %v2270_v32, %v1784_v25 }
 0x14e   : > { %v665_v29 = vpop.permute.xlu1 %664  ;;  %v1257_v23 = vsel %vm1231_vm8, %v1220_v58, %v663_v61  ;;  %v4459_v61 = vadd.s32 32, %v4379_v33  ;;  %vm2342_vm0 = vcmp.lt.s32.totalorder %v2306_v0, 16 }
 0x14f   : > { %v1259_v37 = vsel %vm1231_vm8, %v1222_v59, %v665_v29 }
 0x151   : > { %v716_v1 = vpop.permute.xlu0 %715 }
 0x152   : > { %v718_v38 = vpop.permute.xlu1 %717  ;;  %v1294_v43 = vsel %vm1268_vm9, %v1257_v23, %v716_v1  ;;  %v4477_v1 = vmul.u32.u64.low 3817748708, %v4455_v51  ;;  %v4478_v19 = vmul.u32.u64.high 3817748708, %v4455_v51, %v4477_v1 }
 0x153   : > { %v1296_v9 = vsel %vm1268_vm9, %v1259_v37, %v718_v38 }
 0x155   : > { %v846_v22 = vpop.permute.xlu0 %845 }
 0x156   : > { %v848_v35 = vpop.permute.xlu1 %847  ;;  %v1331_v41 = vsel %vm1305_vm10, %v1294_v43, %v846_v22 }
 0x157   : > { %v1333_v36 = vsel %vm1305_vm10, %v1296_v9, %v848_v35  ;;  %v4484_v2 = vmul.u32.u64.low 3817748708, %v4459_v61  ;;  %v4485_v35 = vmul.u32.u64.high 3817748708, %v4459_v61, %v4484_v2 }
 0x159   : > { %v923_v30 = vpop.permute.xlu0 %922 }
 0x15a   : > { %v925_v17 = vpop.permute.xlu1 %924  ;;  %v1368_v18 = vsel %vm1342_vm11, %v1331_v41, %v923_v30 }
 0x15b   : > { %v1370_v40 = vsel %vm1342_vm11, %v1333_v36, %v925_v17 }
 0x15d   : > { %v976_v15 = vpop.permute.xlu0 %975 }
 0x15e   : > { %v978_v42 = vpop.permute.xlu1 %977  ;;  %v1405_v11 = vsel %vm1379_vm12, %v1368_v18, %v976_v15  ;;  %v1837_v18 = vshrl.u32 %v4478_v19, 4  ;;  %v3368_v19 = vld [vmem:[%s3451_s22 + $0x70] sm:$0xff]  }
 0x15f   : > { %v1407_v24 = vsel %vm1379_vm12, %v1370_v40, %v978_v42  ;;  %v4503_v42 = vmul.u32.u64.low 3817748708, %v4488_v54  ;;  %v4504_v27 = vmul.u32.u64.high 3817748708, %v4488_v54, %v4503_v42  ;;  %v1848_v40 = vshrl.u32 %v4498_v28, 4 }
 0x161   : > { %v1106_v4 = vpop.permute.xlu0 %1105  ;;  %v1826_v45 = vshrl.u32 %v4504_v27, 4 }
 0x162   : > { %v1108_v47 = vpop.permute.xlu1 %1107  ;;  %v1442_v49 = vsel %vm1416_vm13, %v1405_v11, %v1106_v4  ;;  %v1815_v11 = vshrl.u32 %v4485_v35, 4 }
 0x163   : > { %v1444_v60 = vsel %vm1416_vm13, %v1407_v24, %v1108_v47 }
 0x164   : > { %v1816_v10 = vmul.u32 18, %v1815_v11  ;;  %v4586_v11 = vadd.s32 64, %v4379_v33 }
 0x165   : > { %v1183_v63 = vpop.permute.xlu0 %1182 }
 0x166   : > { %v4437_v3 = vpop.permute.xlu1 %589  ;;  %v1479_v39 = vsel %vm1453_vm14, %v1442_v49, %v1183_v63  ;;  %v1817_v0 = vsub.s32 %v4459_v61, %v1816_v10 }
 0x167   : > { %3208 = vmatprep.mubr.msk.bf16.mxu1 %vm5120_vm2, %v1479_v39  ;;  %v1838_v39 = vmul.u32 18, %v1837_v18 }
 0x169   : > { %v1185_v13 = vpop.permute.xlu0 %1184 }
 0x16a   : > { %v4461_v31 = vpop.permute.xlu1 %591  ;;  %v1481_v8 = vsel %vm1453_vm14, %v1444_v60, %v1185_v13 }
 0x16b   : > { %v3186_v12 = vpop.f32.mrf.mxu0  ;;  %3209 = vmatmul.mubr.msk.bf16.gmra.mxu1 %vm5123_vm7, %v1481_v8  ;;  %v1839_v8 = vsub.s32 %v4455_v51, %v1838_v39  ;;  %vm2201_vm7 = vcmp.lt.s32.totalorder %v1817_v0, 0 }
 0x16c   : > { %v2451_v14 = vsel %vm2343_vm4, %v3186_v12, 0.0  ;;  %v1849_v12 = vmul.u32 18, %v1848_v40  ;;  %vm2165_vm4 = vcmp.ne.s32.totalorder %v1817_v0, 0  ;;  %v4601_v40 = vadd.s32 72, %v4379_v33 }
 0x16d   : > { %v3123_v38 = vpack.c.bf16 %v2451_v14, %v2451_v14  ;;  %v1585_v44 = vpop.f32.mrf.mxu0  ;;  %v667_v22 = vpop.permute.xlu0 %666  ;;  %v2746_v47 = vmul.f32 %v2451_v14, %v2451_v14  ;;  %v2669_v46 = vsel %vm1231_vm8, %v2451_v14, 0.0  ;;  %v1827_v14 = vmul.u32 18, %v1826_v45 }
 0x16e   : > { %v4490_v62 = vpop.permute.xlu1 %668  ;;  %v2449_v30 = vsel %vm2341_vm5, %v1585_v44, 0.0  ;;  %vm2167_vm2 = vcmp.ne.s32.totalorder %v1839_v8, 0  ;;  %vm2203_vm3 = vcmp.lt.s32.totalorder %v1839_v8, 0  ;;  %v1850_v2 = vsub.s32 %v4481_v48, %v1849_v12  ;;  %vm5127_vm5 = vmmov %vm5126_vm1 }
 0x16f   : > { %2632 = vst.msk [vmem:[%s4474_s14 + $0x8] sm:$0xf] %vm5113_vm15, %v3123_v38  ;;  %v3121_v5 = vpack.c.bf16 %v2449_v30, %v2449_v30  ;;  %v3187_v6 = vpop.f32.mrf.mxu0  ;;  %v2744_v58 = vmul.f32 %v2449_v30, %v2449_v30  ;;  %v2666_v4 = vsel %vm1231_vm8, %v2449_v30, 0.0  ;;  %v2783_v36 = vsel %vm1231_vm8, %v2746_v47, 0.0 }
 0x170   : > { %v2452_v17 = vsel %vm4465_vm6, %v3187_v6, 0.0  ;;  %v1224_v38 = vsel %vm5126_vm1, %v3368_v19, %v4437_v3  ;;  %v1828_v51 = vsub.s32 %v4488_v54, %v1827_v14  ;;  %v2275_v6 = vadd.s32 18, %v1839_v8  ;;  %vm4542_vm6 = vmand %vm2203_vm3, %vm2167_vm2 }
 0x171   : > { %2630 = vst.msk [vmem:[%s4474_s14] sm:$0xf] %vm5113_vm15, %v3121_v5  ;;  %v3124_v15 = vpack.c.bf16 %v2452_v17, %v2452_v17  ;;  %v1588_v7 = vpop.f32.mrf.mxu0  ;;  %v720_v16 = vpop.permute.xlu0 %719  ;;  %v2780_v56 = vsel %vm1231_vm8, %v2744_v58, 0.0  ;;  %v2747_v55 = vmul.f32 %v2452_v17, %v2452_v17  ;;  %v2671_v63 = vsel %vm1231_vm8, %v2452_v17, 0.0 }
 0x172   : > { %v4506_v23 = vpop.permute.xlu1 %721  ;;  %v2450_v43 = vsel %vm2342_vm0, %v1588_v7, 0.0  ;;  %v1261_v44 = vsel %vm1231_vm8, %v1224_v38, %v667_v22  ;;  %v1226_v3 = vsel %vm5127_vm5, %v4040_v21, %v4461_v31  ;;  %v2273_v48 = vadd.s32 18, %v1817_v0  ;;  %vm4549_vm0 = vmand %vm2201_vm7, %vm2165_vm4 }
 0x173   : > { %2633 = vst.msk [vmem:[%s4474_s14 + $0xc] sm:$0xf] %vm5113_vm15, %v3124_v15  ;;  %v3122_v25 = vpack.c.bf16 %v2450_v43, %v2450_v43  ;;  %v2667_v41 = vsel %vm1231_vm8, %v2450_v43, 0.0  ;;  %v2745_v59 = vmul.f32 %v2450_v43, %v2450_v43  ;;  %v2785_v20 = vsel %vm1231_vm8, %v2747_v55, 0.0 }
 0x174   : > { %v2668_v53 = vadd.f32 %v2667_v41, %v2666_v4  ;;  %v1298_v35 = vsel %vm1268_vm9, %v1261_v44, %v720_v16  ;;  %v1263_v52 = vsel %vm1231_vm8, %v1226_v3, %v4490_v62  ;;  %vm2168_vm1 = vcmp.ne.s32.totalorder %v1850_v2, 0 }
 0x175   : > { %2631 = vst.msk [vmem:[%s4474_s14 + $0x4] sm:$0xf] %vm5113_vm15, %v3122_v25  ;;  %v850_v37 = vpop.permute.xlu0 %849  ;;  %v2781_v9 = vsel %vm1231_vm8, %v2745_v59, 0.0  ;;  %vm2204_vm15 = vcmp.lt.s32.totalorder %v1850_v2, 0  ;;  %v1300_v21 = vsel %vm1268_vm9, %v1263_v52, %v4506_v23  ;;  %vm2166_vm2 = vcmp.ne.s32.totalorder %v1828_v51, 0 }
 0x176   : > { %v2670_v57 = vadd.f32 %v2669_v46, %v2668_v53  ;;  %v852_v49 = vpop.permute.xlu1 %851  ;;  %v2782_v26 = vadd.f32 %v2781_v9, %v2780_v56  ;;  %v1335_v61 = vsel %vm1305_vm10, %v1298_v35, %v850_v37  ;;  %vm2202_vm3 = vcmp.lt.s32.totalorder %v1828_v51, 0  ;;  %vm4567_vm7 = vmand %vm2204_vm15, %vm2168_vm1 }
 0x177   : > { %v1337_v7 = vsel %vm1305_vm10, %v1300_v21, %v852_v49  ;;  %v2311_v42 = vsel %vm4542_vm6, %v2275_v6, %v1839_v8  ;;  %v2276_v27 = vadd.s32 18, %v1850_v2  ;;  %vm5132_vm4 = vcmask 293888   ;;  %vm4575_vm5 = vmand %vm2202_vm3, %vm2166_vm2 }
 0x178   : > { %v4521_v50 = vadd.f32 %v2671_v63, %v2670_v57  ;;  %v2784_v32 = vadd.f32 %v2783_v36, %v2782_v26  ;;  %v2309_v23 = vsel %vm4549_vm0, %v2273_v48, %v1817_v0  ;;  %v2274_v4 = vadd.s32 18, %v1828_v51  ;;  %vm5137_vm0 = vmmov %vm5132_vm4 }
 0x179   : > { %v927_v24 = vpop.permute.xlu0 %926  ;;  %v4572_v25 = vadd.s32 80, %v4379_v33  ;;  %vm2347_vm6 = vcmp.lt.s32.totalorder %v2311_v42, 16  ;;  %vm2345_vm15 = vcmp.lt.s32.totalorder %v2309_v23, 16  ;;  %v2312_v37 = vsel %vm4567_vm7, %v2276_v27, %v1850_v2 }
 0x17a   : > { %v929_v60 = vpop.permute.xlu1 %928  ;;  %v4526_v13 = vadd.f32 %v2785_v20, %v2784_v32  ;;  %v1372_v22 = vsel %vm1342_vm11, %v1335_v61, %v927_v24  ;;  %v2310_v55 = vsel %vm4575_vm5, %v2274_v4, %v1828_v51  ;;  %v4596_v49 = vadd.s32 88, %v4379_v33 }
 0x17b   : > { %v1374_v58 = vsel %vm1342_vm11, %v1337_v7, %v929_v60  ;;  %v4592_v57 = vmul.u32.u64.low 3817748708, %v4572_v25  ;;  %v4593_v9 = vmul.u32.u64.high 3817748708, %v4572_v25, %v4592_v57  ;;  %vm2348_vm1 = vcmp.lt.s32.totalorder %v2312_v37, 16 }
 0x17c   : > { %vm4605_vm2 = vcmp.lt.s32.totalorder %v2310_v55, 16  ;;  %v4610_v45 = vmul.u32.u64.low 3817748708, %v4586_v11  ;;  %v4611_v20 = vmul.u32.u64.high 3817748708, %v4586_v11, %v4610_v45  ;;  %vm5140_vm3 = vcmask 60416  }
 0x17d   : > { %v980_v29 = vpop.permute.xlu0 %979  ;;  %vm5142_vm7 = vmmov %vm5140_vm3  ;;  %v1881_v3 = vshrl.u32 %v4593_v9, 4 }
 0x17e   : > { %v982_v1 = vpop.permute.xlu1 %981  ;;  %v1409_v54 = vsel %vm1379_vm12, %v1372_v22, %v980_v29  ;;  %v4617_v29 = vmul.u32.u64.low 3817748708, %v4596_v49  ;;  %v4618_v0 = vmul.u32.u64.high 3817748708, %v4596_v49, %v4617_v29  ;;  %vm5143_vm5 = vmmov %vm5140_vm3 }
 0x17f   : > { %v1411_v41 = vsel %vm1379_vm12, %v1374_v58, %v982_v1  ;;  %v1882_v42 = vmul.u32 18, %v1881_v3 }
 0x180   : > { %v1892_v23 = vshrl.u32 %v4618_v0, 4 }
 0x181   : > { %v1110_v30 = vpop.permute.xlu0 %1109  ;;  %v1883_v37 = vsub.s32 %v4572_v25, %v1882_v42 }
 0x182   : > { %v1112_v5 = vpop.permute.xlu1 %1111  ;;  %v1446_v31 = vsel %vm1416_vm13, %v1409_v54, %v1110_v30  ;;  %v4624_v35 = vmul.u32.u64.low 3817748708, %v4601_v40  ;;  %v4625_v30 = vmul.u32.u64.high 3817748708, %v4601_v40, %v4624_v35  ;;  %v1893_v55 = vmul.u32 18, %v1892_v23 }
 0x183   : > { %v1448_v53 = vsel %vm1416_vm13, %v1411_v41, %v1112_v5 }
 0x184   : > { %v1870_v47 = vshrl.u32 %v4625_v30, 4  ;;  %v1894_v45 = vsub.s32 %v4596_v49, %v1893_v55 }
 0x185   : > { %v1187_v15 = vpop.permute.xlu0 %1186 }
 0x186   : > { %v4557_v16 = vpop.permute.xlu1 %593  ;;  %v1483_v62 = vsel %vm1453_vm14, %v1446_v31, %v1187_v15  ;;  %v1871_v9 = vmul.u32 18, %v1870_v47 }
 0x187   : > { %3212 = vmatprep.mubr.msk.bf16.mxu1 %vm5132_vm4, %v1483_v62  ;;  %vm5141_vm4 = vmmov %vm5140_vm3 }
 0x189   : > { %v1189_v59 = vpop.permute.xlu0 %1188 }
 0x18a   : > { %v4580_v18 = vpop.permute.xlu1 %595  ;;  %v1485_v46 = vsel %vm1453_vm14, %v1448_v53, %v1189_v59 }
 0x18b   : > { %v3190_v56 = vpop.f32.mrf.mxu0  ;;  %3213 = vmatmul.mubr.msk.bf16.gmra.mxu1 %vm5137_vm0, %v1485_v46 }
 0x18c   : > { %v2455_v63 = vsel %vm2347_vm6, %v3190_v56, 0.0  ;;  %vm5144_vm6 = vcmask 31744  }
 0x18d   : > { %v3127_v26 = vpack.c.bf16 %v2455_v63, %v2455_v63  ;;  %v1601_v36 = vpop.f32.mrf.mxu0  ;;  %v4598_v39 = vpop.permute.xlu0 %670  ;;  %v2750_v22 = vmul.f32 %v2455_v63, %v2455_v63  ;;  %v2677_v28 = vsel %vm1231_vm8, %v2455_v63, 0.0  ;;  %vm5145_vm0 = vmmov %vm5144_vm6 }
 0x18e   : > { %v4603_v32 = vpop.permute.xlu1 %672  ;;  %v2453_v24 = vsel %vm2345_vm15, %v1601_v36, 0.0  ;;  %v3369_v36 = vld [vmem:[%s3451_s22 + $0x80] sm:$0xff]   ;;  %vm2171_vm15 = vcmp.ne.s32.totalorder %v1883_v37, 0  ;;  %v1230_v10 = vsel %vm5145_vm0, %v4159_v34, %v4580_v18 }
 0x18f   : > { %2636 = vst.msk [vmem:[%s4474_s14 + $0x18] sm:$0xf] %vm5140_vm3, %v3127_v26  ;;  %v3125_v60 = vpack.c.bf16 %v2453_v24, %v2453_v24  ;;  %v2673_v8 = vsel %vm1231_vm8, %v2453_v24, 0.0  ;;  %v3191_v12 = vpop.f32.mrf.mxu0  ;;  %v2748_v1 = vmul.f32 %v2453_v24, %v2453_v24  ;;  %v2791_v27 = vsel %vm1231_vm8, %v2750_v22, 0.0 }
 0x190   : > { %v2674_v14 = vadd.f32 %v2673_v8, %v4521_v50  ;;  %v2456_v19 = vsel %vm2348_vm1, %v3191_v12, 0.0  ;;  %v1228_v24 = vsel %vm5144_vm6, %v3369_v36, %v4557_v16  ;;  %vm2207_vm1 = vcmp.lt.s32.totalorder %v1883_v37, 0 }
 0x191   : > { %2634 = vst.msk [vmem:[%s4474_s14 + $0x10] sm:$0xf] %vm5141_vm4, %v3125_v60  ;;  %v3128_v38 = vpack.c.bf16 %v2456_v19, %v2456_v19  ;;  %v1604_v44 = vpop.f32.mrf.mxu0  ;;  %v724_v2 = vpop.permute.xlu0 %723  ;;  %v2787_v51 = vsel %vm1231_vm8, %v2748_v1, 0.0  ;;  %v2751_v21 = vmul.f32 %v2456_v19, %v2456_v19  ;;  %v2679_v58 = vsel %vm1231_vm8, %v2456_v19, 0.0  ;;  %vm4669_vm4 = vmand %vm2207_vm1, %vm2171_vm15 }
 0x192   : > { %v726_v61 = vpop.permute.xlu1 %725  ;;  %v2454_v5 = vsel %vm4605_vm2, %v1604_v44, 0.0  ;;  %v2788_v50 = vadd.f32 %v2787_v51, %v4526_v13  ;;  %v1859_v13 = vshrl.u32 %v4611_v20, 4  ;;  %v1265_v25 = vsel %vm1231_vm8, %v1228_v24, %v4598_v39 }
 0x193   : > { %2637 = vst.msk [vmem:[%s4474_s14 + $0x1c] sm:$0xf] %vm5142_vm7, %v3128_v38  ;;  %v3126_v6 = vpack.c.bf16 %v2454_v5, %v2454_v5  ;;  %v2675_v17 = vsel %vm1231_vm8, %v2454_v5, 0.0  ;;  %v2749_v48 = vmul.f32 %v2454_v5, %v2454_v5  ;;  %v2793_v53 = vsel %vm1231_vm8, %v2751_v21, 0.0 }
 0x194   : > { %v2676_v52 = vadd.f32 %v2675_v17, %v2674_v14  ;;  %v1860_v46 = vmul.u32 18, %v1859_v13  ;;  %v1267_v20 = vsel %vm1231_vm8, %v1230_v10, %v4603_v32  ;;  %v2279_v8 = vadd.s32 18, %v1883_v37 }
 0x195   : > { %2635 = vst.msk [vmem:[%s4474_s14 + $0x14] sm:$0xf] %vm5143_vm5, %v3126_v6  ;;  %v854_v54 = vpop.permute.xlu0 %853  ;;  %v2789_v31 = vsel %vm1231_vm8, %v2749_v48, 0.0  ;;  %v1872_v16 = vsub.s32 %v4601_v40, %v1871_v9  ;;  %v1304_v12 = vsel %vm1268_vm9, %v1267_v20, %v726_v61  ;;  %vm2208_vm7 = vcmp.lt.s32.totalorder %v1894_v45, 0 }
 0x196   : > { %v856_v15 = vpop.permute.xlu1 %855  ;;  %v2678_v7 = vadd.f32 %v2677_v28, %v2676_v52  ;;  %v2790_v62 = vadd.f32 %v2789_v31, %v2788_v50  ;;  %v1861_v26 = vsub.s32 %v4586_v11, %v1860_v46  ;;  %v1302_v11 = vsel %vm1268_vm9, %v1265_v25, %v724_v2 }
 0x197   : > { %v1339_v29 = vsel %vm1305_vm10, %v1302_v11, %v854_v54  ;;  %v1341_v18 = vsel %vm1305_vm10, %v1304_v12, %v856_v15  ;;  %vm2172_vm9 = vcmp.ne.s32.totalorder %v1894_v45, 0  ;;  %vm2170_vm5 = vcmp.ne.s32.totalorder %v1872_v16, 0 }
 0x198   : > { %v2792_v43 = vadd.f32 %v2791_v27, %v2790_v62  ;;  %v4643_v41 = vadd.f32 %v2679_v58, %v2678_v7  ;;  %vm2169_vm2 = vcmp.ne.s32.totalorder %v1861_v26, 0  ;;  %vm2205_vm3 = vcmp.lt.s32.totalorder %v1861_v26, 0 }
 0x199   : > { %v931_v4 = vpop.permute.xlu0 %930  ;;  %v2277_v32 = vadd.s32 18, %v1861_v26  ;;  %vm4677_vm10 = vmand %vm2205_vm3, %vm2169_vm2  ;;  %vm2206_vm6 = vcmp.lt.s32.totalorder %v1872_v16, 0  ;;  %v2315_v30 = vsel %vm4669_vm4, %v2279_v8, %v1883_v37  ;;  %v2280_v51 = vadd.s32 18, %v1894_v45 }
 0x19a   : > { %v933_v59 = vpop.permute.xlu1 %932  ;;  %v4648_v56 = vadd.f32 %v2793_v53, %v2792_v43  ;;  %v1376_v49 = vsel %vm1342_vm11, %v1339_v29, %v931_v4  ;;  %v2278_v50 = vadd.s32 18, %v1872_v16  ;;  %v1743_v22 = vadd.s32 112, %v4379_v33 }
 0x19b   : > { %v1378_v0 = vsel %vm1342_vm11, %v1341_v18, %v933_v59  ;;  %vm5150_vm11 = vcmask 293888   ;;  %v2313_v6 = vsel %vm4677_vm10, %v2277_v32, %v1861_v26  ;;  %v1741_v48 = vadd.s32 96, %v4379_v33 }
 0x19c   : > { %vm5153_vm15 = vmmov %vm5150_vm11  ;;  %vm2349_vm0 = vcmp.lt.s32.totalorder %v2313_v6, 16  ;;  %v4705_v21 = vmul.u32.u64.low 3817748708, %v1743_v22  ;;  %v4706_v31 = vmul.u32.u64.high 3817748708, %v1743_v22, %v4705_v21  ;;  %v1744_v15 = vadd.s32 120, %v4379_v33 }
 0x19d   : > { %v984_v57 = vpop.permute.xlu0 %983  ;;  %v1742_v62 = vadd.s32 104, %v4379_v33  ;;  %v4710_v27 = vmul.u32.u64.low 3817748708, %v1741_v48  ;;  %v4711_v58 = vmul.u32.u64.high 3817748708, %v1741_v48, %v4710_v27  ;;  %vm5156_vm2 = vcmask 60416  }
 0x19e   : > { %v986_v63 = vpop.permute.xlu1 %985  ;;  %v1413_v40 = vsel %vm1379_vm12, %v1376_v49, %v984_v57  ;;  %v4717_v46 = vmul.u32.u64.low 3817748708, %v1744_v15  ;;  %v4718_v37 = vmul.u32.u64.high 3817748708, %v1744_v15, %v4717_v46  ;;  %vm5157_vm4 = vmmov %vm5156_vm2  ;;  %v1925_v11 = vshrl.u32 %v4706_v31, 4 }
 0x19f   : > { %v1415_v14 = vsel %vm1379_vm12, %v1378_v0, %v986_v63  ;;  %vm4688_vm12 = vmand %vm2208_vm7, %vm2172_vm9  ;;  %v4723_v63 = vmul.u32.u64.low 3817748708, %v1742_v62  ;;  %v4724_v26 = vmul.u32.u64.high 3817748708, %v1742_v62, %v4723_v63  ;;  %v1903_v29 = vshrl.u32 %v4711_v58, 4 }
 0x1a0   : > { %v2316_v17 = vsel %vm4688_vm12, %v2280_v51, %v1894_v45  ;;  %vm5158_vm9 = vmmov %vm5156_vm2  ;;  %v1926_v39 = vmul.u32 18, %v1925_v11  ;;  %v1936_v0 = vshrl.u32 %v4718_v37, 4  ;;  %v1746_v58 = vadd.s32 136, %v4379_v33 }
 0x1a1   : > { %v1114_v60 = vpop.permute.xlu0 %1113  ;;  %vm2352_vm1 = vcmp.lt.s32.totalorder %v2316_v17, 16  ;;  %vm5159_vm7 = vmmov %vm5156_vm2 }
 0x1a2   : > { %v1116_v34 = vpop.permute.xlu1 %1115  ;;  %v1450_v1 = vsel %vm1416_vm13, %v1413_v40, %v1114_v60  ;;  %v1927_v38 = vsub.s32 %v1743_v22, %v1926_v39 }
 0x1a3   : > { %v1452_v44 = vsel %vm1416_vm13, %v1415_v14, %v1116_v34  ;;  %vm4695_vm13 = vmand %vm2206_vm6, %vm2170_vm5  ;;  %v1914_v14 = vshrl.u32 %v4724_v26, 4 }
 0x1a4   : > { %v2314_v54 = vsel %vm4695_vm13, %v2278_v50, %v1872_v16  ;;  %vm2175_vm10 = vcmp.ne.s32.totalorder %v1927_v38, 0  ;;  %vm2211_vm5 = vcmp.lt.s32.totalorder %v1927_v38, 0 }
 0x1a5   : > { %v1191_v19 = vpop.permute.xlu0 %1190  ;;  %vm2350_vm3 = vcmp.lt.s32.totalorder %v2314_v54, 16  ;;  %vm2247_vm12 = vmand %vm2211_vm5, %vm2175_vm10  ;;  %vm5164_vm10 = vcmask 60416  }
 0x1a6   : > { %v1193_v2 = vpop.permute.xlu1 %1192  ;;  %v1487_v35 = vsel %vm1453_vm14, %v1450_v1, %v1191_v19  ;;  %v1904_v1 = vmul.u32 18, %v1903_v29 }
 0x1a7   : > { %v1489_v61 = vsel %vm1453_vm14, %v1452_v44, %v1193_v2  ;;  %3216 = vmatprep.mubr.msk.bf16.mxu1 %vm5150_vm11, %v1487_v35  ;;  %vm2351_vm14 = vcmp.lt.s32.totalorder %v2315_v30, 16  ;;  %v1937_v44 = vmul.u32 18, %v1936_v0  ;;  %v1915_v2 = vmul.u32 18, %v1914_v14 }
 0x1a8   : > { %3217 = vmatmul.mubr.msk.bf16.gmra.mxu1 %vm5153_vm15, %v1489_v61  ;;  %v1905_v35 = vsub.s32 %v1741_v48, %v1904_v1  ;;  %v2283_v61 = vadd.s32 18, %v1927_v38 }
 0x1a9   : > { %v1938_v30 = vsub.s32 %v1744_v15, %v1937_v44  ;;  %v1916_v51 = vsub.s32 %v1742_v62, %v1915_v2  ;;  %v1748_v62 = vadd.s32 152, %v4379_v33 }
 0x1aa   : > { %vm2173_vm6 = vcmp.ne.s32.totalorder %v1905_v35, 0  ;;  %vm2209_vm11 = vcmp.lt.s32.totalorder %v1905_v35, 0  ;;  %v2281_v5 = vadd.s32 18, %v1905_v35  ;;  %v2319_v50 = vsel %vm2247_vm12, %v2283_v61, %v1927_v38 }
 0x1ab   : > { %v3194_v52 = vpop.f32.mrf.mxu0  ;;  %vm2176_vm15 = vcmp.ne.s32.totalorder %v1938_v30, 0  ;;  %vm2212_vm13 = vcmp.lt.s32.totalorder %v1938_v30, 0  ;;  %v2284_v6 = vadd.s32 18, %v1938_v30  ;;  %v2282_v22 = vadd.s32 18, %v1916_v51 }
 0x1ac   : > { %v2459_v28 = vsel %vm2351_vm14, %v3194_v52, 0.0  ;;  %vm2245_vm14 = vmand %vm2209_vm11, %vm2173_vm6  ;;  %v1747_v52 = vadd.s32 144, %v4379_v33 }
 0x1ad   : > { %v3131_v13 = vpack.c.bf16 %v2459_v28, %v2459_v28  ;;  %v1617_v7 = vpop.f32.mrf.mxu0  ;;  %v2754_v10 = vmul.f32 %v2459_v28, %v2459_v28  ;;  %v2685_v60 = vsel %vm1231_vm8, %v2459_v28, 0.0  ;;  %v2317_v17 = vsel %vm2245_vm14, %v2281_v5, %v1905_v35  ;;  %vm5165_vm6 = vmmov %vm5164_vm10 }
 0x1ae   : > { %v2457_v42 = vsel %vm2349_vm0, %v1617_v7, 0.0  ;;  %vm2174_vm0 = vcmp.ne.s32.totalorder %v1916_v51, 0  ;;  %v1745_v28 = vadd.s32 128, %v4379_v33  ;;  %vm5166_vm11 = vmmov %vm5165_vm6 }
 0x1af   : > { %2640 = vst.msk [vmem:[%s4474_s14 + $0x28] sm:$0xf] %vm5156_vm2, %v3131_v13  ;;  %v3129_v23 = vpack.c.bf16 %v2457_v42, %v2457_v42  ;;  %v2681_v43 = vsel %vm1231_vm8, %v2457_v42, 0.0  ;;  %v2752_v4 = vmul.f32 %v2457_v42, %v2457_v42  ;;  %v3195_v47 = vpop.f32.mrf.mxu0  ;;  %v2799_v34 = vsel %vm1231_vm8, %v2754_v10, 0.0  ;;  %vm4741_vm2 = vmand %vm2212_vm13, %vm2176_vm15 }
 0x1b0   : > { %v2682_v53 = vadd.f32 %v2681_v43, %v4643_v41  ;;  %v2460_v59 = vsel %vm2352_vm1, %v3195_v47, 0.0  ;;  %vm2210_vm1 = vcmp.lt.s32.totalorder %v1916_v51, 0  ;;  %v2320_v54 = vsel %vm4741_vm2, %v2284_v6, %v1938_v30  ;;  %vm5167_vm12 = vmmov %vm5165_vm6 }
 0x1b1   : > { %2638 = vst.msk [vmem:[%s4474_s14 + $0x20] sm:$0xf] %vm5157_vm4, %v3129_v23  ;;  %v2795_v55 = vsel %vm1231_vm8, %v2752_v4, 0.0  ;;  %v3132_v57 = vpack.c.bf16 %v2460_v59, %v2460_v59  ;;  %v1620_v9 = vpop.f32.mrf.mxu0  ;;  %v2755_v8 = vmul.f32 %v2460_v59, %v2460_v59  ;;  %v2687_v18 = vsel %vm1231_vm8, %v2460_v59, 0.0 }
 0x1b2   : > { %v2796_v36 = vadd.f32 %v2795_v55, %v4648_v56  ;;  %v2458_v24 = vsel %vm2350_vm3, %v1620_v9, 0.0  ;;  %vm4745_vm3 = vmand %vm2210_vm1, %vm2174_vm0  ;;  %vm2355_vm4 = vcmp.lt.s32.totalorder %v2319_v50, 16 }
 0x1b3   : > { %2641 = vst.msk [vmem:[%s4474_s14 + $0x2c] sm:$0xf] %vm5158_vm9, %v3132_v57  ;;  %v3130_v41 = vpack.c.bf16 %v2458_v24, %v2458_v24  ;;  %v2683_v25 = vsel %vm1231_vm8, %v2458_v24, 0.0  ;;  %v2753_v45 = vmul.f32 %v2458_v24, %v2458_v24  ;;  %v2801_v40 = vsel %vm1231_vm8, %v2755_v8, 0.0 }
 0x1b4   : > { %v2684_v20 = vadd.f32 %v2683_v25, %v2682_v53  ;;  %vm2353_vm9 = vcmp.lt.s32.totalorder %v2317_v17, 16  ;;  %v2318_v31 = vsel %vm4745_vm3, %v2282_v22, %v1916_v51 }
 0x1b5   : > { %2639 = vst.msk [vmem:[%s4474_s14 + $0x24] sm:$0xf] %vm5159_vm7, %v3130_v41  ;;  %v2797_v16 = vsel %vm1231_vm8, %v2753_v45, 0.0  ;;  %v4755_v13 = vmul.u32.u64.low 3817748708, %v1747_v52  ;;  %v4756_v7 = vmul.u32.u64.high 3817748708, %v1747_v52, %v4755_v13  ;;  %vm2356_vm7 = vcmp.lt.s32.totalorder %v2320_v54, 16 }
 0x1b6   : > { %v2686_v12 = vadd.f32 %v2685_v60, %v2684_v20  ;;  %v2798_v56 = vadd.f32 %v2797_v16, %v2796_v36  ;;  %v4760_v43 = vmul.u32.u64.low 3817748708, %v1745_v28  ;;  %v4761_v4 = vmul.u32.u64.high 3817748708, %v1745_v28, %v4760_v43 }
 0x1b7   : > { %vm2354_vm5 = vcmp.lt.s32.totalorder %v2318_v31, 16  ;;  %v4766_v57 = vmul.u32.u64.low 3817748708, %v1748_v62  ;;  %v4767_v9 = vmul.u32.u64.high 3817748708, %v1748_v62, %v4766_v57  ;;  %v1969_v16 = vshrl.u32 %v4756_v7, 4 }
 0x1b8   : > { %v2800_v49 = vadd.f32 %v2799_v34, %v2798_v56  ;;  %v2688_v32 = vadd.f32 %v2687_v18, %v2686_v12  ;;  %v4772_v24 = vmul.u32.u64.low 3817748708, %v1746_v58  ;;  %v4773_v10 = vmul.u32.u64.high 3817748708, %v1746_v58, %v4772_v24 }
 0x1b9   : > { %v1980_v1 = vshrl.u32 %v4767_v9, 4 }
 0x1ba   : > { %v2802_v19 = vadd.f32 %v2801_v40, %v2800_v49  ;;  %v1947_v49 = vshrl.u32 %v4761_v4, 4  ;;  %v1970_v40 = vmul.u32 18, %v1969_v16  ;;  %v1958_v38 = vshrl.u32 %v4773_v10, 4 }
 0x1bb   : > { %v1981_v30 = vmul.u32 18, %v1980_v1  ;;  %v1750_v4 = vadd.s32 168, %v4379_v33 }
 0x1bc   : > { %v1948_v44 = vmul.u32 18, %v1947_v49  ;;  %v1971_v35 = vsub.s32 %v1747_v52, %v1970_v40  ;;  %v1959_v51 = vmul.u32 18, %v1958_v38 }
 0x1bd   : > { %v1982_v5 = vsub.s32 %v1748_v62, %v1981_v30 }
 0x1be   : > { %v1949_v61 = vsub.s32 %v1745_v28, %v1948_v44  ;;  %vm2179_vm15 = vcmp.ne.s32.totalorder %v1971_v35, 0  ;;  %vm2215_vm13 = vcmp.lt.s32.totalorder %v1971_v35, 0  ;;  %v1960_v50 = vsub.s32 %v1746_v58, %v1959_v51 }
 0x1bf   : > { %v2287_v6 = vadd.s32 18, %v1971_v35  ;;  %vm2251_vm1 = vmand %vm2215_vm13, %vm2179_vm15  ;;  %vm2180_vm2 = vcmp.ne.s32.totalorder %v1982_v5, 0  ;;  %vm2216_vm3 = vcmp.lt.s32.totalorder %v1982_v5, 0  ;;  %v2288_v17 = vadd.s32 18, %v1982_v5 }
 0x1c0   : > { %vm2177_vm14 = vcmp.ne.s32.totalorder %v1949_v61, 0  ;;  %vm2213_vm0 = vcmp.lt.s32.totalorder %v1949_v61, 0  ;;  %v2285_v3 = vadd.s32 18, %v1949_v61  ;;  %v2286_v52 = vadd.s32 18, %v1960_v50 }
 0x1c1   : > { %v2323_v22 = vsel %vm2251_vm1, %v2287_v6, %v1971_v35  ;;  %v1752_v58 = vadd.s32 184, %v4379_v33  ;;  %vm5172_vm15 = vcmask 60416  }
 0x1cb   : > { %v3198_v21 = vpop.f32.mrf.mxu0 }
 0x1cc   : > { %v2463_v15 = vsel %vm2355_vm4, %v3198_v21, 0.0  ;;  %vm2249_vm4 = vmand %vm2213_vm0, %vm2177_vm14  ;;  %v1751_v21 = vadd.s32 176, %v4379_v33 }
 0x1cd   : > { %v3135_v42 = vpack.c.bf16 %v2463_v15, %v2463_v15  ;;  %v1633_v27 = vpop.f32.mrf.mxu0  ;;  %v2758_v45 = vmul.f32 %v2463_v15, %v2463_v15  ;;  %v2693_v12 = vsel %vm1231_vm8, %v2463_v15, 0.0  ;;  %v2321_v54 = vsel %vm2249_vm4, %v2285_v3, %v1949_v61  ;;  %vm5173_vm14 = vmmov %vm5172_vm15 }
 0x1ce   : > { %v2461_v23 = vsel %vm2353_vm9, %v1633_v27, 0.0  ;;  %vm2178_vm9 = vcmp.ne.s32.totalorder %v1960_v50, 0  ;;  %v1749_v15 = vadd.s32 160, %v4379_v33  ;;  %vm5174_vm0 = vmmov %vm5173_vm14 }
 0x1cf   : > { %2644 = vst.msk [vmem:[%s4474_s14 + $0x38] sm:$0xf] %vm5164_vm10, %v3135_v42  ;;  %v3133_v47 = vpack.c.bf16 %v2461_v23, %v2461_v23  ;;  %v2689_v53 = vsel %vm1231_vm8, %v2461_v23, 0.0  ;;  %v2756_v59 = vmul.f32 %v2461_v23, %v2461_v23  ;;  %v3199_v46 = vpop.f32.mrf.mxu0  ;;  %v2807_v39 = vsel %vm1231_vm8, %v2758_v45, 0.0  ;;  %vm4789_vm10 = vmand %vm2216_vm3, %vm2180_vm2 }
 0x1d0   : > { %v2690_v37 = vadd.f32 %v2689_v53, %v2688_v32  ;;  %v2464_v55 = vsel %vm2356_vm7, %v3199_v46, 0.0  ;;  %vm2214_vm7 = vcmp.lt.s32.totalorder %v1960_v50, 0  ;;  %v2324_v31 = vsel %vm4789_vm10, %v2288_v17, %v1982_v5  ;;  %vm5175_vm1 = vmmov %vm5174_vm0 }
 0x1d1   : > { %2642 = vst.msk [vmem:[%s4474_s14 + $0x30] sm:$0xf] %vm5165_vm6, %v3133_v47  ;;  %v2803_v63 = vsel %vm1231_vm8, %v2756_v59, 0.0  ;;  %v3136_v26 = vpack.c.bf16 %v2464_v55, %v2464_v55  ;;  %v1636_v36 = vpop.f32.mrf.mxu0  ;;  %v2759_v56 = vmul.f32 %v2464_v55, %v2464_v55  ;;  %v2695_v32 = vsel %vm1231_vm8, %v2464_v55, 0.0 }
 0x1d2   : > { %v2804_v41 = vadd.f32 %v2803_v63, %v2802_v19  ;;  %v2462_v25 = vsel %vm2354_vm5, %v1636_v36, 0.0  ;;  %vm4793_vm5 = vmand %vm2214_vm7, %vm2178_vm9  ;;  %vm2359_vm6 = vcmp.lt.s32.totalorder %v2323_v22, 16 }
 0x1d3   : > { %2645 = vst.msk [vmem:[%s4474_s14 + $0x3c] sm:$0xf] %vm5166_vm11, %v3136_v26  ;;  %v3134_v20 = vpack.c.bf16 %v2462_v25, %v2462_v25  ;;  %v2691_v11 = vsel %vm1231_vm8, %v2462_v25, 0.0  ;;  %v2757_v60 = vmul.f32 %v2462_v25, %v2462_v25  ;;  %v2809_v19 = vsel %vm1231_vm8, %v2759_v56, 0.0 }
 0x1d4   : > { %v2692_v8 = vadd.f32 %v2691_v11, %v2690_v37  ;;  %vm2357_vm11 = vcmp.lt.s32.totalorder %v2321_v54, 16  ;;  %v2322_v7 = vsel %vm4793_vm5, %v2286_v52, %v1960_v50 }
 0x1d5   : > { %2643 = vst.msk [vmem:[%s4474_s14 + $0x34] sm:$0xf] %vm5167_vm12, %v3134_v20  ;;  %v2805_v29 = vsel %vm1231_vm8, %v2757_v60, 0.0  ;;  %v4803_v42 = vmul.u32.u64.low 3817748708, %v1751_v21  ;;  %v4804_v27 = vmul.u32.u64.high 3817748708, %v1751_v21, %v4803_v42  ;;  %vm2360_vm12 = vcmp.lt.s32.totalorder %v2324_v31, 16 }
 0x1d6   : > { %v2694_v34 = vadd.f32 %v2693_v12, %v2692_v8  ;;  %v2806_v18 = vadd.f32 %v2805_v29, %v2804_v41  ;;  %v4808_v53 = vmul.u32.u64.low 3817748708, %v1749_v15  ;;  %v4809_v59 = vmul.u32.u64.high 3817748708, %v1749_v15, %v4808_v53 }
 0x1d7   : > { %vm2358_vm13 = vcmp.lt.s32.totalorder %v2322_v7, 16  ;;  %v4814_v26 = vmul.u32.u64.low 3817748708, %v1752_v58  ;;  %v4815_v36 = vmul.u32.u64.high 3817748708, %v1752_v58, %v4814_v26  ;;  %v2013_v29 = vshrl.u32 %v4804_v27, 4 }
 0x1d8   : > { %v2808_v0 = vadd.f32 %v2807_v39, %v2806_v18  ;;  %v2696_v14 = vadd.f32 %v2695_v32, %v2694_v34  ;;  %v4820_v25 = vmul.u32.u64.low 3817748708, %v1750_v4  ;;  %v4821_v45 = vmul.u32.u64.high 3817748708, %v1750_v4, %v4820_v25 }
 0x1d9   : > { %v2024_v44 = vshrl.u32 %v4815_v36, 4 }
 0x1da   : > { %v2810_v2 = vadd.f32 %v2809_v19, %v2808_v0  ;;  %v1991_v0 = vshrl.u32 %v4809_v59, 4  ;;  %v2014_v19 = vmul.u32 18, %v2013_v29  ;;  %v2002_v35 = vshrl.u32 %v4821_v45, 4 }
 0x1db   : > { %v2025_v5 = vmul.u32 18, %v2024_v44  ;;  %v1754_v59 = vadd.s32 200, %v4379_v33 }
 0x1dc   : > { %v1992_v30 = vmul.u32 18, %v1991_v0  ;;  %v2015_v61 = vsub.s32 %v1751_v21, %v2014_v19  ;;  %v2003_v50 = vmul.u32 18, %v2002_v35 }
 0x1dd   : > { %v2026_v3 = vsub.s32 %v1752_v58, %v2025_v5 }
 0x1de   : > { %v1993_v6 = vsub.s32 %v1749_v15, %v1992_v30  ;;  %vm2183_vm2 = vcmp.ne.s32.totalorder %v2015_v61, 0  ;;  %vm2219_vm3 = vcmp.lt.s32.totalorder %v2015_v61, 0  ;;  %v2004_v22 = vsub.s32 %v1750_v4, %v2003_v50 }
 0x1df   : > { %v2291_v17 = vadd.s32 18, %v2015_v61  ;;  %vm2255_vm7 = vmand %vm2219_vm3, %vm2183_vm2  ;;  %vm2184_vm10 = vcmp.ne.s32.totalorder %v2026_v3, 0  ;;  %vm2220_vm5 = vcmp.lt.s32.totalorder %v2026_v3, 0  ;;  %v2292_v54 = vadd.s32 18, %v2026_v3 }
 0x1e0   : > { %vm2181_vm4 = vcmp.ne.s32.totalorder %v1993_v6, 0  ;;  %vm2217_vm9 = vcmp.lt.s32.totalorder %v1993_v6, 0  ;;  %v2289_v48 = vadd.s32 18, %v1993_v6  ;;  %v2290_v21 = vadd.s32 18, %v2004_v22 }
 0x1e1   : > { %v2327_v52 = vsel %vm2255_vm7, %v2291_v17, %v2015_v61  ;;  %v1756_v4 = vadd.s32 216, %v4379_v33  ;;  %vm5180_vm2 = vcmask 60416  }
 0x1e2   : > { %vm5183_vm7 = vmmov %vm5180_vm2 }
 0x1eb   : > { %v3202_v13 = vpop.f32.mrf.mxu0 }
 0x1ec   : > { %v2467_v62 = vsel %vm2359_vm6, %v3202_v13, 0.0  ;;  %vm2253_vm6 = vmand %vm2217_vm9, %vm2181_vm4  ;;  %v1755_v13 = vadd.s32 208, %v4379_v33 }
 0x1ed   : > { %v3139_v23 = vpack.c.bf16 %v2467_v62, %v2467_v62  ;;  %v1649_v43 = vpop.f32.mrf.mxu0  ;;  %v2762_v60 = vmul.f32 %v2467_v62, %v2467_v62  ;;  %v2701_v34 = vsel %vm1231_vm8, %v2467_v62, 0.0  ;;  %v2325_v31 = vsel %vm2253_vm6, %v2289_v48, %v1993_v6  ;;  %vm5181_vm4 = vmmov %vm5180_vm2 }
 0x1ee   : > { %v2465_v47 = vsel %vm2357_vm11, %v1649_v43, 0.0  ;;  %vm2182_vm11 = vcmp.ne.s32.totalorder %v2004_v22, 0  ;;  %v1753_v62 = vadd.s32 192, %v4379_v33  ;;  %vm5182_vm9 = vmmov %vm5180_vm2 }
 0x1ef   : > { %2648 = vst.msk [vmem:[%s4474_s14 + $0x48] sm:$0xf] %vm5172_vm15, %v3139_v23  ;;  %v3137_v46 = vpack.c.bf16 %v2465_v47, %v2465_v47  ;;  %v2697_v37 = vsel %vm1231_vm8, %v2465_v47, 0.0  ;;  %v2760_v55 = vmul.f32 %v2465_v47, %v2465_v47  ;;  %v3203_v57 = vpop.f32.mrf.mxu0  ;;  %v2815_v40 = vsel %vm1231_vm8, %v2762_v60, 0.0  ;;  %vm4837_vm15 = vmand %vm2220_vm5, %vm2184_vm10 }
 0x1f0   : > { %v2698_v9 = vadd.f32 %v2697_v37, %v2696_v14  ;;  %v2468_v63 = vsel %vm2360_vm12, %v3203_v57, 0.0  ;;  %vm2218_vm12 = vcmp.lt.s32.totalorder %v2004_v22, 0  ;;  %v2328_v7 = vsel %vm4837_vm15, %v2292_v54, %v2026_v3 }
 0x1f1   : > { %2646 = vst.msk [vmem:[%s4474_s14 + $0x40] sm:$0xf] %vm5173_vm14, %v3137_v46  ;;  %v2811_v24 = vsel %vm1231_vm8, %v2760_v55, 0.0  ;;  %v3140_v10 = vpack.c.bf16 %v2468_v63, %v2468_v63  ;;  %v1652_v41 = vpop.f32.mrf.mxu0  ;;  %v2763_v18 = vmul.f32 %v2468_v63, %v2468_v63  ;;  %v2703_v14 = vsel %vm1231_vm8, %v2468_v63, 0.0 }
 0x1f2   : > { %v2812_v20 = vadd.f32 %v2811_v24, %v2810_v2  ;;  %v2466_v11 = vsel %vm2358_vm13, %v1652_v41, 0.0  ;;  %vm4841_vm13 = vmand %vm2218_vm12, %vm2182_vm11  ;;  %vm2363_vm14 = vcmp.lt.s32.totalorder %v2327_v52, 16 }
 0x1f3   : > { %2649 = vst.msk [vmem:[%s4474_s14 + $0x4c] sm:$0xf] %vm5174_vm0, %v3140_v10  ;;  %v3138_v8 = vpack.c.bf16 %v2466_v11, %v2466_v11  ;;  %v2699_v16 = vsel %vm1231_vm8, %v2466_v11, 0.0  ;;  %v2761_v12 = vmul.f32 %v2466_v11, %v2466_v11  ;;  %v2817_v2 = vsel %vm1231_vm8, %v2763_v18, 0.0 }
 0x1f4   : > { %v2700_v56 = vadd.f32 %v2699_v16, %v2698_v9  ;;  %vm2361_vm0 = vcmp.lt.s32.totalorder %v2325_v31, 16  ;;  %v2326_v27 = vsel %vm4841_vm13, %v2290_v21, %v2004_v22 }
 0x1f5   : > { %2647 = vst.msk [vmem:[%s4474_s14 + $0x44] sm:$0xf] %vm5175_vm1, %v3138_v8  ;;  %v2813_v49 = vsel %vm1231_vm8, %v2761_v12, 0.0  ;;  %v4851_v23 = vmul.u32.u64.low 3817748708, %v1755_v13  ;;  %v4852_v43 = vmul.u32.u64.high 3817748708, %v1755_v13, %v4851_v23  ;;  %vm2364_vm1 = vcmp.lt.s32.totalorder %v2328_v7, 16 }
 0x1f6   : > { %v2702_v39 = vadd.f32 %v2701_v34, %v2700_v56  ;;  %v2814_v32 = vadd.f32 %v2813_v49, %v2812_v20  ;;  %v4856_v37 = vmul.u32.u64.low 3817748708, %v1753_v62  ;;  %v4857_v55 = vmul.u32.u64.high 3817748708, %v1753_v62, %v4856_v37 }
 0x1f7   : > { %vm2362_vm3 = vcmp.lt.s32.totalorder %v2326_v27, 16  ;;  %v4862_v10 = vmul.u32.u64.low 3817748708, %v1756_v4  ;;  %v4863_v41 = vmul.u32.u64.high 3817748708, %v1756_v4, %v4862_v10  ;;  %v2057_v49 = vshrl.u32 %v4852_v43, 4 }
 0x1f8   : > { %v2816_v1 = vadd.f32 %v2815_v40, %v2814_v32  ;;  %v2704_v38 = vadd.f32 %v2703_v14, %v2702_v39  ;;  %v4868_v11 = vmul.u32.u64.low 3817748708, %v1754_v59  ;;  %v4869_v60 = vmul.u32.u64.high 3817748708, %v1754_v59, %v4868_v11 }
 0x1f9   : > { %v2068_v30 = vshrl.u32 %v4863_v41, 4  ;;  %v1757_v27 = vadd.s32 224, %v4379_v33 }
 0x1fa   : > { %v2818_v51 = vadd.f32 %v2817_v2, %v2816_v1  ;;  %v2035_v1 = vshrl.u32 %v4857_v55, 4  ;;  %v2058_v2 = vmul.u32 18, %v2057_v49  ;;  %v2046_v61 = vshrl.u32 %v4869_v60, 4 }
 0x1fb   : > { %v2069_v3 = vmul.u32 18, %v2068_v30 }
 0x1fc   : > { %v2036_v5 = vmul.u32 18, %v2035_v1  ;;  %v2059_v6 = vsub.s32 %v1755_v13, %v2058_v2  ;;  %v2047_v22 = vmul.u32 18, %v2046_v61  ;;  %v1763_v2 = vadd.s32 272, %v4379_v33 }
 0x1fd   : > { %v2070_v48 = vsub.s32 %v1756_v4, %v2069_v3 }
 0x1fe   : > { %v2037_v17 = vsub.s32 %v1753_v62, %v2036_v5  ;;  %vm2187_vm10 = vcmp.ne.s32.totalorder %v2059_v6, 0  ;;  %vm2223_vm5 = vcmp.lt.s32.totalorder %v2059_v6, 0  ;;  %v2048_v52 = vsub.s32 %v1754_v59, %v2047_v22 }
 0x1ff   : > { %v2295_v54 = vadd.s32 18, %v2059_v6  ;;  %vm2259_vm12 = vmand %vm2223_vm5, %vm2187_vm10  ;;  %vm2188_vm15 = vcmp.ne.s32.totalorder %v2070_v48, 0  ;;  %vm2224_vm13 = vcmp.lt.s32.totalorder %v2070_v48, 0  ;;  %v2296_v31 = vadd.s32 18, %v2070_v48 }
 0x200   : > { %vm2185_vm6 = vcmp.ne.s32.totalorder %v2037_v17, 0  ;;  %vm2221_vm11 = vcmp.lt.s32.totalorder %v2037_v17, 0  ;;  %v2293_v28 = vadd.s32 18, %v2037_v17  ;;  %v2294_v13 = vadd.s32 18, %v2048_v52 }
 0x201   : > { %v2331_v21 = vsel %vm2259_vm12, %v2295_v54, %v2059_v6  ;;  %v1760_v59 = vadd.s32 248, %v4379_v33  ;;  %vm5188_vm10 = vcmask 60416   ;;  %v1761_v6 = vadd.s32 256, %v4379_v33 }
 0x202   : > { %v1762_v54 = vadd.s32 264, %v4379_v33 }
 0x203   : > { %v4923_v10 = vmul.u32.u64.low 3817748708, %v1760_v59  ;;  %v4924_v41 = vmul.u32.u64.high 3817748708, %v1760_v59, %v4923_v10 }
 0x20b   : > { %v3206_v42 = vpop.f32.mrf.mxu1 }
 0x20c   : > { %v2471_v58 = vsel %vm2363_vm14, %v3206_v42, 0.0  ;;  %vm2257_vm14 = vmand %vm2221_vm11, %vm2185_vm6  ;;  %v1759_v42 = vadd.s32 240, %v4379_v33 }
 0x20d   : > { %v3143_v47 = vpack.c.bf16 %v2471_v58, %v2471_v58  ;;  %v1665_v53 = vpop.f32.mrf.mxu1  ;;  %v2766_v12 = vmul.f32 %v2471_v58, %v2471_v58  ;;  %v2709_v39 = vsel %vm1231_vm8, %v2471_v58, 0.0  ;;  %v2329_v7 = vsel %vm2257_vm14, %v2293_v28, %v2037_v17  ;;  %vm5189_vm6 = vmmov %vm5188_vm10 }
 0x20e   : > { %v2469_v46 = vsel %vm2361_vm0, %v1665_v53, 0.0  ;;  %vm2186_vm0 = vcmp.ne.s32.totalorder %v2048_v52, 0  ;;  %vm5190_vm11 = vmmov %vm5189_vm6  ;;  %v4963_v22 = vmul.u32.u64.low 3817748708, %v1763_v2  ;;  %v4964_v17 = vmul.u32.u64.high 3817748708, %v1763_v2, %v4963_v22 }
 0x20f   : > { %2652 = vst.msk [vmem:[%s4474_s14 + $0x58] sm:$0xf] %vm5180_vm2, %v3143_v47  ;;  %v3141_v57 = vpack.c.bf16 %v2469_v46, %v2469_v46  ;;  %v2705_v9 = vsel %vm1231_vm8, %v2469_v46, 0.0  ;;  %v2764_v63 = vmul.f32 %v2469_v46, %v2469_v46  ;;  %v3207_v26 = vpop.f32.mrf.mxu1  ;;  %v2823_v19 = vsel %vm1231_vm8, %v2766_v12, 0.0  ;;  %vm4889_vm2 = vmand %vm2224_vm13, %vm2188_vm15 }
 0x210   : > { %v2706_v36 = vadd.f32 %v2705_v9, %v2704_v38  ;;  %v2472_v24 = vsel %vm2364_vm1, %v3207_v26, 0.0  ;;  %vm2222_vm1 = vcmp.lt.s32.totalorder %v2048_v52, 0  ;;  %v2332_v58 = vsel %vm4889_vm2, %v2296_v31, %v2070_v48  ;;  %vm5191_vm12 = vmmov %vm5189_vm6 }
 0x211   : > { %2650 = vst.msk [vmem:[%s4474_s14 + $0x50] sm:$0xf] %vm5181_vm4, %v3141_v57  ;;  %v2819_v25 = vsel %vm1231_vm8, %v2764_v63, 0.0  ;;  %v3144_v45 = vpack.c.bf16 %v2472_v24, %v2472_v24  ;;  %v1668_v20 = vpop.f32.mrf.mxu1  ;;  %v2767_v32 = vmul.f32 %v2472_v24, %v2472_v24  ;;  %v2711_v38 = vsel %vm1231_vm8, %v2472_v24, 0.0 }
 0x212   : > { %v2820_v8 = vadd.f32 %v2819_v25, %v2818_v51  ;;  %v2470_v16 = vsel %vm2362_vm3, %v1668_v20, 0.0  ;;  %vm4893_vm3 = vmand %vm2222_vm1, %vm2186_vm0  ;;  %vm2367_vm4 = vcmp.lt.s32.totalorder %v2331_v21, 16  ;;  %v1758_v63 = vadd.s32 232, %v4379_v33 }
 0x213   : > { %2653 = vst.msk [vmem:[%s4474_s14 + $0x5c] sm:$0xf] %vm5182_vm9, %v3144_v45  ;;  %v3142_v56 = vpack.c.bf16 %v2470_v16, %v2470_v16  ;;  %v2707_v29 = vsel %vm1231_vm8, %v2470_v16, 0.0  ;;  %v2765_v34 = vmul.f32 %v2470_v16, %v2470_v16  ;;  %v2825_v51 = vsel %vm1231_vm8, %v2767_v32, 0.0 }
 0x214   : > { %v2708_v18 = vadd.f32 %v2707_v29, %v2706_v36  ;;  %vm2365_vm9 = vcmp.lt.s32.totalorder %v2329_v7, 16  ;;  %v2330_v43 = vsel %vm4893_vm3, %v2294_v13, %v2048_v52  ;;  %v2112_v29 = vshrl.u32 %v4924_v41, 4 }
 0x215   : > { %2651 = vst.msk [vmem:[%s4474_s14 + $0x54] sm:$0xf] %vm5183_vm7, %v3142_v56  ;;  %v2821_v0 = vsel %vm1231_vm8, %v2765_v34, 0.0  ;;  %v4905_v47 = vmul.u32.u64.low 3817748708, %v1759_v42  ;;  %v4906_v53 = vmul.u32.u64.high 3817748708, %v1759_v42, %v4905_v47  ;;  %vm2368_vm7 = vcmp.lt.s32.totalorder %v2332_v58, 16 }
 0x216   : > { %v2710_v40 = vadd.f32 %v2709_v39, %v2708_v18  ;;  %v2822_v14 = vadd.f32 %v2821_v0, %v2820_v8  ;;  %v4911_v55 = vmul.u32.u64.low 3817748708, %v1757_v27  ;;  %v4912_v57 = vmul.u32.u64.high 3817748708, %v1757_v27, %v4911_v55 }
 0x217   : > { %vm2366_vm5 = vcmp.lt.s32.totalorder %v2330_v43, 16  ;;  %v4932_v11 = vmul.u32.u64.low 3817748708, %v1758_v63  ;;  %v4933_v60 = vmul.u32.u64.high 3817748708, %v1758_v63, %v4932_v11  ;;  %v2101_v16 = vshrl.u32 %v4906_v53, 4 }
 0x218   : > { %v2824_v44 = vadd.f32 %v2823_v19, %v2822_v14  ;;  %v4882_v35 = vadd.f32 %v2711_v38, %v2710_v40  ;;  %v2079_v12 = vshrl.u32 %v4912_v57, 4  ;;  %v2113_v39 = vmul.u32 18, %v2112_v29 }
 0x219   : > { %v2102_v56 = vmul.u32 18, %v2101_v16  ;;  %v2090_v18 = vshrl.u32 %v4933_v60, 4  ;;  %v1764_v48 = vadd.s32 280, %v4379_v33 }
 0x21a   : > { %v4887_v50 = vadd.f32 %v2825_v51, %v2824_v44  ;;  %v2080_v34 = vmul.u32 18, %v2079_v12  ;;  %v2114_v40 = vsub.s32 %v1760_v59, %v2113_v39 }
 0x21b   : > { %v2103_v49 = vsub.s32 %v1759_v42, %v2102_v56  ;;  %v2091_v0 = vmul.u32 18, %v2090_v18  ;;  %v4974_v31 = vmul.u32.u64.low 3817748708, %v1761_v6  ;;  %v4975_v15 = vmul.u32.u64.high 3817748708, %v1761_v6, %v4974_v31 }
 0x21c   : > { %v2081_v32 = vsub.s32 %v1757_v27, %v2080_v34  ;;  %vm2192_vm3 = vcmp.ne.s32.totalorder %v2114_v40, 0  ;;  %v2300_v51 = vadd.s32 18, %v2114_v40 }
 0x21d   : > { %vm2191_vm15 = vcmp.ne.s32.totalorder %v2103_v49, 0  ;;  %vm2227_vm13 = vcmp.lt.s32.totalorder %v2103_v49, 0  ;;  %v2299_v14 = vadd.s32 18, %v2103_v49  ;;  %v2092_v1 = vsub.s32 %v1758_v63, %v2091_v0 }
 0x21e   : > { %vm2189_vm14 = vcmp.ne.s32.totalorder %v2081_v32, 0  ;;  %vm2225_vm0 = vcmp.lt.s32.totalorder %v2081_v32, 0  ;;  %vm4945_vm1 = vmand %vm2227_vm13, %vm2191_vm15  ;;  %v2297_v38 = vadd.s32 18, %v2081_v32  ;;  %vm5200_vm15 = vcmask 60416  }
 0x21f   : > { %vm4949_vm2 = vmand %vm2225_vm0, %vm2189_vm14  ;;  %v2335_v30 = vsel %vm4945_vm1, %v2299_v14, %v2103_v49  ;;  %v2298_v3 = vadd.s32 18, %v2092_v1  ;;  %v4981_v62 = vmul.u32.u64.low 3817748708, %v1764_v48  ;;  %v4982_v42 = vmul.u32.u64.high 3817748708, %v1764_v48, %v4981_v62 }
 0x220   : > { %v2333_v61 = vsel %vm4949_vm2, %v2297_v38, %v2081_v32  ;;  %vm5201_vm14 = vmmov %vm5200_vm15 }
 0x221   : > { %vm5202_vm0 = vmmov %vm5201_vm14 }
 0x222   : > { %vm5203_vm1 = vmmov %vm5202_vm0 }
 0x22b   : > { %v3210_v23 = vpop.f32.mrf.mxu1 }
 0x22c   : > { %v4903_v4 = vsel %vm2367_vm4, %v3210_v23, 0.0  ;;  %vm2228_vm4 = vcmp.lt.s32.totalorder %v2114_v40, 0  ;;  %v4986_v58 = vmul.u32.u64.low 3817748708, %v1762_v54  ;;  %v4987_v23 = vmul.u32.u64.high 3817748708, %v1762_v54, %v4986_v58 }
 0x22d   : > { %v3147_v46 = vpack.c.bf16 %v4903_v4, %v4903_v4  ;;  %v1681_v37 = vpop.f32.mrf.mxu1  ;;  %v2770_v39 = vmul.f32 %v4903_v4, %v4903_v4 }
 0x22e   : > { %v4914_v9 = vsel %vm2365_vm9, %v1681_v37, 0.0  ;;  %vm2190_vm9 = vcmp.ne.s32.totalorder %v2092_v1, 0  ;;  %v2134_v11 = vshrl.u32 %v4987_v23, 4 }
 0x22f   : > { %2656 = vst.msk [vmem:[%s4474_s14 + $0x68] sm:$0xf] %vm5188_vm10, %v3147_v46  ;;  %v3145_v26 = vpack.c.bf16 %v4914_v9, %v4914_v9  ;;  %v3211_v36 = vpop.f32.mrf.mxu1  ;;  %vm4958_vm10 = vmand %vm2228_vm4, %vm2192_vm3  ;;  %v2145_v46 = vshrl.u32 %v4964_v17, 4  ;;  %v2768_v57 = vmul.f32 %v4914_v9, %v4914_v9  ;;  %v2713_v10 = vsel %vm1231_vm8, %v4914_v9, 0.0 }
 0x230   : > { %v4921_v24 = vsel %vm2368_vm7, %v3211_v36, 0.0  ;;  %vm2226_vm7 = vcmp.lt.s32.totalorder %v2092_v1, 0  ;;  %v2336_v28 = vsel %vm4958_vm10, %v2300_v51, %v2114_v40  ;;  %v2123_v36 = vshrl.u32 %v4975_v15, 4 }
 0x231   : > { %2654 = vst.msk [vmem:[%s4474_s14 + $0x60] sm:$0xf] %vm5189_vm6, %v3145_v26  ;;  %v3148_v25 = vpack.c.bf16 %v4921_v24, %v4921_v24  ;;  %v1684_v45 = vpop.f32.mrf.mxu1  ;;  %vm4967_vm6 = vmand %vm2226_vm7, %vm2190_vm9  ;;  %v2827_v60 = vsel %vm1231_vm8, %v2768_v57, 0.0  ;;  %v2714_v16 = vadd.f32 %v2713_v10, %v4882_v35  ;;  %v2135_v49 = vmul.u32 18, %v2134_v11 }
 0x232   : > { %v4930_v20 = vsel %vm2366_vm5, %v1684_v45, 0.0  ;;  %vm2371_vm5 = vcmp.lt.s32.totalorder %v2335_v30, 16  ;;  %v2334_v7 = vsel %vm4967_vm6, %v2298_v3, %v2092_v1  ;;  %v2156_v45 = vshrl.u32 %v4982_v42, 4 }
 0x233   : > { %2657 = vst.msk [vmem:[%s4474_s14 + $0x6c] sm:$0xf] %vm5190_vm11, %v3148_v25  ;;  %v3146_v8 = vpack.c.bf16 %v4930_v20, %v4930_v20  ;;  %vm2369_vm11 = vcmp.lt.s32.totalorder %v2333_v61, 16  ;;  %vm2370_vm13 = vcmp.lt.s32.totalorder %v2334_v7, 16  ;;  %v2769_v41 = vmul.f32 %v4930_v20, %v4930_v20 }
 0x234   : > { %v2146_v25 = vmul.u32 18, %v2145_v46  ;;  %v2124_v12 = vmul.u32 18, %v2123_v36  ;;  %v2828_v29 = vadd.f32 %v2827_v60, %v4887_v50  ;;  %v2717_v40 = vsel %vm1231_vm8, %v4903_v4, 0.0 }
 0x235   : > { %2655 = vst.msk [vmem:[%s4474_s14 + $0x64] sm:$0xf] %vm5191_vm12, %v3146_v8  ;;  %vm2372_vm12 = vcmp.lt.s32.totalorder %v2336_v28, 16  ;;  %v2715_v8 = vsel %vm1231_vm8, %v4930_v20, 0.0  ;;  %v2829_v9 = vsel %vm1231_vm8, %v2769_v41, 0.0  ;;  %v2157_v18 = vmul.u32 18, %v2156_v45 }
 0x236   : > { %v2147_v56 = vsub.s32 %v1763_v2, %v2146_v25  ;;  %v2716_v34 = vadd.f32 %v2715_v8, %v2714_v16  ;;  %v2830_v32 = vadd.f32 %v2829_v9, %v2828_v29  ;;  %v2125_v0 = vsub.s32 %v1761_v6, %v2124_v12 }
 0x237   : > { %v2158_v35 = vsub.s32 %v1764_v48, %v2157_v18  ;;  %v2136_v14 = vsub.s32 %v1762_v54, %v2135_v49  ;;  %v2831_v1 = vsel %vm1231_vm8, %v2770_v39, 0.0  ;;  %v2771_v50 = vmul.f32 %v4921_v24, %v4921_v24 }
 0x238   : > { %vm2195_vm2 = vcmp.ne.s32.totalorder %v2147_v56, 0  ;;  %v2718_v20 = vadd.f32 %v2717_v40, %v2716_v34  ;;  %vm2231_vm3 = vcmp.lt.s32.totalorder %v2147_v56, 0  ;;  %v2832_v38 = vadd.f32 %v2831_v1, %v2830_v32 }
 0x239   : > { %v2303_v44 = vadd.s32 18, %v2147_v56  ;;  %vm2193_vm4 = vcmp.ne.s32.totalorder %v2125_v0, 0  ;;  %vm2229_vm9 = vcmp.lt.s32.totalorder %v2125_v0, 0  ;;  %v2719_v2 = vsel %vm1231_vm8, %v4921_v24, 0.0  ;;  %vm5028_vm7 = vmand %vm2231_vm3, %vm2195_vm2 }
 0x23a   : > { %v2301_v61 = vadd.s32 18, %v2125_v0  ;;  %v2720_v5 = vadd.f32 %v2719_v2, %v2718_v20  ;;  %vm2196_vm10 = vcmp.ne.s32.totalorder %v2158_v35, 0  ;;  %vm2194_vm6 = vcmp.ne.s32.totalorder %v2136_v14, 0 }
 0x23b   : > { %v2833_v6 = vsel %vm1231_vm8, %v2771_v50, 0.0  ;;  %v2339_v52 = vsel %vm5028_vm7, %v2303_v44, %v2147_v56  ;;  %v2304_v54 = vadd.s32 18, %v2158_v35  ;;  %v2302_v31 = vadd.s32 18, %v2136_v14 }
 0x23c   : > { %v2834_v48 = vadd.f32 %v2833_v6, %v2832_v38  ;;  %vm5214_vm3 = vcmask 60416  }
 0x23d   : > { %vm5217_vm7 = vmmov %vm5214_vm3 }
 0x24b   : > { %v3214_v21 = vpop.f32.mrf.mxu1 }
 0x24c   : > { %v4977_v13 = vsel %vm2371_vm5, %v3214_v21, 0.0  ;;  %vm2232_vm5 = vcmp.lt.s32.totalorder %v2158_v35, 0 }
 0x24d   : > { %v3151_v33 = vpack.c.bf16 %v4977_v13, %v4977_v13  ;;  %v1697_v27 = vpop.f32.mrf.mxu1  ;;  %v2725_v23 = vsel %vm1231_vm8, %v4977_v13, 0.0 }
 0x24e   : > { %v2477_v43 = vsel %vm2369_vm11, %v1697_v27, 0.0  ;;  %vm5035_vm11 = vmand %vm2229_vm9, %vm2193_vm4 }
 0x24f   : > { %2660 = vst.msk [vmem:[%s4474_s14 + $0x78] sm:$0xf] %vm5200_vm15, %v3151_v33  ;;  %v3149_v47 = vpack.c.bf16 %v2477_v43, %v2477_v43  ;;  %v3215_v53 = vpop.f32.mrf.mxu1  ;;  %v2772_v19 = vmul.f32 %v2477_v43, %v2477_v43  ;;  %v2721_v4 = vsel %vm1231_vm8, %v2477_v43, 0.0  ;;  %vm5042_vm15 = vmand %vm2232_vm5, %vm2196_vm10  ;;  %v2337_v62 = vsel %vm5035_vm11, %v2301_v61, %v2125_v0 }
 0x250   : > { %v4991_v59 = vsel %vm2372_vm12, %v3215_v53, 0.0  ;;  %vm2230_vm12 = vcmp.lt.s32.totalorder %v2136_v14, 0  ;;  %v2722_v17 = vadd.f32 %v2721_v4, %v2720_v5  ;;  %v2774_v33 = vmul.f32 %v4977_v13, %v4977_v13  ;;  %vm5215_vm4 = vmmov %vm5214_vm3 }
 0x251   : > { %2658 = vst.msk [vmem:[%s4474_s14 + $0x70] sm:$0xf] %vm5201_vm14, %v3149_v47  ;;  %v3152_v37 = vpack.c.bf16 %v4991_v59, %v4991_v59  ;;  %v1700_v55 = vpop.f32.mrf.mxu1  ;;  %v2835_v3 = vsel %vm1231_vm8, %v2772_v19, 0.0  ;;  %vm2375_vm14 = vcmp.lt.s32.totalorder %v2339_v52, 16  ;;  %v2340_v58 = vsel %vm5042_vm15, %v2304_v54, %v2158_v35  ;;  %vm5216_vm9 = vmmov %vm5214_vm3 }
 0x252   : > { %v2478_v63 = vsel %vm2370_vm13, %v1700_v55, 0.0  ;;  %v2836_v15 = vadd.f32 %v2835_v3, %v2834_v48  ;;  %vm5049_vm13 = vmand %vm2230_vm12, %vm2194_vm6  ;;  %v2775_v55 = vmul.f32 %v4991_v59, %v4991_v59  ;;  %v2727_v10 = vsel %vm1231_vm8, %v4991_v59, 0.0 }
 0x253   : > { %2661 = vst.msk [vmem:[%s4474_s14 + $0x7c] sm:$0xf] %vm5202_vm0, %v3152_v37  ;;  %v3150_v26 = vpack.c.bf16 %v2478_v63, %v2478_v63  ;;  %v2773_v30 = vmul.f32 %v2478_v63, %v2478_v63  ;;  %v2723_v22 = vsel %vm1231_vm8, %v2478_v63, 0.0  ;;  %vm2373_vm0 = vcmp.lt.s32.totalorder %v2337_v62, 16 }
 0x254   : > { %v2724_v7 = vadd.f32 %v2723_v22, %v2722_v17  ;;  %v2338_v47 = vsel %vm5049_vm13, %v2302_v31, %v2136_v14  ;;  %v2839_v37 = vsel %vm1231_vm8, %v2774_v33, 0.0  ;;  %v2841_v16 = vsel %vm1231_vm8, %v2775_v55, 0.0 }
 0x255   : > { %2659 = vst.msk [vmem:[%s4474_s14 + $0x74] sm:$0xf] %vm5203_vm1, %v3150_v26  ;;  %v2837_v28 = vsel %vm1231_vm8, %v2773_v30, 0.0  ;;  %vm2376_vm1 = vcmp.lt.s32.totalorder %v2340_v58, 16  ;;  %vm5064_vm2 = vcmp.lt.s32.totalorder %v2338_v47, 16  ;;  %vm2858_vm10 = vcmask 57344  }
 0x256   : > { %v2838_v27 = vadd.f32 %v2837_v28, %v2836_v15  ;;  %v2726_v53 = vadd.f32 %v2725_v23, %v2724_v7 }
 0x258   : > { %v2840_v26 = vadd.f32 %v2839_v37, %v2838_v27  ;;  %v2728_v60 = vadd.f32 %v2727_v10, %v2726_v53 }
 0x25a   : > { %v2842_v29 = vadd.f32 %v2841_v16, %v2840_v26 }
 0x268   : > { %v3218_v43 = vpop.f32.mrf.mxu1 }
 0x269   : > { %v2483_v46 = vsel %vm2375_vm14, %v3218_v43, 0.0 }
 0x26a   : > { %v3155_v57 = vpack.c.bf16 %v2483_v46, %v2483_v46  ;;  %v1713_v63 = vpop.f32.mrf.mxu1  ;;  %v2778_v18 = vmul.f32 %v2483_v46, %v2483_v46  ;;  %v2733_v20 = vsel %vm1231_vm8, %v2483_v46, 0.0 }
 0x26b   : > { %v2481_v36 = vsel %vm2373_vm0, %v1713_v63, 0.0 }
 0x26c   : > { %2664 = vst.msk [vmem:[%s4474_s14 + $0x88] sm:$0xf] %vm5214_vm3, %v3155_v57  ;;  %v3153_v41 = vpack.c.bf16 %v2481_v36, %v2481_v36  ;;  %v2729_v25 = vsel %vm1231_vm8, %v2481_v36, 0.0  ;;  %v2776_v45 = vmul.f32 %v2481_v36, %v2481_v36  ;;  %v3219_v11 = vpop.f32.mrf.mxu1  ;;  %v2847_v19 = vsel %vm1231_vm8, %v2778_v18, 0.0 }
 0x26d   : > { %v2484_v8 = vsel %vm2376_vm1, %v3219_v11, 0.0  ;;  %v2730_v59 = vadd.f32 %v2729_v25, %v2728_v60 }
 0x26e   : > { %2662 = vst.msk [vmem:[%s4474_s14 + $0x80] sm:$0xf] %vm5215_vm4, %v3153_v41  ;;  %v2843_v12 = vsel %vm1231_vm8, %v2776_v45, 0.0  ;;  %v3156_v9 = vpack.c.bf16 %v2484_v8, %v2484_v8  ;;  %v1716_v56 = vpop.f32.mrf.mxu1  ;;  %v2779_v35 = vmul.f32 %v2484_v8, %v2484_v8  ;;  %v2735_v38 = vsel %vm1231_vm8, %v2484_v8, 0.0 }
 0x26f   : > { %v2482_v34 = vsel %vm5064_vm2, %v1716_v56, 0.0  ;;  %v2844_v0 = vadd.f32 %v2843_v12, %v2842_v29 }
 0x270   : > { %2665 = vst.msk [vmem:[%s4474_s14 + $0x8c] sm:$0xf] %vm5216_vm9, %v3156_v9  ;;  %v3154_v49 = vpack.c.bf16 %v2482_v34, %v2482_v34  ;;  %v2731_v39 = vsel %vm1231_vm8, %v2482_v34, 0.0  ;;  %v2777_v32 = vmul.f32 %v2482_v34, %v2482_v34  ;;  %v2849_v4 = vsel %vm1231_vm8, %v2779_v35, 0.0 }
 0x271   : > { %v2732_v40 = vadd.f32 %v2731_v39, %v2730_v59 }
 0x272   : > { %2663 = vst.msk [vmem:[%s4474_s14 + $0x84] sm:$0xf] %vm5217_vm7, %v3154_v49  ;;  %v2845_v14 = vsel %vm1231_vm8, %v2777_v32, 0.0 }
 0x273   : > { %v2734_v1 = vadd.f32 %v2733_v20, %v2732_v40  ;;  %v2846_v50 = vadd.f32 %v2845_v14, %v2844_v0 }
 0x275   : > { %v2736_v44 = vadd.f32 %v2735_v38, %v2734_v1  ;;  %v2848_v2 = vadd.f32 %v2847_v19, %v2846_v50 }
 0x277   : > { %v2737_v30 = vrot.slane %v2736_v44, 4  ;;  %v2850_v51 = vadd.f32 %v2849_v4, %v2848_v2 }
 0x279   : > { %v2738_v61 = vadd.f32 %v2737_v30, %v2736_v44  ;;  %v2851_v5 = vrot.slane %v2850_v51, 4 }
 0x27b   : > { %v2739_v6 = vrot.slane %v2738_v61, 2  ;;  %v2852_v3 = vadd.f32 %v2851_v5, %v2850_v51 }
 0x27d   : > { %v2740_v22 = vadd.f32 %v2739_v6, %v2738_v61  ;;  %v2853_v24 = vrot.slane %v2852_v3, 2 }
 0x27f   : > { %v2741_v17 = vrot.slane %v2740_v22, 1  ;;  %v2854_v48 = vadd.f32 %v2853_v24, %v2852_v3 }
 0x281   : > { %v2742_v52 = vadd.f32 %v2741_v17, %v2740_v22  ;;  %v2855_v54 = vrot.slane %v2854_v48, 1 }
 0x283   : > { %v2856_v28 = vadd.f32 %v2855_v54, %v2854_v48  ;;  %2859 = vst.msk [vmem:[%s261_s21] sm:$0x1] %vm2858_vm10, %v2742_v52 }
 0x285   : > { %2860 = vst.msk [vmem:[%s267_s24] sm:$0x1] %vm2858_vm10, %v2856_v28 }
 0x286 PF: > { %s15_s17 = sadd.s32 1, %s3392_s17   ;;  %s5218_s15 = smov %s3388_s16 }
 0x287   : > { %p12_p5 = scmp.ge.s32.totalorder %s15_s17, 4   ;;  %s5219_s16 = smov %s5221_s18 }
 0x289   :  { %14 = sbr.rel (!%p12_p5) target bundleno = 2 (0x2), region = 85 }

// kernel: double_conv.4
= control target key start
LH: loop header
LB: loop body
LE: loop exit
PB: predicated region body
PF: predicated region fallthrough
CT: control target
= control target key end

     0   :  { %s4434_s21 = smov 0   ;;  %s4436_s22 = smov 0   ;;  %s6996_s0 = inlined_call_operand.vmem [shape: bf16[2,288,8], index: 0, kind: input, shape index: {}]   ;;  %s6997_s1 = inlined_call_operand.vmem [shape: bf16[72,8], index: 1, kind: input, shape index: {}]   ;;  %s6998_s2 = inlined_call_operand.vmem [shape: f32[1,8], index: 2, kind: input, shape index: {}]   ;;  %s6999_s3 = inlined_call_operand.vmem [shape: f32[1,8], index: 3, kind: input, shape index: {}]   ;;  %s7000_s4 = inlined_call_operand.vmem [shape: bf16[2,288,8], index: 4, kind: output, shape index: {0}]   ;;  %s7001_s5 = inlined_call_operand.vmem [shape: f32[2,1,8], index: 5, kind: output, shape index: {1}]   ;;  %s7002_s6 = inlined_call_operand.vmem [shape: f32[2,1,8], index: 6, kind: output, shape index: {2}]  }
   0x1   :  { %s4438_s23 = smov 0  }
   0x2 LB: > { %s26_s24 = sadd.s32 1, %s4384_s22  ;;  %p3838_p0 = scmp.ge.s32.totalorder %s4388_s23, 1  ;;  %s4388_s23 = sphi %s4438_s23, %s17_s23   ;;  %s4384_s22 = sphi %s4436_s22, %s7703_s22   ;;  %s4380_s21 = sphi %s4434_s21, %s7702_s21  }
   0x3   : > { %p27_p1 = scmp.ge.s32.totalorder %s26_s24, 2  ;;  %p244_p2 = scmp.lt.s32.totalorder %s4388_s23, 3 }
   0x5   : > { %s7705_s24 = smov (%p27_p1, %s26_s24), 0  ;;  %p245_p3 = pnand %p3838_p0, %p244_p2 }
   0x7   : > { %248 = sbr.rel (%p245_p3) target bundleno = 762 (0x2fa), region = 36 }
   0xc   : > { %p293_p4 = scmp.lt.s32.totalorder %s4380_s21, 1  ;;  %vm7009_vm0 = vcmask 60416   ;;  %v561_v0 = vlaneseq  ;;  %v4390_v1 = vmov 0   ;;  %v4534_v14 = vld [vmem:[%s6998_s2] ss:$0 sm:$0xff]  ;;  %v7072_v53 = vmov 0 }
   0xd   : > { %325 = vst.msk [vmem:[#allocation2 + $0x4] sm:$0xf] %vm7009_vm0, %v4390_v1  ;;  %326 = vst.msk [vmem:[#allocation2 + $0x8] sm:$0xf] %vm7009_vm0, %v4390_v1  ;;  %v4545_v22 = vld [vmem:[%s6999_s3] ss:$0 sm:$0xff] }
   0xe   : > { %327 = vst.msk [vmem:[#allocation2 + $0xc] sm:$0xf] %vm7009_vm0, %v4390_v1  ;;  %328 = vst.msk [vmem:[#allocation2 + $0x10] sm:$0xf] %vm7009_vm0, %v4390_v1  ;;  %s7707_s21 = smov (!%p293_p4, %s4380_s21), 1  ;;  %v4502_v2 = vshrl.u32 %v561_v0, 7 }
   0xf   : > { %329 = vst.msk [vmem:[#allocation2 + $0x14] sm:$0xf] %vm7009_vm0, %v4390_v1  ;;  %330 = vst.msk [vmem:[#allocation2 + $0x18] sm:$0xf] %vm7009_vm0, %v4390_v1  ;;  %s4229_s25 = smul.u32 144, %s7707_s21  ;;  %s4391_s9 = smov 16  }
  0x10   : > { %331 = vst.msk [vmem:[#allocation2 + $0x1c] sm:$0xf] %vm7009_vm0, %v4390_v1  ;;  %332 = vst.msk [vmem:[#allocation2 + $0x20] sm:$0xf] %vm7009_vm0, %v4390_v1  ;;  %v4506_v3 = vmul.u32.u64.low 3817748708, %v4502_v2  ;;  %v4507_v4 = vmul.u32.u64.high 3817748708, %v4502_v2, %v4506_v3 }
  0x11   : > { %333 = vst.msk [vmem:[#allocation2 + $0x24] sm:$0xf] %vm7009_vm0, %v4390_v1  ;;  %334 = vst.msk [vmem:[#allocation2 + $0x28] sm:$0xf] %vm7009_vm0, %v4390_v1  ;;  %v563_v5 = vadd.s32 8, %v4502_v2  ;;  %v564_v6 = vadd.s32 16, %v4502_v2  ;;  %s4522_s28 = scalar_lea.vmem %s6996_s0, %s4229_s25 }
  0x12   : > { %335 = vst.msk [vmem:[#allocation2 + $0x2c] sm:$0xf] %vm7009_vm0, %v4390_v1  ;;  %336 = vst.msk [vmem:[#allocation2 + $0x30] sm:$0xf] %vm7009_vm0, %v4390_v1  ;;  %v4512_v7 = vadd.s32 24, %v4502_v2  ;;  %v4515_v8 = vadd.s32 32, %v4502_v2 }
  0x13   : > { %337 = vst.msk [vmem:[#allocation2 + $0x34] sm:$0xf] %vm7009_vm0, %v4390_v1  ;;  %338 = vst.msk [vmem:[#allocation2 + $0x38] sm:$0xf] %vm7009_vm0, %v4390_v1  ;;  %v4524_v9 = vmul.u32.u64.low 3817748708, %v563_v5  ;;  %v4525_v10 = vmul.u32.u64.high 3817748708, %v563_v5, %v4524_v9 }
  0x14   : > { %339 = vst.msk [vmem:[#allocation2 + $0x3c] sm:$0xf] %vm7009_vm0, %v4390_v1  ;;  %340 = vst.msk [vmem:[#allocation2 + $0x40] sm:$0xf] %vm7009_vm0, %v4390_v1  ;;  %v4527_v11 = vmul.u32.u64.low 3817748708, %v564_v6  ;;  %v4528_v12 = vmul.u32.u64.high 3817748708, %v564_v6, %v4527_v11 }
  0x15   : > { %341 = vst.msk [vmem:[#allocation2 + $0x44] sm:$0xf] %vm7009_vm0, %v4390_v1  ;;  %342 = vst.msk [vmem:[#allocation2 + $0x48] sm:$0xf] %vm7009_vm0, %v4390_v1  ;;  %v4060_v13 = vld [vmem:[%s4522_s28] sm:$0xff]   ;;  %v4131_v15 = vld [vmem:[%s4522_s28 + $0x8] sm:$0xff]  }
  0x16   : > { %343 = vst.msk [vmem:[#allocation2 + $0x4c] sm:$0xf] %vm7009_vm0, %v4390_v1  ;;  %344 = vst.msk [vmem:[#allocation2 + $0x50] sm:$0xf] %vm7009_vm0, %v4390_v1  ;;  %v4538_v16 = vmul.u32.u64.low 3817748708, %v4512_v7  ;;  %v4539_v17 = vmul.u32.u64.high 3817748708, %v4512_v7, %v4538_v16  ;;  %v4061_v18 = vunpack.c.l.bf16 %v4060_v13  ;;  %v4062_v20 = vunpack.c.h.bf16 %v4060_v13 }
  0x17   : > { %345 = vst.msk [vmem:[#allocation2 + $0x54] sm:$0xf] %vm7009_vm0, %v4390_v1  ;;  %346 = vst.msk [vmem:[#allocation2 + $0x58] sm:$0xf] %vm7009_vm0, %v4390_v1  ;;  %v604_v19 = vshrl.u32 %v4507_v4, 4  ;;  %v4065_v21 = vunpack.c.l.bf16 %v4131_v15  ;;  %v4548_v23 = vld [vmem:[%s4522_s28 + $0x10] sm:$0xff]   ;;  %v4066_v34 = vunpack.c.h.bf16 %v4131_v15 }
  0x18   : > { %347 = vst.msk [vmem:[#allocation2 + $0x5c] sm:$0xf] %vm7009_vm0, %v4390_v1  ;;  %348 = vst.msk [vmem:[#allocation2 + $0x60] sm:$0xf] %vm7009_vm0, %v4390_v1  ;;  %v4551_v24 = vmul.u32.u64.low 3817748708, %v4515_v8  ;;  %v4552_v25 = vmul.u32.u64.high 3817748708, %v4515_v8, %v4551_v24  ;;  %v446_v26 = vmul.f32 %v4061_v18, %v4534_v14  ;;  %v447_v30 = vmul.f32 %v4062_v20, %v4534_v14 }
  0x19   : > { %349 = vst.msk [vmem:[#allocation2 + $0x64] sm:$0xf] %vm7009_vm0, %v4390_v1  ;;  %350 = vst.msk [vmem:[#allocation2 + $0x68] sm:$0xf] %vm7009_vm0, %v4390_v1  ;;  %v605_v27 = vmul.u32 18, %v604_v19  ;;  %v448_v31 = vmul.f32 %v4065_v21, %v4534_v14  ;;  %v615_v32 = vshrl.u32 %v4525_v10, 4  ;;  %v4069_v38 = vunpack.c.l.bf16 %v4548_v23 }
  0x1a   : > { %351 = vst.msk [vmem:[#allocation2 + $0x6c] sm:$0xf] %vm7009_vm0, %v4390_v1  ;;  %352 = vst.msk [vmem:[#allocation2 + $0x70] sm:$0xf] %vm7009_vm0, %v4390_v1  ;;  %v1499_v28 = vld [vmem:[#allocation2 + $0x8] sm:$0xf]  ;;  %v489_v35 = vadd.f32 %v4545_v22, %v446_v26  ;;  %v490_v37 = vadd.f32 %v4545_v22, %v447_v30  ;;  %v449_v48 = vmul.f32 %v4066_v34, %v4534_v14  ;;  %v4070_v11 = vunpack.c.h.bf16 %v4548_v23 }
  0x1b   : > { %353 = vst.msk [vmem:[#allocation2 + $0x74] sm:$0xf] %vm7009_vm0, %v4390_v1  ;;  %354 = vst.msk [vmem:[#allocation2 + $0x78] sm:$0xf] %vm7009_vm0, %v4390_v1  ;;  %v1535_v29 = vld [vmem:[#allocation2 + $0x4] sm:$0x8]  ;;  %v606_v36 = vsub.s32 %v4502_v2, %v605_v27  ;;  %v491_v40 = vadd.f32 %v4545_v22, %v448_v31  ;;  %v450_v51 = vmul.f32 %v4069_v38, %v4534_v14 }
  0x1c   : > { %355 = vst.msk [vmem:[#allocation2 + $0x7c] sm:$0xf] %vm7009_vm0, %v4390_v1  ;;  %356 = vst.msk [vmem:[#allocation2 + $0x80] sm:$0xf] %vm7009_vm0, %v4390_v1  ;;  %v626_v33 = vshrl.u32 %v4528_v12, 4  ;;  %v4563_v39 = vcombine.low %v1535_v29, %v1499_v28  ;;  %v616_v41 = vmul.u32 18, %v615_v32  ;;  %v492_v58 = vadd.f32 %v4545_v22, %v449_v48 }
  0x1d   : > { %357 = vst.msk [vmem:[#allocation2 + $0x84] sm:$0xf] %vm7009_vm0, %v4390_v1  ;;  %358 = vst.msk [vmem:[#allocation2 + $0x88] sm:$0xf] %vm7009_vm0, %v4390_v1  ;;  %v525_v43 = vmax.f32 %v489_v35, 0.0  ;;  %vm994_vm1 = vcmp.ne.s32.totalorder %v606_v36, 0  ;;  %v493_v63 = vadd.f32 %v4545_v22, %v450_v51  ;;  %v451_v30 = vmul.f32 %v4070_v11, %v4534_v14 }
  0x1e   : > { %359 = vst.msk [vmem:[#allocation2 + $0x8c] sm:$0xf] %vm7009_vm0, %v4390_v1  ;;  %360 = vst.msk [vmem:[#allocation2 + $0x90] sm:$0xf] %vm7009_vm0, %v4390_v1  ;;  %v627_v42 = vmul.u32 18, %v626_v33  ;;  %vm1030_vm2 = vcmp.lt.s32.totalorder %v606_v36, 0  ;;  %v617_v46 = vsub.s32 %v563_v5, %v616_v41 }
  0x1f   : > { %361 = vst.msk [vmem:[#allocation2 + $0x94] sm:$0xf] %vm7009_vm0, %v4390_v1  ;;  %362 = vst.msk [vmem:[#allocation2 + $0x98] sm:$0xf] %vm7009_vm0, %v4390_v1  ;;  %v1102_v44 = vadd.s32 18, %v606_v36  ;;  %v526_v45 = vmax.f32 %v490_v37, 0.0  ;;  %v494_v51 = vadd.f32 %v4545_v22, %v451_v30 }
  0x20   : > { %363 = vst.msk [vmem:[#allocation2 + $0x9c] sm:$0xf] %vm7009_vm0, %v4390_v1  ;;  %364 = vst.msk [vmem:[#allocation2 + $0xa0] sm:$0xf] %vm7009_vm0, %v4390_v1  ;;  %v628_v47 = vsub.s32 %v564_v6, %v627_v42  ;;  %v527_v50 = vmax.f32 %v491_v40, 0.0  ;;  %v637_v52 = vshrl.u32 %v4539_v17, 4 }
  0x21   : > { %365 = vst.msk [vmem:[#allocation2 + $0xa4] sm:$0xf] %vm7009_vm0, %v4390_v1  ;;  %366 = vst.msk [vmem:[#allocation2 + $0xa8] sm:$0xf] %vm7009_vm0, %v4390_v1  ;;  %vm995_vm5 = vcmp.ne.s32.totalorder %v617_v46, 0  ;;  %vm1031_vm7 = vcmp.lt.s32.totalorder %v617_v46, 0 }
  0x22   : > { %vm1066_vm3 = vmand %vm1030_vm2, %vm994_vm1  ;;  %vm996_vm6 = vcmp.ne.s32.totalorder %v628_v47, 0  ;;  %vm1032_vm8 = vcmp.lt.s32.totalorder %v628_v47, 0  ;;  %v1103_v55 = vadd.s32 18, %v617_v46  ;;  %v1104_v56 = vadd.s32 18, %v628_v47  ;;  %v4133_v18 = vld [vmem:[%s4522_s28 + $0x18] sm:$0xff]   ;;  %s4392_s10 = smov 40  }
  0x23   : > { %v1138_v49 = vsel %vm1066_vm3, %v1102_v44, %v606_v36  ;;  %vm1067_vm9 = vmand %vm1031_vm7, %vm995_vm5  ;;  %v638_v59 = vmul.u32 18, %v637_v52  ;;  %v4577_v60 = vadd.s32 40, %v4502_v2  ;;  %v648_v0 = vshrl.u32 %v4552_v25, 4  ;;  %s4393_s11 = smov 8   ;;  %s4394_s12 = smov 48  }
  0x24   : > { %vm4569_vm4 = vcmp.lt.s32.totalorder %v1138_v49, 16  ;;  %vm1068_vm10 = vmand %vm1032_vm8, %vm996_vm6  ;;  %v1139_v61 = vsel %vm1067_vm9, %v1103_v55, %v617_v46  ;;  %v7075_v1 = vmov 0  ;;  %v7078_v3 = vmov 0  ;;  %s4395_s13 = smov 64   ;;  %s4396_s14 = smov 24  }
  0x25   : > { %v7073_v53 = vsel %vm4569_vm4, 4294967295, %v7072_v53  ;;  %v1282_v54 = vsel %vm4569_vm4, %v525_v43, 0.0  ;;  %v1140_v62 = vsel %vm1068_vm10, %v1104_v56, %v628_v47  ;;  %vm4582_vm11 = vcmp.lt.s32.totalorder %v1139_v61, 16  ;;  %s4397_s15 = smov 32   ;;  %s4398_s16 = smov 56  }
  0x26   : > { %7074 = vst [vmem:[#allocation3_spill] sm:$0xff] %v7073_v53  ;;  %v3987_v57 = vpack.c.bf16 %v1282_v54, %v1282_v54  ;;  %v7076_v1 = vsel %vm4582_vm11, 4294967295, %v7075_v1  ;;  %vm4586_vm12 = vcmp.lt.s32.totalorder %v1140_v62, 16  ;;  %v639_v4 = vsub.s32 %v4512_v7, %v638_v59 }
  0x27   : > { %7077 = vst [vmem:[#allocation4_spill] sm:$0xff] %v7076_v1  ;;  %v7079_v3 = vsel %vm4586_vm12, 4294967295, %v7078_v3  ;;  %v1646_v5 = vshll.u32 %v4563_v39, 16  ;;  %v1283_v6 = vsel %vm4582_vm11, %v526_v45, 0.0  ;;  %v1284_v9 = vsel %vm4586_vm12, %v527_v50, 0.0 }
  0x28   : > { %1462 = vst.msk [vmem:[#allocation2 + $0x10] sm:$0xf] %vm7009_vm0, %v3987_v57  ;;  %7080 = vst [vmem:[#allocation5_spill] sm:$0xff] %v7079_v3  ;;  %v649_v10 = vmul.u32 18, %v648_v0  ;;  %v3988_v12 = vpack.c.bf16 %v1283_v6, %v1283_v6  ;;  %v3989_v13 = vpack.c.bf16 %v1284_v9, %v1284_v9  ;;  %vm997_vm13 = vcmp.ne.s32.totalorder %v639_v4, 0 }
  0x29   : > { %vm1033_vm14 = vcmp.lt.s32.totalorder %v639_v4, 0  ;;  %v528_v15 = vmax.f32 %v492_v58, 0.0  ;;  %v1105_v17 = vadd.s32 18, %v639_v4  ;;  %v4604_v19 = vadd.s32 48, %v4502_v2  ;;  %v1537_v50 = vld [vmem:[#allocation2 + $0xc] sm:$0x8] }
  0x2a   : > { %v650_v16 = vsub.s32 %v4515_v8, %v649_v10  ;;  %vm4598_vm15 = vmand %vm1033_vm14, %vm997_vm13  ;;  %1463 = vst.msk [vmem:[#allocation2 + $0x14] sm:$0xf] %vm7009_vm0, %v3988_v12  ;;  %v529_v20 = vmax.f32 %v493_v63, 0.0  ;;  %v1644_v21 = vshrl.u32 %v4563_v39, 16  ;;  %v1500_v8 = vld [vmem:[#allocation2 + $0xc] sm:$0xf]  ;;  %v4073_v29 = vunpack.c.l.bf16 %v4133_v18 }
  0x2b   : > { %1464 = vst.msk [vmem:[#allocation2 + $0x18] sm:$0xf] %vm7009_vm0, %v3989_v13  ;;  %v4610_v23 = vmul.u32.u64.low 3817748708, %v4577_v60  ;;  %v4611_v24 = vmul.u32.u64.high 3817748708, %v4577_v60, %v4610_v23  ;;  %v1141_v26 = vsel %vm4598_vm15, %v1105_v17, %v639_v4  ;;  %v7083_v27 = vmov 0 }
  0x2c   : > { %vm998_vm1 = vcmp.ne.s32.totalorder %v650_v16, 0  ;;  %vm1034_vm2 = vcmp.lt.s32.totalorder %v650_v16, 0  ;;  %v1106_v25 = vadd.s32 18, %v650_v16  ;;  %vm4615_vm5 = vcmp.lt.s32.totalorder %v1141_v26, 16 }
  0x2d   : > { %vm1070_vm3 = vmand %vm1034_vm2, %vm998_vm1  ;;  %v7084_v27 = vsel %vm4615_vm5, 4294967295, %v7083_v27  ;;  %v1648_v28 = vrot.slane %v1646_v5, 1  ;;  %v1285_v33 = vsel %vm4615_vm5, %v528_v15, 0.0  ;;  %v1836_v37 = vrot.slane %v4563_v39, 1 }
  0x2e   : > { %7085 = vst [vmem:[#allocation6_spill] sm:$0xff] %v7084_v27  ;;  %v1142_v32 = vsel %vm1070_vm3, %v1106_v25, %v650_v16  ;;  %v4623_v34 = vmul.u32.u64.low 3817748708, %v4604_v19  ;;  %v4624_v35 = vmul.u32.u64.high 3817748708, %v4604_v19, %v4623_v34  ;;  %v7086_v38 = vmov 0 }
  0x2f   : > { %v1501_v31 = vld [vmem:[#allocation2 + $0x10] sm:$0xf]  ;;  %vm4629_vm6 = vcmp.lt.s32.totalorder %v1142_v32, 16  ;;  %v3990_v40 = vpack.c.bf16 %v1285_v33, %v1285_v33  ;;  %vm7003_vm7 = vcmask 1046528   ;;  %v659_v42 = vshrl.u32 %v4611_v24, 4 }
  0x30   : > { %v4626_v36 = vcombine.low %v1500_v8, %v1501_v31  ;;  %v7087_v38 = vsel %vm4629_vm6, 4294967295, %v7086_v38  ;;  %v1286_v41 = vsel %vm4629_vm6, %v529_v20, 0.0  ;;  %v4637_v43 = vadd.s32 56, %v4502_v2 }
  0x31   : > { %7088 = vst [vmem:[#allocation7_spill] sm:$0xff] %v7087_v38  ;;  %v3991_v45 = vpack.c.bf16 %v1286_v41, %v1286_v41  ;;  %1465 = vst.msk [vmem:[#allocation2 + $0x1c] sm:$0xf] %vm7009_vm0, %v3990_v40  ;;  %v452_v46 = vmul.f32 %v4073_v29, %v4534_v14  ;;  %v1502_v47 = vld [vmem:[#allocation2 + $0x14] sm:$0xf]  ;;  %v1649_v49 = vor.u32 %v1648_v28, %v1644_v21  ;;  %v4074_v52 = vunpack.c.h.bf16 %v4133_v18 }
  0x32   : > { %v1837_v44 = vrot.slane %v4626_v36, 1  ;;  %v1651_v39 = vshll.u32 %v4626_v36, 16  ;;  %v1503_v48 = vld [vmem:[#allocation2 + $0x18] sm:$0xf]  ;;  %v4647_v56 = vcombine.low %v1501_v31, %v1502_v47  ;;  %vm7004_vm8 = vsmask.f32 7424 }
  0x33   : > { %v4645_v55 = vcombine.low %v1502_v47, %v1503_v48  ;;  %1466 = vst.msk [vmem:[#allocation2 + $0x20] sm:$0xf] %vm7009_vm0, %v3991_v45  ;;  %v660_v58 = vmul.u32 18, %v659_v42  ;;  %v670_v59 = vshrl.u32 %v4624_v35, 4  ;;  %v3900_v62 = vcombine.low %v1537_v50, %v1501_v31  ;;  %v1544_v0 = vld [vmem:[#allocation2 + $0x18] sm:$0xe] }
  0x34   : > { %v1838_v54 = vsel %vm7003_vm7, %v1836_v37, %v1837_v44  ;;  %v4650_v57 = vrot.slane %v1651_v39, 1  ;;  %v2186_v61 = vrot.slane %v4647_v56, 6  ;;  %v495_v63 = vadd.f32 %v4545_v22, %v452_v46  ;;  %v4134_v45 = vld [vmem:[%s4522_s28 + $0x20] sm:$0xff]  }
  0x35   : > { %1873 = vrot.lane.b32.xlu1 %v1838_v54, %s4391_s9  ;;  %v530_v4 = vmax.f32 %v494_v51, 0.0  ;;  %v661_v5 = vsub.s32 %v4577_v60, %v660_v58  ;;  %v671_v6 = vmul.u32 18, %v670_v59  ;;  %v453_v9 = vmul.f32 %v4074_v52, %v4534_v14 }
  0x36   : > { %2223 = vrot.lane.b32.xlu0 %v2186_v61, %s4392_s10  ;;  %v1654_v10 = vsel %vm7004_vm8, %v1649_v49, %v4650_v57  ;;  %v1839_v11 = vrot.slane %v4645_v55, 1  ;;  %v4665_v12 = vmul.u32.u64.low 3817748708, %v4637_v43  ;;  %v4666_v13 = vmul.u32.u64.high 3817748708, %v4637_v43, %v4665_v12 }
  0x37   : > { %v672_v60 = vsub.s32 %v4604_v19, %v671_v6  ;;  %vm999_vm9 = vcmp.ne.s32.totalorder %v661_v5, 0  ;;  %vm1035_vm10 = vcmp.lt.s32.totalorder %v661_v5, 0  ;;  %v1107_v16 = vadd.s32 18, %v661_v5 }
  0x38   : > { %v1504_v15 = vld [vmem:[#allocation2 + $0x1c] sm:$0xf]  ;;  %v1920_v18 = vrot.slane %v3900_v62, 1  ;;  %v531_v20 = vmax.f32 %v495_v63, 0.0  ;;  %vm1071_vm13 = vmand %vm1035_vm10, %vm999_vm9  ;;  %v7089_v25 = vmov 0  ;;  %v496_v26 = vadd.f32 %v4545_v22, %v453_v9 }
  0x39   : > { %v4669_v7 = vcombine.low %v1503_v48, %v1504_v15  ;;  %v4671_v17 = vcombine.low %v1544_v0, %v1504_v15  ;;  %vm1000_vm14 = vcmp.ne.s32.totalorder %v672_v60, 0  ;;  %vm1036_vm15 = vcmp.lt.s32.totalorder %v672_v60, 0 }
  0x3a   : > { %v4673_v21 = vld [vmem:[#allocation2 + $0x20] sm:$0xf]  ;;  %v1108_v23 = vadd.s32 18, %v672_v60  ;;  %v1143_v24 = vsel %vm1071_vm13, %v1107_v16, %v661_v5  ;;  %1794 = vrot.lane.b32.xlu0 %v1654_v10, %s4393_s11  ;;  %vm1072_vm1 = vmand %vm1036_vm15, %vm1000_vm14  ;;  %v1840_v28 = vsel %vm7003_vm7, %v1837_v44, %v1839_v11  ;;  %v681_v31 = vshrl.u32 %v4666_v13, 4 }
  0x3b   : > { %v4676_v8 = vcombine.low %v1504_v15, %v4673_v21  ;;  %v4679_v19 = vrot.slane %v4669_v7, 6  ;;  %vm4682_vm2 = vcmp.lt.s32.totalorder %v1143_v24, 16  ;;  %v2447_v32 = vrot.slane %v4671_v17, 7 }
  0x3c   : > { %v7090_v25 = vsel %vm4682_vm2, 4294967295, %v7089_v25  ;;  %v1144_v29 = vsel %vm1072_vm1, %v1108_v23, %v672_v60  ;;  %v1287_v30 = vsel %vm4682_vm2, %v530_v4, 0.0  ;;  %v7092_v34 = vmov 0 }
  0x3d   : > { %7091 = vst [vmem:[#allocation8_spill] sm:$0xff] %v7090_v25  ;;  %2273 = vrot.lane.b32.xlu1 %v4679_v19, %s4394_s12  ;;  %v1841_v33 = vrot.slane %v4676_v8, 1  ;;  %vm4695_vm3 = vcmp.lt.s32.totalorder %v1144_v29, 16  ;;  %v3992_v35 = vpack.c.bf16 %v1287_v30, %v1287_v30  ;;  %v682_v40 = vmul.u32 18, %v681_v31 }
  0x3e   : > { %v7093_v34 = vsel %vm4695_vm3, 4294967295, %v7092_v34  ;;  %v1288_v37 = vsel %vm4695_vm3, %v531_v20, 0.0  ;;  %1875 = vrot.lane.b32.xlu0 %v1840_v28, %s4391_s9  ;;  %v1921_v42 = vsel %vm7003_vm7, %v1920_v18, %v1839_v11  ;;  %vm7005_vm9 = vcmask 1041408   ;;  %v4741_v28 = vld [vmem:[%s4522_s28 + $0x28] sm:$0xff]  }
  0x3f   : > { %7094 = vst [vmem:[#allocation9_spill] sm:$0xff] %v7093_v34  ;;  %v3993_v41 = vpack.c.bf16 %v1288_v37, %v1288_v37  ;;  %1467 = vst.msk [vmem:[#allocation2 + $0x24] sm:$0xf] %vm7009_vm0, %v3992_v35  ;;  %v683_v44 = vsub.s32 %v4637_v43, %v682_v40  ;;  %v1842_v39 = vsel %vm7003_vm7, %v1839_v11, %v1841_v33  ;;  %v532_v46 = vmax.f32 %v496_v26, 0.0 }
  0x40   : > { %v1659_v47 = vshll.u32 %v4645_v55, 16  ;;  %v1992_v48 = vshrl.u32 %v4669_v7, 16  ;;  %v1995_v49 = vshll.u32 %v4669_v7, 16  ;;  %v1984_v50 = vshrl.u32 %v4647_v56, 16 }
  0x41   : > { %2484 = vrot.lane.b32.xlu1 %v2447_v32, %s4395_s13  ;;  %1468 = vst.msk [vmem:[#allocation2 + $0x28] sm:$0xf] %vm7009_vm0, %v3993_v41  ;;  %vm1001_vm10 = vcmp.ne.s32.totalorder %v683_v44, 0  ;;  %vm1037_vm13 = vcmp.lt.s32.totalorder %v683_v44, 0  ;;  %v1109_v43 = vadd.s32 18, %v683_v44  ;;  %v1987_v51 = vshll.u32 %v4647_v56, 16 }
  0x42   : > { %1926 = vrot.lane.b32.xlu0 %v1921_v42, %s4396_s14  ;;  %vm1073_vm14 = vmand %vm1037_vm13, %vm1001_vm10  ;;  %v4077_v52 = vunpack.c.l.bf16 %v4134_v45  ;;  %v4078_v54 = vunpack.c.h.bf16 %v4134_v45  ;;  %v1655_v59 = vshrl.u32 %v4626_v36, 16  ;;  %v1663_v62 = vshrl.u32 %v4645_v55, 16 }
  0x43   : > { %v1145_v58 = vsel %vm1073_vm14, %v1109_v43, %v683_v44  ;;  %v1667_v63 = vshll.u32 %v4676_v8, 16  ;;  %v7095_v0 = vmov 0  ;;  %v1661_v4 = vrot.slane %v1659_v47, 1 }
  0x44   : > { %vm4723_vm15 = vcmp.lt.s32.totalorder %v1145_v58, 16  ;;  %v2316_v5 = vshrl.u32 %v4671_v17, 16  ;;  %v570_v6 = vadd.s32 64, %v4502_v2  ;;  %v2319_v11 = vshll.u32 %v4671_v17, 16 }
  0x45   : > { %1877 = vrot.lane.b32.xlu1 %v1842_v39, %s4391_s9  ;;  %v7096_v0 = vsel %vm4723_vm15, 4294967295, %v7095_v0  ;;  %v1289_v10 = vsel %vm4723_vm15, %v532_v46, 0.0  ;;  %v1994_v12 = vrot.slane %v1992_v48, 5  ;;  %v1997_v13 = vrot.slane %v1995_v49, 6 }
  0x46   : > { %7097 = vst [vmem:[#allocation10_spill] sm:$0xff] %v7096_v0  ;;  %v1506_v9 = vld [vmem:[#allocation2 + $0x24] sm:$0xf]  ;;  %v3994_v60 = vpack.c.bf16 %v1289_v10, %v1289_v10  ;;  %v4735_v16 = vmul.u32.u64.low 3817748708, %v570_v6  ;;  %v4736_v7 = vmul.u32.u64.high 3817748708, %v570_v6, %v4735_v16  ;;  %v1986_v20 = vrot.slane %v1984_v50, 5 }
  0x47   : > { %v4733_v15 = vcombine.low %v4673_v21, %v1506_v9  ;;  %v1989_v23 = vrot.slane %v1987_v51, 6  ;;  %v1657_v24 = vor.u32 %v1655_v59, %v4650_v57  ;;  %v454_v26 = vmul.f32 %v4077_v52, %v4534_v14 }
  0x48   : > { %v1507_v18 = vld [vmem:[#allocation2 + $0x28] sm:$0xf]  ;;  %1469 = vst.msk [vmem:[#allocation2 + $0x2c] sm:$0xf] %vm7009_vm0, %v3994_v60  ;;  %v1665_v21 = vor.u32 %v1663_v62, %v1661_v4  ;;  %v1669_v30 = vrot.slane %v1667_v63, 1  ;;  %v2188_v31 = vsel %vm7005_vm9, %v2186_v61, %v4679_v19  ;;  %v2318_v35 = vrot.slane %v2316_v5, 6 }
  0x49   : > { %1928 = vrot.lane.b32.xlu1 %v1842_v39, %s4396_s14  ;;  %v4744_v29 = vcombine.low %v1506_v9, %v1507_v18  ;;  %vm7007_vm1 = vsmask.f32 2304  ;;  %v2321_v57 = vrot.slane %v2319_v11, 7  ;;  %v1671_v37 = vshrl.u32 %v4676_v8, 16 }
  0x4a   : > { %v2189_v41 = vrot.slane %v4733_v15, 6  ;;  %v4754_v42 = vor.u32 %v1997_v13, %v1994_v12  ;;  %v4081_v44 = vunpack.c.l.bf16 %v4741_v28  ;;  %v4757_v45 = vor.u32 %v1989_v23, %v1986_v20 }
  0x4b   : > { %v1843_v40 = vrot.slane %v4744_v29, 1  ;;  %v4760_v39 = vsel %vm7004_vm8, %v1657_v24, %v1661_v4  ;;  %v497_v56 = vadd.f32 %v4545_v22, %v454_v26  ;;  %v455_v61 = vmul.f32 %v4078_v54, %v4534_v14 }
  0x4c   : > { %v4773_v47 = vsel %vm7004_vm8, %v1665_v21, %v1669_v30  ;;  %v692_v48 = vshrl.u32 %v4736_v7, 4  ;;  %v571_v43 = vadd.s32 72, %v4502_v2  ;;  %v4779_v49 = vor.u32 %v2321_v57, %v2318_v35 }
  0x4d   : > { %v4769_v46 = vsel %vm7003_vm7, %v1841_v33, %v1843_v40  ;;  %2225 = vrot.lane.b32.xlu1 %v2188_v31, %s4392_s10  ;;  %v2001_v50 = vshrl.u32 %v4733_v15, 16  ;;  %v2004_v51 = vshll.u32 %v4733_v15, 16  ;;  %v4783_v33 = vor.u32 %v1671_v37, %v1669_v30 }
  0x4e   : > { %1930 = vrot.lane.b32.xlu0 %v4769_v46, %s4396_s14  ;;  %v2190_v52 = vsel %vm7005_vm9, %v4679_v19, %v2189_v41  ;;  %v4790_v54 = vsel %vm7007_vm1, %v4757_v45, %v4754_v42  ;;  %v693_v58 = vmul.u32 18, %v692_v48  ;;  %v572_v59 = vadd.s32 80, %v4502_v2 }
  0x4f   : > { %v4793_v62 = vld [vmem:[#allocation2 + $0x2c] sm:$0xf]  ;;  %v2448_v63 = vrot.slane %v4733_v15, 7  ;;  %v533_v4 = vmax.f32 %v497_v56, 0.0  ;;  %v456_v5 = vmul.f32 %v4081_v44, %v4534_v14  ;;  %v4798_v9 = vadd.f32 %v4545_v22, %v455_v61 }
  0x50   : > { %v4801_v19 = vcombine.low %v1507_v18, %v4793_v62  ;;  %v694_v10 = vsub.s32 %v570_v6, %v693_v58  ;;  %v4803_v11 = vmul.u32.u64.low 3817748708, %v571_v43  ;;  %v4804_v12 = vmul.u32.u64.high 3817748708, %v571_v43, %v4803_v11 }
  0x51   : > { %v2003_v13 = vrot.slane %v2001_v50, 5  ;;  %v2006_v60 = vrot.slane %v2004_v51, 6  ;;  %v4807_v16 = vmul.u32.u64.low 3817748708, %v572_v59  ;;  %v4808_v7 = vmul.u32.u64.high 3817748708, %v572_v59, %v4807_v16 }
  0x52   : > { %2227 = vrot.lane.b32.xlu0 %v2190_v52, %s4392_s10  ;;  %v2191_v20 = vrot.slane %v4801_v19, 6  ;;  %v2323_v23 = vrot.slane %v2001_v50, 6  ;;  %v2324_v24 = vrot.slane %v2004_v51, 7  ;;  %vm1002_vm10 = vcmp.ne.s32.totalorder %v694_v10, 0 }
  0x53   : > { %vm1038_vm13 = vcmp.lt.s32.totalorder %v694_v10, 0  ;;  %v1110_v26 = vadd.s32 18, %v694_v10  ;;  %v4812_v18 = vadd.f32 %v4545_v22, %v456_v5  ;;  %v4082_v6 = vunpack.c.h.bf16 %v4741_v28 }
  0x54   : > { %v4818_v21 = vsel %vm7005_vm9, %v2189_v41, %v2191_v20  ;;  %v2010_v30 = vshrl.u32 %v4801_v19, 16  ;;  %v2013_v31 = vshll.u32 %v4801_v19, 16  ;;  %vm1074_vm7 = vmand %vm1038_vm13, %vm1002_vm10  ;;  %v703_v35 = vshrl.u32 %v4804_v12, 4 }
  0x55   : > { %2277 = vrot.lane.b32.xlu1 %v4818_v21, %s4394_s12  ;;  %v1675_v28 = vshll.u32 %v4744_v29, 16  ;;  %v1146_v57 = vsel %vm1074_vm7, %v1110_v26, %v694_v10  ;;  %v714_v37 = vshrl.u32 %v4808_v7, 4  ;;  %v573_v41 = vadd.s32 88, %v4502_v2 }
  0x56   : > { %2275 = vrot.lane.b32.xlu0 %v2190_v52, %s4394_s12  ;;  %v4829_v44 = vor.u32 %v2006_v60, %v2003_v13  ;;  %v2325_v56 = vor.u32 %v2324_v24, %v2323_v23  ;;  %vm4831_vm10 = vcmp.lt.s32.totalorder %v1146_v57, 16  ;;  %v7098_v61 = vmov 0  ;;  %v4844_v13 = vld [vmem:[%s4522_s28 + $0x30] sm:$0xff]  }
  0x57   : > { %v7099_v61 = vsel %vm4831_vm10, 4294967295, %v7098_v61  ;;  %v704_v48 = vmul.u32 18, %v703_v35  ;;  %v1290_v50 = vsel %vm4831_vm10, %v533_v4, 0.0  ;;  %v534_v51 = vmax.f32 %v4798_v9, 0.0 }
  0x58   : > { %7100 = vst [vmem:[#allocation11_spill] sm:$0xff] %v7099_v61  ;;  %v715_v52 = vmul.u32 18, %v714_v37  ;;  %v457_v58 = vmul.f32 %v4082_v6, %v4534_v14  ;;  %v2327_v5 = vrot.slane %v2010_v30, 6  ;;  %v2328_v10 = vrot.slane %v2013_v31, 7 }
  0x59   : > { %v3995_v11 = vpack.c.bf16 %v1290_v50, %v1290_v50  ;;  %v705_v12 = vsub.s32 %v571_v43, %v704_v48  ;;  %2144 = vrot.lane.b32.xlu1 %v4757_v45, %s4397_s15  ;;  %v535_v4 = vmax.f32 %v4812_v18, 0.0  ;;  %v2008_v7 = vsel %vm7007_vm1, %v4754_v42, %v4829_v44 }
  0x5a   : > { %1796 = vrot.lane.b32.xlu0 %v4760_v39, %s4393_s11  ;;  %v716_v9 = vsub.s32 %v572_v59, %v715_v52  ;;  %v4851_v60 = vmul.u32.u64.low 3817748708, %v573_v41  ;;  %v4852_v16 = vmul.u32.u64.high 3817748708, %v573_v41, %v4851_v60  ;;  %v4085_v39 = vunpack.c.l.bf16 %v4844_v13 }
  0x5b   : > { %1470 = vst.msk [vmem:[#allocation2 + $0x30] sm:$0xf] %vm7009_vm0, %v3995_v11  ;;  %vm1003_vm7 = vcmp.ne.s32.totalorder %v705_v12, 0  ;;  %vm1039_vm13 = vcmp.lt.s32.totalorder %v705_v12, 0  ;;  %v1111_v43 = vadd.s32 18, %v705_v12  ;;  %v4859_v23 = vor.u32 %v2328_v10, %v2327_v5 }
  0x5c   : > { %vm1004_vm9 = vcmp.ne.s32.totalorder %v716_v9, 0  ;;  %vm1040_vm8 = vcmp.lt.s32.totalorder %v716_v9, 0  ;;  %vm1075_vm14 = vmand %vm1039_vm13, %vm1003_vm7  ;;  %v1112_v45 = vadd.s32 18, %v716_v9  ;;  %v500_v24 = vadd.f32 %v4545_v22, %v457_v58 }
  0x5d   : > { %vm1076_vm10 = vmand %vm1040_vm8, %vm1004_vm9  ;;  %v1147_v59 = vsel %vm1075_vm14, %v1111_v43, %v705_v12  ;;  %v574_v26 = vadd.s32 96, %v4502_v2  ;;  %1798 = vrot.lane.b32.xlu1 %v4773_v47, %s4393_s11  ;;  %v7101_v18 = vmov 0  ;;  %v725_v6 = vshrl.u32 %v4852_v16, 4 }
  0x5e   : > { %2405 = vrot.lane.b32.xlu0 %v4779_v49, %s4398_s16  ;;  %v1148_v42 = vsel %vm1076_vm10, %v1112_v45, %v716_v9  ;;  %vm4867_vm7 = vcmp.lt.s32.totalorder %v1147_v59, 16  ;;  %v4873_v35 = vadd.s32 104, %v4502_v2  ;;  %v7104_v57 = vmov 0 }
  0x5f   : > { %v7102_v18 = vsel %vm4867_vm7, 4294967295, %v7101_v18  ;;  %vm4875_vm8 = vcmp.lt.s32.totalorder %v1148_v42, 16  ;;  %v1291_v47 = vsel %vm4867_vm7, %v534_v51, 0.0  ;;  %vm7107_vm9 = vcmask 1040384   ;;  %v4137_v42 = vld [vmem:[%s4522_s28 + $0x38] sm:$0xff]  }
  0x60   : > { %7103 = vst [vmem:[#allocation12_spill] sm:$0xff] %v7102_v18  ;;  %v7105_v57 = vsel %vm4875_vm8, 4294967295, %v7104_v57  ;;  %v4881_v37 = vmul.u32.u64.low 3817748708, %v574_v26  ;;  %v4882_v48 = vmul.u32.u64.high 3817748708, %v574_v26, %v4881_v37  ;;  %v2449_v50 = vsel %vm7107_vm9, %v2447_v32, %v2448_v63 }
  0x61   : > { %7106 = vst [vmem:[#allocation13_spill] sm:$0xff] %v7105_v57  ;;  %v1292_v52 = vsel %vm4875_vm8, %v535_v4, 0.0  ;;  %v3996_v58 = vpack.c.bf16 %v1291_v47, %v1291_v47  ;;  %v726_v5 = vmul.u32 18, %v725_v6  ;;  %vm7108_vm14 = vsmask.f32 1280  ;;  %2148 = vrot.lane.b32.xlu1 %v2008_v7, %s4397_s15 }
  0x62   : > { %v2326_v10 = vsel %vm7108_vm14, %v4779_v49, %v2325_v56  ;;  %v1677_v11 = vrot.slane %v1675_v28, 1  ;;  %v1679_v51 = vshrl.u32 %v4744_v29, 16  ;;  %v3997_v12 = vpack.c.bf16 %v1292_v52, %v1292_v52  ;;  %2146 = vrot.lane.b32.xlu0 %v4790_v54, %s4397_s15  ;;  %v1509_v17 = vld [vmem:[#allocation2 + $0x30] sm:$0xf]  ;;  %vm7109_vm10 = vmmov %vm7108_vm14 }
  0x63   : > { %1471 = vst.msk [vmem:[#allocation2 + $0x34] sm:$0xf] %vm7009_vm0, %v3996_v58  ;;  %v536_v32 = vmax.f32 %v500_v24, 0.0  ;;  %v727_v9 = vsub.s32 %v573_v41, %v726_v5  ;;  %v4899_v4 = vmul.u32.u64.low 3817748708, %v4873_v35  ;;  %v4900_v60 = vmul.u32.u64.high 3817748708, %v4873_v35, %v4899_v4 }
  0x64   : > { %v2330_v49 = vsel %vm7109_vm10, %v2325_v56, %v4859_v23  ;;  %v4905_v28 = vcombine.low %v4793_v62, %v1509_v17  ;;  %1472 = vst.msk [vmem:[#allocation2 + $0x38] sm:$0xf] %vm7009_vm0, %v3997_v12  ;;  %v458_v16 = vmul.f32 %v4085_v39, %v4534_v14  ;;  %v736_v54 = vshrl.u32 %v4882_v48, 4 }
  0x65   : > { %vm1005_vm13 = vcmp.ne.s32.totalorder %v727_v9, 0  ;;  %vm1041_vm9 = vcmp.lt.s32.totalorder %v727_v9, 0  ;;  %v1113_v41 = vadd.s32 18, %v727_v9  ;;  %v4911_v7 = vadd.s32 112, %v4502_v2  ;;  %2407 = vrot.lane.b32.xlu1 %v2326_v10, %s4398_s16 }
  0x66   : > { %vm7110_vm14 = vsmask.f32 7424  ;;  %v1681_v56 = vor.u32 %v1679_v51, %v1677_v11  ;;  %v1683_v62 = vshll.u32 %v4905_v28, 16  ;;  %vm1077_vm10 = vmand %vm1041_vm9, %vm1005_vm13  ;;  %v737_v45 = vmul.u32 18, %v736_v54  ;;  %2409 = vrot.lane.b32.xlu0 %v2330_v49, %s4398_s16 }
  0x67   : > { %v1678_v43 = vsel %vm7110_vm14, %v4783_v33, %v1677_v11  ;;  %v2450_v39 = vrot.slane %v4801_v19, 7  ;;  %v2012_v59 = vrot.slane %v2010_v30, 5  ;;  %v1149_v24 = vsel %vm1077_vm10, %v1113_v41, %v727_v9 }
  0x68   : > { %v747_v6 = vshrl.u32 %v4900_v60, 4  ;;  %v4923_v47 = vrot.slane %v1683_v62, 1  ;;  %vm4925_vm14 = vcmp.lt.s32.totalorder %v1149_v24, 16  ;;  %v7111_v33 = vmov 0 }
  0x69   : > { %v7112_v33 = vsel %vm4925_vm14, 4294967295, %v7111_v33  ;;  %v501_v37 = vadd.f32 %v4545_v22, %v458_v16  ;;  %v738_v48 = vsub.s32 %v574_v26, %v737_v45  ;;  %v1293_v52 = vsel %vm4925_vm14, %v536_v32, 0.0  ;;  %1800 = vrot.lane.b32.xlu1 %v1678_v43, %s4393_s11 }
  0x6a   : > { %7113 = vst [vmem:[#allocation14_spill] sm:$0xff] %v7112_v33  ;;  %v748_v58 = vmul.u32 18, %v747_v6  ;;  %v4933_v5 = vmul.u32.u64.low 3817748708, %v4911_v7  ;;  %v4934_v30 = vmul.u32.u64.high 3817748708, %v4911_v7, %v4933_v5  ;;  %v1510_v10 = vld [vmem:[#allocation2 + $0x34] sm:$0xf]  ;;  %v3998_v11 = vpack.c.bf16 %v1293_v52, %v1293_v52  ;;  %2486 = vrot.lane.b32.xlu0 %v2449_v50, %s4395_s13 }
  0x6b   : > { %vm1006_vm13 = vcmp.ne.s32.totalorder %v738_v48, 0  ;;  %v4086_v51 = vunpack.c.h.bf16 %v4844_v13  ;;  %v4089_v12 = vunpack.c.l.bf16 %v4137_v42  ;;  %v1511_v9 = vld [vmem:[#allocation2 + $0x38] sm:$0xf]  ;;  %v4939_v26 = vcombine.low %v1509_v17, %v1510_v10 }
  0x6c   : > { %v2015_v32 = vrot.slane %v2013_v31, 6  ;;  %vm1042_vm9 = vcmp.lt.s32.totalorder %v738_v48, 0  ;;  %v1114_v4 = vadd.s32 18, %v738_v48  ;;  %vm7114_vm10 = vsmask.f32 7424 }
  0x6d   : > { %v1686_v60 = vsel %vm7114_vm10, %v1681_v56, %v4923_v47  ;;  %vm7115_vm1 = vcmask 1040384   ;;  %v1845_v49 = vrot.slane %v4905_v28, 1  ;;  %v4951_v50 = vcombine.low %v1510_v10, %v1511_v9  ;;  %1473 = vst.msk [vmem:[#allocation2 + $0x3c] sm:$0xf] %vm7009_vm0, %v3998_v11  ;;  %vm4955_vm7 = vmand %vm1042_vm9, %vm1006_vm13 }
  0x6e   : > { %v2451_v13 = vsel %vm7115_vm1, %v2448_v63, %v2450_v39  ;;  %v2019_v17 = vshrl.u32 %v4939_v26, 16  ;;  %v2022_v16 = vshll.u32 %v4939_v26, 16  ;;  %v749_v54 = vsub.s32 %v4873_v35, %v748_v58  ;;  %1802 = vrot.lane.b32.xlu1 %v1686_v60, %s4393_s11 }
  0x6f   : > { %v537_v15 = vmax.f32 %v501_v37, 0.0  ;;  %v1150_v63 = vsel %vm4955_vm7, %v1114_v4, %v738_v48  ;;  %v459_v41 = vmul.f32 %v4086_v51, %v4534_v14  ;;  %v460_v43 = vmul.f32 %v4089_v12, %v4534_v14  ;;  %2488 = vrot.lane.b32.xlu0 %v2451_v13, %s4395_s13 }
  0x70   : > { %v2016_v56 = vor.u32 %v2015_v32, %v2012_v59  ;;  %v4090_v62 = vunpack.c.h.bf16 %v4137_v42  ;;  %vm7118_vm1 = vcmask 1046528   ;;  %v1847_v35 = vrot.slane %v4951_v50, 1 }
  0x71   : > { %v1846_v45 = vsel %vm7118_vm1, %v1843_v40, %v1845_v49  ;;  %v2021_v24 = vrot.slane %v2019_v17, 5  ;;  %v2024_v6 = vrot.slane %v2022_v16, 6  ;;  %vm4972_vm13 = vcmp.lt.s32.totalorder %v1150_v63, 16  ;;  %vm7122_vm10 = vmmov %vm7118_vm1 }
  0x72   : > { %v7119_v37 = vmov 0  ;;  %v758_v48 = vshrl.u32 %v4934_v30, 4  ;;  %vm1007_vm7 = vcmp.ne.s32.totalorder %v749_v54, 0  ;;  %v577_v52 = vadd.s32 120, %v4502_v2  ;;  %1881 = vrot.lane.b32.xlu1 %v1846_v45, %s4391_s9 }
  0x73   : > { %v7120_v37 = vsel %vm4972_vm13, 4294967295, %v7119_v37  ;;  %v1294_v59 = vsel %vm4972_vm13, %v537_v15, 0.0  ;;  %v502_v42 = vadd.f32 %v4545_v22, %v459_v41  ;;  %v503_v40 = vadd.f32 %v4545_v22, %v460_v43  ;;  %1879 = vrot.lane.b32.xlu0 %v4769_v46, %s4391_s9 }
  0x74   : > { %7121 = vst [vmem:[#allocation15_spill] sm:$0xff] %v7120_v37  ;;  %v4985_v58 = vld [vmem:[#allocation2 + $0x3c] sm:$0xf]  ;;  %v3999_v5 = vpack.c.bf16 %v1294_v59, %v1294_v59  ;;  %v759_v10 = vmul.u32 18, %v758_v48  ;;  %vm1043_vm9 = vcmp.lt.s32.totalorder %v749_v54, 0  ;;  %v461_v30 = vmul.f32 %v4090_v62, %v4534_v14 }
  0x75   : > { %v4991_v11 = vsel %vm7122_vm10, %v1845_v49, %v1847_v35  ;;  %v4993_v51 = vor.u32 %v2024_v6, %v2021_v24  ;;  %v4996_v12 = vcombine.low %v1511_v9, %v4985_v58  ;;  %vm4999_vm1 = vmand %vm1043_vm9, %vm1007_vm7  ;;  %v1115_v32 = vadd.s32 18, %v749_v54 }
  0x76   : > { %vm7125_vm0 = vsmask.f32 2304  ;;  %vm7126_vm13 = vcmask 60416   ;;  %v760_v14 = vsub.s32 %v4911_v7, %v759_v10  ;;  %v538_v31 = vmax.f32 %v502_v42, 0.0  ;;  %1934 = vrot.lane.b32.xlu1 %v4991_v11, %s4396_s14 }
  0x77   : > { %v2017_v4 = vsel %vm7125_vm0, %v4829_v44, %v2016_v56  ;;  %1474 = vst.msk [vmem:[#allocation2 + $0x40] sm:$0xf] %vm7126_vm13, %v3999_v5  ;;  %v5007_v60 = vmul.u32.u64.low 3817748708, %v577_v52  ;;  %v5008_v13 = vmul.u32.u64.high 3817748708, %v577_v52, %v5007_v60  ;;  %v2028_v49 = vshrl.u32 %v4996_v12, 16  ;;  %1932 = vrot.lane.b32.xlu0 %v1846_v45, %s4396_s14  ;;  %v5045_v5 = vld [vmem:[%s4522_s28 + $0x40] sm:$0xff]  }
  0x78   : > { %v2031_v9 = vshll.u32 %v4996_v12, 16  ;;  %v539_v15 = vmax.f32 %v503_v40, 0.0  ;;  %vm1008_vm7 = vcmp.ne.s32.totalorder %v760_v14, 0  ;;  %vm1044_vm0 = vcmp.lt.s32.totalorder %v760_v14, 0 }
  0x79   : > { %v1116_v44 = vadd.s32 18, %v760_v14  ;;  %v1151_v7 = vsel %vm4999_vm1, %v1115_v32, %v749_v54  ;;  %vm7127_vm13 = vsmask.f32 2304  ;;  %v2193_v41 = vrot.slane %v4939_v26, 6  ;;  %vm1080_vm9 = vmand %vm1044_vm0, %vm1008_vm7 }
  0x7a   : > { %v2026_v63 = vsel %vm7127_vm13, %v2016_v56, %v4993_v51  ;;  %v2331_v43 = vrot.slane %v2019_v17, 6  ;;  %v504_v62 = vadd.f32 %v4545_v22, %v461_v30  ;;  %v2332_v24 = vrot.slane %v2022_v16, 7 }
  0x7b   : > { %v1152_v6 = vsel %vm1080_vm9, %v1116_v44, %v760_v14  ;;  %vm5021_vm10 = vcmp.lt.s32.totalorder %v1151_v7, 16  ;;  %v7128_v45 = vmov 0  ;;  %v5026_v48 = vadd.s32 128, %v4502_v2  ;;  %2152 = vrot.lane.b32.xlu1 %v2026_v63, %s4397_s15  ;;  %2150 = vrot.lane.b32.xlu0 %v2017_v4, %s4397_s15 }
  0x7c   : > { %v7129_v45 = vsel %vm5021_vm10, 4294967295, %v7128_v45  ;;  %v7014_v54 = vrot.slane %v4996_v12, 6  ;;  %vm5029_vm1 = vcmp.lt.s32.totalorder %v1152_v6, 16  ;;  %v7131_v56 = vmov 0 }
  0x7d   : > { %7130 = vst [vmem:[#allocation16_spill] sm:$0xff] %v7129_v45  ;;  %v7132_v56 = vsel %vm5029_vm1, 4294967295, %v7131_v56  ;;  %v1295_v17 = vsel %vm5021_vm10, %v538_v31, 0.0  ;;  %v769_v22 = vshrl.u32 %v5008_v13, 4  ;;  %v2335_v16 = vrot.slane %v2028_v49, 6 }
  0x7e   : > { %7133 = vst [vmem:[#allocation17_spill] sm:$0xff] %v7132_v56  ;;  %v2336_v59 = vrot.slane %v2031_v9, 7  ;;  %v1296_v42 = vsel %vm5029_vm1, %v539_v15, 0.0  ;;  %v4000_v40 = vpack.c.bf16 %v1295_v17, %v1295_v17  ;;  %vm7134_vm7 = vcmask 1041408   ;;  %v1513_v60 = vld [vmem:[#allocation2 + $0x40] sm:$0xf] }
  0x7f   : > { %v2194_v10 = vsel %vm7134_vm7, %v2191_v20, %v2193_v41  ;;  %v4001_v30 = vpack.c.bf16 %v1296_v42, %v1296_v42  ;;  %v770_v46 = vmul.u32 18, %v769_v22  ;;  %v1687_v32 = vshrl.u32 %v4905_v28, 16  ;;  %2229 = vrot.lane.b32.xlu0 %v4818_v21, %s4392_s10  ;;  %vm7137_vm9 = vmmov %vm7134_vm7 }
  0x80   : > { %v1691_v4 = vshll.u32 %v4951_v50, 16  ;;  %v2452_v14 = vrot.slane %v4939_v26, 7  ;;  %vm7135_vm0 = vcmask 60416   ;;  %v4093_v31 = vunpack.c.l.bf16 %v5045_v5  ;;  %2231 = vrot.lane.b32.xlu1 %v2194_v10, %s4392_s10 }
  0x81   : > { %1475 = vst.msk [vmem:[#allocation2 + $0x44] sm:$0xf] %vm7135_vm0, %v4000_v40  ;;  %vm7136_vm13 = vmmov %vm7135_vm0  ;;  %v771_v13 = vsub.s32 %v577_v52, %v770_v46  ;;  %v5057_v15 = vmul.u32.u64.low 3817748708, %v5026_v48  ;;  %v5058_v44 = vmul.u32.u64.high 3817748708, %v5026_v48, %v5057_v15  ;;  %v5066_v20 = vsel %vm7137_vm9, %v2193_v41, %v7014_v54 }
  0x82   : > { %1476 = vst.msk [vmem:[#allocation2 + $0x48] sm:$0xf] %vm7136_vm13, %v4001_v30  ;;  %v2333_v26 = vor.u32 %v2332_v24, %v2331_v43  ;;  %v5068_v7 = vor.u32 %v2336_v59, %v2335_v16  ;;  %v540_v52 = vmax.f32 %v504_v62, 0.0  ;;  %v5071_v63 = vcombine.low %v4985_v58, %v1513_v60  ;;  %v5081_v62 = vld [vmem:[%s6998_s2] ss:$0 sm:$0xff]  ;;  %v5086_v16 = vld [vmem:[%s4522_s28 + $0x48] sm:$0xff]  }
  0x83   : > { %vm1009_vm7 = vcmp.ne.s32.totalorder %v771_v13, 0  ;;  %vm1045_vm0 = vcmp.lt.s32.totalorder %v771_v13, 0  ;;  %v1117_v6 = vadd.s32 18, %v771_v13  ;;  %v1689_v17 = vor.u32 %v1687_v32, %v4923_v47  ;;  %2279 = vrot.lane.b32.xlu0 %v2194_v10, %s4394_s12 }
  0x84   : > { %v1693_v22 = vrot.slane %v1691_v4, 1  ;;  %vm7138_vm13 = vcmask 1040384   ;;  %v1695_v41 = vshrl.u32 %v4951_v50, 16  ;;  %vm1081_vm9 = vmand %vm1045_vm0, %vm1009_vm7  ;;  %v462_v58 = vmul.f32 %v5081_v62, %v4093_v31  ;;  %2281 = vrot.lane.b32.xlu1 %v5066_v20, %s4394_s12  ;;  %v5115_v31 = vld [vmem:[%s6999_s3] ss:$0 sm:$0xff] }
  0x85   : > { %v2453_v21 = vsel %vm7138_vm13, %v2450_v39, %v2452_v14  ;;  %v1153_v43 = vsel %vm1081_vm9, %v1117_v6, %v771_v13  ;;  %v780_v24 = vshrl.u32 %v5058_v44, 4  ;;  %v5089_v47 = vadd.s32 136, %v4502_v2 }
  0x86   : > { %vm7139_vm7 = vsmask.f32 1280  ;;  %v7013_v39 = vrot.slane %v4996_v12, 7  ;;  %v2030_v59 = vrot.slane %v2028_v49, 5  ;;  %vm5099_vm0 = vcmp.lt.s32.totalorder %v1153_v43, 16 }
  0x87   : > { %v2334_v19 = vsel %vm7139_vm7, %v4859_v23, %v2333_v26  ;;  %v7140_v42 = vmov 0  ;;  %vm7143_vm13 = vmmov %vm7139_vm7  ;;  %v1699_v30 = vshll.u32 %v5071_v63, 16  ;;  %v1297_v10 = vsel %vm5099_vm0, %v540_v52, 0.0  ;;  %v5129_v43 = vld [vmem:[#allocation2 + $0x4] sm:$0xc] }
  0x88   : > { %v7141_v42 = vsel %vm5099_vm0, 4294967295, %v7140_v42  ;;  %v2338_v40 = vsel %vm7143_vm13, %v2333_v26, %v5068_v7  ;;  %v1514_v46 = vld [vmem:[#allocation2 + $0x44] sm:$0xf]  ;;  %v781_v32 = vmul.u32 18, %v780_v24  ;;  %v2033_v23 = vrot.slane %v2031_v9, 6  ;;  %2411 = vrot.lane.b32.xlu0 %v2334_v19, %s4398_s16 }
  0x89   : > { %7142 = vst [vmem:[#allocation18_spill] sm:$0xff] %v7141_v42  ;;  %v4002_v4 = vpack.c.bf16 %v1297_v10, %v1297_v10  ;;  %v4094_v49 = vunpack.c.h.bf16 %v5045_v5  ;;  %v4097_v13 = vunpack.c.l.bf16 %v5086_v16  ;;  %v505_v15 = vadd.f32 %v5115_v31, %v462_v58  ;;  %2413 = vrot.lane.b32.xlu1 %v2338_v40, %s4398_s16  ;;  %v1515_v40 = vld [vmem:[#allocation2 + $0x48] sm:$0xf] }
  0x8a   : > { %v782_v44 = vsub.s32 %v5026_v48, %v781_v32  ;;  %v5120_v26 = vmul.u32.u64.low 3817748708, %v5089_v47  ;;  %v5121_v52 = vmul.u32.u64.high 3817748708, %v5089_v47, %v5120_v26  ;;  %vm7144_vm9 = vsmask.f32 7424  ;;  %v5145_v32 = vld [vmem:[#allocation2 + $0x8] sm:$0xf] }
  0x8b   : > { %v1694_v9 = vsel %vm7144_vm9, %v1689_v17, %v1693_v22  ;;  %v1697_v5 = vor.u32 %v1695_v41, %v1693_v22  ;;  %v5126_v6 = vcombine.low %v1513_v60, %v1514_v46  ;;  %vm7145_vm7 = vcmask 60416  }
  0x8c   : > { %1477 = vst.msk [vmem:[#allocation2 + $0x4c] sm:$0xf] %vm7145_vm7, %v4002_v4  ;;  %v1701_v58 = vrot.slane %v1699_v30, 1  ;;  %vm1010_vm13 = vcmp.ne.s32.totalorder %v782_v44, 0  ;;  %vm1046_vm10 = vcmp.lt.s32.totalorder %v782_v44, 0  ;;  %v580_v48 = vadd.s32 144, %v4502_v2  ;;  %2490 = vrot.lane.b32.xlu0 %v2453_v21, %s4395_s13 }
  0x8d   : > { %vm7146_vm0 = vcmask 1040384   ;;  %v5135_v19 = vor.u32 %v2033_v23, %v2030_v59  ;;  %v463_v17 = vmul.f32 %v5081_v62, %v4094_v49  ;;  %v464_v60 = vmul.f32 %v5081_v62, %v4097_v13  ;;  %vm5141_vm9 = vmand %vm1046_vm10, %vm1010_vm13  ;;  %1804 = vrot.lane.b32.xlu1 %v1694_v9, %s4393_s11 }
  0x8e   : > { %v2455_v24 = vsel %vm7146_vm0, %v2452_v14, %v7013_v39  ;;  %v1849_v22 = vrot.slane %v5071_v63, 1  ;;  %v1703_v41 = vshrl.u32 %v5071_v63, 16  ;;  %v541_v30 = vmax.f32 %v505_v15, 0.0 }
  0x8f   : > { %v2037_v59 = vshrl.u32 %v5126_v6, 16  ;;  %v2040_v23 = vshll.u32 %v5126_v6, 16  ;;  %v1118_v4 = vadd.s32 18, %v782_v44  ;;  %v791_v49 = vshrl.u32 %v5121_v52, 4 }
  0x90   : > { %vm7149_vm10 = vsmask.f32 7424  ;;  %v5155_v15 = vcombine.low %v1514_v46, %v1515_v40  ;;  %v5157_v26 = vmul.u32.u64.low 3817748708, %v580_v48  ;;  %v5158_v39 = vmul.u32.u64.high 3817748708, %v580_v48, %v5157_v26  ;;  %2492 = vrot.lane.b32.xlu0 %v2455_v24, %s4395_s13 }
  0x91   : > { %v1702_v13 = vsel %vm7149_vm10, %v1697_v5, %v1701_v58  ;;  %v1154_v14 = vsel %vm5141_vm9, %v1118_v4, %v782_v44  ;;  %v506_v9 = vadd.f32 %v5115_v31, %v463_v17  ;;  %v5164_v21 = vadd.f32 %v5115_v31, %v464_v60 }
  0x92   : > { %v792_v54 = vmul.u32 18, %v791_v49  ;;  %vm7150_vm0 = vcmask 1046528   ;;  %vm7151_vm7 = vsmask.f32 2304  ;;  %vm5175_vm13 = vcmp.lt.s32.totalorder %v1154_v14, 16  ;;  %1806 = vrot.lane.b32.xlu1 %v1702_v13, %s4393_s11 }
  0x93   : > { %v1850_v52 = vsel %vm7150_vm0, %v1847_v35, %v1849_v22  ;;  %v5172_v46 = vsel %vm7151_vm7, %v4993_v51, %v5135_v19  ;;  %v7152_v10 = vmov 0  ;;  %v2039_v44 = vrot.slane %v2037_v59, 5  ;;  %v1516_v4 = vld [vmem:[#allocation2 + $0x4c] sm:$0xf] }
  0x94   : > { %v7153_v10 = vsel %vm5175_vm13, 4294967295, %v7152_v10  ;;  %v2042_v17 = vrot.slane %v2040_v23, 6  ;;  %v1298_v35 = vsel %vm5175_vm13, %v541_v30, 0.0  ;;  %v793_v60 = vsub.s32 %v5089_v47, %v792_v54  ;;  %1883 = vrot.lane.b32.xlu0 %v4991_v11, %s4391_s9 }
  0x95   : > { %7154 = vst [vmem:[#allocation19_spill] sm:$0xff] %v7153_v10  ;;  %v7020_v51 = vrot.slane %v5155_v15, 1  ;;  %v1705_v49 = vor.u32 %v1703_v41, %v1701_v58  ;;  %v4003_v26 = vpack.c.bf16 %v1298_v35, %v1298_v35  ;;  %v802_v14 = vshrl.u32 %v5158_v39, 4 }
  0x96   : > { %v1707_v5 = vshll.u32 %v5155_v15, 16  ;;  %v7021_v13 = vrot.slane %v5126_v6, 7  ;;  %v542_v45 = vmax.f32 %v506_v9, 0.0  ;;  %v543_v24 = vmax.f32 %v5164_v21, 0.0  ;;  %1885 = vrot.lane.b32.xlu1 %v1850_v52, %s4391_s9 }
  0x97   : > { %vm7155_vm9 = vcmask 60416   ;;  %v803_v10 = vmul.u32 18, %v802_v14  ;;  %vm1011_vm10 = vcmp.ne.s32.totalorder %v793_v60, 0  ;;  %vm1047_vm0 = vcmp.lt.s32.totalorder %v793_v60, 0 }
  0x98   : > { %1478 = vst.msk [vmem:[#allocation2 + $0x50] sm:$0xf] %vm7155_vm9, %v4003_v26  ;;  %v1119_v54 = vadd.s32 18, %v793_v60  ;;  %v5193_v47 = vor.u32 %v2042_v17, %v2039_v44  ;;  %v7156_v39 = vrot.slane %v5126_v6, 6  ;;  %v7157_v58 = vrot.slane %v4996_v12, 6  ;;  %vm1083_vm9 = vmand %vm1047_vm0, %vm1011_vm10  ;;  %1936 = vrot.lane.b32.xlu0 %v1850_v52, %s4396_s14 }
  0x99   : > { %vm7158_vm7 = vcmask 1041408   ;;  %v5202_v30 = vcombine.low %v1515_v40, %v1516_v4  ;;  %v2339_v9 = vrot.slane %v2037_v59, 6  ;;  %vm7159_vm13 = vcmask 1046528  }
  0x9a   : > { %v5200_v41 = vsel %vm7158_vm7, %v7157_v58, %v7156_v39  ;;  %v5207_v21 = vsel %vm7159_vm13, %v1849_v22, %v7020_v51  ;;  %v804_v11 = vsub.s32 %v580_v48, %v803_v10  ;;  %v1155_v44 = vsel %vm1083_vm9, %v1119_v54, %v793_v60  ;;  %v5220_v39 = vld [vmem:[%s4522_s28 + $0x50] sm:$0xff]  }
  0x9b   : > { %v5210_v17 = vadd.s32 152, %v4502_v2  ;;  %v2340_v35 = vrot.slane %v2040_v23, 7  ;;  %v1709_v26 = vrot.slane %v1707_v5, 1  ;;  %vm5212_vm1 = vcmp.lt.s32.totalorder %v1155_v44, 16  ;;  %1938 = vrot.lane.b32.xlu1 %v5207_v21, %s4396_s14 }
  0x9c   : > { %v7160_v14 = vmov 0  ;;  %v4098_v40 = vunpack.c.h.bf16 %v5086_v16  ;;  %vm1012_vm7 = vcmp.ne.s32.totalorder %v804_v11, 0  ;;  %vm1048_vm10 = vcmp.lt.s32.totalorder %v804_v11, 0  ;;  %2154 = vrot.lane.b32.xlu0 %v5172_v46, %s4397_s15 }
  0x9d   : > { %v7161_v14 = vsel %vm5212_vm1, 4294967295, %v7160_v14  ;;  %v1120_v59 = vadd.s32 18, %v804_v11  ;;  %v1299_v22 = vsel %vm5212_vm1, %v542_v45, 0.0  ;;  %vm7163_vm13 = vsmask.f32 2304  ;;  %vm1084_vm9 = vmand %vm1048_vm10, %vm1012_vm7 }
  0x9e   : > { %7162 = vst [vmem:[#allocation20_spill] sm:$0xff] %v7161_v14  ;;  %v2044_v48 = vsel %vm7163_vm13, %v5135_v19, %v5193_v47  ;;  %v2046_v23 = vshrl.u32 %v5202_v30, 16  ;;  %v7164_v16 = vrot.slane %v4996_v12, 7  ;;  %vm7165_vm0 = vcmask 1040384  }
  0x9f   : > { %v4004_v45 = vpack.c.bf16 %v1299_v22, %v1299_v22  ;;  %v2049_v10 = vshll.u32 %v5202_v30, 16  ;;  %v1156_v60 = vsel %vm1084_vm9, %v1120_v59, %v804_v11  ;;  %v5241_v58 = vld [vmem:[#allocation2 + $0x50] sm:$0xf]  ;;  %v1711_v19 = vshrl.u32 %v5155_v15, 16  ;;  %2156 = vrot.lane.b32.xlu1 %v2044_v48, %s4397_s15 }
  0xa0   : > { %v5234_v5 = vsel %vm7165_vm0, %v7164_v16, %v7021_v13  ;;  %v5238_v52 = vmul.u32.u64.low 3817748708, %v5210_v17  ;;  %v5239_v54 = vmul.u32.u64.high 3817748708, %v5210_v17, %v5238_v52  ;;  %vm5244_vm13 = vcmp.lt.s32.totalorder %v1156_v60, 16  ;;  %v4344_v60 = vld [vmem:[%s6997_s1 + $0x20] ss:$0 sps:$4 sm:$0xff]   ;;  %2233 = vrot.lane.b32.xlu0 %v5066_v20, %s4392_s10 }
  0xa1   : > { %v7166_v44 = vmov 0  ;;  %vm7169_vm1 = vcmask 60416   ;;  %v4101_v12 = vunpack.c.l.bf16 %v5220_v39  ;;  %v5251_v22 = vadd.s32 160, %v4502_v2 }
  0xa2   : > { %v7167_v44 = vsel %vm5244_vm13, 4294967295, %v7166_v44  ;;  %1479 = vst.msk [vmem:[#allocation2 + $0x54] sm:$0xf] %vm7169_vm1, %v4004_v45  ;;  %v2341_v11 = vor.u32 %v2340_v35, %v2339_v9  ;;  %vm7170_vm7 = vsmask.f32 7424  ;;  %v1300_v16 = vsel %vm5244_vm13, %v543_v24, 0.0 }
  0xa3   : > { %7168 = vst [vmem:[#allocation21_spill] sm:$0xff] %v7167_v44  ;;  %v5254_v59 = vsel %vm7170_vm7, %v1705_v49, %v1709_v26  ;;  %v465_v52 = vmul.f32 %v5081_v62, %v4098_v40  ;;  %v5266_v45 = vcombine.low %v1516_v4, %v5241_v58  ;;  %v4005_v9 = vpack.c.bf16 %v1300_v16, %v1300_v16  ;;  %v5281_v24 = vld [vmem:[%s4522_s28 + $0x58] sm:$0xff]  }
  0xa4   : > { %v5269_v49 = vmul.u32.u64.low 3817748708, %v5251_v22  ;;  %v5270_v35 = vmul.u32.u64.high 3817748708, %v5251_v22, %v5269_v49  ;;  %v2343_v40 = vrot.slane %v2046_v23, 6  ;;  %v2344_v51 = vrot.slane %v2049_v10, 7  ;;  %2235 = vrot.lane.b32.xlu1 %v5200_v41, %s4392_s10  ;;  %2283 = vrot.lane.b32.xlu0 %v5200_v41, %s4394_s12 }
  0xa5   : > { %v813_v13 = vshrl.u32 %v5239_v54, 4  ;;  %1480 = vst.msk [vmem:[#allocation2 + $0x58] sm:$0xf] %vm7169_vm1, %v4005_v9  ;;  %v2048_v48 = vrot.slane %v2046_v23, 5  ;;  %v2051_v14 = vrot.slane %v2049_v10, 6  ;;  %v466_v46 = vmul.f32 %v5081_v62, %v4101_v12  ;;  %v4346_v54 = vld [vmem:[%s6997_s1 + $0x18] sm:$0xff]  }
  0xa6   : > { %vm3078_vm10 = vcmask 1043456   ;;  %vm7171_vm0 = vsmask.f32 1280  ;;  %v1713_v16 = vor.u32 %v1711_v19, %v1709_v26  ;;  %v824_v26 = vshrl.u32 %v5270_v35, 4 }
  0xa7   : > { %v2342_v4 = vsel %vm7171_vm0, %v5068_v7, %v2341_v11  ;;  %v814_v49 = vmul.u32 18, %v813_v13  ;;  %4227 = vmatprep.subr.msk.bf16.mxu0 %vm3078_vm10, %v4344_v60  ;;  %4228 = vmatprep.subr.msk.bf16.mxu1 %vm3078_vm10, %v4344_v60  ;;  %v1715_v7 = vshll.u32 %v5266_v45, 16  ;;  %v508_v13 = vadd.f32 %v5115_v31, %v465_v52 }
  0xa8   : > { %v4102_v23 = vunpack.c.h.bf16 %v5220_v39  ;;  %v7172_v10 = vrot.slane %v5202_v30, 6  ;;  %v7173_v19 = vrot.slane %v5126_v6, 6  ;;  %vm7174_vm9 = vcmask 1041408   ;;  %2415 = vrot.lane.b32.xlu0 %v2342_v4, %s4398_s16 }
  0xa9   : > { %v5302_v9 = vor.u32 %v2344_v51, %v2343_v40  ;;  %v815_v44 = vsub.s32 %v5210_v17, %v814_v49  ;;  %v3080_v20 = vsel %vm3078_vm10, %v4344_v60, 0  ;;  %v1518_v42 = vld [vmem:[#allocation2 + $0x54] sm:$0xf]  ;;  %v5306_v37 = vor.u32 %v2051_v14, %v2048_v48 }
  0xaa   : > { %v5300_v12 = vsel %vm7174_vm9, %v7173_v19, %v7172_v10  ;;  %v5309_v52 = vadd.f32 %v5115_v31, %v466_v46  ;;  %v825_v39 = vmul.u32 18, %v824_v26  ;;  %v4105_v35 = vunpack.c.l.bf16 %v5281_v24  ;;  %4172 = vmatpush3.bf16.msra.mxu0 %v3080_v20  ;;  %4222 = vmatpush3.bf16.msra.mxu1 %v3080_v20  ;;  %v4347_v17 = vld [vmem:[%s6997_s1 + $0x10] sm:$0xff]  }
  0xab   : > { %v7026_v10 = vrot.slane %v5266_v45, 1  ;;  %vm1013_vm7 = vcmp.ne.s32.totalorder %v815_v44, 0  ;;  %vm1049_vm1 = vcmp.lt.s32.totalorder %v815_v44, 0  ;;  %v1121_v51 = vadd.s32 18, %v815_v44  ;;  %4173 = vmatprep.subr.bf16.mxu0 %v4346_v54  ;;  %4218 = vmatprep.subr.bf16.mxu1 %v4346_v54 }
  0xac   : > { %2285 = vrot.lane.b32.xlu1 %v5300_v12, %s4394_s12  ;;  %v1717_v14 = vrot.slane %v1715_v7, 1  ;;  %v544_v60 = vmax.f32 %v508_v13, 0.0  ;;  %vm1085_vm10 = vmand %vm1049_vm1, %vm1013_vm7  ;;  %v1719_v40 = vshrl.u32 %v5266_v45, 16  ;;  %v467_v48 = vmul.f32 %v5081_v62, %v4102_v23  ;;  %2494 = vrot.lane.b32.xlu0 %v5234_v5, %s4395_s13 }
  0xad   : > { %v2346_v46 = vsel %vm7171_vm0, %v2341_v11, %v5302_v9  ;;  %v5325_v49 = vcombine.low %v5241_v58, %v1518_v42  ;;  %v1157_v26 = vsel %vm1085_vm10, %v1121_v51, %v815_v44  ;;  %v826_v19 = vsub.s32 %v5251_v22, %v825_v39  ;;  %v5365_v39 = vld [vmem:[#allocation2 + $0x58] sm:$0xf] }
  0xae   : > { %v7175_v20 = vrot.slane %v5202_v30, 7  ;;  %v7176_v41 = vrot.slane %v5126_v6, 7  ;;  %vm7177_vm9 = vcmask 1040384   ;;  %vm7178_vm7 = vsmask.f32 2304  ;;  %4174 = vmatpush3.bf16.msra.mxu0 %v4346_v54  ;;  %4223 = vmatpush3.bf16.msra.mxu1 %v4346_v54  ;;  %v4348_v54 = vld [vmem:[%s6997_s1 + $0x8] sm:$0xff]  }
  0xaf   : > { %v5338_v13 = vsel %vm7178_vm7, %v5193_v47, %v5306_v37  ;;  %v545_v11 = vmax.f32 %v5309_v52, 0.0  ;;  %v468_v58 = vmul.f32 %v5081_v62, %v4105_v35  ;;  %v7179_v44 = vrot.slane %v5155_v15, 1  ;;  %4175 = vmatprep.subr.bf16.mxu0 %v4347_v17  ;;  %4219 = vmatprep.subr.bf16.mxu1 %v4347_v17 }
  0xb0   : > { %v5333_v7 = vsel %vm7177_vm9, %v7176_v41, %v7175_v20  ;;  %vm7180_vm1 = vcmask 1046528   ;;  %vm5349_vm10 = vcmp.lt.s32.totalorder %v1157_v26, 16  ;;  %v7181_v22 = vmov 0  ;;  %2417 = vrot.lane.b32.xlu1 %v2346_v46, %s4398_s16 }
  0xb1   : > { %v5347_v6 = vsel %vm7180_vm1, %v7179_v44, %v7026_v10  ;;  %v7182_v22 = vsel %vm5349_vm10, 4294967295, %v7181_v22  ;;  %v5354_v47 = vadd.s32 168, %v4502_v2  ;;  %v5357_v23 = vadd.s32 176, %v4502_v2  ;;  %2496 = vrot.lane.b32.xlu0 %v5333_v7, %s4395_s13  ;;  %v5524_v7 = vld [vmem:[%s4522_s28 + $0x68] sm:$0xff]  }
  0xb2   : > { %7183 = vst [vmem:[#allocation22_spill] sm:$0xff] %v7182_v22  ;;  %vm7184_vm0 = vsmask.f32 7424  ;;  %v1301_v35 = vsel %vm5349_vm10, %v544_v60, 0.0  ;;  %v5369_v51 = vor.u32 %v1719_v40, %v1717_v14  ;;  %v5372_v26 = vadd.f32 %v5115_v31, %v467_v48  ;;  %4176 = vmatpush3.bf16.msra.mxu0 %v4347_v17  ;;  %4224 = vmatpush3.bf16.msra.mxu1 %v4347_v17  ;;  %v5384_v60 = vpop.permute.xlu1 %1873  ;;  %v5386_v40 = vpop.permute.xlu0 %2223 }
  0xb3   : > { %v1718_v52 = vsel %vm7184_vm0, %v1713_v16, %v1717_v14  ;;  %v2055_v20 = vshrl.u32 %v5325_v49, 16  ;;  %v4006_v41 = vpack.c.bf16 %v1301_v35, %v1301_v35  ;;  %vm1014_vm9 = vcmp.ne.s32.totalorder %v826_v19, 0  ;;  %4177 = vmatprep.subr.bf16.mxu0 %v4348_v54  ;;  %4220 = vmatprep.subr.bf16.mxu1 %v4348_v54 }
  0xb4   : > { %vm1050_vm7 = vcmp.lt.s32.totalorder %v826_v19, 0  ;;  %v2058_v46 = vshll.u32 %v5325_v49, 16  ;;  %v1122_v16 = vadd.s32 18, %v826_v19  ;;  %v5381_v44 = vadd.f32 %v5115_v31, %v468_v58  ;;  %1808 = vrot.lane.b32.xlu1 %v5254_v59, %s4393_s11 }
  0xb5   : > { %vm5376_vm1 = vmand %vm1050_vm7, %vm1014_vm9  ;;  %v4106_v14 = vunpack.c.h.bf16 %v5281_v24  ;;  %v5389_v48 = vcombine.low %v1518_v42, %v5365_v39  ;;  %vm7188_vm0 = vcmask 60416   ;;  %v4349_v24 = vld [vmem:[%s6997_s1] sm:$0xff]   ;;  %v7189_v35 = vmov 0  ;;  %1887 = vrot.lane.b32.xlu0 %v5207_v21, %s4391_s9 }
  0xb6   : > { %1481 = vst.msk [vmem:[#allocation2 + $0x5c] sm:$0xf] %vm7188_vm0, %v4006_v41  ;;  %v5394_v10 = vmul.u32.u64.low 3817748708, %v5354_v47  ;;  %v5395_v22 = vmul.u32.u64.high 3817748708, %v5354_v47, %v5394_v10  ;;  %v1158_v17 = vsel %vm5376_vm1, %v1122_v16, %v826_v19  ;;  %v2057_v41 = vrot.slane %v2055_v20, 5  ;;  %4178 = vmatpush3.bf16.msra.mxu0 %v4348_v54  ;;  %4225 = vmatpush3.bf16.msra.mxu1 %v4348_v54 }
  0xb7   : > { %7187 = vst [vmem:[#allocation23_spill] sm:$0xff] %v5389_v48  ;;  %v5408_v58 = vmul.u32.u64.low 3817748708, %v5357_v23  ;;  %v5409_v10 = vmul.u32.u64.high 3817748708, %v5357_v23, %v5408_v58  ;;  %vm5411_vm9 = vcmp.lt.s32.totalorder %v1158_v17, 16  ;;  %v5417_v56 = vadd.s32 184, %v4502_v2  ;;  %4179 = vmatprep.subr.bf16.mxu0 %v4349_v24  ;;  %4221 = vmatprep.subr.bf16.mxu1 %v4349_v24 }
  0xb8   : > { %v7190_v35 = vsel %vm5411_vm9, 4294967295, %v7189_v35  ;;  %v2060_v5 = vrot.slane %v2058_v46, 6  ;;  %v2347_v42 = vrot.slane %v2055_v20, 6  ;;  %v2348_v18 = vrot.slane %v2058_v46, 7  ;;  %v5424_v58 = vld [vmem:[%s4522_s28 + $0x60] sm:$0xff]   ;;  %1810 = vrot.lane.b32.xlu1 %v1718_v52, %s4393_s11 }
  0xb9   : > { %7191 = vst [vmem:[#allocation24_spill] sm:$0xff] %v7190_v35  ;;  %v1302_v19 = vsel %vm5411_vm9, %v545_v11, 0.0  ;;  %v835_v17 = vshrl.u32 %v5395_v22, 4  ;;  %v5427_v59 = vadd.s32 192, %v4502_v2  ;;  %v1795_v11 = vpop.permute.xlu0 %1794  ;;  %v1723_v54 = vshll.u32 %v5389_v48, 16  ;;  %1940 = vrot.lane.b32.xlu0 %v5347_v6, %s4396_s14 }
  0xba   : > { %v4007_v16 = vpack.c.bf16 %v1302_v19, %v1302_v19  ;;  %v846_v20 = vshrl.u32 %v5409_v10, 4  ;;  %v5435_v46 = vmul.u32.u64.low 3817748708, %v5417_v56  ;;  %v5436_v22 = vmul.u32.u64.high 3817748708, %v5417_v56, %v5435_v46  ;;  %v5438_v19 = vpop.permute.xlu1 %2273  ;;  %4180 = vmatpush3.bf16.msra.mxu0 %v4349_v24  ;;  %4226 = vmatpush3.bf16.msra.mxu1 %v4349_v24 }
  0xbb   : > { %v7192_v4 = vrot.slane %v5325_v49, 6  ;;  %v7193_v35 = vrot.slane %v5202_v30, 6  ;;  %vm7194_vm1 = vcmask 1041408   ;;  %v836_v33 = vmul.u32 18, %v835_v17 }
  0xbc   : > { %1482 = vst.msk [vmem:[#allocation2 + $0x60] sm:$0xf] %vm7188_vm0, %v4007_v16  ;;  %v469_v10 = vmul.f32 %v5081_v62, %v4106_v14  ;;  %v5450_v61 = vor.u32 %v2060_v5, %v2057_v41  ;;  %v5454_v46 = vor.u32 %v2348_v18, %v2347_v42  ;;  %v847_v25 = vmul.u32 18, %v846_v20  ;;  %1889 = vrot.lane.b32.xlu1 %v5347_v6, %s4391_s9 }
  0xbd   : > { %v5445_v52 = vsel %vm7194_vm1, %v7193_v35, %v7192_v4  ;;  %v5452_v57 = vld [vmem:[#allocation2 + $0x5c] sm:$0xf]  ;;  %v4109_v0 = vunpack.c.l.bf16 %v5424_v58  ;;  %v837_v4 = vsub.s32 %v5354_v47, %v836_v33  ;;  %v7195_v18 = vrot.slane %v5389_v48, 1  ;;  %2158 = vrot.lane.b32.xlu0 %v5338_v13, %s4397_s15 }
  0xbe   : > { %v5459_v35 = vcombine.low %v5365_v39, %v5452_v57  ;;  %v5463_v16 = vmul.u32.u64.low 3817748708, %v5427_v59  ;;  %v5464_v14 = vmul.u32.u64.high 3817748708, %v5427_v59, %v5463_v16  ;;  %v7196_v24 = vrot.slane %v5266_v45, 1  ;;  %v5479_v41 = vpop.permute.xlu1 %2484 }
  0xbf   : > { %vm7197_vm1 = vcmask 1046528   ;;  %v1725_v39 = vrot.slane %v1723_v54, 1  ;;  %v1727_v33 = vshrl.u32 %v5389_v48, 16  ;;  %v848_v47 = vsub.s32 %v5357_v23, %v847_v25  ;;  %v5487_v16 = vpop.permute.xlu0 %1875 }
  0xc0   : > { %v5475_v42 = vsel %vm7197_vm1, %v7196_v24, %v7195_v18  ;;  %v7045_v5 = vshrl.u32 %v5459_v35, 16  ;;  %v5484_v21 = vadd.f32 %v5115_v31, %v469_v10  ;;  %v857_v20 = vshrl.u32 %v5436_v22, 4 }
  0xc1   : > { %vm1015_vm0 = vcmp.ne.s32.totalorder %v837_v4, 0  ;;  %vm1016_vm1 = vcmp.ne.s32.totalorder %v848_v47, 0  ;;  %vm1051_vm7 = vcmp.lt.s32.totalorder %v837_v4, 0  ;;  %vm1052_vm9 = vcmp.lt.s32.totalorder %v848_v47, 0  ;;  %1942 = vrot.lane.b32.xlu1 %v5475_v42, %s4396_s14  ;;  %2237 = vrot.lane.b32.xlu0 %v5300_v12, %s4392_s10 }
  0xc2   : > { %vm7198_vm10 = vsmask.f32 2304  ;;  %vm7199_vm13 = vsmask.f32 1280  ;;  %v7200_v54 = vrot.slane %v5325_v49, 7  ;;  %v7201_v22 = vrot.slane %v5202_v30, 7  ;;  %vm5504_vm8 = vmand %vm1051_vm7, %vm1015_vm0 }
  0xc3   : > { %v2062_v25 = vsel %vm7198_vm10, %v5306_v37, %v5450_v61  ;;  %v5495_v23 = vsel %vm7199_vm13, %v5302_v9, %v5454_v46  ;;  %vm7202_vm14 = vcmask 1040384   ;;  %v470_v24 = vmul.f32 %v5081_v62, %v4109_v0  ;;  %v5526_v0 = vpop.permute.xlu1 %1877  ;;  %v5544_v53 = vld [vmem:[#allocation2 + $0x60] sm:$0xf] }
  0xc4   : > { %v5502_v10 = vsel %vm7202_vm14, %v7201_v22, %v7200_v54  ;;  %vm7205_vm13 = vsmask.f32 7424  ;;  %v5517_v30 = vor.u32 %v1727_v33, %v1725_v39  ;;  %vm5519_vm14 = vmand %vm1052_vm9, %vm1016_vm1  ;;  %v1123_v54 = vadd.s32 18, %v837_v4 }
  0xc5   : > { %v5515_v37 = vsel %vm7205_vm13, %v5369_v51, %v1725_v39  ;;  %v1124_v22 = vadd.s32 18, %v848_v47  ;;  %v2351_v17 = vrot.slane %v7045_v5, 6  ;;  %v7208_v6 = vshll.u32 %v5459_v35, 16  ;;  %2160 = vrot.lane.b32.xlu1 %v2062_v25, %s4397_s15  ;;  %2287 = vrot.lane.b32.xlu0 %v5445_v52, %s4394_s12 }
  0xc6   : > { %v858_v51 = vmul.u32 18, %v857_v20  ;;  %v4110_v39 = vunpack.c.h.bf16 %v5424_v58  ;;  %v7209_v33 = vcombine.low %v5129_v43, %v5145_v32  ;;  %vm7210_vm10 = vcmask 64512  }
  0xc7   : > { %v2352_v38 = vrot.slane %v7208_v6, 7  ;;  %v1159_v1 = vsel %vm5504_vm8, %v1123_v54, %v837_v4  ;;  %v1160_v27 = vsel %vm5519_vm14, %v1124_v22, %v848_v47  ;;  %v548_v5 = vmax.f32 %v5484_v21, 0.0  ;;  %v5577_v9 = vpop.permute.xlu1 %1928 }
  0xc8   : > { %v5537_v34 = vsel %vm7210_vm10, %v7209_v33, %v1795_v11  ;;  %vm5546_vm9 = vcmp.lt.s32.totalorder %v1159_v1, 16  ;;  %v7211_v20 = vmov 0  ;;  %v5551_v58 = vadd.f32 %v5115_v31, %v470_v24  ;;  %v5558_v11 = vpop.permute.xlu0 %1926 }
  0xc9   : > { %v7212_v20 = vsel %vm5546_vm9, 4294967295, %v7211_v20  ;;  %v868_v43 = vshrl.u32 %v5464_v14, 4  ;;  %v4113_v32 = vunpack.c.l.bf16 %v5524_v7  ;;  %v7047_v1 = vrot.slane %v5459_v35, 6  ;;  %2239 = vrot.lane.b32.xlu1 %v5445_v52, %s4392_s10  ;;  %2419 = vrot.lane.b32.xlu0 %v5495_v23, %s4398_s16 }
  0xca   : > { %7213 = vst [vmem:[#allocation25_spill] sm:$0xff] %v7212_v20  ;;  %vm5561_vm7 = vcmp.lt.s32.totalorder %v1160_v27, 16  ;;  %v7214_v4 = vmov 0  ;;  %v7217_v47 = vmax.f32 %v5372_v26, 0.0  ;;  %v859_v21 = vsub.s32 %v5417_v56, %v858_v51 }
  0xcb   : > { %v7215_v4 = vsel %vm5561_vm7, 4294967295, %v7214_v4  ;;  %v5570_v25 = vor.u32 %v2352_v38, %v2351_v17  ;;  %v7218_v13 = vmax.f32 %v5381_v44, 0.0  ;;  %v471_v27 = vmul.f32 %v5081_v62, %v4110_v39 }
  0xcc   : > { %7216 = vst [vmem:[#allocation26_spill] sm:$0xff] %v7215_v4  ;;  %v1303_v14 = vsel %vm5546_vm9, %v7217_v47, 0.0  ;;  %v5581_v26 = vcombine.low %v5452_v57, %v5544_v53  ;;  %vm1017_vm1 = vcmp.ne.s32.totalorder %v859_v21, 0  ;;  %vm1053_vm13 = vcmp.lt.s32.totalorder %v859_v21, 0 }
  0xcd   : > { %v1304_v18 = vsel %vm5561_vm7, %v7218_v13, 0.0  ;;  %v4008_v24 = vpack.c.bf16 %v1303_v14, %v1303_v14  ;;  %vm7220_vm14 = vcmask 60416   ;;  %vm5585_vm10 = vmand %vm1053_vm13, %vm1017_vm1  ;;  %v1125_v44 = vadd.s32 18, %v859_v21  ;;  %2498 = vrot.lane.b32.xlu0 %v5502_v10, %s4395_s13 }
  0xce   : > { %7219 = vst [vmem:[#allocation27_spill] sm:$0xff] %v5581_v26  ;;  %v4009_v54 = vpack.c.bf16 %v1304_v18, %v1304_v18  ;;  %v869_v17 = vmul.u32 18, %v868_v43  ;;  %v5590_v22 = vadd.s32 200, %v4502_v2  ;;  %v7223_v57 = vrot.slane %v5325_v49, 6 }
  0xcf   : > { %1483 = vst.msk [vmem:[#allocation2 + $0x64] sm:$0xf] %vm7220_vm14, %v4008_v24  ;;  %vm7224_vm14 = vcmask 1041408   ;;  %vm7225_vm1 = vcmask 60416   ;;  %v7226_v51 = vshrl.u32 %v5459_v35, 16  ;;  %v7227_v33 = vshll.u32 %v5459_v35, 16  ;;  %v5616_v24 = vpop.permute.xlu0 %1930 }
  0xd0   : > { %v5601_v6 = vsel %vm7224_vm14, %v7223_v57, %v7047_v1  ;;  %1484 = vst.msk [vmem:[#allocation2 + $0x68] sm:$0xf] %vm7225_vm1, %v4009_v54  ;;  %v549_v47 = vmax.f32 %v5551_v58, 0.0  ;;  %v1161_v12 = vsel %vm5585_vm10, %v1125_v44, %v859_v21  ;;  %v870_v14 = vsub.s32 %v5427_v59, %v869_v17 }
  0xd1   : > { %v2066_v39 = vrot.slane %v7226_v51, 5  ;;  %v2069_v43 = vrot.slane %v7227_v33, 6  ;;  %v5613_v13 = vadd.s32 208, %v4502_v2  ;;  %v4114_v18 = vunpack.c.h.bf16 %v5524_v7  ;;  %2289 = vrot.lane.b32.xlu1 %v5601_v6, %s4394_s12 }
  0xd2   : > { %vm7228_vm13 = vsmask.f32 1280  ;;  %v1731_v57 = vshll.u32 %v5581_v26, 16  ;;  %vm5623_vm14 = vcmp.lt.s32.totalorder %v1161_v12, 16  ;;  %v7229_v56 = vmov 0 }
  0xd3   : > { %v2354_v54 = vsel %vm7228_vm13, %v5454_v46, %v5570_v25  ;;  %v7230_v56 = vsel %vm5623_vm14, 4294967295, %v7229_v56  ;;  %v1305_v59 = vsel %vm5623_vm14, %v548_v5, 0.0  ;;  %vm1018_vm10 = vcmp.ne.s32.totalorder %v870_v14, 0  ;;  %v5633_v46 = vpop.permute.xlu1 %2225  ;;  %v5645_v52 = vpop.permute.xlu0 %2227 }
  0xd4   : > { %7231 = vst [vmem:[#allocation28_spill] sm:$0xff] %v7230_v56  ;;  %vm1054_vm1 = vcmp.lt.s32.totalorder %v870_v14, 0  ;;  %v1126_v7 = vadd.s32 18, %v870_v14  ;;  %v4010_v21 = vpack.c.bf16 %v1305_v59, %v1305_v59  ;;  %v472_v44 = vmul.f32 %v5081_v62, %v4113_v32 }
  0xd5   : > { %vm1090_vm0 = vmand %vm1054_vm1, %vm1018_vm10  ;;  %v5637_v17 = vmul.u32.u64.low 3817748708, %v5590_v22  ;;  %v5638_v51 = vmul.u32.u64.high 3817748708, %v5590_v22, %v5637_v17  ;;  %v5641_v33 = vmul.u32.u64.low 3817748708, %v5613_v13  ;;  %v5642_v12 = vmul.u32.u64.high 3817748708, %v5613_v13, %v5641_v33  ;;  %2421 = vrot.lane.b32.xlu1 %v2354_v54, %s4398_s16 }
  0xd6   : > { %v1162_v5 = vsel %vm1090_vm0, %v1126_v7, %v870_v14  ;;  %v473_v1 = vmul.f32 %v5081_v62, %v4114_v18  ;;  %v1733_v58 = vrot.slane %v1731_v57, 1  ;;  %v1522_v38 = vld [vmem:[#allocation2 + $0x64] sm:$0xf]  ;;  %v5647_v59 = vor.u32 %v2069_v43, %v2066_v39 }
  0xd7   : > { %vm7232_vm10 = vcmask 60416   ;;  %v1735_v32 = vshrl.u32 %v5581_v26, 16  ;;  %vm5651_vm1 = vcmp.lt.s32.totalorder %v1162_v5, 16  ;;  %v7233_v17 = vmov 0  ;;  %v1523_v18 = vld [vmem:[#allocation2 + $0x68] sm:$0xf] }
  0xd8   : > { %1485 = vst.msk [vmem:[#allocation2 + $0x6c] sm:$0xf] %vm7232_vm10, %v4010_v21  ;;  %v7234_v17 = vsel %vm5651_vm1, 4294967295, %v7233_v17  ;;  %vm7236_vm0 = vcmask 130048   ;;  %v5659_v57 = vcombine.low %v5544_v53, %v1522_v38  ;;  %v1306_v39 = vsel %vm5651_vm1, %v549_v47, 0.0 }
  0xd9   : > { %7235 = vst [vmem:[#allocation29_spill] sm:$0xff] %v7234_v17  ;;  %v2564_v14 = vsel %vm7236_vm0, %v5537_v34, %v5384_v60  ;;  %v5664_v43 = vadd.f32 %v5115_v31, %v471_v27  ;;  %v7237_v7 = vrot.slane %v5459_v35, 7  ;;  %v7238_v34 = vrot.slane %v5325_v49, 7  ;;  %v5681_v27 = vld [vmem:[%s4522_s28 + $0x70] sm:$0xff]   ;;  %1812 = vrot.lane.b32.xlu1 %v5515_v37, %s4393_s11 }
  0xda   : > { %vm7239_vm10 = vcmask 1040384   ;;  %v4011_v53 = vpack.c.bf16 %v1306_v39, %v1306_v39  ;;  %v5675_v21 = vadd.f32 %v5115_v31, %v472_v44  ;;  %v5678_v47 = vadd.s32 216, %v4502_v2  ;;  %v5697_v39 = vpop.permute.xlu1 %2277 }
  0xdb   : > { %v2463_v60 = vsel %vm7239_vm10, %v7238_v34, %v7237_v7  ;;  %vm7240_vm8 = vcmask 195584   ;;  %v7241_v23 = vrot.slane %v5581_v26, 1  ;;  %v7242_v5 = vrot.slane %v5389_v48, 1  ;;  %v5699_v7 = vpop.permute.xlu0 %2275 }
  0xdc   : > { %v2603_v54 = vsel %vm7240_vm8, %v2564_v14, %v5558_v11  ;;  %vm7243_vm13 = vcmask 1046528   ;;  %v5692_v33 = vcombine.low %v1522_v38, %v1523_v18  ;;  %v5695_v44 = vadd.f32 %v5115_v31, %v473_v1  ;;  %2500 = vrot.lane.b32.xlu0 %v2463_v60, %s4395_s13 }
  0xdd   : > { %v5690_v49 = vsel %vm7243_vm13, %v7242_v5, %v7241_v23  ;;  %vm7244_vm10 = vsmask.f32 7424  ;;  %vm7245_vm0 = vsmask.f32 2304  ;;  %v5708_v14 = vor.u32 %v1735_v32, %v1733_v58 }
  0xde   : > { %v1734_v34 = vsel %vm7244_vm10, %v5517_v30, %v1733_v58  ;;  %v5706_v11 = vsel %vm7245_vm0, %v5450_v61, %v5647_v59  ;;  %vm7246_vm13 = vcmask 60416   ;;  %v879_v31 = vshrl.u32 %v5638_v51, 4  ;;  %v2145_v20 = vpop.permute.xlu1 %2144 }
  0xdf   : > { %1486 = vst.msk [vmem:[#allocation2 + $0x70] sm:$0xf] %vm7246_vm13, %v4011_v53  ;;  %v2073_v1 = vshrl.u32 %v5659_v57, 16  ;;  %v2076_v38 = vshll.u32 %v5659_v57, 16  ;;  %v4117_v30 = vunpack.c.l.bf16 %v5681_v27  ;;  %v1524_v5 = vld [vmem:[#allocation2 + $0x6c] sm:$0xf]  ;;  %v1797_v56 = vpop.permute.xlu0 %1796  ;;  %1814 = vrot.lane.b32.xlu1 %v1734_v34, %s4393_s11 }
  0xe0   : > { %v5723_v51 = vmul.u32.u64.low 3817748708, %v5678_v47  ;;  %v5724_v32 = vmul.u32.u64.high 3817748708, %v5678_v47, %v5723_v51  ;;  %v1739_v23 = vshll.u32 %v5692_v33, 16  ;;  %v890_v17 = vshrl.u32 %v5642_v12, 4  ;;  %1891 = vrot.lane.b32.xlu0 %v5475_v42, %s4391_s9 }
  0xe1   : > { %v5730_v10 = vcombine.low %v1523_v18, %v1524_v5  ;;  %v880_v58 = vmul.u32 18, %v879_v31  ;;  %v5734_v4 = vadd.s32 224, %v4502_v2  ;;  %vm7247_vm0 = vcmask 261120  }
  0xe2   : > { %v2642_v51 = vsel %vm7247_vm0, %v2603_v54, %v2145_v20  ;;  %v2075_v53 = vrot.slane %v2073_v1, 5  ;;  %v2078_v3 = vrot.slane %v2076_v38, 6  ;;  %v5738_v48 = vmul.f32 %v5081_v62, %v4117_v30  ;;  %v1799_v60 = vpop.permute.xlu1 %1798 }
  0xe3   : > { %vm7248_vm10 = vcmask 326656   ;;  %vm7249_vm13 = vcmask 64512   ;;  %v7250_v31 = vrot.slane %v5659_v57, 6  ;;  %v7251_v37 = vrot.slane %v5459_v35, 6  ;;  %v2406_v61 = vpop.permute.xlu0 %2405  ;;  %1893 = vrot.lane.b32.xlu1 %v5690_v49, %s4391_s9 }
  0xe4   : > { %v2681_v12 = vsel %vm7248_vm10, %v2642_v51, %v5386_v40  ;;  %v2527_v18 = vsel %vm7249_vm13, %v4626_v36, %v1797_v56  ;;  %vm7252_vm0 = vcmask 1041408   ;;  %v891_v54 = vmul.u32 18, %v890_v17  ;;  %1944 = vrot.lane.b32.xlu0 %v5690_v49, %s4396_s14 }
  0xe5   : > { %v5751_v20 = vsel %vm7252_vm0, %v7251_v37, %v7250_v31  ;;  %v7253_v62 = vrot.slane %v5692_v33, 1  ;;  %v7254_v30 = vrot.slane %v5581_v26, 1  ;;  %vm7255_vm10 = vcmask 1046528  }
  0xe6   : > { %v2355_v36 = vrot.slane %v2073_v1, 6  ;;  %v2356_v56 = vrot.slane %v2076_v38, 7  ;;  %v5760_v34 = vrot.slane %v1739_v23, 1  ;;  %vm7256_vm13 = vcmask 392192  }
  0xe7   : > { %v5758_v40 = vsel %vm7255_vm10, %v7254_v30, %v7253_v62  ;;  %v2720_v51 = vsel %vm7256_vm13, %v2681_v12, %v5438_v19  ;;  %v2082_v37 = vshrl.u32 %v5730_v10, 16  ;;  %v7257_v17 = vrot.slane %v5659_v57, 7  ;;  %v2149_v30 = vpop.permute.xlu1 %2148 }
  0xe8   : > { %v7258_v31 = vrot.slane %v5459_v35, 7  ;;  %vm7259_vm0 = vcmask 1040384   ;;  %v881_v62 = vsub.s32 %v5590_v22, %v880_v58  ;;  %vm7260_vm10 = vcmask 130048   ;;  %v5787_v22 = vld [vmem:[#allocation2 + $0x70] sm:$0xf]  ;;  %1946 = vrot.lane.b32.xlu1 %v5758_v40, %s4396_s14  ;;  %2162 = vrot.lane.b32.xlu0 %v5706_v11, %s4397_s15 }
  0xe9   : > { %v2566_v1 = vsel %vm7260_vm10, %v2527_v18, %v5487_v16  ;;  %vm7261_vm8 = vcmask 64512   ;;  %vm7262_vm1 = vcmask 457728   ;;  %v2085_v23 = vshll.u32 %v5730_v10, 16  ;;  %vm7263_vm13 = vmmov %vm7260_vm10 }
  0xea   : > { %v5770_v26 = vsel %vm7259_vm0, %v7258_v31, %v7257_v17  ;;  %v2529_v38 = vsel %vm7261_vm8, %v4645_v55, %v1799_v60  ;;  %v2759_v19 = vsel %vm7262_vm1, %v2720_v51, %v2406_v61  ;;  %v5785_v35 = vor.u32 %v2078_v3, %v2075_v53  ;;  %v2147_v3 = vpop.permute.xlu0 %2146 }
  0xeb   : > { %v2568_v12 = vsel %vm7263_vm13, %v2529_v38, %v5526_v0  ;;  %v1743_v16 = vshrl.u32 %v5692_v33, 16  ;;  %v892_v55 = vsub.s32 %v5613_v13, %v891_v54  ;;  %vm7264_vm1 = vcmask 523264   ;;  %v2408_v17 = vpop.permute.xlu1 %2407 }
  0xec   : > { %v2798_v61 = vsel %vm7264_vm1, %v2759_v19, %v5479_v41  ;;  %v2207_v58 = vrot.slane %v5730_v10, 6  ;;  %v2357_v0 = vor.u32 %v2356_v56, %v2355_v36  ;;  %v901_v18 = vshrl.u32 %v5724_v32, 4  ;;  %2241 = vrot.lane.b32.xlu0 %v5601_v6, %s4392_s10  ;;  %v5889_v6 = vld [vmem:[%s4522_s28 + $0x78] sm:$0xff]  }
  0xed   : > { %vm7265_vm8 = vcmask 195584   ;;  %v2359_v53 = vrot.slane %v2082_v37, 6  ;;  %vm7266_vm0 = vsmask.f32 7424  ;;  %vm7268_vm1 = vcmask 261120  }
  0xee   : > { %v2605_v42 = vsel %vm7265_vm8, %v2566_v1, %v5577_v9  ;;  %v5802_v13 = vsel %vm7266_vm0, %v5708_v14, %v5760_v34  ;;  %vm7267_vm13 = vmmov %vm7265_vm8  ;;  %v2360_v32 = vrot.slane %v2085_v23, 7  ;;  %v5810_v9 = vcombine.low %v1524_v5, %v5787_v22 }
  0xef   : > { %v2607_v41 = vsel %vm7267_vm13, %v2568_v12, %v5616_v24  ;;  %v2644_v54 = vsel %vm7268_vm1, %v2605_v42, %v2147_v3  ;;  %v2845_v36 = vshrl.u32 %v2798_v61, 16  ;;  %vm7269_vm8 = vcmask 326656  }
  0xf0   : > { %v2683_v56 = vsel %vm7269_vm8, %v2644_v54, %v5633_v46  ;;  %vm1055_vm13 = vcmp.lt.s32.totalorder %v881_v62, 0  ;;  %v2848_v24 = vshll.u32 %v2798_v61, 16  ;;  %vm7270_vm1 = vsmask.f32 2304  ;;  %2291 = vrot.lane.b32.xlu0 %v5751_v20, %s4394_s12 }
  0xf1   : > { %v2080_v14 = vsel %vm7270_vm1, %v5647_v59, %v5785_v35  ;;  %v7271_v5 = vrot.slane %v5659_v57, 6  ;;  %vm7272_vm10 = vcmask 1041408   ;;  %vm7273_vm8 = vsmask.f32 1280  ;;  %v2410_v59 = vpop.permute.xlu0 %2409 }
  0xf2   : > { %v5830_v46 = vsel %vm7273_vm8, %v5570_v25, %v2357_v0  ;;  %vm7274_vm9 = vcmp.ne.s32.totalorder %v881_v62, 0  ;;  %vm7277_vm0 = vcmask 261120   ;;  %vm1056_vm1 = vcmp.lt.s32.totalorder %v892_v55, 0  ;;  %2164 = vrot.lane.b32.xlu1 %v2080_v14, %s4397_s15 }
  0xf3   : > { %v5826_v60 = vsel %vm7272_vm10, %v7271_v5, %v2207_v58  ;;  %vm5833_vm14 = vmand %vm1055_vm13, %vm7274_vm9  ;;  %v2646_v51 = vsel %vm7277_vm0, %v2607_v41, %v2149_v30  ;;  %v1127_v31 = vadd.s32 18, %v881_v62  ;;  %v1128_v1 = vadd.s32 18, %v892_v55 }
  0xf4   : > { %vm7278_vm7 = vcmask 392192   ;;  %v5840_v19 = vor.u32 %v2360_v32, %v2359_v53  ;;  %v1747_v25 = vshll.u32 %v5810_v9, 16  ;;  %v2466_v12 = vrot.slane %v5730_v10, 7  ;;  %v5861_v32 = vpop.permute.xlu1 %1800  ;;  %2423 = vrot.lane.b32.xlu0 %v5830_v46, %s4398_s16  ;;  %v5948_v46 = vld [vmem:[%s6999_s3] ss:$0 sm:$0xff] }
  0xf5   : > { %v2722_v38 = vsel %vm7278_vm7, %v2683_v56, %v5699_v7  ;;  %vm7279_vm9 = vcmp.ne.s32.totalorder %v892_v55, 0  ;;  %v2847_v61 = vrot.slane %v2845_v36, 2  ;;  %v1163_v30 = vsel %vm5833_vm14, %v1127_v31, %v881_v62  ;;  %v2487_v36 = vpop.permute.xlu0 %2486 }
  0xf6   : > { %vm1092_vm13 = vmand %vm1056_vm1, %vm7279_vm9  ;;  %v902_v42 = vmul.u32 18, %v901_v18  ;;  %v2850_v3 = vrot.slane %v2848_v24, 3  ;;  %vm7280_vm7 = vcmask 326656   ;;  %vm5852_vm8 = vcmp.lt.s32.totalorder %v1163_v30, 16  ;;  %2243 = vrot.lane.b32.xlu1 %v5751_v20, %s4392_s10 }
  0xf7   : > { %v1164_v7 = vsel %vm1092_vm13, %v1128_v1, %v892_v55  ;;  %v2685_v53 = vsel %vm7280_vm7, %v2646_v51, %v5645_v52  ;;  %v7281_v41 = vmov 0  ;;  %v7283_v54 = vmov 0 }
  0xf8   : > { %v7282_v41 = vsel %vm5852_vm8, 4294967295, %v7281_v41  ;;  %vm5856_vm1 = vcmp.lt.s32.totalorder %v1164_v7, 16  ;;  %vm7285_vm9 = vcmask 457728   ;;  %v7286_v62 = vmax.f32 %v5664_v43, 0.0  ;;  %v1803_v1 = vpop.permute.xlu1 %1802  ;;  %2502 = vrot.lane.b32.xlu0 %v5770_v26, %s4395_s13 }
  0xf9   : > { %v7284_v54 = vsel %vm5856_vm1, 4294967295, %v7283_v54  ;;  %v2761_v11 = vsel %vm7285_vm9, %v2722_v38, %v2408_v17  ;;  %v7287_v52 = vmax.f32 %v5675_v21, 0.0  ;;  %v903_v56 = vsub.s32 %v5678_v47, %v902_v42  ;;  %v2489_v38 = vpop.permute.xlu0 %2488 }
  0xfa   : > { %v1307_v55 = vsel %vm5852_vm8, %v7286_v62, 0.0  ;;  %vm7288_vm14 = vcmask 523264   ;;  %vm7289_vm13 = vsmask.f32 1280  ;;  %vm7290_vm7 = vcmask 392192   ;;  %2293 = vrot.lane.b32.xlu1 %v5826_v60, %s4394_s12 }
  0xfb   : > { %v1308_v18 = vsel %vm5856_vm1, %v7287_v52, 0.0  ;;  %v2800_v24 = vsel %vm7288_vm14, %v2761_v11, %v2487_v36  ;;  %v2362_v14 = vsel %vm7289_vm13, %v2357_v0, %v5840_v19  ;;  %v4012_v5 = vpack.c.bf16 %v1307_v55, %v1307_v55 }
  0xfc   : > { %v4013_v49 = vpack.c.bf16 %v1308_v18, %v1308_v18  ;;  %v2724_v43 = vsel %vm7290_vm7, %v2685_v53, %v5697_v39  ;;  %v2852_v51 = vshrl.u32 %v2800_v24, 16  ;;  %v2855_v17 = vshll.u32 %v2800_v24, 16  ;;  %v1882_v24 = vpop.permute.xlu1 %1881 }
  0xfd   : > { %vm1021_vm9 = vcmp.ne.s32.totalorder %v903_v56, 0  ;;  %vm7291_vm0 = vcmask 457728   ;;  %v2851_v47 = vor.u32 %v2850_v3, %v2847_v61  ;;  %vm7292_vm14 = vcmask 60416  }
  0xfe   : > { %v2763_v21 = vsel %vm7291_vm0, %v2724_v43, %v2410_v59  ;;  %1487 = vst.msk [vmem:[#allocation2 + $0x74] sm:$0xf] %vm7292_vm14, %v4012_v5  ;;  %vm7293_vm13 = vmmov %vm7292_vm14  ;;  %vm1057_vm10 = vcmp.lt.s32.totalorder %v903_v56, 0  ;;  %v1129_v0 = vadd.s32 18, %v903_v56  ;;  %v2854_v39 = vrot.slane %v2852_v51, 2  ;;  %v1880_v5 = vpop.permute.xlu0 %1879  ;;  %2425 = vrot.lane.b32.xlu1 %v2362_v14, %s4398_s16 }
  0xff   : > { %1488 = vst.msk [vmem:[#allocation2 + $0x78] sm:$0xf] %vm7293_vm13, %v4013_v49  ;;  %v2857_v31 = vrot.slane %v2855_v17, 3  ;;  %vm1093_vm7 = vmand %vm1057_vm10, %vm1021_vm9  ;;  %v5885_v30 = vmul.u32.u64.low 3817748708, %v5734_v4  ;;  %v5886_v7 = vmul.u32.u64.high 3817748708, %v5734_v4, %v5885_v30  ;;  %vm7294_vm8 = vcmask 523264  }
 0x100   : > { %v2802_v59 = vsel %vm7294_vm8, %v2763_v21, %v2489_v38  ;;  %v2084_v61 = vrot.slane %v2082_v37, 5  ;;  %v1165_v42 = vsel %vm1093_vm7, %v1129_v0, %v903_v56  ;;  %v4118_v3 = vunpack.c.h.bf16 %v5681_v27  ;;  %v5924_v17 = vld [vmem:[%s6998_s2] ss:$0 sm:$0xff]  ;;  %vm7302_vm14 = vmmov %vm7293_vm13 }
 0x101   : > { %v2860_v53 = vshrl.u32 %v2802_v59, 16  ;;  %v2863_v11 = vshll.u32 %v2802_v59, 16  ;;  %v2858_v36 = vor.u32 %v2857_v31, %v2854_v39  ;;  %vm5899_vm10 = vcmp.lt.s32.totalorder %v1165_v42, 16 }
 0x102   : > { %v7295_v62 = vmov 0  ;;  %v2087_v55 = vrot.slane %v2085_v23, 6  ;;  %v7297_v37 = vmax.f32 %v5695_v44, 0.0  ;;  %v4121_v52 = vunpack.c.l.bf16 %v5889_v6  ;;  %v1933_v59 = vpop.permute.xlu0 %1932  ;;  %1816 = vrot.lane.b32.xlu1 %v5802_v13, %s4393_s11 }
 0x103   : > { %v7296_v62 = vsel %vm5899_vm10, 4294967295, %v7295_v62  ;;  %v5911_v18 = vadd.s32 232, %v4502_v2  ;;  %v2862_v56 = vrot.slane %v2860_v53, 2  ;;  %v2865_v20 = vrot.slane %v2863_v11, 3 }
 0x104   : > { %v1309_v27 = vsel %vm5899_vm10, %v7297_v37, 0.0  ;;  %vm7298_vm0 = vsmask.f32 5376  ;;  %vm7299_vm8 = vcmask 588800   ;;  %v1745_v44 = vor.u32 %v1743_v16, %v5760_v34 }
 0x105   : > { %v2859_v49 = vsel %vm7298_vm0, %v2851_v47, %v2858_v36  ;;  %v4014_v43 = vpack.c.bf16 %v1309_v27, %v1309_v27  ;;  %v1749_v23 = vrot.slane %v1747_v25, 1  ;;  %v912_v51 = vshrl.u32 %v5886_v7, 4  ;;  %v1526_v0 = vld [vmem:[#allocation2 + $0x74] sm:$0xf]  ;;  %v1935_v7 = vpop.permute.xlu1 %1934  ;;  %vm7303_vm13 = vmmov %vm7298_vm0 }
 0x106   : > { %4181 = vmatprep.mubr.msk.bf16.mxu0 %vm7299_vm8, %v2859_v49  ;;  %v475_v21 = vmul.f32 %v5924_v17, %v4118_v3  ;;  %v5927_v47 = vor.u32 %v2865_v20, %v2862_v56  ;;  %v7300_v34 = vrot.slane %v5659_v57, 7  ;;  %vm7301_vm9 = vcmask 1040384   ;;  %v1527_v39 = vld [vmem:[#allocation2 + $0x78] sm:$0xf]  ;;  %vm7305_vm0 = vmmov %vm7299_vm8 }
 0x107   : > { %v1861_v25 = vrot.slane %v5810_v9, 1  ;;  %1489 = vst.msk [vmem:[#allocation2 + $0x7c] sm:$0xf] %vm7302_vm14, %v4014_v43  ;;  %v1751_v31 = vshrl.u32 %v5810_v9, 16  ;;  %v5941_v38 = vcombine.low %v5787_v22, %v1526_v0  ;;  %v5943_v14 = vor.u32 %v2087_v55, %v2084_v61 }
 0x108   : > { %v2467_v16 = vsel %vm7301_vm9, %v7300_v34, %v2466_v12  ;;  %v5952_v57 = vadd.f32 %v5948_v46, %v5738_v48  ;;  %v913_v30 = vmul.u32 18, %v912_v51  ;;  %v2867_v42 = vsel %vm7303_vm13, %v2858_v36, %v5927_v47 }
 0x109   : > { %v476_v22 = vmul.f32 %v5924_v17, %v4121_v52  ;;  %v5958_v61 = vmul.u32.u64.low 3817748708, %v5911_v18  ;;  %v5959_v3 = vmul.u32.u64.high 3817748708, %v5911_v18, %v5958_v61  ;;  %vm7304_vm7 = vcmask 64512   ;;  %4182 = vmatmul.mubr.msk.bf16.vlgmr.msra.gmra.mxu0 %vm7305_vm0, %v2867_v42  ;;  %v2153_v43 = vpop.permute.xlu1 %2152  ;;  %2504 = vrot.lane.b32.xlu0 %v2467_v16, %s4395_s13 }
 0x10a   : > { %v2533_v53 = vsel %vm7304_vm7, %v4744_v29, %v1803_v1  ;;  %vm7306_vm8 = vsmask.f32 7424  ;;  %v5965_v11 = vcombine.low %v1526_v0, %v1527_v39  ;;  %v5968_v55 = vadd.f32 %v5948_v46, %v475_v21  ;;  %vm7309_vm14 = vmmov %vm7304_vm7 }
 0x10b   : > { %v1750_v48 = vsel %vm7306_vm8, %v1745_v44, %v1749_v23  ;;  %v7307_v36 = vrot.slane %v5692_v33, 1  ;;  %vm7308_vm9 = vcmask 1046528   ;;  %v2091_v1 = vshrl.u32 %v5941_v38, 16  ;;  %v2151_v44 = vpop.permute.xlu0 %2150 }
 0x10c   : > { %v2094_v37 = vshll.u32 %v5941_v38, 16  ;;  %v5981_v27 = vor.u32 %v1751_v31, %v1749_v23  ;;  %v2531_v52 = vsel %vm7309_vm14, %v4676_v8, %v5861_v32  ;;  %vm7310_vm13 = vsmask.f32 2304  ;;  %1818 = vrot.lane.b32.xlu1 %v1750_v48, %s4393_s11 }
 0x10d   : > { %v1862_v29 = vsel %vm7308_vm9, %v7307_v36, %v1861_v25  ;;  %v5989_v26 = vsel %vm7310_vm13, %v5785_v35, %v5943_v14  ;;  %v553_v13 = vmax.f32 %v5952_v57, 0.0  ;;  %v914_v56 = vsub.s32 %v5734_v4, %v913_v30  ;;  %1895 = vrot.lane.b32.xlu0 %v5758_v40, %s4391_s9 }
 0x10e   : > { %vm7311_vm7 = vcmask 130048   ;;  %v5996_v23 = vadd.f32 %v5948_v46, %v476_v22  ;;  %v5999_v8 = vadd.s32 240, %v4502_v2  ;;  %v7060_v32 = vrot.slane %v5965_v11, 1  ;;  %v6002_v35 = vld [vmem:[#allocation2 + $0x7c] sm:$0xf]  ;;  %v2232_v22 = vpop.permute.xlu1 %2231 }
 0x10f   : > { %v2572_v20 = vsel %vm7311_vm7, %v2533_v53, %v1882_v24  ;;  %vm7312_vm0 = vmmov %vm7311_vm7  ;;  %vm1022_vm8 = vcmp.ne.s32.totalorder %v914_v56, 0  ;;  %v554_v51 = vmax.f32 %v5968_v55, 0.0  ;;  %v2093_v24 = vrot.slane %v2091_v1, 5  ;;  %v2230_v61 = vpop.permute.xlu0 %2229 }
 0x110   : > { %v2570_v49 = vsel %vm7312_vm0, %v2531_v52, %v1880_v5  ;;  %v2096_v5 = vrot.slane %v2094_v37, 6  ;;  %v6009_v21 = vcombine.low %v1527_v39, %v6002_v35  ;;  %vm1058_vm9 = vcmp.lt.s32.totalorder %v914_v56, 0  ;;  %1897 = vrot.lane.b32.xlu1 %v1862_v29, %s4391_s9 }
 0x111   : > { %v2209_v34 = vrot.slane %v5941_v38, 6  ;;  %v1755_v0 = vshll.u32 %v5965_v11, 16  ;;  %vm6013_vm14 = vmand %vm1058_vm9, %vm1022_vm8  ;;  %v1130_v57 = vadd.s32 18, %v914_v56  ;;  %v923_v30 = vshrl.u32 %v5959_v3, 4  ;;  %1948 = vrot.lane.b32.xlu0 %v1862_v29, %s4396_s14 }
 0x112   : > { %vm7315_vm13 = vcmask 195584   ;;  %v2363_v39 = vrot.slane %v2091_v1, 6  ;;  %v555_v53 = vmax.f32 %v5996_v23, 0.0  ;;  %v2100_v48 = vshrl.u32 %v6009_v21, 16 }
 0x113   : > { %v2611_v42 = vsel %vm7315_vm13, %v2572_v20, %v1935_v7  ;;  %vm7316_vm7 = vmmov %vm7315_vm13  ;;  %v2103_v36 = vshll.u32 %v6009_v21, 16  ;;  %v2364_v52 = vrot.slane %v2094_v37, 7  ;;  %v1166_v4 = vsel %vm6013_vm14, %v1130_v57, %v914_v56 }
 0x114   : > { %v2609_v16 = vsel %vm7316_vm7, %v2570_v49, %v1933_v59  ;;  %vm7317_vm0 = vcmask 1046528   ;;  %v6035_v59 = vor.u32 %v2096_v5, %v2093_v24  ;;  %v2468_v3 = vrot.slane %v5941_v38, 7  ;;  %v2282_v49 = vpop.permute.xlu1 %2281  ;;  %v2280_v24 = vpop.permute.xlu0 %2279 }
 0x115   : > { %v6033_v7 = vsel %vm7317_vm0, %v1861_v25, %v7060_v32  ;;  %vm6038_vm8 = vcmp.lt.s32.totalorder %v1166_v4, 16  ;;  %v7318_v1 = vmov 0  ;;  %vm7320_vm9 = vcmask 1041408   ;;  %2166 = vrot.lane.b32.xlu0 %v5989_v26, %s4397_s15 }
 0x116   : > { %v7319_v1 = vsel %vm6038_vm8, 4294967295, %v7318_v1  ;;  %v6045_v37 = vsel %vm7320_vm9, %v2207_v58, %v2209_v34  ;;  %v6047_v40 = vrot.slane %v1755_v0, 1  ;;  %v1310_v56 = vsel %vm6038_vm8, %v553_v13, 0.0  ;;  %1950 = vrot.lane.b32.xlu1 %v6033_v7, %s4396_s14 }
 0x117   : > { %v924_v25 = vmul.u32 18, %v923_v30  ;;  %vm7321_vm14 = vcmask 261120   ;;  %v4015_v5 = vpack.c.bf16 %v1310_v56, %v1310_v56  ;;  %v2365_v57 = vor.u32 %v2364_v52, %v2363_v39 }
 0x118   : > { %v2650_v20 = vsel %vm7321_vm14, %v2611_v42, %v2153_v43  ;;  %v6053_v4 = vmul.u32.u64.low 3817748708, %v5999_v8  ;;  %v6054_v31 = vmul.u32.u64.high 3817748708, %v5999_v8, %v6053_v4  ;;  %v2367_v58 = vrot.slane %v2100_v48, 6  ;;  %vm7322_vm13 = vmmov %vm7321_vm14 }
 0x119   : > { %v2368_v0 = vrot.slane %v2103_v36, 7  ;;  %v925_v32 = vsub.s32 %v5911_v18, %v924_v25  ;;  %v2648_v13 = vsel %vm7322_vm13, %v2609_v16, %v2151_v44  ;;  %vm7323_vm7 = vsmask.f32 2304  ;;  %v2412_v16 = vpop.permute.xlu0 %2411  ;;  %2245 = vrot.lane.b32.xlu0 %v5826_v60, %s4392_s10 }
 0x11a   : > { %v2098_v43 = vsel %vm7323_vm7, %v5943_v14, %v6035_v59  ;;  %v2211_v30 = vrot.slane %v6009_v21, 6  ;;  %vm7324_vm0 = vcmask 1040384   ;;  %vm7325_vm9 = vcmask 60416   ;;  %v2414_v14 = vpop.permute.xlu1 %2413 }
 0x11b   : > { %v6074_v42 = vsel %vm7324_vm0, %v2466_v12, %v2468_v3  ;;  %1490 = vst.msk [vmem:[#allocation2 + $0x80] sm:$0xf] %vm7325_vm9, %v4015_v5  ;;  %vm1023_vm14 = vcmp.ne.s32.totalorder %v925_v32, 0  ;;  %vm1059_vm13 = vcmp.lt.s32.totalorder %v925_v32, 0  ;;  %v1131_v18 = vadd.s32 18, %v925_v32  ;;  %2168 = vrot.lane.b32.xlu1 %v2098_v43, %s4397_s15 }
 0x11c   : > { %v6078_v29 = vadd.s32 248, %v4502_v2  ;;  %vm7326_vm8 = vcmask 326656   ;;  %vm7327_vm7 = vsmask.f32 7424  ;;  %v1759_v10 = vshrl.u32 %v5965_v11, 16  ;;  %vm1095_vm0 = vmand %vm1059_vm13, %vm1023_vm14 }
 0x11d   : > { %v2689_v44 = vsel %vm7326_vm8, %v2650_v20, %v2232_v22  ;;  %v6084_v39 = vsel %vm7327_vm7, %v5981_v27, %v6047_v40  ;;  %v934_v12 = vshrl.u32 %v6054_v31, 4  ;;  %vm7328_vm9 = vmmov %vm7326_vm8  ;;  %v6089_v56 = vor.u32 %v2368_v0, %v2367_v58  ;;  %v2491_v31 = vpop.permute.xlu0 %2490  ;;  %2295 = vrot.lane.b32.xlu0 %v6045_v37, %s4394_s12 }
 0x11e   : > { %v2687_v52 = vsel %vm7328_vm9, %v2648_v13, %v2230_v61  ;;  %vm7329_vm10 = vsmask.f32 1280  ;;  %v1167_v22 = vsel %vm1095_vm0, %v1131_v18, %v925_v32  ;;  %vm7330_vm8 = vcmask 392192  }
 0x11f   : > { %v6093_v25 = vsel %vm7329_vm10, %v5840_v19, %v2365_v57  ;;  %v2728_v20 = vsel %vm7330_vm8, %v2689_v44, %v2282_v49  ;;  %vm7331_vm7 = vcmask 1041408   ;;  %v935_v61 = vmul.u32 18, %v934_v12  ;;  %vm7334_vm10 = vmmov %vm7330_vm8  ;;  %2247 = vrot.lane.b32.xlu1 %v6045_v37, %s4392_s10 }
 0x120   : > { %v6102_v27 = vsel %vm7331_vm7, %v2209_v34, %v2211_v30  ;;  %vm6104_vm14 = vcmp.lt.s32.totalorder %v1167_v22, 16  ;;  %v7332_v5 = vmov 0  ;;  %v2726_v19 = vsel %vm7334_vm10, %v2687_v52, %v2280_v24  ;;  %v6118_v34 = vpop.permute.xlu1 %1804 }
 0x121   : > { %v7333_v5 = vsel %vm6104_vm14, 4294967295, %v7332_v5  ;;  %v1311_v32 = vsel %vm6104_vm14, %v554_v51, 0.0  ;;  %v6114_v49 = vmul.u32.u64.low 3817748708, %v6078_v29  ;;  %v6115_v26 = vmul.u32.u64.high 3817748708, %v6078_v29, %v6114_v49  ;;  %2427 = vrot.lane.b32.xlu0 %v6093_v25, %s4398_s16 }
 0x122   : > { %vm7335_vm13 = vcmask 457728   ;;  %v936_v58 = vsub.s32 %v5999_v8, %v935_v61  ;;  %v4016_v0 = vpack.c.bf16 %v1311_v32, %v1311_v32  ;;  %v6122_v24 = vadd.s32 256, %v4502_v2  ;;  %v1529_v13 = vld [vmem:[#allocation2 + $0x80] sm:$0xf]  ;;  %v2493_v61 = vpop.permute.xlu0 %2492 }
 0x123   : > { %v2765_v4 = vsel %vm7335_vm13, %v2726_v19, %v2412_v16  ;;  %vm7336_vm0 = vcmask 523264   ;;  %vm7337_vm9 = vsmask.f32 1280  ;;  %v2102_v43 = vrot.slane %v2100_v48, 5  ;;  %vm7339_vm8 = vmmov %vm7335_vm13  ;;  %2297 = vrot.lane.b32.xlu1 %v6102_v27, %s4394_s12 }
 0x124   : > { %v2804_v55 = vsel %vm7336_vm0, %v2765_v4, %v2491_v31  ;;  %v2370_v51 = vsel %vm7337_vm9, %v2365_v57, %v6089_v56  ;;  %v7338_v18 = vunpack.c.h.bf16 %v5889_v6  ;;  %v2767_v16 = vsel %vm7339_vm8, %v2728_v20, %v2414_v14  ;;  %v6139_v57 = vld [vmem:[%s4522_s28 + $0x80] sm:$0xff]   ;;  %v1807_v20 = vpop.permute.xlu1 %1806 }
 0x125   : > { %v2868_v8 = vshrl.u32 %v2804_v55, 16  ;;  %v2871_v12 = vshll.u32 %v2804_v55, 16  ;;  %vm1024_vm7 = vcmp.ne.s32.totalorder %v936_v58, 0  ;;  %vm7340_vm10 = vcmask 60416   ;;  %2506 = vrot.lane.b32.xlu0 %v6074_v42, %s4395_s13 }
 0x126   : > { %v477_v44 = vmul.f32 %v5924_v17, %v7338_v18  ;;  %1491 = vst.msk [vmem:[#allocation2 + $0x84] sm:$0xf] %vm7340_vm10, %v4016_v0  ;;  %v6142_v48 = vcombine.low %v6002_v35, %v1529_v13  ;;  %vm1060_vm13 = vcmp.lt.s32.totalorder %v936_v58, 0  ;;  %v1132_v6 = vadd.s32 18, %v936_v58 }
 0x127   : > { %v945_v14 = vshrl.u32 %v6115_v26, 4  ;;  %v2870_v52 = vrot.slane %v2868_v8, 2  ;;  %v2873_v22 = vrot.slane %v2871_v12, 3  ;;  %vm1096_vm0 = vmand %vm1060_vm13, %vm1024_vm7  ;;  %vm7341_vm9 = vcmask 523264   ;;  %2429 = vrot.lane.b32.xlu1 %v2370_v51, %s4398_s16 }
 0x128   : > { %v6146_v19 = vmul.u32.u64.low 3817748708, %v6122_v24  ;;  %v6147_v60 = vmul.u32.u64.high 3817748708, %v6122_v24, %v6146_v19  ;;  %v2806_v32 = vsel %vm7341_vm9, %v2767_v16, %v2493_v61  ;;  %v1168_v49 = vsel %vm1096_vm0, %v1132_v6, %v936_v58 }
 0x129   : > { %v946_v4 = vmul.u32 18, %v945_v14  ;;  %v4125_v35 = vunpack.c.l.bf16 %v6139_v57  ;;  %v2874_v31 = vor.u32 %v2873_v22, %v2870_v52  ;;  %v2876_v0 = vshrl.u32 %v2806_v32, 16  ;;  %v1886_v14 = vpop.permute.xlu1 %1885  ;;  %v1884_v52 = vpop.permute.xlu0 %1883 }
 0x12a   : > { %v2879_v55 = vshll.u32 %v2806_v32, 16  ;;  %v2105_v26 = vrot.slane %v2103_v36, 6  ;;  %v1763_v18 = vshll.u32 %v6142_v48, 16  ;;  %vm6158_vm8 = vcmp.lt.s32.totalorder %v1168_v49, 16 }
 0x12b   : > { %v7342_v16 = vmov 0  ;;  %v520_v58 = vadd.f32 %v5948_v46, %v477_v44  ;;  %v947_v8 = vsub.s32 %v6078_v29, %v946_v4  ;;  %v2878_v12 = vrot.slane %v2876_v0, 2  ;;  %1820 = vrot.lane.b32.xlu1 %v6084_v39, %s4393_s11 }
 0x12c   : > { %v7343_v16 = vsel %vm6158_vm8, 4294967295, %v7342_v16  ;;  %v2881_v6 = vrot.slane %v2879_v55, 3  ;;  %vm7344_vm7 = vsmask.f32 5376  ;;  %v1761_v36 = vor.u32 %v1759_v10, %v6047_v40 }
 0x12d   : > { %v2875_v37 = vsel %vm7344_vm7, %v5927_v47, %v2874_v31  ;;  %vm7345_vm10 = vcmask 588800   ;;  %v2470_v22 = vrot.slane %v6009_v21, 7  ;;  %v1312_v29 = vsel %vm6158_vm8, %v555_v53, 0.0  ;;  %v1530_v44 = vld [vmem:[#allocation2 + $0x84] sm:$0xf]  ;;  %v1939_v4 = vpop.permute.xlu1 %1938 }
 0x12e   : > { %4185 = vmatprep.mubr.msk.bf16.mxu0 %vm7345_vm10, %v2875_v37  ;;  %vm1025_vm13 = vcmp.ne.s32.totalorder %v947_v8, 0  ;;  %v478_v61 = vmul.f32 %v5924_v17, %v4125_v35  ;;  %v6176_v19 = vor.u32 %v2881_v6, %v2878_v12  ;;  %v4017_v47 = vpack.c.bf16 %v1312_v29, %v1312_v29  ;;  %v1937_v35 = vpop.permute.xlu0 %1936 }
 0x12f   : > { %v6181_v40 = vcombine.low %v1529_v13, %v1530_v44  ;;  %vm1061_vm0 = vcmp.lt.s32.totalorder %v947_v8, 0  ;;  %v1765_v10 = vrot.slane %v1763_v18, 1  ;;  %v6183_v23 = vor.u32 %v2105_v26, %v2102_v43 }
 0x130   : > { %v556_v32 = vmax.f32 %v520_v58, 0.0  ;;  %vm6185_vm9 = vmand %vm1061_vm0, %vm1025_vm13  ;;  %v1133_v49 = vadd.s32 18, %v947_v8  ;;  %v2883_v51 = vsel %vm7344_vm7, %v2874_v31, %v6176_v19  ;;  %vm7348_vm10 = vcmask 60416  }
 0x131   : > { %1492 = vst.msk [vmem:[#allocation2 + $0x88] sm:$0xf] %vm7348_vm10, %v4017_v47  ;;  %v956_v25 = vshrl.u32 %v6147_v60, 4  ;;  %vm7349_vm14 = vcmask 588800   ;;  %vm7350_vm13 = vcmask 1040384   ;;  %v1865_v43 = vrot.slane %v6142_v48, 1  ;;  %v2157_v18 = vpop.permute.xlu1 %2156 }
 0x132   : > { %4186 = vmatmul.mubr.msk.bf16.gmra.mxu0 %vm7349_vm14, %v2883_v51  ;;  %v2471_v13 = vsel %vm7350_vm13, %v2468_v3, %v2470_v22  ;;  %v1169_v0 = vsel %vm6185_vm9, %v1133_v49, %v947_v8  ;;  %v521_v55 = vadd.f32 %v5948_v46, %v478_v61  ;;  %vm7351_vm0 = vcmask 64512   ;;  %v2155_v58 = vpop.permute.xlu0 %2154 }
 0x133   : > { %v2537_v31 = vsel %vm7351_vm0, %v4951_v50, %v1807_v20  ;;  %v2109_v38 = vshrl.u32 %v6181_v40, 16  ;;  %v2112_v3 = vshll.u32 %v6181_v40, 16  ;;  %vm6211_vm14 = vcmp.lt.s32.totalorder %v1169_v0, 16  ;;  %vm7356_vm10 = vmmov %vm7351_vm0  ;;  %2508 = vrot.lane.b32.xlu0 %v2471_v13, %s4395_s13 }
 0x134   : > { %v7352_v60 = vmov 0  ;;  %vm7354_vm9 = vsmask.f32 7424  ;;  %vm7355_vm7 = vsmask.f32 2304  ;;  %v1313_v39 = vsel %vm6211_vm14, %v556_v32, 0.0 }
 0x135   : > { %v7353_v60 = vsel %vm6211_vm14, 4294967295, %v7352_v60  ;;  %v1766_v26 = vsel %vm7354_vm9, %v1761_v36, %v1765_v10  ;;  %v6219_v50 = vsel %vm7355_vm7, %v6035_v59, %v6183_v23  ;;  %v1767_v42 = vshrl.u32 %v6142_v48, 16  ;;  %v2236_v0 = vpop.permute.xlu1 %2235 }
 0x136   : > { %v2535_v20 = vsel %vm7356_vm10, %v4905_v28, %v6118_v34  ;;  %v4018_v8 = vpack.c.bf16 %v1313_v39, %v1313_v39  ;;  %v957_v12 = vmul.u32 18, %v956_v25  ;;  %v4126_v6 = vunpack.c.h.bf16 %v6139_v57  ;;  %1822 = vrot.lane.b32.xlu1 %v1766_v26, %s4393_s11 }
 0x137   : > { %vm7357_vm13 = vcmask 130048   ;;  %v7358_v59 = vrot.slane %v5965_v11, 1  ;;  %vm7359_vm0 = vcmask 1046528   ;;  %v2213_v29 = vrot.slane %v6181_v40, 6  ;;  %1899 = vrot.lane.b32.xlu0 %v6033_v7, %s4391_s9 }
 0x138   : > { %v2576_v37 = vsel %vm7357_vm13, %v2537_v31, %v1886_v14  ;;  %v557_v61 = vmax.f32 %v521_v55, 0.0  ;;  %v2111_v28 = vrot.slane %v2109_v38, 5  ;;  %v2114_v34 = vrot.slane %v2112_v3, 6  ;;  %v4147_v14 = vld [vmem:[%s4522_s28 + $0x88] sm:$0xff]   ;;  %vm7361_vm7 = vmmov %vm7357_vm13  ;;  %v2234_v55 = vpop.permute.xlu0 %2233 }
 0x139   : > { %v1866_v36 = vsel %vm7359_vm0, %v7358_v59, %v1865_v43  ;;  %vm7360_vm9 = vcmask 60416   ;;  %v2472_v47 = vrot.slane %v6181_v40, 7  ;;  %v958_v57 = vsub.s32 %v6122_v24, %v957_v12  ;;  %v1531_v53 = vld [vmem:[#allocation2 + $0x88] sm:$0xf] }
 0x13a   : > { %1493 = vst.msk [vmem:[#allocation2 + $0x8c] sm:$0xf] %vm7360_vm9, %v4018_v8  ;;  %v2574_v32 = vsel %vm7361_vm7, %v2535_v20, %v1884_v52  ;;  %v2371_v49 = vrot.slane %v2109_v38, 6  ;;  %v2372_v51 = vrot.slane %v2112_v3, 7  ;;  %v6240_v25 = vor.u32 %v1767_v42, %v1765_v10  ;;  %1901 = vrot.lane.b32.xlu1 %v1866_v36, %s4391_s9  ;;  %v2286_v20 = vpop.permute.xlu1 %2285 }
 0x13b   : > { %v6242_v31 = vcombine.low %v1530_v44, %v1531_v53  ;;  %vm1026_vm10 = vcmp.ne.s32.totalorder %v958_v57, 0  ;;  %vm1062_vm13 = vcmp.lt.s32.totalorder %v958_v57, 0  ;;  %v1134_v13 = vadd.s32 18, %v958_v57  ;;  %1952 = vrot.lane.b32.xlu0 %v1866_v36, %s4396_s14 }
 0x13c   : > { %vm7362_vm0 = vcmask 195584   ;;  %vm7364_vm7 = vcmask 1041408   ;;  %vm1098_vm14 = vmand %vm1062_vm13, %vm1026_vm10  ;;  %v4129_v52 = vunpack.c.l.bf16 %v4147_v14  ;;  %v6257_v10 = vor.u32 %v2114_v34, %v2111_v28  ;;  %v2284_v8 = vpop.permute.xlu0 %2283 }
 0x13d   : > { %v2615_v26 = vsel %vm7362_vm0, %v2576_v37, %v1939_v4  ;;  %vm7363_vm9 = vmmov %vm7362_vm0  ;;  %v6251_v24 = vsel %vm7364_vm7, %v2211_v30, %v2213_v29  ;;  %v1867_v44 = vrot.slane %v6242_v31, 1  ;;  %vm7365_vm0 = vcmask 1040384  }
 0x13e   : > { %v2613_v39 = vsel %vm7363_vm9, %v2574_v32, %v1937_v35  ;;  %v6264_v4 = vsel %vm7365_vm0, %v2470_v22, %v2472_v47  ;;  %v1170_v30 = vsel %vm1098_vm14, %v1134_v13, %v958_v57  ;;  %v7366_v35 = vmov 0  ;;  %v2418_v32 = vpop.permute.xlu1 %2417 }
 0x13f   : > { %vm6266_vm9 = vcmp.lt.s32.totalorder %v1170_v30, 16  ;;  %v4130_v38 = vunpack.c.h.bf16 %v4147_v14  ;;  %v6271_v3 = vadd.s32 264, %v4502_v2  ;;  %v6274_v7 = vadd.s32 272, %v4502_v2  ;;  %2170 = vrot.lane.b32.xlu0 %v6219_v50, %s4397_s15 }
 0x140   : > { %v7367_v35 = vsel %vm6266_vm9, 4294967295, %v7366_v35  ;;  %vm7368_vm10 = vcmask 261120   ;;  %vm7369_vm13 = vcmask 1046528   ;;  %v6282_v22 = vor.u32 %v2372_v51, %v2371_v49  ;;  %v2416_v36 = vpop.permute.xlu0 %2415 }
 0x141   : > { %v2654_v42 = vsel %vm7368_vm10, %v2615_v26, %v2157_v18  ;;  %v6280_v21 = vsel %vm7369_vm13, %v1865_v43, %v1867_v44  ;;  %v1314_v12 = vsel %vm6266_vm9, %v557_v61, 0.0  ;;  %vm7370_vm14 = vmmov %vm7368_vm10  ;;  %v1532_v59 = vld [vmem:[#allocation2 + $0x8c] sm:$0xf]  ;;  %v479_v34 = vmul.f32 %v5924_v17, %v4126_v6 }
 0x142   : > { %v2652_v37 = vsel %vm7370_vm14, %v2613_v39, %v2155_v58  ;;  %v4019_v28 = vpack.c.bf16 %v1314_v12, %v1314_v12  ;;  %v6289_v18 = vadd.s32 280, %v4502_v2  ;;  %1954 = vrot.lane.b32.xlu1 %v6280_v21, %s4396_s14  ;;  %vm7371_vm7 = vsmask.f32 2304 }
 0x143   : > { %v2116_v43 = vsel %vm7371_vm7, %v6183_v23, %v6257_v10  ;;  %v6297_v57 = vcombine.low %v1531_v53, %v1532_v59  ;;  %v480_v58 = vmul.f32 %v5924_v17, %v4129_v52  ;;  %vm7372_vm0 = vcmask 60416   ;;  %2249 = vrot.lane.b32.xlu0 %v6102_v27, %s4392_s10 }
 0x144   : > { %1494 = vst.msk [vmem:[#allocation2 + $0x90] sm:$0xf] %vm7372_vm0, %v4019_v28  ;;  %v6302_v6 = vmul.u32.u64.low 3817748708, %v6271_v3  ;;  %v6303_v61 = vmul.u32.u64.high 3817748708, %v6271_v3, %v6302_v6  ;;  %v6306_v2 = vmul.u32.u64.low 3817748708, %v6274_v7  ;;  %v6307_v14 = vmul.u32.u64.high 3817748708, %v6274_v7, %v6306_v2  ;;  %v2495_v50 = vpop.permute.xlu0 %2494 }
 0x145   : > { %v2118_v49 = vshrl.u32 %v6297_v57, 16  ;;  %v2121_v23 = vshll.u32 %v6297_v57, 16  ;;  %vm7373_vm10 = vsmask.f32 1280  ;;  %v481_v51 = vmul.f32 %v5924_v17, %v4130_v38 }
 0x146   : > { %v6314_v53 = vsel %vm7373_vm10, %v6089_v56, %v6282_v22  ;;  %vm7374_vm13 = vcmask 326656   ;;  %v6319_v26 = vadd.f32 %v5948_v46, %v479_v34  ;;  %vm7376_vm7 = vcmask 392192   ;;  %2172 = vrot.lane.b32.xlu1 %v2116_v43, %s4397_s15 }
 0x147   : > { %v2691_v13 = vsel %vm7374_vm13, %v2652_v37, %v2234_v55  ;;  %v6322_v39 = vmul.u32.u64.low 3817748708, %v6289_v18  ;;  %v6323_v52 = vmul.u32.u64.high 3817748708, %v6289_v18, %v6322_v39  ;;  %vm7375_vm14 = vmmov %vm7374_vm13  ;;  %v2215_v17 = vrot.slane %v6297_v57, 6  ;;  %v6341_v37 = vpop.permute.xlu1 %1808  ;;  %2299 = vrot.lane.b32.xlu0 %v6251_v24, %s4394_s12 }
 0x148   : > { %v2693_v30 = vsel %vm7375_vm14, %v2654_v42, %v2236_v0  ;;  %v2730_v12 = vsel %vm7376_vm7, %v2691_v13, %v2284_v8  ;;  %v6332_v56 = vadd.f32 %v5948_v46, %v480_v58  ;;  %v2375_v55 = vrot.slane %v2118_v49, 6  ;;  %vm7378_vm10 = vmmov %vm7376_vm7 }
 0x149   : > { %v2376_v38 = vrot.slane %v2121_v23, 7  ;;  %v967_v0 = vshrl.u32 %v6303_v61, 4  ;;  %v978_v42 = vshrl.u32 %v6307_v14, 4  ;;  %vm7377_vm0 = vcmask 457728  }
 0x14a   : > { %v2769_v8 = vsel %vm7377_vm0, %v2730_v12, %v2416_v36  ;;  %v1771_v28 = vshll.u32 %v6242_v31, 16  ;;  %v1775_v34 = vshrl.u32 %v6242_v31, 16  ;;  %v6346_v43 = vadd.f32 %v5948_v46, %v481_v51  ;;  %vm7380_vm14 = vmmov %vm7377_vm0  ;;  %2251 = vrot.lane.b32.xlu1 %v6251_v24, %s4392_s10 }
 0x14b   : > { %v2732_v58 = vsel %vm7378_vm10, %v2693_v30, %v2286_v20  ;;  %vm7379_vm13 = vcmask 523264   ;;  %v968_v2 = vmul.u32 18, %v967_v0  ;;  %v979_v61 = vmul.u32 18, %v978_v42  ;;  %v6355_v39 = vld [vmem:[#allocation2 + $0x90] sm:$0xf]  ;;  %v6371_v0 = vpop.permute.xlu1 %1810  ;;  %v2497_v42 = vpop.permute.xlu0 %2496  ;;  %2431 = vrot.lane.b32.xlu0 %v6314_v53, %s4398_s16 }
 0x14c   : > { %v2808_v6 = vsel %vm7379_vm13, %v2769_v8, %v2495_v50  ;;  %v2771_v14 = vsel %vm7380_vm14, %v2732_v58, %v2418_v32  ;;  %v989_v46 = vshrl.u32 %v6323_v52, 4  ;;  %vm7381_vm7 = vcmask 1041408   ;;  %vm7382_vm0 = vmmov %vm7379_vm13 }
 0x14d   : > { %v2884_v13 = vshrl.u32 %v2808_v6, 16  ;;  %v2887_v36 = vshll.u32 %v2808_v6, 16  ;;  %v6363_v20 = vsel %vm7381_vm7, %v2213_v29, %v2215_v17  ;;  %v6365_v32 = vor.u32 %v2376_v38, %v2375_v55 }
 0x14e   : > { %v6368_v51 = vcombine.low %v1532_v59, %v6355_v39  ;;  %v969_v30 = vsub.s32 %v6271_v3, %v968_v2  ;;  %v980_v52 = vsub.s32 %v6274_v7, %v979_v61  ;;  %v990_v8 = vmul.u32 18, %v989_v46  ;;  %2301 = vrot.lane.b32.xlu1 %v6363_v20, %s4394_s12 }
 0x14f   : > { %v2886_v12 = vrot.slane %v2884_v13, 2  ;;  %v2889_v27 = vrot.slane %v2887_v36, 3  ;;  %v2810_v50 = vsel %vm7382_vm0, %v2771_v14, %v2497_v42  ;;  %v1773_v58 = vrot.slane %v1771_v28, 1  ;;  %v6387_v61 = vpop.permute.xlu1 %1889  ;;  %v6389_v14 = vpop.permute.xlu0 %1887  ;;  %2510 = vrot.lane.b32.xlu0 %v6264_v4, %s4395_s13 }
 0x150   : > { %v558_v29 = vmax.f32 %v6319_v26, 0.0  ;;  %v559_v55 = vmax.f32 %v6332_v56, 0.0  ;;  %v2892_v59 = vshrl.u32 %v2810_v50, 16  ;;  %v2895_v6 = vshll.u32 %v2810_v50, 16 }
 0x151   : > { %v2890_v38 = vor.u32 %v2889_v27, %v2886_v12  ;;  %v991_v3 = vsub.s32 %v6289_v18, %v990_v8  ;;  %vm7383_vm10 = vsmask.f32 1280  ;;  %v1779_v28 = vshll.u32 %v6368_v51, 16 }
 0x152   : > { %v2378_v7 = vsel %vm7383_vm10, %v6282_v22, %v6365_v32  ;;  %v560_v26 = vmax.f32 %v6346_v43, 0.0  ;;  %v2894_v56 = vrot.slane %v2892_v59, 2  ;;  %v2897_v2 = vrot.slane %v2895_v6, 3 }
 0x153   : > { %vm7384_vm14 = vsmask.f32 5376  ;;  %vm7385_vm0 = vcmask 588800   ;;  %vm7386_vm9 = vsmask.f32 7424  ;;  %v2474_v18 = vrot.slane %v6297_v57, 7  ;;  %2433 = vrot.lane.b32.xlu1 %v2378_v7, %s4398_s16  ;;  %v1943_v42 = vpop.permute.xlu1 %1942  ;;  %v1941_v53 = vpop.permute.xlu0 %1940 }
 0x154   : > { %v2891_v24 = vsel %vm7384_vm14, %v6176_v19, %v2890_v38  ;;  %v1774_v22 = vsel %vm7386_vm9, %v6240_v25, %v1773_v58  ;;  %vm1063_vm8 = vcmp.lt.s32.totalorder %v969_v30, 0  ;;  %v6397_v43 = vor.u32 %v2897_v2, %v2894_v56 }
 0x155   : > { %4189 = vmatprep.mubr.msk.bf16.mxu0 %vm7385_vm0, %v2891_v24  ;;  %vm1064_vm13 = vcmp.lt.s32.totalorder %v980_v52, 0  ;;  %vm1065_vm1 = vcmp.lt.s32.totalorder %v991_v3, 0  ;;  %vm7387_vm14 = vcmp.ne.s32.totalorder %v969_v30, 0  ;;  %v1135_v13 = vadd.s32 18, %v969_v30 }
 0x156   : > { %vm6403_vm7 = vmand %vm1063_vm8, %vm7387_vm14  ;;  %v1777_v25 = vor.u32 %v1775_v34, %v1773_v58  ;;  %v6407_v36 = vrot.slane %v1779_v28, 1  ;;  %vm7390_vm9 = vcmp.ne.s32.totalorder %v980_v52, 0  ;;  %v1136_v12 = vadd.s32 18, %v980_v52 }
 0x157   : > { %vm6410_vm0 = vmand %vm1064_vm13, %vm7390_vm9  ;;  %v1137_v27 = vadd.s32 18, %v991_v3  ;;  %vm7393_vm10 = vsmask.f32 5376  ;;  %vm7394_vm8 = vcmp.ne.s32.totalorder %v991_v3, 0  ;;  %v1171_v50 = vsel %vm6403_vm7, %v1135_v13, %v969_v30  ;;  %1824 = vrot.lane.b32.xlu1 %v1774_v22, %s4393_s11  ;;  %v2161_v7 = vpop.permute.xlu1 %2160  ;;  %v2159_v28 = vpop.permute.xlu0 %2158 }
 0x158   : > { %v2899_v8 = vsel %vm7393_vm10, %v2890_v38, %v6397_v43  ;;  %vm1101_vm14 = vmand %vm1065_vm1, %vm7394_vm8  ;;  %vm7395_vm2 = vcmask 588800   ;;  %vm7396_vm13 = vcmask 1040384   ;;  %v1172_v58 = vsel %vm6410_vm0, %v1136_v12, %v980_v52 }
 0x159   : > { %4190 = vmatmul.mubr.msk.bf16.gmra.mxu0 %vm7395_vm2, %v2899_v8  ;;  %v2475_v34 = vsel %vm7396_vm13, %v2472_v47, %v2474_v18  ;;  %v1173_v59 = vsel %vm1101_vm14, %v1137_v27, %v991_v3  ;;  %v6431_v38 = vrot.slane %v6368_v51, 1  ;;  %vm6433_vm1 = vcmp.lt.s32.totalorder %v1171_v50, 16 }
 0x15a   : > { %v7397_v30 = vmov 0  ;;  %vm6437_vm2 = vcmp.lt.s32.totalorder %v1172_v58, 16  ;;  %v7399_v40 = vmov 0  ;;  %vm6441_vm7 = vcmp.lt.s32.totalorder %v1173_v59, 16  ;;  %2512 = vrot.lane.b32.xlu0 %v2475_v34, %s4395_s13 }
 0x15b   : > { %v7398_v30 = vsel %vm6433_vm1, 4294967295, %v7397_v30  ;;  %v7400_v40 = vsel %vm6437_vm2, 4294967295, %v7399_v40  ;;  %v7401_v47 = vmov 0  ;;  %vm7403_vm10 = vsmask.f32 7424  ;;  %v2240_v22 = vpop.permute.xlu1 %2239  ;;  %v2238_v19 = vpop.permute.xlu0 %2237 }
 0x15c   : > { %v7402_v47 = vsel %vm6441_vm7, 4294967295, %v7401_v47  ;;  %v1782_v52 = vsel %vm7403_vm10, %v1777_v25, %v6407_v36  ;;  %v1315_v4 = vsel %vm6433_vm1, %v558_v29, 0.0  ;;  %v1316_v6 = vsel %vm6437_vm2, %v559_v55, 0.0 }
 0x15d   : > { %v1317_v3 = vsel %vm6441_vm7, %v560_v26, 0.0  ;;  %v4020_v56 = vpack.c.bf16 %v1315_v4, %v1315_v4  ;;  %v4021_v2 = vpack.c.bf16 %v1316_v6, %v1316_v6  ;;  %1826 = vrot.lane.b32.xlu1 %v1782_v52, %s4393_s11  ;;  %vm7404_vm9 = vcmask 60416  }
 0x15e   : > { %v4022_v24 = vpack.c.bf16 %v1317_v3, %v1317_v3  ;;  %vm7405_vm0 = vmmov %vm7404_vm9  ;;  %vm7407_vm14 = vcmask 1046528   ;;  %v2120_v55 = vrot.slane %v2118_v49, 5  ;;  %v2123_v26 = vrot.slane %v2121_v23, 6  ;;  %1903 = vrot.lane.b32.xlu0 %v6280_v21, %s4391_s9 }
 0x15f   : > { %1495 = vst.msk [vmem:[#allocation2 + $0x94] sm:$0xf] %vm7404_vm9, %v4020_v56  ;;  %vm7406_vm8 = vmmov %vm7405_vm0  ;;  %v1870_v29 = vsel %vm7407_vm14, %v1867_v44, %v6431_v38  ;;  %vm7408_vm13 = vcmask 64512   ;;  %v2290_v46 = vpop.permute.xlu1 %2289  ;;  %v2288_v44 = vpop.permute.xlu0 %2287  ;;  %vm7410_vm9 = vcmask 130048   ;;  %vm7452_vm1 = vcmask 326656  }
 0x160   : > { %1496 = vst.msk [vmem:[#allocation2 + $0x98] sm:$0xf] %vm7405_vm0, %v4021_v2  ;;  %v2541_v13 = vsel %vm7408_vm13, %v5155_v15, %v6371_v0  ;;  %v2124_v25 = vor.u32 %v2123_v26, %v2120_v55  ;;  %vm7409_vm10 = vmmov %vm7408_vm13  ;;  %vm7414_vm13 = vsmask.f32 2304  ;;  %vm7475_vm7 = vcmask 392192  }
 0x161   : > { %1497 = vst.msk [vmem:[#allocation2 + $0x9c] sm:$0xf] %vm7406_vm8, %v4022_v24  ;;  %1905 = vrot.lane.b32.xlu1 %v1870_v29, %s4391_s9  ;;  %v2539_v49 = vsel %vm7409_vm10, %v5071_v63, %v6341_v37  ;;  %v2580_v8 = vsel %vm7410_vm9, %v2541_v13, %v6387_v61  ;;  %vm7411_vm0 = vmmov %vm7410_vm9  ;;  %vm7412_vm8 = vcmask 195584   ;;  %vm7415_vm10 = vcmask 261120  }
 0x162   : > { %v2578_v21 = vsel %vm7411_vm0, %v2539_v49, %v6389_v14  ;;  %1956 = vrot.lane.b32.xlu0 %v1870_v29, %s4396_s14  ;;  %v2619_v63 = vsel %vm7412_vm8, %v2580_v8, %v1943_v42  ;;  %vm7413_vm14 = vmmov %vm7412_vm8  ;;  %v2125_v50 = vsel %vm7414_vm13, %v6257_v10, %v2124_v25  ;;  %vm7417_vm0 = vcmask 326656  }
 0x163   : > { %v2617_v37 = vsel %vm7413_vm14, %v2578_v21, %v1941_v53  ;;  %v2422_v14 = vpop.permute.xlu1 %2421  ;;  %v2420_v58 = vpop.permute.xlu0 %2419  ;;  %v2658_v52 = vsel %vm7415_vm10, %v2619_v63, %v2161_v7  ;;  %vm7416_vm9 = vmmov %vm7415_vm10  ;;  %vm7418_vm8 = vcmask 1046528   ;;  %vm7419_vm14 = vcmask 392192  }
 0x164   : > { %v2656_v42 = vsel %vm7416_vm9, %v2617_v37, %v2159_v28  ;;  %vm7420_vm13 = vcmask 457728   ;;  %vm7421_vm10 = vmmov %vm7417_vm0  ;;  %vm7422_vm9 = vcmask 523264  }
 0x165   : > { %v2695_v53 = vsel %vm7417_vm0, %v2656_v42, %v2238_v19  ;;  %v2697_v13 = vsel %vm7421_vm10, %v2658_v52, %v2240_v22  ;;  %vm7423_vm0 = vmmov %vm7419_vm14 }
 0x166   : > { %v6475_v12 = vld [vmem:[#allocation2 + $0x94] sm:$0xf]  ;;  %2174 = vrot.lane.b32.xlu0 %v2125_v50, %s4397_s15  ;;  %v2734_v3 = vsel %vm7419_vm14, %v2695_v53, %v2288_v44  ;;  %v2736_v49 = vsel %vm7423_vm0, %v2697_v13, %v2290_v46  ;;  %vm7425_vm14 = vmmov %vm7420_vm13  ;;  %v1783_v53 = vshrl.u32 %v6368_v51, 16  ;;  %vm7429_vm0 = vsmask.f32 1280 }
 0x167   : > { %v1538_v23 = vld [vmem:[#allocation2 + $0x98] sm:$0xf]  ;;  %v6486_v0 = vcombine.low %v6355_v39, %v6475_v12  ;;  %v2773_v28 = vsel %vm7420_vm13, %v2734_v3, %v2420_v58  ;;  %v6513_v29 = vpop.permute.xlu1 %1812  ;;  %v2499_v55 = vpop.permute.xlu0 %2498  ;;  %vm7426_vm13 = vcmask 1041408   ;;  %v6532_v37 = vld [vmem:[#allocation2 + $0x94] ss:$0 sps:$4 sm:$0x77]   ;;  %vm7427_vm10 = vmmov %vm7422_vm9 }
 0x168   : > { %v6477_v27 = vld [vmem:[#allocation2 + $0x9c] sm:$0xf]  ;;  %v3901_v15 = vcombine.low %v6475_v12, %v1538_v23  ;;  %v2812_v44 = vsel %vm7422_vm9, %v2773_v28, %v2499_v55  ;;  %vm7428_vm9 = vmmov %vm7426_vm13  ;;  %v1791_v57 = vshrl.u32 %v6532_v37, 16 }
 0x169   : > { %v6496_v61 = vcombine.low %v1538_v23, %v6477_v27  ;;  %v2127_v59 = vshrl.u32 %v6486_v0, 16  ;;  %v2130_v39 = vshll.u32 %v6486_v0, 16  ;;  %v2217_v56 = vrot.slane %v6486_v0, 6 }
 0x16a   : > { %v6493_v34 = vrot.slane %v3901_v15, 1  ;;  %v2900_v8 = vshrl.u32 %v2812_v44, 16  ;;  %v2903_v21 = vshll.u32 %v2812_v44, 16  ;;  %2253 = vrot.lane.b32.xlu0 %v6363_v20, %s4392_s10  ;;  %v2775_v15 = vsel %vm7425_vm14, %v2736_v49, %v2422_v14 }
 0x16b   : > { %v2129_v4 = vrot.slane %v2127_v59, 5  ;;  %v2132_v6 = vrot.slane %v2130_v39, 6  ;;  %v2379_v2 = vrot.slane %v2127_v59, 6  ;;  %v2380_v7 = vrot.slane %v2130_v39, 7  ;;  %v6534_v58 = vpop.permute.xlu1 %1814  ;;  %v2501_v59 = vpop.permute.xlu0 %2500 }
 0x16c   : > { %v1923_v10 = vsel %vm7418_vm8, %v6431_v38, %v6493_v34  ;;  %v2136_v26 = vshrl.u32 %v6496_v61, 16  ;;  %v2139_v19 = vshll.u32 %v6496_v61, 16  ;;  %vm7424_vm8 = vsmask.f32 2304 }
 0x16d   : > { %1958 = vrot.lane.b32.xlu1 %v1923_v10, %s4396_s14  ;;  %v6511_v24 = vor.u32 %v2132_v6, %v2129_v4  ;;  %v2218_v22 = vsel %vm7426_vm13, %v2215_v17, %v2217_v56  ;;  %v6530_v63 = vrot.slane %v6496_v61, 6  ;;  %v2381_v46 = vor.u32 %v2380_v7, %v2379_v2 }
 0x16e   : > { %v2905_v50 = vrot.slane %v2903_v21, 3  ;;  %v2383_v20 = vrot.slane %v2136_v26, 6  ;;  %v2384_v14 = vrot.slane %v2139_v19, 7  ;;  %v2814_v39 = vsel %vm7427_vm10, %v2775_v15, %v2501_v59  ;;  %2303 = vrot.lane.b32.xlu0 %v2218_v22, %s4394_s12  ;;  %vm7433_vm10 = vmmov %vm7429_vm0 }
 0x16f   : > { %v2134_v23 = vsel %vm7424_vm8, %v2124_v25, %v6511_v24  ;;  %v2902_v25 = vrot.slane %v2900_v8, 2  ;;  %v2908_v52 = vshrl.u32 %v2814_v39, 16  ;;  %v2911_v42 = vshll.u32 %v2814_v39, 16  ;;  %v6552_v28 = vpop.permute.xlu1 %1893  ;;  %v1892_v55 = vpop.permute.xlu0 %1891 }
 0x170   : > { %v6546_v10 = vsel %vm7428_vm9, %v2217_v56, %v6530_v63  ;;  %v2382_v4 = vsel %vm7429_vm0, %v6365_v32, %v2381_v46  ;;  %v1787_v6 = vshll.u32 %v6532_v37, 16  ;;  %v2476_v3 = vrot.slane %v6486_v0, 7 }
 0x171   : > { %2176 = vrot.lane.b32.xlu1 %v2134_v23, %s4397_s15  ;;  %v2906_v17 = vor.u32 %v2905_v50, %v2902_v25  ;;  %v2910_v2 = vrot.slane %v2908_v52, 2  ;;  %v2913_v7 = vrot.slane %v2911_v42, 3  ;;  %v6554_v13 = vor.u32 %v2384_v14, %v2383_v20  ;;  %v6594_v42 = vld [vmem:[#allocation2 + $0xa0] sm:$0xff]  }
 0x172   : > { %vm7430_vm8 = vsmask.f32 5376  ;;  %vm7431_vm14 = vcmask 588800   ;;  %2435 = vrot.lane.b32.xlu0 %v2382_v4, %s4398_s16  ;;  %vm7432_vm13 = vcmask 1040384   ;;  %v2478_v0 = vrot.slane %v6496_v61, 7 }
 0x173   : > { %v2907_v44 = vsel %vm7430_vm8, %v6397_v43, %v2906_v17  ;;  %v6559_v56 = vor.u32 %v2913_v7, %v2910_v2  ;;  %v2477_v32 = vsel %vm7432_vm13, %v2474_v18, %v2476_v3  ;;  %v3899_v49 = vcombine.low %v6475_v12, %v6475_v12  ;;  %v1947_v23 = vpop.permute.xlu1 %1946  ;;  %v1945_v8 = vpop.permute.xlu0 %1944  ;;  %vm7434_vm9 = vmmov %vm7430_vm8  ;;  %v4359_v7 = vld [vmem:[#allocation2 + $0xa8] ss:$0 sps:$4 sm:$0x11]  }
 0x174   : > { %4193 = vmatprep.mubr.msk.bf16.mxu0 %vm7431_vm14, %v2907_v44  ;;  %v2386_v43 = vsel %vm7433_vm10, %v2381_v46, %v6554_v13  ;;  %v1785_v21 = vor.u32 %v1783_v53, %v6407_v36  ;;  %v1789_v15 = vrot.slane %v1787_v6, 1  ;;  %vm7435_vm0 = vmmov %vm7431_vm14  ;;  %v3902_v36 = vcombine.low %v6477_v27, %v6477_v27  ;;  %v7443_v44 = vld [vmem:[#allocation23_spill] sm:$0xff] }
 0x175   : > { %2255 = vrot.lane.b32.xlu1 %v2218_v22, %s4392_s10  ;;  %v2915_v22 = vsel %vm7434_vm9, %v2906_v17, %v6559_v56  ;;  %vm7436_vm8 = vmmov %vm7432_vm13  ;;  %v1871_v12 = vrot.slane %v3899_v49, 1  ;;  %vm7437_vm14 = vsmask.f32 7424  ;;  %vm7438_vm13 = vcmask 1046528  }
 0x176   : > { %4194 = vmatmul.mubr.msk.bf16.gmra.mxu0 %vm7435_vm0, %v2915_v22  ;;  %2514 = vrot.lane.b32.xlu0 %v2477_v32, %s4395_s13  ;;  %v2479_v18 = vsel %vm7436_vm8, %v2476_v3, %v2478_v0  ;;  %v1790_v46 = vsel %vm7437_vm14, %v1785_v21, %v1789_v15  ;;  %v1793_v59 = vor.u32 %v1791_v57, %v1789_v15  ;;  %v1924_v14 = vrot.slane %v3902_v36, 1  ;;  %vm7439_vm10 = vmmov %vm7438_vm13 }
 0x177   : > { %v2165_v25 = vpop.permute.xlu1 %2164  ;;  %v2163_v50 = vpop.permute.xlu0 %2162  ;;  %v1872_v20 = vsel %vm7438_vm13, %v6431_v38, %v1871_v12  ;;  %v2138_v39 = vrot.slane %v2136_v26, 5  ;;  %v2141_v17 = vrot.slane %v2139_v19, 6  ;;  %vm7440_vm9 = vcmask 64512  }
 0x178   : > { %v1925_v53 = vsel %vm7439_vm10, %v6493_v34, %v1924_v14  ;;  %v2543_v26 = vsel %vm7440_vm9, %v5266_v45, %v6513_v29  ;;  %v2388_v19 = vshrl.u32 %v6594_v42, 16  ;;  %v2391_v3 = vshll.u32 %v6594_v42, 16  ;;  %vm7444_vm14 = vmmov %vm7440_vm9 }
 0x179   : > { %2305 = vrot.lane.b32.xlu1 %v6546_v10, %s4394_s12  ;;  %v2142_v4 = vor.u32 %v2141_v17, %v2138_v39  ;;  %vm7441_vm0 = vcmask 130048   ;;  %vm7442_vm8 = vsmask.f32 2304  ;;  %v2545_v32 = vsel %vm7444_vm14, %v7443_v44, %v6534_v58 }
 0x17a   : > { %2516 = vrot.lane.b32.xlu0 %v2479_v18, %s4395_s13  ;;  %v2582_v2 = vsel %vm7441_vm0, %v2543_v26, %v1892_v55  ;;  %vm7445_vm13 = vcmask 195584   ;;  %vm7446_vm10 = vcmask 261120   ;;  %vm7447_vm9 = vcmask 326656  }
 0x17b   : > { %v2244_v27 = vpop.permute.xlu1 %2243  ;;  %v2242_v52 = vpop.permute.xlu0 %2241  ;;  %v2143_v34 = vsel %vm7442_vm8, %v6511_v24, %v2142_v4  ;;  %v2621_v45 = vsel %vm7445_vm13, %v2582_v2, %v1945_v8  ;;  %v2269_v55 = vrot.slane %v6594_v42, 6  ;;  %v2390_v22 = vrot.slane %v2388_v19, 6  ;;  %vm7449_vm14 = vmmov %vm7445_vm13 }
 0x17c   : > { %v2660_v21 = vsel %vm7446_vm10, %v2621_v45, %v2163_v50  ;;  %v2393_v24 = vrot.slane %v2391_v3, 7  ;;  %v2584_v57 = vsel %vm7441_vm0, %v2545_v32, %v6552_v28  ;;  %vm7448_vm8 = vcmask 392192  }
 0x17d   : > { %2437 = vrot.lane.b32.xlu1 %v2386_v43, %s4398_s16  ;;  %v4357_v43 = vld [vmem:[#allocation2 + $0xa0] ss:$0 sps:$4 sm:$0x11]   ;;  %v2699_v15 = vsel %vm7447_vm9, %v2660_v21, %v2242_v52  ;;  %v2397_v8 = vshrl.u32 %v4359_v7, 16  ;;  %v2400_v18 = vshll.u32 %v4359_v7, 16  ;;  %vm7450_vm13 = vcmask 457728   ;;  %vm7453_vm0 = vmmov %vm7448_vm8 }
 0x17e   : > { %1907 = vrot.lane.b32.xlu0 %v1872_v20, %s4391_s9  ;;  %vm7451_vm9 = vcmask 523264   ;;  %v2271_v17 = vrot.slane %v4359_v7, 6 }
 0x17f   : > { %v2294_v38 = vpop.permute.xlu1 %2293  ;;  %v2292_v6 = vpop.permute.xlu0 %2291  ;;  %v2399_v26 = vrot.slane %v2397_v8, 6 }
 0x180   : > { %v2738_v58 = vsel %vm7448_vm8, %v2699_v15, %v2292_v6  ;;  %vm7454_vm8 = vcmask 1041408  }
 0x181   : > { %1828 = vrot.lane.b32.xlu1 %v1790_v46, %s4393_s11  ;;  %v2270_v6 = vsel %vm7454_vm8, %v6530_v63, %v2269_v55 }
 0x182   : > { %1960 = vrot.lane.b32.xlu0 %v1925_v53, %s4396_s14 }
 0x183   : > { %v2426_v29 = vpop.permute.xlu1 %2425  ;;  %v2424_v49 = vpop.permute.xlu0 %2423 }
 0x184   : > { %v2777_v36 = vsel %vm7450_vm13, %v2738_v58, %v2424_v49 }
 0x185   : > { %1830 = vrot.lane.b32.xlu1 %v1793_v59, %s4393_s11  ;;  %v2221_v59 = vrot.slane %v4357_v43, 6 }
 0x186   : > { %2178 = vrot.lane.b32.xlu0 %v2143_v34, %s4397_s15 }
 0x187   : > { %v1817_v46 = vpop.permute.xlu1 %1816  ;;  %v2503_v50 = vpop.permute.xlu0 %2502 }
 0x188   : > { %v2816_v39 = vsel %vm7451_vm9, %v2777_v36, %v2503_v50 }
 0x189   : > { %1909 = vrot.lane.b32.xlu1 %v1871_v12, %s4391_s9  ;;  %v2623_v12 = vsel %vm7449_vm14, %v2584_v57, %v1947_v23  ;;  %v2916_v52 = vshrl.u32 %v2816_v39, 16  ;;  %v2919_v53 = vshll.u32 %v2816_v39, 16  ;;  %vm7455_vm14 = vmmov %vm7450_vm13 }
 0x18a   : > { %v2662_v20 = vsel %vm7446_vm10, %v2623_v12, %v2165_v25  ;;  %2257 = vrot.lane.b32.xlu0 %v6546_v10, %s4392_s10  ;;  %v2402_v25 = vrot.slane %v2400_v18, 7  ;;  %vm7457_vm13 = vmmov %vm7451_vm9  ;;  %vm7459_vm9 = vsmask.f32 1280 }
 0x18b   : > { %v2701_v28 = vsel %vm7452_vm1, %v2662_v20, %v2244_v27  ;;  %v2918_v3 = vrot.slane %v2916_v52, 2  ;;  %v2921_v2 = vrot.slane %v2919_v53, 3  ;;  %vm7456_vm1 = vmmov %vm7454_vm8  ;;  %v1819_v34 = vpop.permute.xlu1 %1818  ;;  %v2505_v7 = vpop.permute.xlu0 %2504  ;;  %vm7461_vm8 = vcmask 588800   ;;  %v7467_v20 = vld [vmem:[#allocation27_spill] sm:$0xff] }
 0x18c   : > { %v2740_v23 = vsel %vm7453_vm0, %v2701_v28, %v2294_v38  ;;  %v2222_v27 = vsel %vm7456_vm1, %v6530_v63, %v2221_v59  ;;  %vm7458_vm10 = vmmov %vm7456_vm1  ;;  %v2403_v15 = vor.u32 %v2402_v25, %v2399_v26  ;;  %vm7460_vm0 = vsmask.f32 5376 }
 0x18d   : > { %1962 = vrot.lane.b32.xlu1 %v1924_v14, %s4396_s14  ;;  %v2394_v14 = vor.u32 %v2393_v24, %v2390_v22  ;;  %v2779_v19 = vsel %vm7455_vm14, %v2740_v23, %v2426_v29  ;;  %v2922_v44 = vor.u32 %v2921_v2, %v2918_v3  ;;  %v2480_v29 = vrot.slane %v6594_v42, 7  ;;  %v4360_v24 = vld [vmem:[#allocation2 + $0xa8] ss:$0 sps:$4 sm:$0x33]   ;;  %vm7463_vm1 = vmmov %vm7459_vm9 }
 0x18e   : > { %v2818_v10 = vsel %vm7457_vm13, %v2779_v19, %v2505_v7  ;;  %2307 = vrot.lane.b32.xlu0 %v2270_v6, %s4394_s12  ;;  %vm7462_vm14 = vcmask 1040384   ;;  %v2482_v8 = vrot.slane %v4360_v24, 7  ;;  %vm7464_vm13 = vmmov %vm7460_vm0 }
 0x18f   : > { %v2924_v38 = vshrl.u32 %v2818_v10, 16  ;;  %v2927_v32 = vshll.u32 %v2818_v10, 16  ;;  %v2395_v45 = vsel %vm7459_vm9, %v6554_v13, %v2394_v14  ;;  %v1898_v43 = vpop.permute.xlu1 %1897  ;;  %v1896_v21 = vpop.permute.xlu0 %1895  ;;  %v2923_v22 = vsel %vm7460_vm0, %v6559_v56, %v2922_v44  ;;  %vm7466_vm9 = vmmov %vm7462_vm14 }
 0x190   : > { %4197 = vmatprep.mubr.msk.bf16.mxu0 %vm7461_vm8, %v2923_v22  ;;  %v2481_v13 = vsel %vm7462_vm14, %v2478_v0, %v2480_v29  ;;  %v2404_v42 = vsel %vm7463_vm1, %v2394_v14, %v2403_v15  ;;  %v2483_v56 = vsel %vm7466_vm9, %v2480_v29, %v2482_v8  ;;  %vm7468_vm0 = vcmask 64512  }
 0x191   : > { %2180 = vrot.lane.b32.xlu1 %v2142_v4, %s4397_s15  ;;  %v2272_v4 = vsel %vm7458_vm10, %v2269_v55, %v2271_v17  ;;  %v2926_v49 = vrot.slane %v2924_v38, 2  ;;  %v2929_v63 = vrot.slane %v2927_v32, 3  ;;  %vm7465_vm10 = vmmov %vm7461_vm8  ;;  %v2547_v39 = vsel %vm7468_vm0, %v7467_v20, %v1817_v46  ;;  %s321_s15 = scalar_lea.vmem %s7002_s6, %s7707_s21 }
 0x192   : > { %2439 = vrot.lane.b32.xlu0 %v2395_v45, %s4398_s16  ;;  %vm7469_vm8 = vcmask 130048   ;;  %vm7470_vm14 = vmmov %vm7468_vm0  ;;  %vm7471_vm1 = vcmask 195584   ;;  %vm7477_vm0 = vcmask 457728  }
 0x193   : > { %v2930_v57 = vor.u32 %v2929_v63, %v2926_v49  ;;  %v1951_v55 = vpop.permute.xlu1 %1950  ;;  %v1949_v58 = vpop.permute.xlu0 %1948  ;;  %v2586_v17 = vsel %vm7469_vm8, %v2547_v39, %v1896_v21  ;;  %v2549_v28 = vsel %vm7470_vm14, %v5692_v33, %v1819_v34  ;;  %vm7474_vm9 = vmmov %vm7469_vm8  ;;  %vm7479_vm14 = vcmask 523264  }
 0x194   : > { %v2625_v52 = vsel %vm7471_vm1, %v2586_v17, %v1949_v58  ;;  %v2588_v26 = vsel %vm7474_vm9, %v2549_v28, %v1898_v43  ;;  %vm7476_vm2 = vmmov %vm7471_vm1  ;;  %vm7485_vm9 = vcmask 588800  }
 0x195   : > { %2259 = vrot.lane.b32.xlu1 %v2222_v27, %s4392_s10  ;;  %v2931_v18 = vsel %vm7464_vm13, %v2922_v44, %v2930_v57  ;;  %vm7472_vm13 = vcmask 261120   ;;  %v2627_v19 = vsel %vm7476_vm2, %v2588_v26, %v1951_v55  ;;  %vm7483_vm2 = vmmov %vm7479_vm14  ;;  %s6711_s10 = scalar_lea.vmem %s7000_s4, %s4229_s25 }
 0x196   : > { %4198 = vmatmul.mubr.msk.bf16.gmra.mxu0 %vm7465_vm10, %v2931_v18  ;;  %2518 = vrot.lane.b32.xlu0 %v2481_v13, %s4395_s13  ;;  %vm7473_vm10 = vcmask 326656   ;;  %vm7478_vm8 = vmmov %vm7472_vm13 }
 0x197   : > { %v2169_v12 = vpop.permute.xlu1 %2168  ;;  %v2167_v36 = vpop.permute.xlu0 %2166  ;;  %vm7480_vm1 = vmmov %vm7473_vm10 }
 0x198   : > { %v2664_v23 = vsel %vm7472_vm13, %v2625_v52, %v2167_v36  ;;  %v2666_v33 = vsel %vm7478_vm8, %v2627_v19, %v2169_v12  ;;  %vm7481_vm13 = vmmov %vm7475_vm7 }
 0x199   : > { %2309 = vrot.lane.b32.xlu1 %v2272_v4, %s4394_s12  ;;  %vm7487_vm8 = vmmov %vm7485_vm9  ;;  %s315_s12 = scalar_lea.vmem %s7001_s5, %s7707_s21 }
 0x19b   : > { %v2248_v61 = vpop.permute.xlu1 %2247  ;;  %v2246_v0 = vpop.permute.xlu0 %2245 }
 0x19c   : > { %v2703_v6 = vsel %vm7473_vm10, %v2664_v23, %v2246_v0  ;;  %v2705_v34 = vsel %vm7480_vm1, %v2666_v33, %v2248_v61  ;;  %vm7482_vm10 = vmmov %vm7477_vm0  ;;  %vm7489_vm1 = vcmask 130048  }
 0x19d   : > { %2441 = vrot.lane.b32.xlu1 %v2404_v42, %s4398_s16 }
 0x19f   : > { %v2298_v50 = vpop.permute.xlu1 %2297  ;;  %v2296_v59 = vpop.permute.xlu0 %2295 }
 0x1a0   : > { %v2742_v25 = vsel %vm7475_vm7, %v2703_v6, %v2296_v59  ;;  %v2744_v44 = vsel %vm7481_vm13, %v2705_v34, %v2298_v50  ;;  %vm7484_vm7 = vsmask.f32 5376 }
 0x1a1   : > { %2520 = vrot.lane.b32.xlu1 %v2483_v56, %s4395_s13 }
 0x1a3   : > { %v2430_v53 = vpop.permute.xlu1 %2429  ;;  %v2428_v14 = vpop.permute.xlu0 %2427 }
 0x1a4   : > { %v2781_v46 = vsel %vm7477_vm0, %v2742_v25, %v2428_v14  ;;  %v2783_v38 = vsel %vm7482_vm10, %v2744_v44, %v2430_v53  ;;  %vm7486_vm0 = vmmov %vm7484_vm7  ;;  %vm7491_vm10 = vcmask 195584  }
 0x1a7   : > { %v1821_v3 = vpop.permute.xlu1 %1820  ;;  %v2507_v2 = vpop.permute.xlu0 %2506 }
 0x1a8   : > { %v2820_v27 = vsel %vm7479_vm14, %v2781_v46, %v2507_v2  ;;  %vm7488_vm14 = vcmask 64512  }
 0x1a9   : > { %v2932_v7 = vshrl.u32 %v2820_v27, 16  ;;  %v2935_v10 = vshll.u32 %v2820_v27, 16  ;;  %v2551_v59 = vsel %vm7488_vm14, %v5810_v9, %v1821_v3  ;;  %vm7490_vm13 = vmmov %vm7488_vm14  ;;  %vm7497_vm14 = vcmask 457728  }
 0x1ab   : > { %v2934_v32 = vrot.slane %v2932_v7, 2  ;;  %v2937_v4 = vrot.slane %v2935_v10, 3  ;;  %v1823_v45 = vpop.permute.xlu1 %1822  ;;  %v2509_v29 = vpop.permute.xlu0 %2508 }
 0x1ac   : > { %v2822_v49 = vsel %vm7483_vm2, %v2783_v38, %v2509_v29  ;;  %v2553_v20 = vsel %vm7490_vm13, %v5965_v11, %v1823_v45  ;;  %vm7492_vm2 = vcmask 261120   ;;  %vm7499_vm13 = vcmask 523264  }
 0x1ad   : > { %v2940_v63 = vshrl.u32 %v2822_v49, 16  ;;  %v2943_v43 = vshll.u32 %v2822_v49, 16  ;;  %v2938_v21 = vor.u32 %v2937_v4, %v2934_v32 }
 0x1af   : > { %v2942_v15 = vrot.slane %v2940_v63, 2  ;;  %v2945_v22 = vrot.slane %v2943_v43, 3  ;;  %v1902_v24 = vpop.permute.xlu1 %1901  ;;  %v1900_v13 = vpop.permute.xlu0 %1899  ;;  %v2939_v42 = vsel %vm7484_vm7, %v2930_v57, %v2938_v21  ;;  %vm7493_vm7 = vcmask 326656  }
 0x1b0   : > { %4201 = vmatprep.mubr.msk.bf16.mxu1 %vm7485_vm9, %v2939_v42  ;;  %v2590_v57 = vsel %vm7489_vm1, %v2551_v59, %v1900_v13  ;;  %vm7494_vm9 = vmmov %vm7489_vm1 }
 0x1b1   : > { %v2946_v55 = vor.u32 %v2945_v22, %v2942_v15  ;;  %v2592_v14 = vsel %vm7494_vm9, %v2553_v20, %v1902_v24  ;;  %vm7498_vm1 = vmmov %vm7492_vm2 }
 0x1b2   : > { %vm7503_vm9 = vmmov %vm7499_vm13 }
 0x1b3   : > { %v1953_v8 = vpop.permute.xlu0 %1952  ;;  %v2947_v18 = vsel %vm7486_vm0, %v2938_v21, %v2946_v55  ;;  %vm7495_vm0 = vcmask 392192  }
 0x1b4   : > { %v1955_v58 = vpop.permute.xlu1 %1954  ;;  %4202 = vmatmul.mubr.msk.bf16.vlgmr.msra.gmra.mxu1 %vm7487_vm8, %v2947_v18  ;;  %v2629_v39 = vsel %vm7491_vm10, %v2590_v57, %v1953_v8  ;;  %vm7496_vm8 = vmmov %vm7491_vm10 }
 0x1b5   : > { %v2631_v6 = vsel %vm7496_vm8, %v2592_v14, %v1955_v58  ;;  %vm7500_vm10 = vmmov %vm7493_vm7  ;;  %vm7505_vm8 = vcmask 588800  }
 0x1b7   : > { %v2171_v12 = vpop.permute.xlu0 %2170 }
 0x1b8   : > { %v2173_v56 = vpop.permute.xlu1 %2172  ;;  %v2668_v52 = vsel %vm7492_vm2, %v2629_v39, %v2171_v12  ;;  %vm7501_vm2 = vmmov %vm7495_vm0 }
 0x1b9   : > { %v2670_v11 = vsel %vm7498_vm1, %v2631_v6, %v2173_v56  ;;  %vm7507_vm1 = vmmov %vm7505_vm8 }
 0x1bb   : > { %v2250_v61 = vpop.permute.xlu0 %2249 }
 0x1bc   : > { %v2252_v36 = vpop.permute.xlu1 %2251  ;;  %v2707_v53 = vsel %vm7493_vm7, %v2668_v52, %v2250_v61  ;;  %vm7502_vm7 = vmmov %vm7497_vm14 }
 0x1bd   : > { %v2709_v46 = vsel %vm7500_vm10, %v2670_v11, %v2252_v36 }
 0x1bf   : > { %v2300_v50 = vpop.permute.xlu0 %2299 }
 0x1c0   : > { %v2302_v0 = vpop.permute.xlu1 %2301  ;;  %v2746_v23 = vsel %vm7495_vm0, %v2707_v53, %v2300_v50  ;;  %vm7504_vm0 = vsmask.f32 5376 }
 0x1c1   : > { %v2748_v33 = vsel %vm7501_vm2, %v2709_v46, %v2302_v0 }
 0x1c3   : > { %v2432_v28 = vpop.permute.xlu0 %2431 }
 0x1c4   : > { %v2785_v9 = vsel %vm7497_vm14, %v2746_v23, %v2432_v28  ;;  %vm7506_vm14 = vmmov %vm7504_vm0 }
 0x1c5   : > { %v2434_v17 = vpop.permute.xlu1 %2433 }
 0x1c6   : > { %v2787_v27 = vsel %vm7502_vm7, %v2748_v33, %v2434_v17 }
 0x1c7   : > { %v2511_v25 = vpop.permute.xlu0 %2510 }
 0x1c8   : > { %v2824_v19 = vsel %vm7499_vm13, %v2785_v9, %v2511_v25  ;;  %vm7510_vm13 = vcmask 60416  }
 0x1c9   : > { %v6691_v26 = vpop.permute.xlu1 %1824  ;;  %v2948_v3 = vshrl.u32 %v2824_v19, 16  ;;  %v2951_v2 = vshll.u32 %v2824_v19, 16  ;;  %v4183_v13 = vpop.f32.mrf.mxu0  ;;  %vm7512_vm10 = vmmov %vm7510_vm13 }
 0x1cb   : > { %v2950_v34 = vrot.slane %v2948_v3, 2  ;;  %v2953_v7 = vrot.slane %v2951_v2, 3  ;;  %v3116_v8 = vpop.f32.mrf.mxu0 }
 0x1cc   : > { %v2513_v10 = vpop.permute.xlu0 %2512  ;;  %v3259_v56 = vsel %vm4569_vm4, %v3116_v8, 0.0  ;;  %vm7514_vm4 = vcmask 64512  }
 0x1cd   : > { %v2826_v38 = vsel %vm7503_vm9, %v2787_v27, %v2513_v10  ;;  %v2954_v32 = vor.u32 %v2953_v7, %v2950_v34  ;;  %v4023_v61 = vpack.c.bf16 %v3259_v56, %v3259_v56  ;;  %v4184_v0 = vpop.f32.mrf.mxu0  ;;  %v3553_v57 = vmul.f32 %v3259_v56, %v3259_v56  ;;  %vm7516_vm2 = vmmov %vm7514_vm4 }
 0x1ce   : > { %v2956_v4 = vshrl.u32 %v2826_v38, 16  ;;  %v2959_v45 = vshll.u32 %v2826_v38, 16  ;;  %v3262_v59 = vsel %vm4615_vm5, %v4184_v0, 0.0  ;;  %v3475_v23 = vsel %vm7514_vm4, %v3259_v56, 0.0  ;;  %vm7517_vm5 = vmmov %vm7516_vm2 }
 0x1cf   : > { %v1827_v44 = vpop.permute.xlu1 %1826  ;;  %v2955_v43 = vsel %vm7504_vm0, %v2946_v55, %v2954_v32  ;;  %v3261_v55 = vsel %vm4586_vm12, %v4183_v13, 0.0  ;;  %3439 = vst.msk [vmem:[%s6711_s10] sm:$0xf] %vm7512_vm10, %v4023_v61  ;;  %v4026_v20 = vpack.c.bf16 %v3262_v59, %v3262_v59  ;;  %v3119_v39 = vpop.f32.mrf.mxu0  ;;  %vm7515_vm12 = vmmov %vm7512_vm10  ;;  %v3556_v3 = vmul.f32 %v3262_v59, %v3262_v59 }
 0x1d0   : > { %v2958_v29 = vrot.slane %v2956_v4, 2  ;;  %v2961_v49 = vrot.slane %v2959_v45, 3  ;;  %v1904_v63 = vpop.permute.xlu0 %1903  ;;  %4205 = vmatprep.mubr.msk.bf16.mxu1 %vm7505_vm8, %v2955_v43  ;;  %v4025_v58 = vpack.c.bf16 %v3261_v55, %v3261_v55  ;;  %v3555_v17 = vmul.f32 %v3261_v55, %v3261_v55  ;;  %vm7518_vm7 = vmmov %vm7516_vm2 }
 0x1d1   : > { %v3260_v52 = vsel %vm4582_vm11, %v3119_v39, 0.0  ;;  %3442 = vst.msk [vmem:[%s6711_s10 + $0xc] sm:$0xf] %vm7515_vm12, %v4026_v20  ;;  %v3478_v19 = vsel %vm7517_vm5, %v3261_v55, 0.0  ;;  %v3589_v46 = vsel %vm7518_vm7, %v3553_v57, 0.0  ;;  %vm7519_vm9 = vmmov %vm7512_vm10  ;;  %vm7527_vm4 = vcmask 195584  }
 0x1d2   : > { %v6701_v21 = vor.u32 %v2961_v49, %v2958_v29  ;;  %3441 = vst.msk [vmem:[%s6711_s10 + $0x8] sm:$0xf] %vm7510_vm13, %v4025_v58  ;;  %v4024_v6 = vpack.c.bf16 %v3260_v52, %v3260_v52  ;;  %v3476_v9 = vsel %vm7516_vm2, %v3260_v52, 0.0  ;;  %v3554_v25 = vmul.f32 %v3260_v52, %v3260_v52  ;;  %vm7520_vm0 = vmmov %vm7516_vm2 }
 0x1d3   : > { %v1906_v15 = vpop.permute.xlu1 %1905  ;;  %v3477_v11 = vadd.f32 %v3476_v9, %v3475_v23  ;;  %vm7521_vm11 = vmmov %vm7520_vm0  ;;  %vm7528_vm12 = vcmask 261120   ;;  %vm7529_vm2 = vcmask 326656   ;;  %vm7531_vm7 = vcmask 392192  }
 0x1d4   : > { %v1957_v22 = vpop.permute.xlu0 %1956  ;;  %v2963_v24 = vsel %vm7506_vm14, %v2954_v32, %v6701_v21  ;;  %3440 = vst.msk [vmem:[%s6711_s10 + $0x4] sm:$0xf] %vm7519_vm9, %v4024_v6  ;;  %v3590_v2 = vsel %vm7520_vm0, %v3554_v25, 0.0  ;;  %v3592_v7 = vsel %vm7521_vm11, %v3555_v17, 0.0  ;;  %vm7522_vm8 = vmmov %vm7520_vm0 }
 0x1d5   : > { %4206 = vmatmul.mubr.msk.bf16.gmra.mxu1 %vm7507_vm1, %v2963_v24  ;;  %v3479_v33 = vadd.f32 %v3478_v19, %v3477_v11  ;;  %v3591_v27 = vadd.f32 %v3590_v2, %v3589_v46  ;;  %v3480_v10 = vsel %vm7522_vm8, %v3262_v59, 0.0  ;;  %vm7523_vm14 = vmmov %vm7520_vm0  ;;  %vm7524_vm1 = vcmask 130048  }
 0x1d6   : > { %v2555_v32 = vsel %vm7523_vm14, %v6142_v48, %v6691_v26  ;;  %vm7525_vm13 = vmmov %vm7520_vm0  ;;  %vm7535_vm8 = vcmask 523264  }
 0x1d7   : > { %v3593_v4 = vadd.f32 %v3592_v7, %v3591_v27  ;;  %v3481_v45 = vadd.f32 %v3480_v10, %v3479_v33  ;;  %v2594_v29 = vsel %vm7524_vm1, %v2555_v32, %v1904_v63  ;;  %v3594_v49 = vsel %vm7525_vm13, %v3556_v3, 0.0  ;;  %vm7526_vm10 = vmmov %vm7520_vm0 }
 0x1d8   : > { %v2175_v12 = vpop.permute.xlu0 %2174  ;;  %v2557_v43 = vsel %vm7526_vm10, %v6242_v31, %v1827_v44  ;;  %v2633_v24 = vsel %vm7527_vm4, %v2594_v29, %v1957_v22  ;;  %vm7530_vm5 = vmmov %vm7524_vm1  ;;  %vm7533_vm0 = vcmask 457728  }
 0x1d9   : > { %v3595_v42 = vadd.f32 %v3594_v49, %v3593_v4  ;;  %v2672_v55 = vsel %vm7528_vm12, %v2633_v24, %v2175_v12  ;;  %v2596_v48 = vsel %vm7530_vm5, %v2557_v43, %v1906_v15  ;;  %vm7532_vm9 = vmmov %vm7527_vm4  ;;  %vm7540_vm4 = vsmask.f32 5376 }
 0x1da   : > { %vm7534_vm11 = vmmov %vm7528_vm12  ;;  %vm7541_vm12 = vcmask 588800  }
 0x1db   : > { %vm7536_vm14 = vmmov %vm7529_vm2 }
 0x1dc   : > { %v2254_v53 = vpop.permute.xlu0 %2253  ;;  %vm7537_vm1 = vmmov %vm7531_vm7 }
 0x1dd   : > { %v2711_v8 = vsel %vm7529_vm2, %v2672_v55, %v2254_v53  ;;  %vm7538_vm13 = vmmov %vm7533_vm0 }
 0x1de   : > { %vm7539_vm10 = vmmov %vm7535_vm8 }
 0x1df   : > { %v1959_v36 = vpop.permute.xlu1 %1958  ;;  %vm7542_vm2 = vmmov %vm7540_vm4 }
 0x1e0   : > { %v2304_v34 = vpop.permute.xlu0 %2303  ;;  %v2635_v63 = vsel %vm7532_vm9, %v2596_v48, %v1959_v36  ;;  %vm7543_vm5 = vmmov %vm7541_vm12  ;;  %vm7547_vm9 = vcmask 64512  }
 0x1e1   : > { %v2750_v26 = vsel %vm7531_vm7, %v2711_v8, %v2304_v34  ;;  %vm7546_vm7 = vcmask 60416  }
 0x1e3   : > { %v2177_v14 = vpop.permute.xlu1 %2176 }
 0x1e4   : > { %v2436_v13 = vpop.permute.xlu0 %2435  ;;  %v2674_v31 = vsel %vm7534_vm11, %v2635_v63, %v2177_v14 }
 0x1e5   : > { %v2789_v18 = vsel %vm7533_vm0, %v2750_v26, %v2436_v13  ;;  %vm7550_vm0 = vmmov %vm7547_vm9  ;;  %v7551_v26 = vld [vmem:[#allocation8_spill] sm:$0xff] }
 0x1e7   : > { %v2256_v38 = vpop.permute.xlu1 %2255 }
 0x1e8   : > { %v2515_v56 = vpop.permute.xlu0 %2514  ;;  %v2713_v61 = vsel %vm7536_vm14, %v2674_v31, %v2256_v38 }
 0x1e9   : > { %v2828_v22 = vsel %vm7535_vm8, %v2789_v18, %v2515_v56  ;;  %vm7554_vm8 = vmmov %vm7550_vm0 }
 0x1ea   : > { %v2964_v12 = vshrl.u32 %v2828_v22, 16  ;;  %v2967_v0 = vshll.u32 %v2828_v22, 16 }
 0x1eb   : > { %v2306_v58 = vpop.permute.xlu1 %2305 }
 0x1ec   : > { %v2752_v50 = vsel %vm7537_vm1, %v2713_v61, %v2306_v58  ;;  %v2966_v59 = vrot.slane %v2964_v12, 2  ;;  %v2969_v57 = vrot.slane %v2967_v0, 3  ;;  %v2517_v20 = vpop.permute.xlu0 %2516  ;;  %vm7557_vm1 = vmmov %vm7550_vm0 }
 0x1ee   : > { %v2970_v17 = vor.u32 %v2969_v57, %v2966_v59 }
 0x1ef   : > { %v2438_v44 = vpop.permute.xlu1 %2437 }
 0x1f0   : > { %v2791_v15 = vsel %vm7538_vm13, %v2752_v50, %v2438_v44  ;;  %v1908_v23 = vpop.permute.xlu0 %1907  ;;  %v2971_v6 = vsel %vm7540_vm4, %v6701_v21, %v2970_v17  ;;  %vm7558_vm13 = vmmov %vm7550_vm0 }
 0x1f1   : > { %v2830_v39 = vsel %vm7539_vm10, %v2791_v15, %v2517_v20  ;;  %4209 = vmatprep.mubr.msk.bf16.mxu1 %vm7541_vm12, %v2971_v6  ;;  %vm7559_vm10 = vmmov %vm7550_vm0  ;;  %vm7561_vm12 = vcmask 130048  }
 0x1f2   : > { %v2972_v28 = vshrl.u32 %v2830_v39, 16  ;;  %v2975_v52 = vshll.u32 %v2830_v39, 16  ;;  %v4187_v3 = vpop.f32.mrf.mxu0  ;;  %vm7560_vm4 = vmmov %vm7550_vm0 }
 0x1f3   : > { %v1829_v36 = vpop.permute.xlu1 %1828  ;;  %v3265_v33 = vsel %vm4695_vm3, %v4187_v3, 0.0  ;;  %vm7549_vm3 = vmmov %vm7546_vm7 }
 0x1f4   : > { %v2974_v53 = vrot.slane %v2972_v28, 2  ;;  %v2977_v14 = vrot.slane %v2975_v52, 3  ;;  %v1961_v11 = vpop.permute.xlu0 %1960  ;;  %v4029_v27 = vpack.c.bf16 %v3265_v33, %v3265_v33  ;;  %v3132_v34 = vpop.f32.mrf.mxu0  ;;  %v3559_v56 = vmul.f32 %v3265_v33, %v3265_v33  ;;  %vm7553_vm11 = vmmov %vm7549_vm3 }
 0x1f5   : > { %v3263_v7 = vsel %vm4629_vm6, %v3132_v34, 0.0  ;;  %vm7552_vm6 = vnez %v7551_v26  ;;  %vm7556_vm14 = vmmov %vm7549_vm3 }
 0x1f6   : > { %v6759_v25 = vor.u32 %v2977_v14, %v2974_v53  ;;  %3445 = vst.msk [vmem:[%s6711_s10 + $0x18] sm:$0xf] %vm7546_vm7, %v4029_v27  ;;  %v4027_v32 = vpack.c.bf16 %v3263_v7, %v3263_v7  ;;  %v3482_v4 = vsel %vm7547_vm9, %v3263_v7, 0.0  ;;  %v3557_v29 = vmul.f32 %v3263_v7, %v3263_v7  ;;  %v4188_v49 = vpop.f32.mrf.mxu0  ;;  %vm7564_vm7 = vmmov %vm7550_vm0 }
 0x1f7   : > { %v1831_v9 = vpop.permute.xlu1 %1830  ;;  %v3483_v43 = vadd.f32 %v3482_v4, %v3481_v45  ;;  %v3266_v13 = vsel %vm4723_vm15, %v4188_v49, 0.0  ;;  %vm7555_vm15 = vmmov %vm7550_vm0  ;;  %v3600_v57 = vsel %vm7558_vm13, %v3559_v56, 0.0  ;;  %vm7565_vm9 = vcmask 261120  }
 0x1f8   : > { %v2979_v19 = vsel %vm7542_vm2, %v2970_v17, %v6759_v25  ;;  %v2179_v10 = vpop.permute.xlu0 %2178  ;;  %3443 = vst.msk [vmem:[%s6711_s10 + $0x10] sm:$0xf] %vm7549_vm3, %v4027_v32  ;;  %v3596_v55 = vsel %vm7550_vm0, %v3557_v29, 0.0  ;;  %v4030_v58 = vpack.c.bf16 %v3266_v13, %v3266_v13  ;;  %v3135_v8 = vpop.f32.mrf.mxu0  ;;  %v3486_v12 = vsel %vm7555_vm15, %v3265_v33, 0.0  ;;  %vm7562_vm2 = vmmov %vm7550_vm0 }
 0x1f9   : > { %4210 = vmatmul.mubr.msk.bf16.gmra.mxu1 %vm7543_vm5, %v2979_v19  ;;  %v3597_v48 = vadd.f32 %v3596_v55, %v3595_v42  ;;  %v3264_v63 = vsel %vm7552_vm6, %v3135_v8, 0.0  ;;  %v3560_v0 = vmul.f32 %v3266_v13, %v3266_v13  ;;  %v3488_v20 = vsel %vm7559_vm10, %v3266_v13, 0.0  ;;  %vm7568_vm6 = vmmov %vm7561_vm12 }
 0x1fa   : > { %3446 = vst.msk [vmem:[%s6711_s10 + $0x1c] sm:$0xf] %vm7553_vm11, %v4030_v58  ;;  %v4028_v45 = vpack.c.bf16 %v3264_v63, %v3264_v63  ;;  %v3484_v44 = vsel %vm7554_vm8, %v3264_v63, 0.0  ;;  %v3558_v22 = vmul.f32 %v3264_v63, %v3264_v63  ;;  %v2559_v17 = vsel %vm7560_vm4, %v6368_v51, %v1829_v36 }
 0x1fb   : > { %v1910_v46 = vpop.permute.xlu1 %1909  ;;  %v3485_v61 = vadd.f32 %v3484_v44, %v3483_v43  ;;  %v2598_v53 = vsel %vm7561_vm12, %v2559_v17, %v1908_v23  ;;  %v3602_v14 = vsel %vm7562_vm2, %v3560_v0, 0.0  ;;  %vm7563_vm5 = vcmask 195584  }
 0x1fc   : > { %v2258_v18 = vpop.permute.xlu0 %2257  ;;  %3444 = vst.msk [vmem:[%s6711_s10 + $0x14] sm:$0xf] %vm7556_vm14, %v4028_v45  ;;  %v3598_v42 = vsel %vm7557_vm1, %v3558_v22, 0.0  ;;  %v2637_v6 = vsel %vm7563_vm5, %v2598_v53, %v1961_v11  ;;  %v2561_v2 = vsel %vm7564_vm7, %v6532_v37, %v1831_v9  ;;  %vm7566_vm3 = vcmask 326656   ;;  %vm7570_vm8 = vmmov %vm7563_vm5  ;;  %v7591_v53 = vld [vmem:[#allocation12_spill] sm:$0xff] }
 0x1fd   : > { %v3487_v50 = vadd.f32 %v3486_v12, %v3485_v61  ;;  %v3599_v15 = vadd.f32 %v3598_v42, %v3597_v48  ;;  %v2676_v33 = vsel %vm7565_vm9, %v2637_v6, %v2179_v10  ;;  %vm7567_vm0 = vcmask 392192   ;;  %vm7572_vm14 = vmmov %vm7565_vm9  ;;  %v7583_v61 = vld [vmem:[#allocation11_spill] sm:$0xff] }
 0x1fe   : > { %v2715_v34 = vsel %vm7566_vm3, %v2676_v33, %v2258_v18  ;;  %v2600_v36 = vsel %vm7568_vm6, %v2561_v2, %v1910_v46  ;;  %vm7569_vm11 = vcmask 457728   ;;  %vm7571_vm15 = vcmask 523264   ;;  %vm7573_vm1 = vmmov %vm7566_vm3 }
 0x1ff   : > { %v1963_v38 = vpop.permute.xlu1 %1962  ;;  %v3601_v28 = vadd.f32 %v3600_v57, %v3599_v15  ;;  %v3489_v52 = vadd.f32 %v3488_v20, %v3487_v50  ;;  %vm7574_vm13 = vmmov %vm7567_vm0  ;;  %vm7577_vm12 = vsmask.f32 5376  ;;  %vm7578_vm2 = vcmask 588800  }
 0x200   : > { %v2308_v59 = vpop.permute.xlu0 %2307  ;;  %v2639_v7 = vsel %vm7570_vm8, %v2600_v36, %v1963_v38  ;;  %vm7575_vm10 = vmmov %vm7569_vm11  ;;  %vm7584_vm3 = vnez %v7583_v61  ;;  %vm7586_vm6 = vcmask 64512  }
 0x201   : > { %v3603_v3 = vadd.f32 %v3602_v14, %v3601_v28  ;;  %v2754_v51 = vsel %vm7567_vm0, %v2715_v34, %v2308_v59  ;;  %vm7576_vm4 = vmmov %vm7571_vm15  ;;  %vm7585_vm0 = vcmask 60416   ;;  %v7587_v59 = vld [vmem:[#allocation14_spill] sm:$0xff] }
 0x202   : > { %vm7579_vm5 = vmmov %vm7577_vm12 }
 0x203   : > { %v2181_v31 = vpop.permute.xlu1 %2180  ;;  %vm7580_vm7 = vmmov %vm7578_vm2 }
 0x204   : > { %v2440_v19 = vpop.permute.xlu0 %2439  ;;  %v2678_v4 = vsel %vm7572_vm14, %v2639_v7, %v2181_v31  ;;  %v7581_v31 = vld [vmem:[#allocation13_spill] sm:$0xff]  ;;  %vm7589_vm8 = vmmov %vm7585_vm0  ;;  %vm7592_vm14 = vnez %v7591_v53 }
 0x205   : > { %v2793_v23 = vsel %vm7569_vm11, %v2754_v51, %v2440_v19  ;;  %vm7582_vm9 = vnez %v7581_v31  ;;  %vm7588_vm11 = vnez %v7587_v59  ;;  %v7610_v31 = vld [vmem:[#allocation16_spill] sm:$0xff] }
 0x207   : > { %v2260_v39 = vpop.permute.xlu1 %2259 }
 0x208   : > { %v2519_v21 = vpop.permute.xlu0 %2518  ;;  %v2717_v10 = vsel %vm7573_vm1, %v2678_v4, %v2260_v39  ;;  %vm7593_vm1 = vmmov %vm7585_vm0 }
 0x209   : > { %v2832_v32 = vsel %vm7571_vm15, %v2793_v23, %v2519_v21  ;;  %vm7590_vm15 = vmmov %vm7586_vm6 }
 0x20a   : > { %v2980_v37 = vshrl.u32 %v2832_v32, 16  ;;  %v2983_v9 = vshll.u32 %v2832_v32, 16 }
 0x20b   : > { %v2310_v27 = vpop.permute.xlu1 %2309 }
 0x20c   : > { %v2756_v29 = vsel %vm7574_vm13, %v2717_v10, %v2310_v27  ;;  %v2982_v49 = vrot.slane %v2980_v37, 2  ;;  %v2985_v43 = vrot.slane %v2983_v9, 3  ;;  %vm7594_vm13 = vmmov %vm7586_vm6  ;;  %v7601_v9 = vld [vmem:[#allocation17_spill] sm:$0xff] }
 0x20e   : > { %v2986_v38 = vor.u32 %v2985_v43, %v2982_v49  ;;  %v7603_v43 = vld [vmem:[#allocation15_spill] sm:$0xff] }
 0x20f   : > { %v2442_v11 = vpop.permute.xlu1 %2441 }
 0x210   : > { %v2795_v46 = vsel %vm7575_vm10, %v2756_v29, %v2442_v11  ;;  %v2987_v8 = vsel %vm7577_vm12, %v6759_v25, %v2986_v38  ;;  %vm7595_vm10 = vmmov %vm7586_vm6 }
 0x211   : > { %4213 = vmatprep.mubr.msk.bf16.mxu1 %vm7578_vm2, %v2987_v8  ;;  %vm7597_vm12 = vmmov %vm7586_vm6  ;;  %v7606_v8 = vld [vmem:[#allocation18_spill] sm:$0xff] }
 0x212   : > { %vm7598_vm2 = vmmov %vm7586_vm6 }
 0x213   : > { %v2521_v24 = vpop.permute.xlu1 %2520 }
 0x214   : > { %v2834_v13 = vsel %vm7576_vm4, %v2795_v46, %v2521_v24  ;;  %vm7596_vm4 = vmmov %vm7585_vm0 }
 0x215   : > { %v2988_v55 = vshrl.u32 %v2834_v13, 16  ;;  %v2991_v58 = vshll.u32 %v2834_v13, 16 }
 0x217   : > { %v2990_v48 = vrot.slane %v2988_v55, 2  ;;  %v2993_v26 = vrot.slane %v2991_v58, 3 }
 0x219   : > { %v2994_v63 = vor.u32 %v2993_v26, %v2990_v48  ;;  %v4191_v56 = vpop.f32.mrf.mxu0 }
 0x21a   : > { %v3269_v45 = vsel %vm7582_vm9, %v4191_v56, 0.0  ;;  %vm7602_vm9 = vnez %v7601_v9  ;;  %v7628_v9 = vld [vmem:[#allocation20_spill] sm:$0xff] }
 0x21b   : > { %v2995_v18 = vsel %vm7579_vm5, %v2986_v38, %v2994_v63  ;;  %v4033_v44 = vpack.c.bf16 %v3269_v45, %v3269_v45  ;;  %v3148_v22 = vpop.f32.mrf.mxu0  ;;  %v3563_v6 = vmul.f32 %v3269_v45, %v3269_v45  ;;  %v3494_v27 = vsel %vm7595_vm10, %v3269_v45, 0.0  ;;  %vm7599_vm5 = vmmov %vm7598_vm2 }
 0x21c   : > { %4214 = vmatmul.mubr.msk.bf16.gmra.mxu1 %vm7580_vm7, %v2995_v18  ;;  %v3267_v25 = vsel %vm7584_vm3, %v3148_v22, 0.0  ;;  %vm7600_vm7 = vmmov %vm7598_vm2  ;;  %vm7604_vm3 = vnez %v7603_v43 }
 0x21d   : > { %3449 = vst.msk [vmem:[%s6711_s10 + $0x28] sm:$0xf] %vm7585_vm0, %v4033_v44  ;;  %v4031_v12 = vpack.c.bf16 %v3267_v25, %v3267_v25  ;;  %v3490_v0 = vsel %vm7586_vm6, %v3267_v25, 0.0  ;;  %v3561_v42 = vmul.f32 %v3267_v25, %v3267_v25  ;;  %v4192_v50 = vpop.f32.mrf.mxu0  ;;  %v3608_v23 = vsel %vm7598_vm2, %v3563_v6, 0.0  ;;  %vm7605_vm6 = vmmov %vm7598_vm2  ;;  %v7619_v6 = vld [vmem:[#allocation21_spill] sm:$0xff] }
 0x21e   : > { %v3491_v15 = vadd.f32 %v3490_v0, %v3489_v52  ;;  %v3270_v57 = vsel %vm7588_vm11, %v4192_v50, 0.0  ;;  %vm7607_vm11 = vnez %v7606_v8  ;;  %vm7614_vm10 = vmmov %vm7598_vm2 }
 0x21f   : > { %3447 = vst.msk [vmem:[%s6711_s10 + $0x20] sm:$0xf] %vm7589_vm8, %v4031_v12  ;;  %v3604_v20 = vsel %vm7590_vm15, %v3561_v42, 0.0  ;;  %v4034_v39 = vpack.c.bf16 %v3270_v57, %v3270_v57  ;;  %v3151_v17 = vpop.f32.mrf.mxu0  ;;  %v3564_v34 = vmul.f32 %v3270_v57, %v3270_v57  ;;  %v3496_v21 = vsel %vm7599_vm5, %v3270_v57, 0.0  ;;  %vm7608_vm8 = vmmov %vm7585_vm0 }
 0x220   : > { %v3605_v28 = vadd.f32 %v3604_v20, %v3603_v3  ;;  %v3268_v14 = vsel %vm7592_vm14, %v3151_v17, 0.0  ;;  %vm7609_vm15 = vmmov %vm7598_vm2  ;;  %vm7611_vm14 = vnez %v7610_v31 }
 0x221   : > { %3450 = vst.msk [vmem:[%s6711_s10 + $0x2c] sm:$0xf] %vm7593_vm1, %v4034_v39  ;;  %v4032_v19 = vpack.c.bf16 %v3268_v14, %v3268_v14  ;;  %v3492_v52 = vsel %vm7594_vm13, %v3268_v14, 0.0  ;;  %v3562_v2 = vmul.f32 %v3268_v14, %v3268_v14  ;;  %v3610_v32 = vsel %vm7600_vm7, %v3564_v34, 0.0  ;;  %vm7612_vm1 = vmmov %vm7585_vm0 }
 0x222   : > { %v3493_v33 = vadd.f32 %v3492_v52, %v3491_v15  ;;  %vm7613_vm13 = vmmov %vm7598_vm2 }
 0x223   : > { %3448 = vst.msk [vmem:[%s6711_s10 + $0x24] sm:$0xf] %vm7596_vm4, %v4032_v19  ;;  %v3606_v51 = vsel %vm7597_vm12, %v3562_v2, 0.0  ;;  %vm7615_vm4 = vmmov %vm7585_vm0 }
 0x224   : > { %v3495_v3 = vadd.f32 %v3494_v27, %v3493_v33  ;;  %v3607_v36 = vadd.f32 %v3606_v51, %v3605_v28  ;;  %vm7616_vm12 = vmmov %vm7598_vm2  ;;  %v7621_v33 = vld [vmem:[#allocation19_spill] sm:$0xff] }
 0x225   : > { %vm7617_vm5 = vmmov %vm7598_vm2 }
 0x226   : > { %v3609_v7 = vadd.f32 %v3608_v23, %v3607_v36  ;;  %v3497_v11 = vadd.f32 %v3496_v21, %v3495_v3  ;;  %vm7618_vm7 = vmmov %vm7598_vm2  ;;  %v7624_v21 = vld [vmem:[#allocation22_spill] sm:$0xff] }
 0x228   : > { %v3611_v4 = vadd.f32 %v3610_v32, %v3609_v7 }
 0x236   : > { %v4195_v37 = vpop.f32.mrf.mxu0 }
 0x237   : > { %v3273_v10 = vsel %vm7602_vm9, %v4195_v37, 0.0  ;;  %vm7620_vm9 = vnez %v7619_v6  ;;  %v7646_v6 = vld [vmem:[#allocation25_spill] sm:$0xff] }
 0x238   : > { %v4037_v29 = vpack.c.bf16 %v3273_v10, %v3273_v10  ;;  %v3164_v49 = vpop.f32.mrf.mxu0  ;;  %v3567_v44 = vmul.f32 %v3273_v10, %v3273_v10  ;;  %v3502_v0 = vsel %vm7614_vm10, %v3273_v10, 0.0  ;;  %vm7632_vm10 = vmmov %vm7598_vm2 }
 0x239   : > { %v3271_v46 = vsel %vm7604_vm3, %v3164_v49, 0.0  ;;  %vm7622_vm3 = vnez %v7621_v33 }
 0x23a   : > { %3453 = vst.msk [vmem:[%s6711_s10 + $0x38] sm:$0xf] %vm7585_vm0, %v4037_v29  ;;  %v4035_v24 = vpack.c.bf16 %v3271_v46, %v3271_v46  ;;  %v3498_v13 = vsel %vm7605_vm6, %v3271_v46, 0.0  ;;  %v3565_v38 = vmul.f32 %v3271_v46, %v3271_v46  ;;  %v4196_v55 = vpop.f32.mrf.mxu0  ;;  %v3616_v57 = vsel %vm7598_vm2, %v3567_v44, 0.0  ;;  %vm7623_vm6 = vmmov %vm7598_vm2  ;;  %v7637_v44 = vld [vmem:[#allocation26_spill] sm:$0xff] }
 0x23b   : > { %v3499_v58 = vadd.f32 %v3498_v13, %v3497_v11  ;;  %v3274_v48 = vsel %vm7607_vm11, %v4196_v55, 0.0  ;;  %vm7625_vm11 = vnez %v7624_v21 }
 0x23c   : > { %3451 = vst.msk [vmem:[%s6711_s10 + $0x30] sm:$0xf] %vm7608_vm8, %v4035_v24  ;;  %v3612_v26 = vsel %vm7609_vm15, %v3565_v38, 0.0  ;;  %v4038_v63 = vpack.c.bf16 %v3274_v48, %v3274_v48  ;;  %v3167_v18 = vpop.f32.mrf.mxu0  ;;  %v3568_v42 = vmul.f32 %v3274_v48, %v3274_v48  ;;  %v3504_v20 = vsel %vm7617_vm5, %v3274_v48, 0.0  ;;  %vm7626_vm8 = vmmov %vm7585_vm0 }
 0x23d   : > { %v3613_v56 = vadd.f32 %v3612_v26, %v3611_v4  ;;  %v3272_v45 = vsel %vm7611_vm14, %v3167_v18, 0.0  ;;  %vm7627_vm15 = vmmov %vm7598_vm2  ;;  %vm7629_vm14 = vnez %v7628_v9 }
 0x23e   : > { %3454 = vst.msk [vmem:[%s6711_s10 + $0x3c] sm:$0xf] %vm7612_vm1, %v4038_v63  ;;  %v4036_v22 = vpack.c.bf16 %v3272_v45, %v3272_v45  ;;  %v3500_v61 = vsel %vm7613_vm13, %v3272_v45, 0.0  ;;  %v3566_v25 = vmul.f32 %v3272_v45, %v3272_v45  ;;  %v3618_v28 = vsel %vm7618_vm7, %v3568_v42, 0.0  ;;  %vm7630_vm1 = vmmov %vm7585_vm0 }
 0x23f   : > { %v3501_v12 = vadd.f32 %v3500_v61, %v3499_v58  ;;  %vm7631_vm13 = vmmov %vm7598_vm2 }
 0x240   : > { %3452 = vst.msk [vmem:[%s6711_s10 + $0x34] sm:$0xf] %vm7615_vm4, %v4036_v22  ;;  %v3614_v50 = vsel %vm7616_vm12, %v3566_v25, 0.0  ;;  %vm7633_vm4 = vmmov %vm7585_vm0 }
 0x241   : > { %v3503_v15 = vadd.f32 %v3502_v0, %v3501_v12  ;;  %v3615_v59 = vadd.f32 %v3614_v50, %v3613_v56  ;;  %vm7634_vm12 = vmmov %vm7598_vm2  ;;  %v7639_v12 = vld [vmem:[#allocation24_spill] sm:$0xff] }
 0x242   : > { %vm7635_vm5 = vmmov %vm7598_vm2 }
 0x243   : > { %v3617_v39 = vadd.f32 %v3616_v57, %v3615_v59  ;;  %v3505_v17 = vadd.f32 %v3504_v20, %v3503_v15  ;;  %vm7636_vm7 = vmmov %vm7598_vm2  ;;  %v7642_v20 = vld [vmem:[#allocation28_spill] sm:$0xff] }
 0x245   : > { %v3619_v53 = vadd.f32 %v3618_v28, %v3617_v39 }
 0x256   : > { %v4199_v14 = vpop.f32.mrf.mxu0 }
 0x257   : > { %v3277_v19 = vsel %vm7620_vm9, %v4199_v14, 0.0  ;;  %vm7638_vm9 = vnez %v7637_v44 }
 0x258   : > { %v4041_v52 = vpack.c.bf16 %v3277_v19, %v3277_v19  ;;  %v3180_v2 = vpop.f32.mrf.mxu0  ;;  %v3571_v29 = vmul.f32 %v3277_v19, %v3277_v19  ;;  %v3510_v13 = vsel %vm7632_vm10, %v3277_v19, 0.0  ;;  %vm7650_vm10 = vmmov %vm7598_vm2 }
 0x259   : > { %v3275_v27 = vsel %vm7622_vm3, %v3180_v2, 0.0  ;;  %vm7640_vm3 = vnez %v7639_v12 }
 0x25a   : > { %3457 = vst.msk [vmem:[%s6711_s10 + $0x48] sm:$0xf] %vm7585_vm0, %v4041_v52  ;;  %v4039_v34 = vpack.c.bf16 %v3275_v27, %v3275_v27  ;;  %v3506_v51 = vsel %vm7623_vm6, %v3275_v27, 0.0  ;;  %v3569_v3 = vmul.f32 %v3275_v27, %v3275_v27  ;;  %v4200_v36 = vpop.f32.mrf.mxu0  ;;  %v3624_v48 = vsel %vm7598_vm2, %v3571_v29, 0.0  ;;  %vm7641_vm6 = vmmov %vm7598_vm2 }
 0x25b   : > { %v3507_v23 = vadd.f32 %v3506_v51, %v3505_v17  ;;  %v3278_v7 = vsel %vm7625_vm11, %v4200_v36, 0.0  ;;  %vm7643_vm11 = vnez %v7642_v20 }
 0x25c   : > { %3455 = vst.msk [vmem:[%s6711_s10 + $0x40] sm:$0xf] %vm7626_vm8, %v4039_v34  ;;  %v3620_v11 = vsel %vm7627_vm15, %v3569_v3, 0.0  ;;  %v4042_v32 = vpack.c.bf16 %v3278_v7, %v3278_v7  ;;  %v3183_v4 = vpop.f32.mrf.mxu0  ;;  %v3572_v38 = vmul.f32 %v3278_v7, %v3278_v7  ;;  %v3512_v26 = vsel %vm7635_vm5, %v3278_v7, 0.0  ;;  %vm7644_vm8 = vmmov %vm7585_vm0 }
 0x25d   : > { %v3621_v37 = vadd.f32 %v3620_v11, %v3619_v53  ;;  %v3276_v10 = vsel %vm7629_vm14, %v3183_v4, 0.0  ;;  %vm7645_vm15 = vmmov %vm7598_vm2  ;;  %vm7647_vm14 = vnez %v7646_v6 }
 0x25e   : > { %3458 = vst.msk [vmem:[%s6711_s10 + $0x4c] sm:$0xf] %vm7630_vm1, %v4042_v32  ;;  %v4040_v49 = vpack.c.bf16 %v3276_v10, %v3276_v10  ;;  %v3508_v43 = vsel %vm7631_vm13, %v3276_v10, 0.0  ;;  %v3570_v46 = vmul.f32 %v3276_v10, %v3276_v10  ;;  %v3626_v56 = vsel %vm7636_vm7, %v3572_v38, 0.0  ;;  %vm7648_vm1 = vmmov %vm7585_vm0 }
 0x25f   : > { %v3509_v24 = vadd.f32 %v3508_v43, %v3507_v23  ;;  %vm7649_vm13 = vmmov %vm7598_vm2 }
 0x260   : > { %3456 = vst.msk [vmem:[%s6711_s10 + $0x44] sm:$0xf] %vm7633_vm4, %v4040_v49  ;;  %v3622_v55 = vsel %vm7634_vm12, %v3570_v46, 0.0  ;;  %vm7651_vm4 = vmmov %vm7585_vm0  ;;  %v7656_v46 = vld [vmem:[#allocation29_spill] sm:$0xff] }
 0x261   : > { %v3511_v58 = vadd.f32 %v3510_v13, %v3509_v24  ;;  %v3623_v8 = vadd.f32 %v3622_v55, %v3621_v37  ;;  %vm7652_vm12 = vmmov %vm7598_vm2 }
 0x262   : > { %vm7653_vm5 = vmmov %vm7598_vm2 }
 0x263   : > { %v3625_v63 = vadd.f32 %v3624_v48, %v3623_v8  ;;  %v3513_v18 = vadd.f32 %v3512_v26, %v3511_v58  ;;  %vm7654_vm7 = vmmov %vm7598_vm2 }
 0x265   : > { %v3627_v31 = vadd.f32 %v3626_v56, %v3625_v63 }
 0x274   : > { %v4203_v45 = vpop.f32.mrf.mxu1 }
 0x275   : > { %v3281_v22 = vsel %vm7638_vm9, %v4203_v45, 0.0  ;;  %vm7655_vm9 = vnez %v7284_v54 }
 0x276   : > { %v4045_v61 = vpack.c.bf16 %v3281_v22, %v3281_v22  ;;  %v3196_v25 = vpop.f32.mrf.mxu1  ;;  %v3575_v52 = vmul.f32 %v3281_v22, %v3281_v22  ;;  %v3518_v51 = vsel %vm7650_vm10, %v3281_v22, 0.0  ;;  %vm7665_vm10 = vmmov %vm7585_vm0 }
 0x277   : > { %v3279_v0 = vsel %vm7640_vm3, %v3196_v25, 0.0  ;;  %vm7657_vm3 = vnez %v7656_v46 }
 0x278   : > { %3461 = vst.msk [vmem:[%s6711_s10 + $0x58] sm:$0xf] %vm7585_vm0, %v4045_v61  ;;  %v4043_v42 = vpack.c.bf16 %v3279_v0, %v3279_v0  ;;  %v3514_v50 = vsel %vm7641_vm6, %v3279_v0, 0.0  ;;  %v3573_v15 = vmul.f32 %v3279_v0, %v3279_v0  ;;  %v4204_v59 = vpop.f32.mrf.mxu1  ;;  %v3632_v7 = vsel %vm7598_vm2, %v3575_v52, 0.0 }
 0x279   : > { %v3515_v57 = vadd.f32 %v3514_v50, %v3513_v18  ;;  %v3282_v39 = vsel %vm7643_vm11, %v4204_v59, 0.0  ;;  %vm7658_vm6 = vnez %v7296_v62  ;;  %vm7659_vm11 = vmmov %vm7585_vm0  ;;  %vm7668_vm2 = vnez %v7333_v5 }
 0x27a   : > { %3459 = vst.msk [vmem:[%s6711_s10 + $0x50] sm:$0xf] %vm7644_vm8, %v4043_v42  ;;  %v3628_v17 = vsel %vm7645_vm15, %v3573_v15, 0.0  ;;  %v4046_v28 = vpack.c.bf16 %v3282_v39, %v3282_v39  ;;  %v3199_v53 = vpop.f32.mrf.mxu1  ;;  %v3576_v3 = vmul.f32 %v3282_v39, %v3282_v39  ;;  %v3520_v11 = vsel %vm7653_vm5, %v3282_v39, 0.0  ;;  %vm7661_vm15 = vmmov %vm7585_vm0 }
 0x27b   : > { %v3629_v14 = vadd.f32 %v3628_v17, %v3627_v31  ;;  %v3280_v19 = vsel %vm7647_vm14, %v3199_v53, 0.0  ;;  %vm7660_vm8 = vnez %v7282_v41  ;;  %vm7662_vm14 = vmmov %vm7585_vm0 }
 0x27c   : > { %3462 = vst.msk [vmem:[%s6711_s10 + $0x5c] sm:$0xf] %vm7648_vm1, %v4046_v28  ;;  %v4044_v2 = vpack.c.bf16 %v3280_v19, %v3280_v19  ;;  %v3516_v33 = vsel %vm7649_vm13, %v3280_v19, 0.0  ;;  %v3574_v27 = vmul.f32 %v3280_v19, %v3280_v19  ;;  %v3634_v37 = vsel %vm7654_vm7, %v3576_v3, 0.0  ;;  %vm7669_vm5 = vmmov %vm7585_vm0 }
 0x27d   : > { %v3517_v34 = vadd.f32 %v3516_v33, %v3515_v57  ;;  %vm7663_vm1 = vnez %v7343_v16  ;;  %vm7664_vm13 = vnez %v7319_v1  ;;  %vm7670_vm7 = vmmov %vm7585_vm0 }
 0x27e   : > { %3460 = vst.msk [vmem:[%s6711_s10 + $0x54] sm:$0xf] %vm7651_vm4, %v4044_v2  ;;  %v3630_v36 = vsel %vm7652_vm12, %v3574_v27, 0.0  ;;  %vm7666_vm4 = vnez %v7353_v60  ;;  %vm7667_vm12 = vmmov %vm7585_vm0 }
 0x27f   : > { %v3519_v23 = vadd.f32 %v3518_v51, %v3517_v34  ;;  %v3631_v21 = vadd.f32 %v3630_v36, %v3629_v14 }
 0x281   : > { %v3633_v32 = vadd.f32 %v3632_v7, %v3631_v21  ;;  %v3521_v4 = vadd.f32 %v3520_v11, %v3519_v23 }
 0x283   : > { %v3635_v9 = vadd.f32 %v3634_v37, %v3633_v32 }
 0x295   : > { %v4207_v10 = vpop.f32.mrf.mxu1 }
 0x296   : > { %v3285_v29 = vsel %vm7655_vm9, %v4207_v10, 0.0  ;;  %vm7671_vm9 = vcmask 64512  }
 0x297   : > { %v4049_v49 = vpack.c.bf16 %v3285_v29, %v3285_v29  ;;  %v3212_v43 = vpop.f32.mrf.mxu1  ;;  %v3579_v5 = vmul.f32 %v3285_v29, %v3285_v29 }
 0x298   : > { %v3283_v24 = vsel %vm7657_vm3, %v3212_v43, 0.0  ;;  %vm7672_vm3 = vmmov %vm7671_vm9 }
 0x299   : > { %3465 = vst.msk [vmem:[%s6711_s10 + $0x68] sm:$0xf] %vm7585_vm0, %v4049_v49  ;;  %v4047_v13 = vpack.c.bf16 %v3283_v24, %v3283_v24  ;;  %v4208_v38 = vpop.f32.mrf.mxu1  ;;  %v3577_v1 = vmul.f32 %v3283_v24, %v3283_v24  ;;  %v3522_v25 = vsel %vm7671_vm9, %v3283_v24, 0.0  ;;  %vm7673_vm0 = vmmov %vm7672_vm3 }
 0x29a   : > { %v3286_v55 = vsel %vm7658_vm6, %v4208_v38, 0.0  ;;  %v3523_v42 = vadd.f32 %v3522_v25, %v3521_v4  ;;  %vm7674_vm6 = vmmov %vm7673_vm0 }
 0x29b   : > { %3463 = vst.msk [vmem:[%s6711_s10 + $0x60] sm:$0xf] %vm7659_vm11, %v4047_v13  ;;  %v4050_v58 = vpack.c.bf16 %v3286_v55, %v3286_v55  ;;  %v3215_v8 = vpop.f32.mrf.mxu1  ;;  %v3636_v0 = vsel %vm7672_vm3, %v3577_v1, 0.0  ;;  %vm7675_vm11 = vmmov %vm7673_vm0  ;;  %v3580_v28 = vmul.f32 %v3286_v55, %v3286_v55  ;;  %vm7688_vm3 = vcmask 60416  }
 0x29c   : > { %v3284_v54 = vsel %vm7660_vm8, %v3215_v8, 0.0  ;;  %v3637_v15 = vadd.f32 %v3636_v0, %v3635_v9  ;;  %v3526_v20 = vsel %vm7675_vm11, %v3285_v29, 0.0  ;;  %vm7676_vm8 = vmmov %vm7673_vm0 }
 0x29d   : > { %3466 = vst.msk [vmem:[%s6711_s10 + $0x6c] sm:$0xf] %vm7661_vm15, %v4050_v58  ;;  %v4048_v48 = vpack.c.bf16 %v3284_v54, %v3284_v54  ;;  %v3578_v12 = vmul.f32 %v3284_v54, %v3284_v54  ;;  %v3524_v60 = vsel %vm7673_vm0, %v3284_v54, 0.0  ;;  %v3640_v17 = vsel %vm7676_vm8, %v3579_v5, 0.0  ;;  %vm7677_vm15 = vmmov %vm7673_vm0 }
 0x29e   : > { %v3525_v59 = vadd.f32 %v3524_v60, %v3523_v42  ;;  %v3528_v6 = vsel %vm7677_vm15, %v3286_v55, 0.0  ;;  %vm7687_vm9 = vmmov %vm7673_vm0 }
 0x29f   : > { %3464 = vst.msk [vmem:[%s6711_s10 + $0x64] sm:$0xf] %vm7662_vm14, %v4048_v48  ;;  %v3638_v50 = vsel %vm7674_vm6, %v3578_v12, 0.0  ;;  %vm7678_vm14 = vmmov %vm7673_vm0  ;;  %vm7689_vm6 = vnez %v7402_v47 }
 0x2a0   : > { %v3639_v57 = vadd.f32 %v3638_v50, %v3637_v15  ;;  %v3527_v39 = vadd.f32 %v3526_v20, %v3525_v59  ;;  %vm7690_vm11 = vmmov %vm7673_vm0 }
 0x2a1   : > { %vm7691_vm8 = vmmov %vm7688_vm3 }
 0x2a2   : > { %v3641_v14 = vadd.f32 %v3640_v17, %v3639_v57  ;;  %v3529_v2 = vadd.f32 %v3528_v6, %v3527_v39  ;;  %vm7692_vm15 = vmmov %vm7673_vm0 }
 0x2b9   : > { %v4211_v26 = vpop.f32.mrf.mxu1 }
 0x2ba   : > { %v3289_v62 = vsel %vm7663_vm1, %v4211_v26, 0.0  ;;  %vm7679_vm1 = vmmov %vm7673_vm0 }
 0x2bb   : > { %v4053_v63 = vpack.c.bf16 %v3289_v62, %v3289_v62  ;;  %v3228_v18 = vpop.f32.mrf.mxu1  ;;  %v3642_v33 = vsel %vm7679_vm1, %v3580_v28, 0.0  ;;  %v3583_v7 = vmul.f32 %v3289_v62, %v3289_v62  ;;  %vm7694_vm1 = vmmov %vm7688_vm3 }
 0x2bc   : > { %v3287_v56 = vsel %vm7664_vm13, %v3228_v18, 0.0  ;;  %vm7680_vm13 = vmmov %vm7673_vm0  ;;  %v3643_v3 = vadd.f32 %v3642_v33, %v3641_v14 }
 0x2bd   : > { %3469 = vst.msk [vmem:[%s6711_s10 + $0x78] sm:$0xf] %vm7665_vm10, %v4053_v63  ;;  %v4051_v41 = vpack.c.bf16 %v3287_v56, %v3287_v56  ;;  %v4212_v31 = vpop.f32.mrf.mxu1  ;;  %v3581_v53 = vmul.f32 %v3287_v56, %v3287_v56  ;;  %v3530_v19 = vsel %vm7678_vm14, %v3287_v56, 0.0  ;;  %vm7681_vm10 = vmmov %vm7673_vm0  ;;  %vm7693_vm14 = vnez %v7398_v30 }
 0x2be   : > { %v3290_v45 = vsel %vm7666_vm4, %v4212_v31, 0.0  ;;  %v3531_v51 = vadd.f32 %v3530_v19, %v3529_v2  ;;  %vm7682_vm4 = vmmov %vm7673_vm0 }
 0x2bf   : > { %3467 = vst.msk [vmem:[%s6711_s10 + $0x70] sm:$0xf] %vm7667_vm12, %v4051_v41  ;;  %v4054_v44 = vpack.c.bf16 %v3290_v45, %v3290_v45  ;;  %v3231_v22 = vpop.f32.mrf.mxu1  ;;  %v3644_v27 = vsel %vm7680_vm13, %v3581_v53, 0.0  ;;  %vm7683_vm12 = vmmov %vm7673_vm0  ;;  %v3584_v29 = vmul.f32 %v3290_v45, %v3290_v45  ;;  %v3536_v13 = vsel %vm7687_vm9, %v3290_v45, 0.0 }
 0x2c0   : > { %v3288_v16 = vsel %vm7668_vm2, %v3231_v22, 0.0  ;;  %v3645_v23 = vadd.f32 %v3644_v27, %v3643_v3  ;;  %v3534_v32 = vsel %vm7683_vm12, %v3289_v62, 0.0  ;;  %vm7684_vm2 = vnez %v7400_v40  ;;  %vm7695_vm13 = vmmov %vm7673_vm0 }
 0x2c1   : > { %3470 = vst.msk [vmem:[%s6711_s10 + $0x7c] sm:$0xf] %vm7669_vm5, %v4054_v44  ;;  %v4052_v61 = vpack.c.bf16 %v3288_v16, %v3288_v16  ;;  %v3582_v52 = vmul.f32 %v3288_v16, %v3288_v16  ;;  %v3532_v34 = vsel %vm7681_vm10, %v3288_v16, 0.0  ;;  %vm7685_vm5 = vmmov %vm7673_vm0  ;;  %v3650_v48 = vsel %vm7690_vm11, %v3584_v29, 0.0 }
 0x2c2   : > { %v3533_v21 = vadd.f32 %v3532_v34, %v3531_v51  ;;  %v3648_v10 = vsel %vm7685_vm5, %v3583_v7, 0.0  ;;  %vm7696_vm10 = vmmov %vm7673_vm0  ;;  %vm3667_vm9 = vcmask 57344  }
 0x2c3   : > { %3468 = vst.msk [vmem:[%s6711_s10 + $0x74] sm:$0xf] %vm7670_vm7, %v4052_v61  ;;  %v3646_v36 = vsel %vm7682_vm4, %v3582_v52, 0.0  ;;  %vm7686_vm7 = vnez %v7367_v35  ;;  %vm7697_vm4 = vmmov %vm7694_vm1 }
 0x2c4   : > { %v3647_v11 = vadd.f32 %v3646_v36, %v3645_v23  ;;  %v3535_v37 = vadd.f32 %v3534_v32, %v3533_v21  ;;  %vm7698_vm12 = vmmov %vm7673_vm0 }
 0x2c5   : > { %vm7700_vm5 = vmmov %vm7673_vm0 }
 0x2c6   : > { %v3649_v46 = vadd.f32 %v3648_v10, %v3647_v11  ;;  %v3537_v8 = vadd.f32 %v3536_v13, %v3535_v37 }
 0x2c8   : > { %v3651_v18 = vadd.f32 %v3650_v48, %v3649_v46 }
 0x2dc   : > { %v4215_v4 = vpop.f32.mrf.mxu1 }
 0x2dd   : > { %v3293_v9 = vsel %vm7684_vm2, %v4215_v4, 0.0  ;;  %vm7699_vm2 = vmmov %vm7673_vm0 }
 0x2de   : > { %v4057_v49 = vpack.c.bf16 %v3293_v9, %v3293_v9  ;;  %v3244_v43 = vpop.f32.mrf.mxu1  ;;  %v3587_v41 = vmul.f32 %v3293_v9, %v3293_v9  ;;  %v3542_v16 = vsel %vm7696_vm10, %v3293_v9, 0.0 }
 0x2df   : > { %v3291_v24 = vsel %vm7686_vm7, %v3244_v43, 0.0  ;;  %vm7701_vm7 = vmmov %vm7673_vm0 }
 0x2e0   : > { %3473 = vst.msk [vmem:[%s6711_s10 + $0x88] sm:$0xf] %vm7688_vm3, %v4057_v49  ;;  %v4055_v38 = vpack.c.bf16 %v3291_v24, %v3291_v24  ;;  %v3538_v55 = vsel %vm7673_vm0, %v3291_v24, 0.0  ;;  %v3585_v40 = vmul.f32 %v3291_v24, %v3291_v24  ;;  %v4216_v58 = vpop.f32.mrf.mxu1  ;;  %v3656_v30 = vsel %vm7699_vm2, %v3587_v41, 0.0 }
 0x2e1   : > { %v3294_v54 = vsel %vm7689_vm6, %v4216_v58, 0.0  ;;  %v3539_v63 = vadd.f32 %v3538_v55, %v3537_v8 }
 0x2e2   : > { %3471 = vst.msk [vmem:[%s6711_s10 + $0x80] sm:$0xf] %vm7691_vm8, %v4055_v38  ;;  %v3652_v35 = vsel %vm7692_vm15, %v3585_v40, 0.0  ;;  %v4058_v26 = vpack.c.bf16 %v3294_v54, %v3294_v54  ;;  %v3247_v62 = vpop.f32.mrf.mxu1  ;;  %v3588_v61 = vmul.f32 %v3294_v54, %v3294_v54  ;;  %v3544_v0 = vsel %vm7700_vm5, %v3294_v54, 0.0 }
 0x2e3   : > { %v3292_v56 = vsel %vm7693_vm14, %v3247_v62, 0.0  ;;  %v3653_v44 = vadd.f32 %v3652_v35, %v3651_v18 }
 0x2e4   : > { %3474 = vst.msk [vmem:[%s6711_s10 + $0x8c] sm:$0xf] %vm7694_vm1, %v4058_v26  ;;  %v4056_v31 = vpack.c.bf16 %v3292_v56, %v3292_v56  ;;  %v3540_v47 = vsel %vm7695_vm13, %v3292_v56, 0.0  ;;  %v3586_v45 = vmul.f32 %v3292_v56, %v3292_v56  ;;  %v3658_v50 = vsel %vm7701_vm7, %v3588_v61, 0.0 }
 0x2e5   : > { %v3541_v22 = vadd.f32 %v3540_v47, %v3539_v63 }
 0x2e6   : > { %3472 = vst.msk [vmem:[%s6711_s10 + $0x84] sm:$0xf] %vm7697_vm4, %v4056_v31  ;;  %v3654_v1 = vsel %vm7698_vm12, %v3586_v45, 0.0 }
 0x2e7   : > { %v3543_v25 = vadd.f32 %v3542_v16, %v3541_v22  ;;  %v3655_v12 = vadd.f32 %v3654_v1, %v3653_v44 }
 0x2e9   : > { %v3545_v60 = vadd.f32 %v3544_v0, %v3543_v25  ;;  %v3657_v42 = vadd.f32 %v3656_v30, %v3655_v12 }
 0x2eb   : > { %v3546_v15 = vrot.slane %v3545_v60, 4  ;;  %v3659_v59 = vadd.f32 %v3658_v50, %v3657_v42 }
 0x2ed   : > { %v3547_v5 = vadd.f32 %v3546_v15, %v3545_v60  ;;  %v3660_v57 = vrot.slane %v3659_v59, 4 }
 0x2ef   : > { %v3548_v20 = vrot.slane %v3547_v5, 2  ;;  %v3661_v39 = vadd.f32 %v3660_v57, %v3659_v59 }
 0x2f1   : > { %v3549_v17 = vadd.f32 %v3548_v20, %v3547_v5  ;;  %v3662_v28 = vrot.slane %v3661_v39, 2 }
 0x2f3   : > { %v3550_v53 = vrot.slane %v3549_v17, 1  ;;  %v3663_v14 = vadd.f32 %v3662_v28, %v3661_v39 }
 0x2f5   : > { %v3551_v6 = vadd.f32 %v3550_v53, %v3549_v17  ;;  %v3664_v19 = vrot.slane %v3663_v14, 1 }
 0x2f7   : > { %v3665_v52 = vadd.f32 %v3664_v19, %v3663_v14  ;;  %3668 = vst.msk [vmem:[%s315_s12] sm:$0x1] %vm3667_vm9, %v3551_v6 }
 0x2f9   : > { %3669 = vst.msk [vmem:[%s321_s15] sm:$0x1] %vm3667_vm9, %v3665_v52 }
 0x2fa PF: > { %s17_s23 = sadd.s32 1, %s4388_s23   ;;  %s7702_s21 = smov %s4384_s22 }
 0x2fb   : > { %p14_p5 = scmp.ge.s32.totalorder %s17_s23, 4   ;;  %s7703_s22 = smov %s7705_s24 }
 0x2fd   :  { %16 = sbr.rel (!%p14_p5) target bundleno = 2 (0x2), region = 93 }

</bundles_post_ra>
